<compile_context>
chip_gen: v6e
topology: v6e:2x2x1
jax: 0.10.0
libtpu: 0.0.40
codegen_flags: <defaults>
</compile_context>

<pallas_src>
import functools

import jax
import jax.numpy as jnp
from jax.experimental import pallas as pl
from jax.experimental.pallas import tpu as pltpu


def _conv_bn_lrelu_kernel(p_ref, w_ref, shift_ref, o_ref, acc_ref, *,
                          plan, m_rows, neg_slope):
    """One (batch, depth-group) step: 5 big matmuls + BN shift + LeakyReLU.

    p_ref     : (1, 1, R_in, 12*Cin) bf16  flat phase rows (see wrapper).
    w_ref     : (27*Cin, Cout)       bf16  packed, BN-scale-folded weights.
    shift_ref : (1, Cout)            f32   BN shift (beta - mean*scale).
    o_ref     : (1, 1, M, Cout)      bf16  padded output rows.
    acc_ref   : (M, Cout)            f32   VMEM accumulator scratch.
    plan      : static tuple of (row_off, chan_off, K, weight_row_off).
    """
    for i, (s, c0, kk, wr) in enumerate(plan):
        lhs = p_ref[0, 0, s:s + m_rows, c0:c0 + kk]     # contiguous, aligned slice
        rhs = w_ref[wr:wr + kk, :]
        contrib = jnp.dot(lhs, rhs, preferred_element_type=jnp.float32)
        if i == 0:
            acc_ref[...] = contrib
        else:
            acc_ref[...] += contrib
    y = acc_ref[...] + shift_ref[...]                   # folded eval-mode BatchNorm3d
    o_ref[0, 0] = jnp.where(y >= 0, y, neg_slope * y).astype(o_ref.dtype)


def conv_block_forward(x, w, bn_gamma, bn_beta, bn_mean, bn_var, *,
                       eps=1e-5, negative_slope=0.01, depth_tile=None):
    """ConvBlock.forward: Conv3d(k=3,s=2,p=1,bias=False) -> BatchNorm3d -> LeakyReLU.

    x : (B, Cin, D, H, W) float32   (PyTorch NCDHW layout)
    w : (Cout, Cin, 3, 3, 3)        (PyTorch Conv3d weight layout)
    Returns (B, Cout, D//2, H//2, W//2) bfloat16.
    """
    B, Cin, D, H, W = x.shape
    Cout = w.shape[0]
    assert D % 2 == 0 and H % 2 == 0 and W % 2 == 0, "even spatial dims assumed"
    # TODO(synk): odd D/H/W (legal for k=3, s=2, p=1) are not supported.
    Do, Ho, Wo = D // 2, H // 2, W // 2
    DT = Do if depth_tile is None else depth_tile
    assert Do % DT == 0
    Gd = Do // DT

    # ---- fold BatchNorm (eval-mode running stats) into the conv weight --------
    # TODO(synk): BatchNorm3d training-mode batch statistics are not implemented.
    scale = bn_gamma / jnp.sqrt(bn_var + eps)                       # (Cout,)
    shift = (bn_beta - bn_mean * scale).reshape(1, Cout).astype(jnp.float32)
    w27 = jnp.transpose(w, (2, 3, 4, 1, 0)).reshape(27, Cin, Cout)  # tap kd*9+kh*3+kw
    w27 = (w27 * scale[None, None, :]).astype(jnp.bfloat16)

    # ---- XLA pre-pass: pad once, stack D/H parities + the 3 W taps on channels --
    # channel group q = ph*6 + pd*3 + kw  (ph/pd = H/D parity, kw = W tap index)
    # TODO(synk): this relayout is a one-shot XLA pass (~1.7x of the input read +
    # written once); for bandwidth-bound production sizes it could be moved into
    # the kernel with manual strided DMA.
    x_cl = jnp.transpose(x, (0, 2, 3, 4, 1)).astype(jnp.bfloat16)   # NDHWC
    xp = jnp.pad(x_cl, ((0, 0), (1, 1), (1, 1), (1, 1), (0, 0)))
    parts = []
    for ph in (0, 1):
        for pd in (0, 1):
            for kw in (0, 1, 2):
                parts.append(xp[:, pd::2, ph::2, kw:kw + 2 * Wo:2, :])
    phx = jnp.concatenate(parts, axis=-1)            # (B, Do+1, Ho+1, Wo, 12*Cin)
    CQ = 12 * Cin
    Sp = (Ho + 1) * Wo                               # flat rows per depth plane
    phx = phx.reshape(B, Do + 1, Sp, CQ)

    # depth groups of DT planes + one halo plane, flattened to a single row axis
    if Gd == 1:
        grp = phx[:, None]                           # (B, 1, Do+1, Sp, CQ)
    else:
        grp = jnp.stack([phx[:, g * DT:g * DT + DT + 1] for g in range(Gd)], axis=1)
    grp = grp.reshape(B, Gd, (DT + 1) * Sp, CQ)
    M = DT * Sp                                      # padded output rows per step
    R_in = M + Sp + Wo                               # largest tap row-offset = Sp+Wo
    grp = jnp.pad(grp, ((0, 0), (0, 0), (0, R_in - (DT + 1) * Sp), (0, 0)))

    # ---- static matmul plan: 5 contiguous (row, channel) slabs cover all 27 taps
    # (row offset s = od*Sp + oh*Wo ; channel run [q0*Cin, (q0+nq)*Cin))
    groups = ((0, 0, 0, 12), (0, 1, 0, 6), (1, 0, 0, 3), (1, 0, 6, 3), (1, 1, 0, 3))
    plan, w_rows, woff = [], [], 0
    for od, oh, q0, nq in groups:
        for q in range(q0, q0 + nq):
            ph_, pd_, kw_ = q // 6, (q % 6) // 3, q % 3
            kd = pd_ if od == 0 else 2
            kh = ph_ if oh == 0 else 2
            w_rows.append(w27[kd * 9 + kh * 3 + kw_])
        plan.append((od * Sp + oh * Wo, q0 * Cin, nq * Cin, woff))
        woff += nq * Cin
    w_packed = jnp.concatenate(w_rows, axis=0)       # (27*Cin, Cout), group-ordered

    kernel = functools.partial(_conv_bn_lrelu_kernel, plan=tuple(plan),
                               m_rows=M, neg_slope=negative_slope)

    out = pl.pallas_call(
        kernel,
        out_shape=jax.ShapeDtypeStruct((B, Gd, M, Cout), jnp.bfloat16),
        grid=(B, Gd),
        in_specs=[
            pl.BlockSpec((1, 1, R_in, CQ), lambda b, g: (b, g, 0, 0)),
            pl.BlockSpec((27 * Cin, Cout), lambda b, g: (0, 0)),   # VMEM-resident
            pl.BlockSpec((1, Cout), lambda b, g: (0, 0)),
        ],
        out_specs=pl.BlockSpec((1, 1, M, Cout), lambda b, g: (b, g, 0, 0)),
        scratch_shapes=[pltpu.VMEM((M, Cout), jnp.float32)],
        compiler_params=pltpu.CompilerParams(
            dimension_semantics=("parallel", "parallel"),
            vmem_limit_bytes=32 * 1024 * 1024),
    )(grp, w_packed, shift)

    # strip the ho == Ho padding rows and return NCDHW
    out = out.reshape(B, Gd, DT, Ho + 1, Wo, Cout)[:, :, :, :Ho]
    out = out.reshape(B, Do, Ho, Wo, Cout)
    return jnp.transpose(out, (0, 4, 1, 2, 3))


if __name__ == "__main__":
    B, D, H, W = 2, 16, 16, 16
    Cin, Cout = 64, 128

    key = jax.random.PRNGKey(0)
    kx, kw_, kg, kb, km, kv = jax.random.split(key, 6)
    x = jax.random.normal(kx, (B, Cin, D, H, W), jnp.float32)
    w = jax.random.normal(kw_, (Cout, Cin, 3, 3, 3), jnp.float32) / jnp.sqrt(27.0 * Cin)
    gamma = 1.0 + 0.1 * jax.random.normal(kg, (Cout,), jnp.float32)
    beta = 0.1 * jax.random.normal(kb, (Cout,), jnp.float32)
    r_mean = 0.1 * jax.random.normal(km, (Cout,), jnp.float32)
    r_var = jnp.abs(1.0 + 0.1 * jax.random.normal(kv, (Cout,), jnp.float32))

    fwd = jax.jit(conv_block_forward)
    out = fwd(x, w, gamma, beta, r_mean, r_var)
    jax.block_until_ready(out)
    assert out.shape == (B, Cout, D // 2, H // 2, W // 2)

    # Numerical sanity check vs XLA conv with identically folded BN
    # (bf16 operands, f32 accumulation, same epilogue).
    scale = gamma / jnp.sqrt(r_var + 1e-5)
    shift = beta - r_mean * scale
    w_folded = (w * scale[:, None, None, None, None]).astype(jnp.bfloat16)
    ref = jax.lax.conv_general_dilated(
        x.astype(jnp.bfloat16), w_folded,
        window_strides=(2, 2, 2), padding=((1, 1),) * 3,
        dimension_numbers=("NCDHW", "OIDHW", "NCDHW"),
        preferred_element_type=jnp.float32)
    ref = ref + shift.reshape(1, Cout, 1, 1, 1)
    ref = jnp.where(ref >= 0, ref, 0.01 * ref)

    err = float(jnp.max(jnp.abs(out.astype(jnp.float32) - ref)))
    assert err < 5e-2, f"max abs err {err}"
    print("KERNEL_OK")
</pallas_src>

<mosaic_0001>
module attributes {stable_mosaic.version = 11 : i64} {
  func.func @_conv_bn_lrelu_kernel(%arg0: i32, %arg1: i32, %arg2: memref<1x1x656x768xbf16, #tpu.memory_space<vmem>>, %arg3: memref<1728x128xbf16, #tpu.memory_space<vmem>>, %arg4: memref<1x128xf32, #tpu.memory_space<vmem>>, %arg5: memref<1x1x576x128xbf16, #tpu.memory_space<vmem>>, %arg6: memref<576x128xf32, #tpu.memory_space<vmem>>) attributes {dimension_semantics = [#tpu.dimension_semantics<parallel>, #tpu.dimension_semantics<parallel>], iteration_bounds = array<i64: 2, 1>, scalar_prefetch = 0 : i64, scratch_operands = 1 : i64, tpu.core_type = #tpu.core_type<tc>, window_params = [{transform_indices = @transform_0, window_bounds = array<i64: 1, 1, 656, 768>}, {pipeline_mode = #tpu.pipeline_mode<synchronous>, transform_indices = @transform_1, window_bounds = array<i64: 1728, 128>}, {pipeline_mode = #tpu.pipeline_mode<synchronous>, transform_indices = @transform_2, window_bounds = array<i64: 1, 128>}, {transform_indices = @transform_3, window_bounds = array<i64: 1, 1, 576, 128>}]} {
    %c0 = arith.constant 0 : index
    %c0_0 = arith.constant 0 : index
    %c0_1 = arith.constant 0 : index
    %c0_2 = arith.constant 0 : index
    %0 = vector.load %arg2[%c0, %c0_0, %c0_1, %c0_2] : memref<1x1x656x768xbf16, #tpu.memory_space<vmem>>, vector<1x1x576x768xbf16>
    %1 = vector.shape_cast %0 : vector<1x1x576x768xbf16> to vector<576x768xbf16>
    %c0_3 = arith.constant 0 : index
    %c0_4 = arith.constant 0 : index
    %2 = vector.load %arg3[%c0_3, %c0_4] : memref<1728x128xbf16, #tpu.memory_space<vmem>>, vector<768x128xbf16>
    %cst = arith.constant dense<0.000000e+00> : vector<576x128xf32>
    %3 = tpu.matmul %1, %2, %cst {dimension_numbers = #tpu.dot_dimension_numbers<[1], [0], [0], [1], [0, 0, 1, 1], [], []>} : vector<576x768xbf16>, vector<768x128xbf16>, vector<576x128xf32> -> vector<576x128xf32>
    %c0_5 = arith.constant 0 : index
    %c0_6 = arith.constant 0 : index
    %4 = vector.load %arg6[%c0_5, %c0_6] : memref<576x128xf32, #tpu.memory_space<vmem>>, vector<576x128xf32>
    tpu.vector_store %arg6[%c0_5, %c0_6], %3 {strides = array<i32>} : memref<576x128xf32, #tpu.memory_space<vmem>>, vector<576x128xf32>,
    %c0_7 = arith.constant 0 : index
    %c0_8 = arith.constant 0 : index
    %c8 = arith.constant 8 : index
    %c0_9 = arith.constant 0 : index
    %5 = vector.load %arg2[%c0_7, %c0_8, %c8, %c0_9] : memref<1x1x656x768xbf16, #tpu.memory_space<vmem>>, vector<1x1x576x384xbf16>
    %6 = vector.shape_cast %5 : vector<1x1x576x384xbf16> to vector<576x384xbf16>
    %c768 = arith.constant 768 : index
    %c0_10 = arith.constant 0 : index
    %7 = vector.load %arg3[%c768, %c0_10] : memref<1728x128xbf16, #tpu.memory_space<vmem>>, vector<384x128xbf16>
    %cst_11 = arith.constant dense<0.000000e+00> : vector<576x128xf32>
    %8 = tpu.matmul %6, %7, %cst_11 {dimension_numbers = #tpu.dot_dimension_numbers<[1], [0], [0], [1], [0, 0, 1, 1], [], []>} : vector<576x384xbf16>, vector<384x128xbf16>, vector<576x128xf32> -> vector<576x128xf32>
    %c0_12 = arith.constant 0 : index
    %c0_13 = arith.constant 0 : index
    %9 = vector.load %arg6[%c0_12, %c0_13] : memref<576x128xf32, #tpu.memory_space<vmem>>, vector<576x128xf32>
    %10 = arith.addf %9, %8 : vector<576x128xf32>
    %c0_14 = arith.constant 0 : index
    %c0_15 = arith.constant 0 : index
    %11 = vector.load %arg6[%c0_14, %c0_15] : memref<576x128xf32, #tpu.memory_space<vmem>>, vector<576x128xf32>
    tpu.vector_store %arg6[%c0_14, %c0_15], %10 {strides = array<i32>} : memref<576x128xf32, #tpu.memory_space<vmem>>, vector<576x128xf32>,
    %c0_16 = arith.constant 0 : index
    %c0_17 = arith.constant 0 : index
    %c72 = arith.constant 72 : index
    %c0_18 = arith.constant 0 : index
    %12 = vector.load %arg2[%c0_16, %c0_17, %c72, %c0_18] : memref<1x1x656x768xbf16, #tpu.memory_space<vmem>>, vector<1x1x576x192xbf16>
    %13 = vector.shape_cast %12 : vector<1x1x576x192xbf16> to vector<576x192xbf16>
    %c1152 = arith.constant 1152 : index
    %c0_19 = arith.constant 0 : index
    %14 = vector.load %arg3[%c1152, %c0_19] : memref<1728x128xbf16, #tpu.memory_space<vmem>>, vector<192x128xbf16>
    %cst_20 = arith.constant dense<0.000000e+00> : vector<576x128xf32>
    %15 = tpu.matmul %13, %14, %cst_20 {dimension_numbers = #tpu.dot_dimension_numbers<[1], [0], [0], [1], [0, 0, 1, 1], [], []>} : vector<576x192xbf16>, vector<192x128xbf16>, vector<576x128xf32> -> vector<576x128xf32>
    %c0_21 = arith.constant 0 : index
    %c0_22 = arith.constant 0 : index
    %16 = vector.load %arg6[%c0_21, %c0_22] : memref<576x128xf32, #tpu.memory_space<vmem>>, vector<576x128xf32>
    %17 = arith.addf %16, %15 : vector<576x128xf32>
    %c0_23 = arith.constant 0 : index
    %c0_24 = arith.constant 0 : index
    %18 = vector.load %arg6[%c0_23, %c0_24] : memref<576x128xf32, #tpu.memory_space<vmem>>, vector<576x128xf32>
    tpu.vector_store %arg6[%c0_23, %c0_24], %17 {strides = array<i32>} : memref<576x128xf32, #tpu.memory_space<vmem>>, vector<576x128xf32>,
    %c0_25 = arith.constant 0 : index
    %c0_26 = arith.constant 0 : index
    %c72_27 = arith.constant 72 : index
    %c384 = arith.constant 384 : index
    %19 = vector.load %arg2[%c0_25, %c0_26, %c72_27, %c384] : memref<1x1x656x768xbf16, #tpu.memory_space<vmem>>, vector<1x1x576x192xbf16>
    %20 = vector.shape_cast %19 : vector<1x1x576x192xbf16> to vector<576x192xbf16>
    %c1344 = arith.constant 1344 : index
    %c0_28 = arith.constant 0 : index
    %21 = vector.load %arg3[%c1344, %c0_28] : memref<1728x128xbf16, #tpu.memory_space<vmem>>, vector<192x128xbf16>
    %cst_29 = arith.constant dense<0.000000e+00> : vector<576x128xf32>
    %22 = tpu.matmul %20, %21, %cst_29 {dimension_numbers = #tpu.dot_dimension_numbers<[1], [0], [0], [1], [0, 0, 1, 1], [], []>} : vector<576x192xbf16>, vector<192x128xbf16>, vector<576x128xf32> -> vector<576x128xf32>
    %c0_30 = arith.constant 0 : index
    %c0_31 = arith.constant 0 : index
    %23 = vector.load %arg6[%c0_30, %c0_31] : memref<576x128xf32, #tpu.memory_space<vmem>>, vector<576x128xf32>
    %24 = arith.addf %23, %22 : vector<576x128xf32>
    %c0_32 = arith.constant 0 : index
    %c0_33 = arith.constant 0 : index
    %25 = vector.load %arg6[%c0_32, %c0_33] : memref<576x128xf32, #tpu.memory_space<vmem>>, vector<576x128xf32>
    tpu.vector_store %arg6[%c0_32, %c0_33], %24 {strides = array<i32>} : memref<576x128xf32, #tpu.memory_space<vmem>>, vector<576x128xf32>,
    %c0_34 = arith.constant 0 : index
    %c0_35 = arith.constant 0 : index
    %c80 = arith.constant 80 : index
    %c0_36 = arith.constant 0 : index
    %26 = vector.load %arg2[%c0_34, %c0_35, %c80, %c0_36] : memref<1x1x656x768xbf16, #tpu.memory_space<vmem>>, vector<1x1x576x192xbf16>
    %27 = vector.shape_cast %26 : vector<1x1x576x192xbf16> to vector<576x192xbf16>
    %c1536 = arith.constant 1536 : index
    %c0_37 = arith.constant 0 : index
    %28 = vector.load %arg3[%c1536, %c0_37] : memref<1728x128xbf16, #tpu.memory_space<vmem>>, vector<192x128xbf16>
    %cst_38 = arith.constant dense<0.000000e+00> : vector<576x128xf32>
    %29 = tpu.matmul %27, %28, %cst_38 {dimension_numbers = #tpu.dot_dimension_numbers<[1], [0], [0], [1], [0, 0, 1, 1], [], []>} : vector<576x192xbf16>, vector<192x128xbf16>, vector<576x128xf32> -> vector<576x128xf32>
    %c0_39 = arith.constant 0 : index
    %c0_40 = arith.constant 0 : index
    %30 = vector.load %arg6[%c0_39, %c0_40] : memref<576x128xf32, #tpu.memory_space<vmem>>, vector<576x128xf32>
    %31 = arith.addf %30, %29 : vector<576x128xf32>
    %c0_41 = arith.constant 0 : index
    %c0_42 = arith.constant 0 : index
    %32 = vector.load %arg6[%c0_41, %c0_42] : memref<576x128xf32, #tpu.memory_space<vmem>>, vector<576x128xf32>
    tpu.vector_store %arg6[%c0_41, %c0_42], %31 {strides = array<i32>} : memref<576x128xf32, #tpu.memory_space<vmem>>, vector<576x128xf32>,
    %c0_43 = arith.constant 0 : index
    %c0_44 = arith.constant 0 : index
    %33 = vector.load %arg6[%c0_43, %c0_44] : memref<576x128xf32, #tpu.memory_space<vmem>>, vector<576x128xf32>
    %c0_45 = arith.constant 0 : index
    %c0_46 = arith.constant 0 : index
    %34 = vector.load %arg4[%c0_45, %c0_46] : memref<1x128xf32, #tpu.memory_space<vmem>>, vector<1x128xf32>
    %35 = vector.broadcast %34 : vector<1x128xf32> to vector<576x128xf32>
    %36 = arith.addf %33, %35 : vector<576x128xf32>
    %cst_47 = arith.constant 0.000000e+00 : f32
    %37 = vector.broadcast %cst_47 : f32 to vector<576x128xf32>
    %38 = arith.cmpf oge, %36, %37 : vector<576x128xf32>
    %cst_48 = arith.constant 0.00999999977 : f32
    %39 = vector.broadcast %cst_48 : f32 to vector<576x128xf32>
    %40 = arith.mulf %39, %36 : vector<576x128xf32>
    %41 = arith.select %38, %36, %40 : vector<576x128xi1>, vector<576x128xf32>
    %42 = arith.truncf %41 : vector<576x128xf32> to vector<576x128xbf16>
    %c0_49 = arith.constant 0 : index
    %c0_50 = arith.constant 0 : index
    %c0_51 = arith.constant 0 : index
    %c0_52 = arith.constant 0 : index
    %43 = vector.load %arg5[%c0_49, %c0_50, %c0_51, %c0_52] : memref<1x1x576x128xbf16, #tpu.memory_space<vmem>>, vector<1x1x576x128xbf16>
    %44 = vector.shape_cast %43 : vector<1x1x576x128xbf16> to vector<576x128xbf16>
    %45 = vector.shape_cast %42 : vector<576x128xbf16> to vector<1x1x576x128xbf16>
    tpu.vector_store %arg5[%c0_49, %c0_50, %c0_51, %c0_52], %45 {strides = array<i32>} : memref<1x1x576x128xbf16, #tpu.memory_space<vmem>>, vector<1x1x576x128xbf16>,
    return
  }
  func.func @transform_0(%arg0: i32, %arg1: i32) -> (i32, i32, i32, i32) {
    %c0_i32 = arith.constant 0 : i32
    %c0_i32_0 = arith.constant 0 : i32
    %c0_i32_1 = arith.constant 0 : i32
    return %arg0, %arg1, %c0_i32, %c0_i32_0 : i32, i32, i32, i32
  }
  func.func @transform_1(%arg0: i32, %arg1: i32) -> (i32, i32) {
    %c0_i32 = arith.constant 0 : i32
    %c0_i32_0 = arith.constant 0 : i32
    %c0_i32_1 = arith.constant 0 : i32
    return %c0_i32, %c0_i32_0 : i32, i32
  }
  func.func @transform_2(%arg0: i32, %arg1: i32) -> (i32, i32) {
    %c0_i32 = arith.constant 0 : i32
    %c0_i32_0 = arith.constant 0 : i32
    %c0_i32_1 = arith.constant 0 : i32
    return %c0_i32, %c0_i32_0 : i32, i32
  }
  func.func @transform_3(%arg0: i32, %arg1: i32) -> (i32, i32, i32, i32) {
    %c0_i32 = arith.constant 0 : i32
    %c0_i32_0 = arith.constant 0 : i32
    %c0_i32_1 = arith.constant 0 : i32
    return %arg0, %arg1, %c0_i32, %c0_i32_0 : i32, i32, i32, i32
  }
}

</mosaic_0001>

<bundles_post_ra>
// kernel: conv_block_forward.1
= control target key start
LH: loop header
LB: loop body
LE: loop exit
PB: predicated region body
PF: predicated region fallthrough
CT: control target
= control target key end

     0   :  { %s11183_s12 = smov 0   ;;  %s11185_s13 = smov 0   ;;  %s13776_s0 = inlined_call_operand.vmem [shape: bf16[2,1,656,768], index: 0, kind: input, shape index: {}]   ;;  %s13777_s1 = inlined_call_operand.vmem [shape: bf16[1728,128], index: 1, kind: input, shape index: {}]   ;;  %s13778_s2 = inlined_call_operand.vmem [shape: f32[1,128], index: 2, kind: input, shape index: {}]   ;;  %s13779_s3 = inlined_call_operand.vmem [shape: bf16[2,1,576,128], index: 3, kind: output, shape index: {}]  }
   0x1   :  { %s11187_s14 = smov 0  }
   0x2 LB: > { %s25_s15 = sadd.s32 1, %s11156_s13  ;;  %p8928_p0 = scmp.ge.s32.totalorder %s11160_s14, 1  ;;  %s11160_s14 = sphi %s11187_s14, %s13_s14   ;;  %s11156_s13 = sphi %s11185_s13, %s14308_s13   ;;  %s11152_s12 = sphi %s11183_s12, %s14307_s12  }
   0x3   : > { %p27_p1 = scmp.ge.s32.totalorder %s25_s15, 2  ;;  %p157_p2 = scmp.lt.s32.totalorder %s11160_s14, 3 }
   0x5   : > { %s14310_s15 = smov (%p27_p1, %s25_s15), 0  ;;  %p158_p3 = pnand %p8928_p0, %p157_p2 }
   0x7   : > { %161 = sbr.rel (%p158_p3) target bundleno = 1358 (0x54e), region = 32 }
   0xc   : > { %v10240_v0 = vld [vmem:[%s13777_s1 + $0x38] sm:$0xff]   ;;  %v13780_v1 = vmov 0   ;;  %v10242_v3 = vld [vmem:[%s13777_s1 + $0x30] sm:$0xff]   ;;  %v10244_v5 = vld [vmem:[%s13777_s1 + $0x28] sm:$0xff]   ;;  %p189_p4 = scmp.lt.s32.totalorder %s11152_s12, 1  ;;  %vm5185_vm0 = vcmask 523264  }
   0xd   : > { %1888 = vmatprep.subr.bf16.mxu0 %v13780_v1  ;;  %10181 = vmatprep.subr.bf16.mxu1 %v13780_v1  ;;  %v11211_v2 = vld [vmem:[%s13777_s1 + $0xb8] sm:$0xff]   ;;  %v11221_v4 = vld [vmem:[%s13777_s1 + $0xb0] sm:$0xff]   ;;  %v11232_v6 = vld [vmem:[%s13777_s1 + $0xa8] sm:$0xff]  }
   0xe   : > { %1889 = vmatpush1.bf16.msra.mxu0 %v10240_v0  ;;  %10197 = vmatpush1.bf16.msra.mxu1 %v11211_v2  ;;  %v10246_v7 = vld [vmem:[%s13777_s1 + $0x20] sm:$0xff]   ;;  %v10248_v9 = vld [vmem:[%s13777_s1 + $0x18] sm:$0xff]   ;;  %v10250_v11 = vld [vmem:[%s13777_s1 + $0x10] sm:$0xff]   ;;  %s14312_s12 = smov (!%p189_p4, %s11152_s12), 1 }
   0xf   : > { %1890 = vmatprep.subr.bf16.mxu0 %v13780_v1  ;;  %10182 = vmatprep.subr.bf16.mxu1 %v13780_v1  ;;  %v11243_v8 = vld [vmem:[%s13777_s1 + $0xa0] sm:$0xff]   ;;  %v11254_v10 = vld [vmem:[%s13777_s1 + $0x98] sm:$0xff]   ;;  %v11266_v12 = vld [vmem:[%s13777_s1 + $0x90] sm:$0xff]   ;;  %s10213_s21 = smul.u32 1968, %s14312_s12 }
  0x10   : > { %v10252_v13 = vld [vmem:[%s13777_s1 + $0x8] sm:$0xff]   ;;  %v10254_v15 = vld [vmem:[%s13777_s1] sm:$0xff]   ;;  %v10256_v17 = vld [vmem:[%s13777_s1 + $0x78] sm:$0xff]   ;;  %s10214_s16 = smul.u32 288, %s14312_s12 }
  0x11   : > { %v11280_v14 = vld [vmem:[%s13777_s1 + $0x88] sm:$0xff]   ;;  %v11292_v16 = vld [vmem:[%s13777_s1 + $0x80] sm:$0xff]   ;;  %s11298_s28 = scalar_lea.vmem %s13776_s0, %s10213_s21  ;;  %v11308_v18 = vld [vmem:[%s13777_s1 + $0xf8] sm:$0xff]  }
  0x12   : > { %1891 = vmatpush1.bf16.msra.mxu0 %v10242_v3  ;;  %10198 = vmatpush1.bf16.msra.mxu1 %v11221_v4  ;;  %v208_v19 = vld [vmem:[%s11298_s28] sm:$0xff]  ;;  %v211_v20 = vld [vmem:[%s11298_s28 + $0x18] sm:$0xff]  ;;  %v10258_v23 = vld [vmem:[%s13777_s1 + $0x70] sm:$0xff]   ;;  %s13493_s18 = scalar_lea.vmem %s13779_s3, %s10214_s16 }
  0x13   : > { %1892 = vmatprep.subr.bf16.mxu0 %v13780_v1  ;;  %10183 = vmatprep.subr.bf16.mxu1 %v13780_v1  ;;  %v8932_v21 = vcombine.high %v208_v19, %v211_v20  ;;  %v10276_v22 = vld [vmem:[%s11298_s28 + $0x1bc] ss:$24 sps:$4 sm:$0xff]   ;;  %v10260_v25 = vld [vmem:[%s13777_s1 + $0x68] sm:$0xff]   ;;  %v10262_v27 = vld [vmem:[%s13777_s1 + $0x60] sm:$0xff]   ;;  %v8931_v39 = vcombine.low %v208_v19, %v211_v20 }
  0x14   : > { %v11322_v24 = vld [vmem:[%s13777_s1 + $0xf0] sm:$0xff]   ;;  %2313 = vmatprep.mubr.bf16.mxu1 %v10276_v22  ;;  %v11333_v26 = vld [vmem:[%s13777_s1 + $0xe8] sm:$0xff]   ;;  %v11344_v28 = vld [vmem:[%s13777_s1 + $0xe0] sm:$0xff]  }
  0x15   : > { %1920 = vmatprep.mubr.bf16.mxu0 %v8932_v21  ;;  %v10264_v29 = vld [vmem:[%s13777_s1 + $0x58] sm:$0xff]   ;;  %v10266_v31 = vld [vmem:[%s13777_s1 + $0x50] sm:$0xff]   ;;  %v10268_v33 = vld [vmem:[%s13777_s1 + $0x48] sm:$0xff]  }
  0x16   : > { %1893 = vmatpush1.bf16.msra.mxu0 %v10244_v5  ;;  %10199 = vmatpush1.bf16.msra.mxu1 %v11232_v6  ;;  %v11355_v30 = vld [vmem:[%s13777_s1 + $0xd8] sm:$0xff]   ;;  %v11366_v32 = vld [vmem:[%s13777_s1 + $0xd0] sm:$0xff]   ;;  %v11377_v34 = vld [vmem:[%s13777_s1 + $0xc8] sm:$0xff]  }
  0x17   : > { %1894 = vmatprep.subr.bf16.mxu0 %v13780_v1  ;;  %10184 = vmatprep.subr.bf16.mxu1 %v13780_v1  ;;  %v10270_v35 = vld [vmem:[%s13777_s1 + $0x40] sm:$0xff]   ;;  %v214_v37 = vld [vmem:[%s11298_s28 + $0x30] sm:$0xff]  ;;  %v217_v38 = vld [vmem:[%s11298_s28 + $0x48] sm:$0xff] }
  0x18   : > { %v11388_v36 = vld [vmem:[%s13777_s1 + $0xc0] sm:$0xff]   ;;  %v10274_v40 = vld [vmem:[%s11298_s28 + $0x1b8] ss:$24 sps:$4 sm:$0xff]   ;;  %v8938_v42 = vcombine.high %v214_v37, %v217_v38  ;;  %v8937_v47 = vcombine.low %v214_v37, %v217_v38  ;;  %v10284_v50 = vld [vmem:[%s11298_s28 + $0x21c] ss:$24 sps:$4 sm:$0xff]  }
  0x19   : > { %v10277_v41 = vld [vmem:[%s13777_s1 + $0x1b8] sm:$0xff]   ;;  %v10279_v43 = vld [vmem:[%s11298_s28 + $0x1ec] ss:$24 sps:$4 sm:$0xff]   ;;  %v10288_v46 = vld [vmem:[%s13777_s1 + $0x1b0] sm:$0xff]  }
  0x1a   : > { %1895 = vmatpush1.bf16.msra.mxu0 %v10246_v7  ;;  %10200 = vmatpush1.bf16.msra.mxu1 %v11243_v8  ;;  %v220_v44 = vld [vmem:[%s11298_s28 + $0x60] sm:$0xff]  ;;  %v223_v45 = vld [vmem:[%s11298_s28 + $0x78] sm:$0xff]  ;;  %v10294_v51 = vld [vmem:[%s13777_s1 + $0x1a8] sm:$0xff]  }
  0x1b   : > { %1896 = vmatprep.subr.bf16.mxu0 %v13780_v1  ;;  %10185 = vmatprep.subr.bf16.mxu1 %v13780_v1  ;;  %v10282_v48 = vld [vmem:[%s11298_s28 + $0x1e8] ss:$24 sps:$4 sm:$0xff]   ;;  %v8944_v49 = vcombine.high %v220_v44, %v223_v45  ;;  %v226_v52 = vld [vmem:[%s11298_s28 + $0x90] sm:$0xff]  ;;  %v8943_v55 = vcombine.low %v220_v44, %v223_v45  ;;  %v10290_v58 = vld [vmem:[%s11298_s28 + $0x24c] ss:$24 sps:$4 sm:$0xff]  }
  0x1c   : > { %v229_v53 = vld [vmem:[%s11298_s28 + $0xa8] sm:$0xff]  ;;  %v10305_v54 = vld [vmem:[%s13777_s1 + $0x1a0] sm:$0xff]   ;;  %v10287_v56 = vld [vmem:[%s11298_s28 + $0x218] ss:$24 sps:$4 sm:$0xff]  }
  0x1d   : > { %v8950_v57 = vcombine.high %v226_v52, %v229_v53  ;;  %v10316_v59 = vld [vmem:[%s13777_s1 + $0x198] sm:$0xff]   ;;  %v232_v60 = vld [vmem:[%s11298_s28 + $0xc0] sm:$0xff]  ;;  %v10325_v62 = vld [vmem:[%s13777_s1 + $0x190] sm:$0xff]   ;;  %v8949_v63 = vcombine.low %v226_v52, %v229_v53 }
  0x1e   : > { %1897 = vmatpush1.bf16.msra.mxu0 %v10248_v9  ;;  %10201 = vmatpush1.bf16.msra.mxu1 %v11254_v10  ;;  %v235_v61 = vld [vmem:[%s11298_s28 + $0xd8] sm:$0xff]  ;;  %v10293_v0 = vld [vmem:[%s11298_s28 + $0x248] ss:$24 sps:$4 sm:$0xff]   ;;  %v238_v5 = vld [vmem:[%s11298_s28 + $0xf0] sm:$0xff] }
  0x1f   : > { %1898 = vmatprep.subr.bf16.mxu0 %v13780_v1  ;;  %10186 = vmatprep.subr.bf16.mxu1 %v13780_v1  ;;  %v10296_v3 = vld [vmem:[%s11298_s28 + $0x27c] ss:$24 sps:$4 sm:$0xff]   ;;  %v10346_v7 = vld [vmem:[%s13777_s1 + $0x180] sm:$0xff]   ;;  %v8955_v9 = vcombine.low %v232_v60, %v235_v61  ;;  %v10379_v20 = vld [vmem:[%s13777_s1 + $0x1e8] sm:$0xff]  }
  0x20   : > { %v10307_v19 = vld [vmem:[%s11298_s28 + $0x2dc] ss:$24 sps:$4 sm:$0xff]   ;;  %v253_v22 = vld [vmem:[%s11298_s28 + $0x168] sm:$0xff]  ;;  %v268_v44 = vld [vmem:[%s11298_s28 + $0x1e0] sm:$0xff] }
  0x21   : > { %v10315_v37 = vld [vmem:[%s11298_s28 + $0x308] ss:$24 sps:$4 sm:$0xff]   ;;  %v10318_v38 = vld [vmem:[%s11298_s28 + $0x33c] ss:$24 sps:$4 sm:$0xff]   ;;  %v10336_v52 = vld [vmem:[%s11298_s28 + $0x3cc] ss:$24 sps:$4 sm:$0xff]  }
  0x22   : > { %1899 = vmatpush1.bf16.msra.mxu0 %v10250_v11  ;;  %10202 = vmatpush1.bf16.msra.mxu1 %v11266_v12  ;;  %v10357_v11 = vld [vmem:[%s13777_s1 + $0x1f8] sm:$0xff]   ;;  %v10432_v53 = vld [vmem:[%s13777_s1 + $0x1c0] sm:$0xff]  }
  0x23   : > { %1900 = vmatprep.subr.bf16.mxu0 %v13780_v1  ;;  %10187 = vmatprep.subr.bf16.mxu1 %v13780_v1  ;;  %v271_v45 = vld [vmem:[%s11298_s28 + $0x1f8] sm:$0xff] }
  0x26   : > { %1901 = vmatpush1.bf16.msra.mxu0 %v10252_v13  ;;  %10203 = vmatpush1.bf16.msra.mxu1 %v11280_v14  ;;  %v244_v13 = vld [vmem:[%s11298_s28 + $0x120] sm:$0xff] }
  0x27   : > { %1902 = vmatprep.subr.bf16.mxu0 %v13780_v1  ;;  %10188 = vmatprep.subr.bf16.mxu1 %v13780_v1 }
  0x2a   : > { %1903 = vmatpush1.bf16.msra.mxu0 %v10254_v15  ;;  %10204 = vmatpush1.bf16.msra.mxu1 %v11292_v16  ;;  %v10366_v15 = vld [vmem:[%s13777_s1 + $0x1f0] sm:$0xff]  }
  0x2b   : > { %1904 = vmatprep.subr.bf16.mxu0 %v13780_v1  ;;  %10189 = vmatprep.subr.bf16.mxu1 %v13780_v1 }
  0x2e   : > { %1905 = vmatpush2.bf16.msra.mxu0 %v10256_v17  ;;  %10205 = vmatpush2.bf16.msra.mxu1 %v11308_v18  ;;  %v10304_v17 = vld [vmem:[%s11298_s28 + $0x2a8] ss:$24 sps:$4 sm:$0xff]  }
  0x2f   : > { %1906 = vmatprep.subr.bf16.mxu0 %v13780_v1  ;;  %10190 = vmatprep.subr.bf16.mxu1 %v13780_v1 }
  0x32   : > { %1907 = vmatpush2.bf16.msra.mxu0 %v10258_v23  ;;  %10206 = vmatpush2.bf16.msra.mxu1 %v11322_v24  ;;  %v10392_v23 = vld [vmem:[%s13777_s1 + $0x1e0] sm:$0xff]  }
  0x33   : > { %1908 = vmatprep.subr.bf16.mxu0 %v13780_v1  ;;  %10191 = vmatprep.subr.bf16.mxu1 %v13780_v1 }
  0x36   : > { %1909 = vmatpush2.bf16.msra.mxu0 %v10260_v25  ;;  %10207 = vmatpush2.bf16.msra.mxu1 %v11333_v26  ;;  %v10310_v25 = vld [vmem:[%s11298_s28 + $0x2d8] ss:$24 sps:$4 sm:$0xff]  }
  0x37   : > { %1910 = vmatprep.subr.bf16.mxu0 %v13780_v1  ;;  %10192 = vmatprep.subr.bf16.mxu1 %v13780_v1 }
  0x3a   : > { %1911 = vmatpush2.bf16.msra.mxu0 %v10262_v27  ;;  %10208 = vmatpush2.bf16.msra.mxu1 %v11344_v28  ;;  %v10312_v27 = vld [vmem:[%s11298_s28 + $0x30c] ss:$24 sps:$4 sm:$0xff]  }
  0x3b   : > { %1912 = vmatprep.subr.bf16.mxu0 %v13780_v1  ;;  %10193 = vmatprep.subr.bf16.mxu1 %v13780_v1 }
  0x3e   : > { %1913 = vmatpush2.bf16.msra.mxu0 %v10264_v29  ;;  %10209 = vmatpush2.bf16.msra.mxu1 %v11355_v30  ;;  %v10399_v29 = vld [vmem:[%s13777_s1 + $0x1d8] sm:$0xff]  }
  0x3f   : > { %1914 = vmatprep.subr.bf16.mxu0 %v13780_v1  ;;  %10194 = vmatprep.subr.bf16.mxu1 %v13780_v1 }
  0x42   : > { %1915 = vmatpush2.bf16.msra.mxu0 %v10266_v31  ;;  %10210 = vmatpush2.bf16.msra.mxu1 %v11366_v32 }
  0x43   : > { %1916 = vmatprep.subr.bf16.mxu0 %v13780_v1  ;;  %10195 = vmatprep.subr.bf16.mxu1 %v13780_v1 }
  0x46   : > { %1917 = vmatpush2.bf16.msra.mxu0 %v10268_v33  ;;  %10211 = vmatpush2.bf16.msra.mxu1 %v11377_v34  ;;  %v259_v33 = vld [vmem:[%s11298_s28 + $0x198] sm:$0xff] }
  0x47   : > { %1918 = vmatprep.subr.bf16.mxu0 %v13780_v1  ;;  %10196 = vmatprep.subr.bf16.mxu1 %v13780_v1 }
  0x4a   : > { %1919 = vmatpush2.bf16.msra.mxu0 %v10270_v35  ;;  %10212 = vmatpush2.bf16.msra.mxu1 %v11388_v36  ;;  %v10412_v35 = vld [vmem:[%s13777_s1 + $0x1d0] sm:$0xff]  }
  0x4b   : > { %2209 = vmatprep.subr.bf16.mxu0 %v13780_v1  ;;  %3835 = vmatprep.subr.bf16.mxu1 %v13780_v1 }
  0x4d   : > { %1921 = vmatmul.mubr.bf16.vlgmr.msra.gmra.mxu0 %v8931_v39  ;;  %2314 = vmatmul.mubr.bf16.vlgmr.msra.gmra.mxu1 %v10274_v40  ;;  %v262_v40 = vld [vmem:[%s11298_s28 + $0x1b0] sm:$0xff] }
  0x4e   : > { %2210 = vmatpush1.bf16.msra.mxu0 %v11211_v2  ;;  %3836 = vmatpush1.bf16.msra.mxu1 %v10277_v41  ;;  %v8956_v2 = vcombine.high %v232_v60, %v235_v61  ;;  %v10321_v41 = vld [vmem:[%s11298_s28 + $0x338] ss:$24 sps:$4 sm:$0xff]   ;;  %v10347_v60 = vld [vmem:[%s11298_s28 + $0x274] ss:$24 sps:$4 sm:$0xff]  }
  0x4f   : > { %1928 = vmatprep.mubr.bf16.mxu0 %v8938_v42  ;;  %2321 = vmatprep.mubr.bf16.mxu1 %v10279_v43  ;;  %v10323_v43 = vld [vmem:[%s11298_s28 + $0x36c] ss:$24 sps:$4 sm:$0xff]  }
  0x50   : > { %3837 = vmatprep.subr.bf16.mxu1 %v13780_v1  ;;  %2211 = vmatprep.subr.bf16.mxu0 %v13780_v1  ;;  %v10349_v61 = vld [vmem:[%s11298_s28 + $0x42c] ss:$24 sps:$4 sm:$0xff]  }
  0x52   : > { %2212 = vmatpush1.bf16.msra.mxu0 %v11221_v4  ;;  %3838 = vmatpush1.bf16.msra.mxu1 %v10288_v46  ;;  %v10333_v4 = vld [vmem:[%s13777_s1 + $0x188] sm:$0xff]  }
  0x53   : > { %2213 = vmatprep.subr.bf16.mxu0 %v13780_v1  ;;  %3839 = vmatprep.subr.bf16.mxu1 %v13780_v1  ;;  %v10327_v46 = vld [vmem:[%s11298_s28 + $0x368] ss:$24 sps:$4 sm:$0xff]  }
  0x55   : > { %1929 = vmatmul.mubr.bf16.gmra.mxu0 %v8937_v47  ;;  %2322 = vmatmul.mubr.bf16.gmra.mxu1 %v10282_v48  ;;  %v10329_v48 = vld [vmem:[%s11298_s28 + $0x39c] ss:$24 sps:$4 sm:$0xff]  }
  0x56   : > { %1936 = vmatprep.mubr.bf16.mxu0 %v8944_v49  ;;  %2329 = vmatprep.mubr.bf16.mxu1 %v10284_v50  ;;  %v10332_v49 = vld [vmem:[%s11298_s28 + $0x398] ss:$24 sps:$4 sm:$0xff]   ;;  %v10334_v50 = vld [vmem:[%s11298_s28 + $0x214] ss:$24 sps:$4 sm:$0xff]  }
  0x57   : > { %3840 = vmatpush1.bf16.msra.mxu1 %v10294_v51  ;;  %2214 = vmatpush1.bf16.msra.mxu0 %v11232_v6  ;;  %v241_v6 = vld [vmem:[%s11298_s28 + $0x108] sm:$0xff]  ;;  %v8991_v51 = vcombine.low %v268_v44, %v271_v45 }
  0x58   : > { %3841 = vmatprep.subr.bf16.mxu1 %v13780_v1  ;;  %2215 = vmatprep.subr.bf16.mxu0 %v13780_v1 }
  0x5b   : > { %3842 = vmatpush1.bf16.msra.mxu1 %v10305_v54  ;;  %2216 = vmatpush1.bf16.msra.mxu0 %v11243_v8  ;;  %v10299_v8 = vld [vmem:[%s11298_s28 + $0x278] ss:$24 sps:$4 sm:$0xff]  }
  0x5c   : > { %3843 = vmatprep.subr.bf16.mxu1 %v13780_v1  ;;  %2217 = vmatprep.subr.bf16.mxu0 %v13780_v1  ;;  %v10338_v54 = vld [vmem:[%s11298_s28 + $0x210] ss:$24 sps:$4 sm:$0xff]  }
  0x5d   : > { %1937 = vmatmul.mubr.bf16.gmra.mxu0 %v8943_v55  ;;  %2330 = vmatmul.mubr.bf16.gmra.mxu1 %v10287_v56  ;;  %v10339_v55 = vld [vmem:[%s11298_s28 + $0x3c8] ss:$24 sps:$4 sm:$0xff]   ;;  %v10340_v56 = vld [vmem:[%s11298_s28 + $0x244] ss:$24 sps:$4 sm:$0xff]  }
  0x5e   : > { %1944 = vmatprep.mubr.bf16.mxu0 %v8950_v57  ;;  %2337 = vmatprep.mubr.bf16.mxu1 %v10290_v58  ;;  %v10342_v57 = vld [vmem:[%s11298_s28 + $0x3fc] ss:$24 sps:$4 sm:$0xff]   ;;  %v10344_v58 = vld [vmem:[%s11298_s28 + $0x240] ss:$24 sps:$4 sm:$0xff]  }
  0x5f   : > { %3844 = vmatpush1.bf16.msra.mxu1 %v10316_v59  ;;  %2218 = vmatpush1.bf16.msra.mxu0 %v11254_v10  ;;  %v10301_v10 = vld [vmem:[%s11298_s28 + $0x2ac] ss:$24 sps:$4 sm:$0xff]   ;;  %v10345_v59 = vld [vmem:[%s11298_s28 + $0x3f8] ss:$24 sps:$4 sm:$0xff]  }
  0x60   : > { %3845 = vmatprep.subr.bf16.mxu1 %v13780_v1  ;;  %2219 = vmatprep.subr.bf16.mxu0 %v13780_v1 }
  0x63   : > { %3846 = vmatpush1.bf16.msra.mxu1 %v10325_v62  ;;  %2220 = vmatpush1.bf16.msra.mxu0 %v11266_v12  ;;  %v8962_v12 = vcombine.high %v238_v5, %v241_v6  ;;  %v10351_v62 = vld [vmem:[%s11298_s28 + $0x270] ss:$24 sps:$4 sm:$0xff]  }
  0x64   : > { %3847 = vmatprep.subr.bf16.mxu1 %v13780_v1  ;;  %2221 = vmatprep.subr.bf16.mxu0 %v13780_v1 }
  0x65   : > { %1945 = vmatmul.mubr.bf16.gmra.mxu0 %v8949_v63  ;;  %2338 = vmatmul.mubr.bf16.gmra.mxu1 %v10293_v0  ;;  %v10352_v63 = vld [vmem:[%s11298_s28 + $0x428] ss:$24 sps:$4 sm:$0xff]   ;;  %v10353_v0 = vld [vmem:[%s11298_s28 + $0x2a4] ss:$24 sps:$4 sm:$0xff]  }
  0x66   : > { %1952 = vmatprep.mubr.bf16.mxu0 %v8956_v2  ;;  %2345 = vmatprep.mubr.bf16.mxu1 %v10296_v3  ;;  %v10355_v2 = vld [vmem:[%s11298_s28 + $0x45c] ss:$24 sps:$4 sm:$0xff]   ;;  %v10358_v3 = vld [vmem:[%s11298_s28 + $0x2a0] ss:$24 sps:$4 sm:$0xff]  }
  0x67   : > { %3848 = vmatpush1.bf16.msra.mxu1 %v10333_v4  ;;  %2222 = vmatpush1.bf16.msra.mxu0 %v11280_v14  ;;  %v247_v14 = vld [vmem:[%s11298_s28 + $0x138] sm:$0xff] }
  0x68   : > { %3849 = vmatprep.subr.bf16.mxu1 %v13780_v1  ;;  %2223 = vmatprep.subr.bf16.mxu0 %v13780_v1  ;;  %v8968_v21 = vcombine.high %v244_v13, %v247_v14  ;;  %v10359_v4 = vld [vmem:[%s11298_s28 + $0x458] ss:$24 sps:$4 sm:$0xff]  }
  0x6b   : > { %3850 = vmatpush1.bf16.msra.mxu1 %v10346_v7  ;;  %2224 = vmatpush1.bf16.msra.mxu0 %v11292_v16  ;;  %v8961_v16 = vcombine.low %v238_v5, %v241_v6  ;;  %v10360_v5 = vld [vmem:[%s11298_s28 + $0x2d4] ss:$24 sps:$4 sm:$0xff]   ;;  %v10364_v7 = vld [vmem:[%s11298_s28 + $0x2d0] ss:$24 sps:$4 sm:$0xff]  }
  0x6c   : > { %3851 = vmatprep.subr.bf16.mxu1 %v13780_v1  ;;  %2225 = vmatprep.subr.bf16.mxu0 %v13780_v1  ;;  %v10362_v6 = vld [vmem:[%s11298_s28 + $0x48c] ss:$24 sps:$4 sm:$0xff]  }
  0x6d   : > { %1953 = vmatmul.mubr.bf16.gmra.mxu0 %v8955_v9  ;;  %2346 = vmatmul.mubr.bf16.gmra.mxu1 %v10299_v8  ;;  %v10365_v8 = vld [vmem:[%s11298_s28 + $0x488] ss:$24 sps:$4 sm:$0xff]   ;;  %v10367_v9 = vld [vmem:[%s11298_s28 + $0x304] ss:$24 sps:$4 sm:$0xff]  }
  0x6e   : > { %1960 = vmatprep.mubr.bf16.mxu0 %v8962_v12  ;;  %2353 = vmatprep.mubr.bf16.mxu1 %v10301_v10  ;;  %v10369_v10 = vld [vmem:[%s11298_s28 + $0x4bc] ss:$24 sps:$4 sm:$0xff]   ;;  %v10372_v12 = vld [vmem:[%s11298_s28 + $0x4b8] ss:$24 sps:$4 sm:$0xff]  }
  0x6f   : > { %3852 = vmatpush2.bf16.msra.mxu1 %v10357_v11  ;;  %2226 = vmatpush2.bf16.msra.mxu0 %v11308_v18  ;;  %v250_v18 = vld [vmem:[%s11298_s28 + $0x150] sm:$0xff]  ;;  %v10371_v11 = vld [vmem:[%s11298_s28 + $0x300] ss:$24 sps:$4 sm:$0xff]  }
  0x70   : > { %3853 = vmatprep.subr.bf16.mxu1 %v13780_v1  ;;  %2227 = vmatprep.subr.bf16.mxu0 %v13780_v1  ;;  %v8974_v31 = vcombine.high %v250_v18, %v253_v22 }
  0x73   : > { %3854 = vmatpush2.bf16.msra.mxu1 %v10366_v15  ;;  %2228 = vmatpush2.bf16.msra.mxu0 %v11322_v24  ;;  %v8967_v24 = vcombine.low %v244_v13, %v247_v14  ;;  %v10373_v13 = vld [vmem:[%s11298_s28 + $0x334] ss:$24 sps:$4 sm:$0xff]   ;;  %v10377_v15 = vld [vmem:[%s11298_s28 + $0x330] ss:$24 sps:$4 sm:$0xff]  }
  0x74   : > { %3855 = vmatprep.subr.bf16.mxu1 %v13780_v1  ;;  %2229 = vmatprep.subr.bf16.mxu0 %v13780_v1  ;;  %v10375_v14 = vld [vmem:[%s11298_s28 + $0x4ec] ss:$24 sps:$4 sm:$0xff]  }
  0x75   : > { %1961 = vmatmul.mubr.bf16.gmra.mxu0 %v8961_v16  ;;  %2354 = vmatmul.mubr.bf16.gmra.mxu1 %v10304_v17  ;;  %v10378_v17 = vld [vmem:[%s11298_s28 + $0x4e8] ss:$24 sps:$4 sm:$0xff]   ;;  %v10380_v16 = vld [vmem:[%s11298_s28 + $0x364] ss:$24 sps:$4 sm:$0xff]  }
  0x76   : > { %1968 = vmatprep.mubr.bf16.mxu0 %v8968_v21  ;;  %2361 = vmatprep.mubr.bf16.mxu1 %v10307_v19  ;;  %v10382_v19 = vld [vmem:[%s11298_s28 + $0x51c] ss:$24 sps:$4 sm:$0xff]   ;;  %v10385_v21 = vld [vmem:[%s11298_s28 + $0x518] ss:$24 sps:$4 sm:$0xff]  }
  0x77   : > { %3856 = vmatpush2.bf16.msra.mxu1 %v10379_v20  ;;  %2230 = vmatpush2.bf16.msra.mxu0 %v11333_v26  ;;  %v256_v26 = vld [vmem:[%s11298_s28 + $0x180] sm:$0xff] }
  0x78   : > { %3857 = vmatprep.subr.bf16.mxu1 %v13780_v1  ;;  %2231 = vmatprep.subr.bf16.mxu0 %v13780_v1  ;;  %v8980_v39 = vcombine.high %v256_v26, %v259_v33  ;;  %v8979_v42 = vcombine.low %v256_v26, %v259_v33  ;;  %v10384_v20 = vld [vmem:[%s11298_s28 + $0x360] ss:$24 sps:$4 sm:$0xff]   ;;  %v10400_v26 = vld [vmem:[%s11298_s28 + $0x3f4] ss:$24 sps:$4 sm:$0xff]  }
  0x79   : > { %v10402_v33 = vld [vmem:[%s11298_s28 + $0x5ac] ss:$24 sps:$4 sm:$0xff]  }
  0x7b   : > { %3858 = vmatpush2.bf16.msra.mxu1 %v10392_v23  ;;  %2232 = vmatpush2.bf16.msra.mxu0 %v11344_v28  ;;  %v8973_v28 = vcombine.low %v250_v18, %v253_v22  ;;  %v10386_v18 = vld [vmem:[%s11298_s28 + $0x394] ss:$24 sps:$4 sm:$0xff]   ;;  %v10390_v23 = vld [vmem:[%s11298_s28 + $0x390] ss:$24 sps:$4 sm:$0xff]  }
  0x7c   : > { %3859 = vmatprep.subr.bf16.mxu1 %v13780_v1  ;;  %2233 = vmatprep.subr.bf16.mxu0 %v13780_v1  ;;  %v10388_v22 = vld [vmem:[%s11298_s28 + $0x54c] ss:$24 sps:$4 sm:$0xff]  }
  0x7d   : > { %1969 = vmatmul.mubr.bf16.gmra.mxu0 %v8967_v24  ;;  %2362 = vmatmul.mubr.bf16.gmra.mxu1 %v10310_v25  ;;  %v10391_v25 = vld [vmem:[%s11298_s28 + $0x548] ss:$24 sps:$4 sm:$0xff]   ;;  %v10393_v24 = vld [vmem:[%s11298_s28 + $0x3c4] ss:$24 sps:$4 sm:$0xff]  }
  0x7e   : > { %1976 = vmatprep.mubr.bf16.mxu0 %v8974_v31  ;;  %2369 = vmatprep.mubr.bf16.mxu1 %v10312_v27  ;;  %v10395_v27 = vld [vmem:[%s11298_s28 + $0x57c] ss:$24 sps:$4 sm:$0xff]   ;;  %v10398_v31 = vld [vmem:[%s11298_s28 + $0x578] ss:$24 sps:$4 sm:$0xff]  }
  0x7f   : > { %3860 = vmatpush2.bf16.msra.mxu1 %v10399_v29  ;;  %2234 = vmatpush2.bf16.msra.mxu0 %v11355_v30  ;;  %v265_v30 = vld [vmem:[%s11298_s28 + $0x1c8] sm:$0xff]  ;;  %v10397_v29 = vld [vmem:[%s11298_s28 + $0x3c0] ss:$24 sps:$4 sm:$0xff]  }
  0x80   : > { %3861 = vmatprep.subr.bf16.mxu1 %v13780_v1  ;;  %2235 = vmatprep.subr.bf16.mxu0 %v13780_v1  ;;  %v8985_v47 = vcombine.low %v262_v40, %v265_v30 }
  0x83   : > { %3862 = vmatpush2.bf16.msra.mxu1 %v10412_v35  ;;  %2236 = vmatpush2.bf16.msra.mxu0 %v11366_v32  ;;  %v8986_v32 = vcombine.high %v262_v40, %v265_v30  ;;  %v10404_v35 = vld [vmem:[%s11298_s28 + $0x3f0] ss:$24 sps:$4 sm:$0xff]   ;;  %v10413_v30 = vld [vmem:[%s11298_s28 + $0x454] ss:$24 sps:$4 sm:$0xff]  }
  0x84   : > { %3863 = vmatprep.subr.bf16.mxu1 %v13780_v1  ;;  %2237 = vmatprep.subr.bf16.mxu0 %v13780_v1  ;;  %v10411_v40 = vld [vmem:[%s11298_s28 + $0x5d8] ss:$24 sps:$4 sm:$0xff]  }
  0x85   : > { %1977 = vmatmul.mubr.bf16.gmra.mxu0 %v8973_v28  ;;  %2370 = vmatmul.mubr.bf16.gmra.mxu1 %v10315_v37  ;;  %v10405_v37 = vld [vmem:[%s11298_s28 + $0x5a8] ss:$24 sps:$4 sm:$0xff]   ;;  %v10406_v28 = vld [vmem:[%s11298_s28 + $0x424] ss:$24 sps:$4 sm:$0xff]  }
  0x86   : > { %1984 = vmatprep.mubr.bf16.mxu0 %v8980_v39  ;;  %2377 = vmatprep.mubr.bf16.mxu1 %v10318_v38  ;;  %v10408_v38 = vld [vmem:[%s11298_s28 + $0x5dc] ss:$24 sps:$4 sm:$0xff]   ;;  %v10410_v39 = vld [vmem:[%s11298_s28 + $0x420] ss:$24 sps:$4 sm:$0xff]  }
  0x87   : > { %2238 = vmatpush2.bf16.msra.mxu0 %v11377_v34  ;;  %v10425_v34 = vld [vmem:[%s13777_s1 + $0x1c8] sm:$0xff]  }
  0x88   : > { %2239 = vmatprep.subr.bf16.mxu0 %v13780_v1  ;;  %3864 = vmatpush2.bf16.msra.mxu1 %v10425_v34  ;;  %v10424_v34 = vld [vmem:[%s11298_s28 + $0x638] ss:$24 sps:$4 sm:$0xff]  }
  0x89   : > { %3865 = vmatprep.subr.bf16.mxu1 %v13780_v1 }
  0x8b   : > { %2240 = vmatpush2.bf16.msra.mxu0 %v11388_v36  ;;  %v8992_v36 = vcombine.high %v268_v44, %v271_v45  ;;  %v10421_v44 = vld [vmem:[%s11298_s28 + $0x63c] ss:$24 sps:$4 sm:$0xff]   ;;  %v10423_v45 = vld [vmem:[%s11298_s28 + $0x480] ss:$24 sps:$4 sm:$0xff]  }
  0x8c   : > { %2530 = vmatprep.subr.bf16.mxu0 %v13780_v1  ;;  %3866 = vmatpush2.bf16.msra.mxu1 %v10432_v53 }
  0x8d   : > { %1985 = vmatmul.mubr.bf16.gmra.mxu0 %v8979_v42  ;;  %2378 = vmatmul.mubr.bf16.gmra.mxu1 %v10321_v41  ;;  %v10415_v41 = vld [vmem:[%s11298_s28 + $0x60c] ss:$24 sps:$4 sm:$0xff]   ;;  %v10417_v42 = vld [vmem:[%s11298_s28 + $0x450] ss:$24 sps:$4 sm:$0xff]  }
  0x8e   : > { %1992 = vmatprep.mubr.bf16.mxu0 %v8986_v32  ;;  %2385 = vmatprep.mubr.bf16.mxu1 %v10323_v43  ;;  %v10418_v43 = vld [vmem:[%s11298_s28 + $0x608] ss:$24 sps:$4 sm:$0xff]   ;;  %v10419_v32 = vld [vmem:[%s11298_s28 + $0x484] ss:$24 sps:$4 sm:$0xff]  }
  0x8f   : > { %5294 = vmatprep.subr.bf16.mxu1 %v13780_v1 }
  0x95   : > { %1993 = vmatmul.mubr.bf16.gmra.mxu0 %v8985_v47  ;;  %2386 = vmatmul.mubr.bf16.gmra.mxu1 %v10327_v46  ;;  %v10426_v46 = vld [vmem:[%s11298_s28 + $0x4b4] ss:$24 sps:$4 sm:$0xff]  }
  0x96   : > { %2000 = vmatprep.mubr.bf16.mxu0 %v8992_v36  ;;  %2393 = vmatprep.mubr.bf16.mxu1 %v10329_v48  ;;  %v10428_v47 = vld [vmem:[%s11298_s28 + $0x66c] ss:$24 sps:$4 sm:$0xff]  }
  0x9d   : > { %2001 = vmatmul.mubr.bf16.gmra.mxu0 %v8991_v51  ;;  %2394 = vmatmul.mubr.bf16.gmra.mxu1 %v10332_v49 }
  0x9e   : > { %2008 = vmatprep.mubr.bf16.mxu0 %v10334_v50  ;;  %2401 = vmatprep.mubr.bf16.mxu1 %v10336_v52  ;;  %v10430_v50 = vld [vmem:[%s11298_s28 + $0x4b0] ss:$24 sps:$4 sm:$0xff]  }
  0x9f   : > { %v10431_v52 = vld [vmem:[%s11298_s28 + $0x668] ss:$24 sps:$4 sm:$0xff]  }
  0xa5   : > { %2009 = vmatmul.mubr.bf16.gmra.mxu0 %v10338_v54  ;;  %2402 = vmatmul.mubr.bf16.gmra.mxu1 %v10339_v55  ;;  %v10433_v55 = vld [vmem:[%s11298_s28 + $0x4e4] ss:$24 sps:$4 sm:$0xff]  }
  0xa6   : > { %2016 = vmatprep.mubr.bf16.mxu0 %v10340_v56  ;;  %2409 = vmatprep.mubr.bf16.mxu1 %v10342_v57  ;;  %v10435_v57 = vld [vmem:[%s11298_s28 + $0x69c] ss:$24 sps:$4 sm:$0xff]  }
  0xad   : > { %2017 = vmatmul.mubr.bf16.gmra.mxu0 %v10344_v58  ;;  %2410 = vmatmul.mubr.bf16.gmra.mxu1 %v10345_v59 }
  0xae   : > { %2024 = vmatprep.mubr.bf16.mxu0 %v10347_v60  ;;  %2417 = vmatprep.mubr.bf16.mxu1 %v10349_v61 }
  0xb5   : > { %2025 = vmatmul.mubr.bf16.gmra.mxu0 %v10351_v62  ;;  %2418 = vmatmul.mubr.bf16.gmra.mxu1 %v10352_v63  ;;  %v10437_v62 = vld [vmem:[%s11298_s28 + $0x4e0] ss:$24 sps:$4 sm:$0xff]  }
  0xb6   : > { %2032 = vmatprep.mubr.bf16.mxu0 %v10353_v0  ;;  %2425 = vmatprep.mubr.bf16.mxu1 %v10355_v2  ;;  %v10438_v0 = vld [vmem:[%s11298_s28 + $0x698] ss:$24 sps:$4 sm:$0xff]   ;;  %v10439_v2 = vld [vmem:[%s11298_s28 + $0x514] ss:$24 sps:$4 sm:$0xff]  }
  0xbd   : > { %2033 = vmatmul.mubr.bf16.gmra.mxu0 %v10358_v3  ;;  %2426 = vmatmul.mubr.bf16.gmra.mxu1 %v10359_v4 }
  0xbe   : > { %2040 = vmatprep.mubr.bf16.mxu0 %v10360_v5  ;;  %2433 = vmatprep.mubr.bf16.mxu1 %v10362_v6  ;;  %v11119_v6 = vld [vmem:[%s11298_s28 + $0x18] sm:$0xff] }
  0xc5   : > { %2041 = vmatmul.mubr.bf16.gmra.mxu0 %v10364_v7  ;;  %2434 = vmatmul.mubr.bf16.gmra.mxu1 %v10365_v8  ;;  %v11120_v7 = vld [vmem:[%s11298_s28 + $0x30] sm:$0xff] }
  0xc6   : > { %2048 = vmatprep.mubr.bf16.mxu0 %v10367_v9  ;;  %2441 = vmatprep.mubr.bf16.mxu1 %v10369_v10  ;;  %v9196_v8 = vcombine.high %v11119_v6, %v11120_v7 }
  0xcd   : > { %2049 = vmatmul.mubr.bf16.gmra.mxu0 %v10371_v11  ;;  %2442 = vmatmul.mubr.bf16.gmra.mxu1 %v10372_v12 }
  0xce   : > { %2056 = vmatprep.mubr.bf16.mxu0 %v10373_v13  ;;  %2449 = vmatprep.mubr.bf16.mxu1 %v10375_v14  ;;  %v10443_v14 = vld [vmem:[%s11298_s28 + $0x510] ss:$24 sps:$4 sm:$0xff]  }
  0xd5   : > { %2057 = vmatmul.mubr.bf16.gmra.mxu0 %v10377_v15  ;;  %2450 = vmatmul.mubr.bf16.gmra.mxu1 %v10378_v17  ;;  %v10447_v15 = vld [vmem:[%s11298_s28 + $0x544] ss:$24 sps:$4 sm:$0xff]  }
  0xd6   : > { %2064 = vmatprep.mubr.bf16.mxu0 %v10380_v16  ;;  %2457 = vmatprep.mubr.bf16.mxu1 %v10382_v19  ;;  %v9195_v19 = vcombine.low %v11119_v6, %v11120_v7  ;;  %v10455_v6 = vld [vmem:[%s11298_s28 + $0x5a0] ss:$24 sps:$4 sm:$0xff]  }
  0xdd   : > { %2065 = vmatmul.mubr.bf16.gmra.mxu0 %v10384_v20  ;;  %2458 = vmatmul.mubr.bf16.gmra.mxu1 %v10385_v21  ;;  %v10444_v21 = vld [vmem:[%s13777_s1 + $0x278] sm:$0xff]  }
  0xde   : > { %2072 = vmatprep.mubr.bf16.mxu0 %v10386_v18  ;;  %2465 = vmatprep.mubr.bf16.mxu1 %v10388_v22  ;;  %v11121_v18 = vld [vmem:[%s11298_s28 + $0x48] sm:$0xff]  ;;  %v11122_v22 = vld [vmem:[%s11298_s28 + $0x60] sm:$0xff] }
  0xe5   : > { %2073 = vmatmul.mubr.bf16.gmra.mxu0 %v10390_v23  ;;  %2466 = vmatmul.mubr.bf16.gmra.mxu1 %v10391_v25  ;;  %v9199_v23 = vcombine.high %v11121_v18, %v11122_v22 }
  0xe6   : > { %2080 = vmatprep.mubr.bf16.mxu0 %v10393_v24  ;;  %2473 = vmatprep.mubr.bf16.mxu1 %v10395_v27  ;;  %v10460_v27 = vld [vmem:[%s13777_s1 + $0x270] sm:$0xff]  }
  0xed   : > { %2081 = vmatmul.mubr.bf16.gmra.mxu0 %v10397_v29  ;;  %2474 = vmatmul.mubr.bf16.gmra.mxu1 %v10398_v31 }
  0xee   : > { %2088 = vmatprep.mubr.bf16.mxu0 %v10400_v26  ;;  %2481 = vmatprep.mubr.bf16.mxu1 %v10402_v33  ;;  %v10445_v26 = vld [vmem:[%s11298_s28 + $0x540] ss:$24 sps:$4 sm:$0xff]  }
  0xf5   : > { %2089 = vmatmul.mubr.bf16.gmra.mxu0 %v10404_v35  ;;  %2482 = vmatmul.mubr.bf16.gmra.mxu1 %v10405_v37  ;;  %v10452_v37 = vld [vmem:[%s11298_s28 + $0x574] ss:$24 sps:$4 sm:$0xff]  }
  0xf6   : > { %2096 = vmatprep.mubr.bf16.mxu0 %v10406_v28  ;;  %2489 = vmatprep.mubr.bf16.mxu1 %v10408_v38  ;;  %v9198_v38 = vcombine.low %v11121_v18, %v11122_v22 }
  0xfd   : > { %2097 = vmatmul.mubr.bf16.gmra.mxu0 %v10410_v39  ;;  %2490 = vmatmul.mubr.bf16.gmra.mxu1 %v10411_v40  ;;  %v11123_v40 = vld [vmem:[%s11298_s28 + $0x78] sm:$0xff] }
  0xfe   : > { %2104 = vmatprep.mubr.bf16.mxu0 %v10413_v30  ;;  %2497 = vmatprep.mubr.bf16.mxu1 %v10415_v41  ;;  %v11124_v30 = vld [vmem:[%s11298_s28 + $0x90] sm:$0xff] }
  0xff   : > { %v9202_v41 = vcombine.high %v11123_v40, %v11124_v30 }
 0x105   : > { %2105 = vmatmul.mubr.bf16.gmra.mxu0 %v10417_v42  ;;  %2498 = vmatmul.mubr.bf16.gmra.mxu1 %v10418_v43  ;;  %v10476_v42 = vld [vmem:[%s13777_s1 + $0x268] sm:$0xff]  }
 0x106   : > { %2112 = vmatprep.mubr.bf16.mxu0 %v10419_v32  ;;  %2505 = vmatprep.mubr.bf16.mxu1 %v10421_v44  ;;  %v10493_v44 = vld [vmem:[%s13777_s1 + $0x260] sm:$0xff]  }
 0x10d   : > { %v11589_v36 = vpop.f32.mrf.mxu0  ;;  %2113 = vmatmul.mubr.bf16.gmra.mxu0 %v10423_v45  ;;  %v11591_v48 = vpop.f32.mrf.mxu1  ;;  %2506 = vmatmul.mubr.bf16.gmra.mxu1 %v10424_v34 }
 0x10e   : > { %2120 = vmatprep.mubr.bf16.mxu0 %v10426_v46  ;;  %2513 = vmatprep.mubr.bf16.mxu1 %v10428_v47  ;;  %v10450_v46 = vld [vmem:[%s11298_s28 + $0x570] ss:$24 sps:$4 sm:$0xff]  }
 0x10f   : > { %v1924_v49 = vpop.f32.mrf.mxu0  ;;  %v2317_v51 = vpop.f32.mrf.mxu1 }
 0x111   : > { %v11595_v53 = vpop.f32.mrf.mxu0  ;;  %v11597_v54 = vpop.f32.mrf.mxu1 }
 0x113   : > { %v1927_v56 = vpop.f32.mrf.mxu0  ;;  %v2320_v58 = vpop.f32.mrf.mxu1 }
 0x114   : > { %v11125_v56 = vld [vmem:[%s11298_s28 + $0xa8] sm:$0xff] }
 0x115   : > { %v11601_v59 = vpop.f32.mrf.mxu0  ;;  %2121 = vmatmul.mubr.bf16.gmra.mxu0 %v10430_v50  ;;  %v11603_v60 = vpop.f32.mrf.mxu1  ;;  %2514 = vmatmul.mubr.bf16.gmra.mxu1 %v10431_v52  ;;  %v10457_v50 = vld [vmem:[%s11298_s28 + $0x5a4] ss:$24 sps:$4 sm:$0xff]   ;;  %v9201_v52 = vcombine.low %v11123_v40, %v11124_v30  ;;  %v11129_v40 = vld [vmem:[%s11298_s28 + $0x108] sm:$0xff] }
 0x116   : > { %2128 = vmatprep.mubr.bf16.mxu0 %v10433_v55  ;;  %2521 = vmatprep.mubr.bf16.mxu1 %v10435_v57  ;;  %v11126_v57 = vld [vmem:[%s11298_s28 + $0xc0] sm:$0xff] }
 0x117   : > { %v1932_v61 = vpop.f32.mrf.mxu0  ;;  %v2325_v63 = vpop.f32.mrf.mxu1  ;;  %v9205_v58 = vcombine.high %v11125_v56, %v11126_v57  ;;  %v11130_v30 = vld [vmem:[%s11298_s28 + $0x120] sm:$0xff] }
 0x118   : > { %v10517_v61 = vld [vmem:[%s13777_s1 + $0x258] sm:$0xff]  }
 0x119   : > { %v11608_v3 = vpop.f32.mrf.mxu0  ;;  %v11610_v4 = vpop.f32.mrf.mxu1 }
 0x11b   : > { %v1935_v5 = vpop.f32.mrf.mxu0  ;;  %v2328_v9 = vpop.f32.mrf.mxu1 }
 0x11d   : > { %v11614_v10 = vpop.f32.mrf.mxu0  ;;  %2129 = vmatmul.mubr.bf16.gmra.mxu0 %v10437_v62  ;;  %v11616_v11 = vpop.f32.mrf.mxu1  ;;  %2522 = vmatmul.mubr.bf16.gmra.mxu1 %v10438_v0 }
 0x11e   : > { %2136 = vmatprep.mubr.bf16.mxu0 %v10439_v2  ;;  %3867 = vmatprep.mubr.bf16.mxu1 %v9196_v8  ;;  %v10542_v2 = vld [vmem:[%s13777_s1 + $0x250] sm:$0xff]  }
 0x11f   : > { %v1940_v12 = vpop.f32.mrf.mxu0  ;;  %v2333_v13 = vpop.f32.mrf.mxu1  ;;  %v10463_v8 = vld [vmem:[%s11298_s28 + $0x5d4] ss:$24 sps:$4 sm:$0xff]  }
 0x120   : > { %v9204_v13 = vcombine.low %v11125_v56, %v11126_v57  ;;  %v9210_v56 = vcombine.low %v11129_v40, %v11130_v30 }
 0x121   : > { %v11620_v17 = vpop.f32.mrf.mxu0  ;;  %v11622_v16 = vpop.f32.mrf.mxu1 }
 0x123   : > { %v1943_v20 = vpop.f32.mrf.mxu0  ;;  %v2336_v25 = vpop.f32.mrf.mxu1 }
 0x125   : > { %v11629_v24 = vpop.f32.mrf.mxu0  ;;  %2137 = vmatmul.mubr.bf16.gmra.mxu0 %v10443_v14  ;;  %v11634_v29 = vpop.f32.mrf.mxu1  ;;  %3868 = vmatmul.mubr.bf16.vlgmr.msra.gmra.mxu1 %v9195_v19  ;;  %v11128_v19 = vld [vmem:[%s11298_s28 + $0xf0] sm:$0xff] }
 0x126   : > { %2144 = vmatprep.mubr.bf16.mxu0 %v10447_v15  ;;  %5295 = vmatpush1.bf16.msra.mxu1 %v10444_v21  ;;  %v11127_v15 = vld [vmem:[%s11298_s28 + $0xd8] sm:$0xff]  ;;  %v10566_v21 = vld [vmem:[%s13777_s1 + $0x248] sm:$0xff]  }
 0x127   : > { %v1948_v31 = vpop.f32.mrf.mxu0  ;;  %3875 = vmatprep.mubr.bf16.mxu1 %v9199_v23  ;;  %v2341_v33 = vpop.f32.mrf.mxu1  ;;  %5296 = vmatprep.subr.bf16.mxu1 %v13780_v1  ;;  %v9208_v20 = vcombine.high %v11127_v15, %v11128_v19 }
 0x129   : > { %v11638_v35 = vpop.f32.mrf.mxu0  ;;  %v11641_v28 = vpop.f32.mrf.mxu1 }
 0x12a   : > { %13782 = vst [vmem:[#allocation3_spill] sm:$0xff] %v11641_v28  ;;  %5297 = vmatpush1.bf16.msra.mxu1 %v10460_v27  ;;  %v10461_v27 = vld [vmem:[%s11298_s28 + $0x5d0] ss:$24 sps:$4 sm:$0xff]   ;;  %v10726_v28 = vld [vmem:[%s11298_s28 + $0x4c4] ss:$24 sps:$4 sm:$0xff]  }
 0x12b   : > { %v1951_v39 = vpop.f32.mrf.mxu0  ;;  %v2344_v43 = vpop.f32.mrf.mxu1  ;;  %5298 = vmatprep.subr.bf16.mxu1 %v13780_v1 }
 0x12d   : > { %v11649_v32 = vpop.f32.mrf.mxu0  ;;  %2145 = vmatmul.mubr.bf16.gmra.mxu0 %v10445_v26  ;;  %v11654_v45 = vpop.f32.mrf.mxu1  ;;  %3876 = vmatmul.mubr.bf16.gmra.mxu1 %v9198_v38  ;;  %v10468_v26 = vld [vmem:[%s11298_s28 + $0x604] ss:$24 sps:$4 sm:$0xff]   ;;  %v9207_v38 = vcombine.low %v11127_v15, %v11128_v19 }
 0x12e   : > { %13783 = vst [vmem:[#allocation4_spill] sm:$0xff] %v11654_v45  ;;  %2152 = vmatprep.mubr.bf16.mxu0 %v10452_v37  ;;  %3883 = vmatprep.mubr.bf16.mxu1 %v9202_v41  ;;  %v9211_v41 = vcombine.high %v11129_v40, %v11130_v30  ;;  %v10585_v15 = vld [vmem:[%s13777_s1 + $0x240] sm:$0xff]   ;;  %v2955_v40 = vld [vmem:[%s11298_s28 + $0x198] sm:$0xff]  ;;  %v10719_v45 = vld [vmem:[%s11298_s28 + $0x494] ss:$24 sps:$4 sm:$0xff]  }
 0x12f   : > { %v1956_v34 = vpop.f32.mrf.mxu0  ;;  %5299 = vmatpush1.bf16.msra.mxu1 %v10476_v42  ;;  %v2349_v47 = vpop.f32.mrf.mxu1 }
 0x130   : > { %5300 = vmatprep.subr.bf16.mxu1 %v13780_v1 }
 0x131   : > { %v11658_v49 = vpop.f32.mrf.mxu0  ;;  %v11661_v51 = vpop.f32.mrf.mxu1 }
 0x132   : > { %13784 = vst [vmem:[#allocation5_spill] sm:$0xff] %v11661_v51  ;;  %v10711_v51 = vld [vmem:[%s11298_s28 + $0x460] ss:$24 sps:$4 sm:$0xff]  }
 0x133   : > { %v1959_v55 = vpop.f32.mrf.mxu0  ;;  %5301 = vmatpush1.bf16.msra.mxu1 %v10493_v44  ;;  %v2352_v62 = vpop.f32.mrf.mxu1 }
 0x134   : > { %5302 = vmatprep.subr.bf16.mxu1 %v13780_v1 }
 0x135   : > { %v11669_v63 = vpop.f32.mrf.mxu0  ;;  %2153 = vmatmul.mubr.bf16.gmra.mxu0 %v10450_v46  ;;  %v11671_v0 = vpop.f32.mrf.mxu1  ;;  %3884 = vmatmul.mubr.bf16.gmra.mxu1 %v9201_v52  ;;  %v10466_v46 = vld [vmem:[%s11298_s28 + $0x600] ss:$24 sps:$4 sm:$0xff]  }
 0x136   : > { %13785 = vst [vmem:[#allocation6_spill] sm:$0xff] %v11671_v0  ;;  %2160 = vmatprep.mubr.bf16.mxu0 %v10457_v50  ;;  %3891 = vmatprep.mubr.bf16.mxu1 %v9205_v58  ;;  %v10473_v50 = vld [vmem:[%s11298_s28 + $0x634] ss:$24 sps:$4 sm:$0xff]   ;;  %v11131_v58 = vld [vmem:[%s11298_s28 + $0x138] sm:$0xff] }
 0x137   : > { %v1964_v5 = vpop.f32.mrf.mxu0  ;;  %5303 = vmatpush1.bf16.msra.mxu1 %v10517_v61  ;;  %v2357_v7 = vpop.f32.mrf.mxu1  ;;  %v11132_v61 = vld [vmem:[%s11298_s28 + $0x150] sm:$0xff] }
 0x138   : > { %5304 = vmatprep.subr.bf16.mxu1 %v13780_v1  ;;  %v9214_v62 = vcombine.high %v11131_v58, %v11132_v61 }
 0x139   : > { %v11679_v9 = vpop.f32.mrf.mxu0  ;;  %v11681_v12 = vpop.f32.mrf.mxu1 }
 0x13a   : > { %13786 = vst [vmem:[#allocation7_spill] sm:$0xff] %v11681_v12  ;;  %v10697_v12 = vld [vmem:[%s11298_s28 + $0x400] ss:$24 sps:$4 sm:$0xff]  }
 0x13b   : > { %v1967_v14 = vpop.f32.mrf.mxu0  ;;  %5305 = vmatpush1.bf16.msra.mxu1 %v10542_v2  ;;  %v2360_v18 = vpop.f32.mrf.mxu1 }
 0x13c   : > { %5306 = vmatprep.subr.bf16.mxu1 %v13780_v1  ;;  %v10479_v14 = vld [vmem:[%s11298_s28 + $0x664] ss:$24 sps:$4 sm:$0xff]  }
 0x13d   : > { %v11689_v22 = vpop.f32.mrf.mxu0  ;;  %2161 = vmatmul.mubr.bf16.gmra.mxu0 %v10455_v6  ;;  %v11691_v23 = vpop.f32.mrf.mxu1  ;;  %3892 = vmatmul.mubr.bf16.gmra.mxu1 %v9204_v13 }
 0x13e   : > { %13787 = vst [vmem:[#allocation8_spill] sm:$0xff] %v11691_v23  ;;  %2168 = vmatprep.mubr.bf16.mxu0 %v10463_v8  ;;  %3899 = vmatprep.mubr.bf16.mxu1 %v9208_v20  ;;  %v10471_v8 = vld [vmem:[%s11298_s28 + $0x630] ss:$24 sps:$4 sm:$0xff]  }
 0x13f   : > { %v1972_v25 = vpop.f32.mrf.mxu0  ;;  %5307 = vmatpush1.bf16.msra.mxu1 %v10566_v21  ;;  %v2365_v31 = vpop.f32.mrf.mxu1  ;;  %v9213_v21 = vcombine.low %v11131_v58, %v11132_v61  ;;  %v10691_v23 = vld [vmem:[%s11298_s28 + $0x3d0] ss:$24 sps:$4 sm:$0xff]  }
 0x140   : > { %5308 = vmatprep.subr.bf16.mxu1 %v13780_v1  ;;  %v11133_v25 = vld [vmem:[%s11298_s28 + $0x168] sm:$0xff] }
 0x141   : > { %v11696_v33 = vpop.f32.mrf.mxu0  ;;  %v11698_v37 = vpop.f32.mrf.mxu1 }
 0x142   : > { %13788 = vst [vmem:[#allocation9_spill] sm:$0xff] %v11698_v37 }
 0x143   : > { %v1975_v39 = vpop.f32.mrf.mxu0  ;;  %v2368_v42 = vpop.f32.mrf.mxu1  ;;  %5309 = vmatpush1.bf16.msra.mxu1 %v10585_v15  ;;  %v10482_v15 = vld [vmem:[%s11298_s28 + $0x690] ss:$24 sps:$4 sm:$0xff]  }
 0x144   : > { %5318 = vmatprep.subr.bf16.mxu1 %v13780_v1 }
 0x145   : > { %v11702_v43 = vpop.f32.mrf.mxu0  ;;  %2169 = vmatmul.mubr.bf16.gmra.mxu0 %v10461_v27  ;;  %v11704_v44 = vpop.f32.mrf.mxu1  ;;  %3900 = vmatmul.mubr.bf16.gmra.mxu1 %v9207_v38  ;;  %v11134_v27 = vld [vmem:[%s11298_s28 + $0x180] sm:$0xff] }
 0x146   : > { %13789 = vst [vmem:[#allocation10_spill] sm:$0xff] %v11704_v44  ;;  %2176 = vmatprep.mubr.bf16.mxu0 %v10468_v26  ;;  %3907 = vmatprep.mubr.bf16.mxu1 %v9211_v41  ;;  %v9217_v31 = vcombine.high %v11133_v25, %v11134_v27  ;;  %v10477_v41 = vld [vmem:[%s11298_s28 + $0x660] ss:$24 sps:$4 sm:$0xff]   ;;  %v10584_v44 = vld [vmem:[%s11298_s28 + $0x40c] ss:$24 sps:$4 sm:$0xff]  }
 0x147   : > { %v1980_v34 = vpop.f32.mrf.mxu0  ;;  %v2373_v47 = vpop.f32.mrf.mxu1 }
 0x148   : > { %v9216_v47 = vcombine.low %v11133_v25, %v11134_v27  ;;  %v10489_v25 = vld [vmem:[%s11298_s28 + $0xc] ss:$24 sps:$4 sm:$0xff]  }
 0x149   : > { %v11708_v52 = vpop.f32.mrf.mxu0  ;;  %v11710_v55 = vpop.f32.mrf.mxu1 }
 0x14a   : > { %13790 = vst [vmem:[#allocation11_spill] sm:$0xff] %v11710_v55  ;;  %v10562_v55 = vld [vmem:[%s11298_s28 + $0x378] ss:$24 sps:$4 sm:$0xff]  }
 0x14b   : > { %v1983_v57 = vpop.f32.mrf.mxu0  ;;  %v2376_v2 = vpop.f32.mrf.mxu1 }
 0x14c   : > { %v11135_v57 = vld [vmem:[%s11298_s28 + $0x1b0] sm:$0xff] }
 0x14d   : > { %v11714_v5 = vpop.f32.mrf.mxu0  ;;  %2177 = vmatmul.mubr.bf16.gmra.mxu0 %v10466_v46  ;;  %v11716_v6 = vpop.f32.mrf.mxu1  ;;  %3908 = vmatmul.mubr.bf16.gmra.mxu1 %v9210_v56  ;;  %v9220_v58 = vcombine.high %v2955_v40, %v11135_v57 }
 0x14e   : > { %13791 = vst [vmem:[#allocation12_spill] sm:$0xff] %v11716_v6  ;;  %2184 = vmatprep.mubr.bf16.mxu0 %v10473_v50  ;;  %3915 = vmatprep.mubr.bf16.mxu1 %v9214_v62  ;;  %v10484_v50 = vld [vmem:[%s11298_s28 + $0x694] ss:$24 sps:$4 sm:$0xff]   ;;  %v10543_v6 = vld [vmem:[%s11298_s28 + $0x158] ss:$24 sps:$4 sm:$0xff]  }
 0x14f   : > { %v1988_v7 = vpop.f32.mrf.mxu0  ;;  %v2381_v13 = vpop.f32.mrf.mxu1 }
 0x150   : > { %v2959_v13 = vld [vmem:[%s11298_s28 + $0x1c8] sm:$0xff] }
 0x151   : > { %v11723_v19 = vpop.f32.mrf.mxu0  ;;  %v11725_v20 = vpop.f32.mrf.mxu1 }
 0x152   : > { %13792 = vst [vmem:[#allocation13_spill] sm:$0xff] %v11725_v20  ;;  %v10545_v20 = vld [vmem:[%s11298_s28 + $0x15c] ss:$24 sps:$4 sm:$0xff]  }
 0x153   : > { %v1991_v18 = vpop.f32.mrf.mxu0  ;;  %v2384_v26 = vpop.f32.mrf.mxu1 }
 0x154   : > { %v9219_v18 = vcombine.low %v2955_v40, %v11135_v57  ;;  %v10605_v40 = vld [vmem:[%s13777_s1 + $0x298] sm:$0xff]   ;;  %v10487_v57 = vld [vmem:[%s11298_s28 + $0x8] ss:$24 sps:$4 sm:$0xff]  }
 0x155   : > { %v11730_v38 = vpop.f32.mrf.mxu0  ;;  %2185 = vmatmul.mubr.bf16.gmra.mxu0 %v10471_v8  ;;  %v11732_v39 = vpop.f32.mrf.mxu1  ;;  %3916 = vmatmul.mubr.bf16.gmra.mxu1 %v9213_v21 }
 0x156   : > { %13793 = vst [vmem:[#allocation14_spill] sm:$0xff] %v11732_v39  ;;  %2192 = vmatprep.mubr.bf16.mxu0 %v10479_v14  ;;  %3923 = vmatprep.mubr.bf16.mxu1 %v9217_v31  ;;  %v11136_v31 = vld [vmem:[%s11298_s28 + $0x1e0] sm:$0xff] }
 0x157   : > { %v1996_v30 = vpop.f32.mrf.mxu0  ;;  %v2389_v42 = vpop.f32.mrf.mxu1  ;;  %v9223_v26 = vcombine.high %v2959_v13, %v11136_v31  ;;  %5319 = vmatpush2.bf16.msra.mxu1 %v10605_v40 }
 0x158   : > { %5320 = vmatprep.subr.bf16.mxu1 %v13780_v1 }
 0x159   : > { %v11736_v34 = vpop.f32.mrf.mxu0  ;;  %v11738_v46 = vpop.f32.mrf.mxu1 }
 0x15a   : > { %13794 = vst [vmem:[#allocation15_spill] sm:$0xff] %v11738_v46  ;;  %v10527_v46 = vld [vmem:[%s11298_s28 + $0xf8] ss:$24 sps:$4 sm:$0xff]  }
 0x15b   : > { %v1999_v56 = vpop.f32.mrf.mxu0  ;;  %v2392_v61 = vpop.f32.mrf.mxu1 }
 0x15c   : > { %v9222_v61 = vcombine.low %v2959_v13, %v11136_v31  ;;  %v10494_v13 = vld [vmem:[%s13777_s1 + $0x130] sm:$0xff]  }
 0x15d   : > { %v11742_v62 = vpop.f32.mrf.mxu0  ;;  %2193 = vmatmul.mubr.bf16.gmra.mxu0 %v10477_v41  ;;  %v11744_v2 = vpop.f32.mrf.mxu1  ;;  %3924 = vmatmul.mubr.bf16.gmra.mxu1 %v9216_v47 }
 0x15e   : > { %13795 = vst [vmem:[#allocation16_spill] sm:$0xff] %v11744_v2  ;;  %2200 = vmatprep.mubr.bf16.mxu0 %v10484_v50  ;;  %3931 = vmatprep.mubr.bf16.mxu1 %v9220_v58 }
 0x15f   : > { %v2004_v7 = vpop.f32.mrf.mxu0  ;;  %v2397_v8 = vpop.f32.mrf.mxu1 }
 0x160   : > { %v10492_v7 = vld [vmem:[%s13777_s1 + $0x138] sm:$0xff]  }
 0x161   : > { %v11747_v14 = vpop.f32.mrf.mxu0  ;;  %v11750_v21 = vpop.f32.mrf.mxu1 }
 0x162   : > { %13796 = vst [vmem:[#allocation17_spill] sm:$0xff] %v11750_v21  ;;  %v10519_v21 = vld [vmem:[%s11298_s28 + $0xc8] ss:$24 sps:$4 sm:$0xff]  }
 0x163   : > { %v2007_v27 = vpop.f32.mrf.mxu0  ;;  %v2400_v30 = vpop.f32.mrf.mxu1 }
 0x165   : > { %v11754_v41 = vpop.f32.mrf.mxu0  ;;  %2201 = vmatmul.mubr.bf16.gmra.mxu0 %v10482_v15  ;;  %v11756_v42 = vpop.f32.mrf.mxu1  ;;  %3932 = vmatmul.mubr.bf16.gmra.mxu1 %v9219_v18  ;;  %v10497_v15 = vld [vmem:[%s11298_s28 + $0x3c] ss:$24 sps:$4 sm:$0xff]  }
 0x166   : > { %13797 = vst [vmem:[#allocation18_spill] sm:$0xff] %v11756_v42  ;;  %2241 = vmatprep.mubr.bf16.mxu0 %v10489_v25  ;;  %3939 = vmatprep.mubr.bf16.mxu1 %v9223_v26  ;;  %v10500_v25 = vld [vmem:[%s11298_s28 + $0x1fc] ss:$24 sps:$4 sm:$0xff]  }
 0x167   : > { %v2012_v47 = vpop.f32.mrf.mxu0  ;;  %v2405_v50 = vpop.f32.mrf.mxu1 }
 0x168   : > { %v10495_v50 = vld [vmem:[%s11298_s28 + $0x38] ss:$24 sps:$4 sm:$0xff]  }
 0x169   : > { %v11761_v56 = vpop.f32.mrf.mxu0  ;;  %v11764_v58 = vpop.f32.mrf.mxu1 }
 0x16a   : > { %13798 = vst [vmem:[#allocation19_spill] sm:$0xff] %v11764_v58 }
 0x16b   : > { %v2015_v8 = vpop.f32.mrf.mxu0  ;;  %v2408_v18 = vpop.f32.mrf.mxu1 }
 0x16c   : > { %v10504_v8 = vld [vmem:[%s11298_s28 + $0x6c] ss:$24 sps:$4 sm:$0xff]  }
 0x16d   : > { %v11772_v27 = vpop.f32.mrf.mxu0  ;;  %2242 = vmatmul.mubr.bf16.vlgmr.msra.gmra.mxu0 %v10487_v57  ;;  %v11774_v26 = vpop.f32.mrf.mxu1  ;;  %3940 = vmatmul.mubr.bf16.gmra.mxu1 %v9222_v61  ;;  %v10498_v57 = vld [vmem:[%s11298_s28 + $0x1f8] ss:$24 sps:$4 sm:$0xff]   ;;  %v10501_v61 = vld [vmem:[%s13777_s1 + $0x128] sm:$0xff]  }
 0x16e   : > { %13799 = vst [vmem:[#allocation20_spill] sm:$0xff] %v11774_v26  ;;  %2531 = vmatpush1.bf16.msra.mxu0 %v10492_v7  ;;  %2249 = vmatprep.mubr.bf16.mxu0 %v10497_v15  ;;  %v10508_v15 = vld [vmem:[%s11298_s28 + $0x22c] ss:$24 sps:$4 sm:$0xff]  }
 0x16f   : > { %v2020_v31 = vpop.f32.mrf.mxu0  ;;  %2532 = vmatprep.subr.bf16.mxu0 %v13780_v1  ;;  %v2413_v30 = vpop.f32.mrf.mxu1  ;;  %3947 = vmatprep.mubr.bf16.mxu1 %v10500_v25 }
 0x171   : > { %v11780_v47 = vpop.f32.mrf.mxu0  ;;  %v11783_v40 = vpop.f32.mrf.mxu1 }
 0x172   : > { %13800 = vst [vmem:[#allocation21_spill] sm:$0xff] %v11780_v47  ;;  %13801 = vst [vmem:[#allocation22_spill] sm:$0xff] %v11783_v40  ;;  %2533 = vmatpush1.bf16.msra.mxu0 %v10494_v13  ;;  %v10505_v13 = vld [vmem:[%s13777_s1 + $0x120] sm:$0xff]  }
 0x173   : > { %v2023_v7 = vpop.f32.mrf.mxu0  ;;  %2534 = vmatprep.subr.bf16.mxu0 %v13780_v1  ;;  %v2416_v18 = vpop.f32.mrf.mxu1  ;;  %v10502_v40 = vld [vmem:[%s11298_s28 + $0x68] ss:$24 sps:$4 sm:$0xff]  }
 0x175   : > { %v11792_v25 = vpop.f32.mrf.mxu0  ;;  %2250 = vmatmul.mubr.bf16.gmra.mxu0 %v10495_v50  ;;  %v11794_v31 = vpop.f32.mrf.mxu1  ;;  %3948 = vmatmul.mubr.bf16.gmra.mxu1 %v10498_v57  ;;  %v10506_v57 = vld [vmem:[%s11298_s28 + $0x228] ss:$24 sps:$4 sm:$0xff]  }
 0x176   : > { %13802 = vst [vmem:[#allocation23_spill] sm:$0xff] %v11792_v25  ;;  %13803 = vst [vmem:[#allocation24_spill] sm:$0xff] %v11794_v31  ;;  %2535 = vmatpush1.bf16.msra.mxu0 %v10501_v61  ;;  %2257 = vmatprep.mubr.bf16.mxu0 %v10504_v8  ;;  %v10509_v61 = vld [vmem:[%s13777_s1 + $0x118] sm:$0xff]  }
 0x177   : > { %v2028_v30 = vpop.f32.mrf.mxu0  ;;  %2536 = vmatprep.subr.bf16.mxu0 %v13780_v1  ;;  %v2421_v7 = vpop.f32.mrf.mxu1  ;;  %3955 = vmatprep.mubr.bf16.mxu1 %v10508_v15  ;;  %v10515_v8 = vld [vmem:[%s11298_s28 + $0x25c] ss:$24 sps:$4 sm:$0xff]  }
 0x178   : > { %v10512_v30 = vld [vmem:[%s11298_s28 + $0x9c] ss:$24 sps:$4 sm:$0xff]  }
 0x179   : > { %v11800_v18 = vpop.f32.mrf.mxu0  ;;  %v11803_v50 = vpop.f32.mrf.mxu1 }
 0x17a   : > { %13804 = vst [vmem:[#allocation25_spill] sm:$0xff] %v11800_v18  ;;  %13805 = vst [vmem:[#allocation26_spill] sm:$0xff] %v11803_v50  ;;  %2537 = vmatpush1.bf16.msra.mxu0 %v10505_v13  ;;  %v10516_v13 = vld [vmem:[%s13777_s1 + $0x110] sm:$0xff]  }
 0x17b   : > { %v2031_v31 = vpop.f32.mrf.mxu0  ;;  %2538 = vmatprep.subr.bf16.mxu0 %v13780_v1  ;;  %v2424_v26 = vpop.f32.mrf.mxu1 }
 0x17d   : > { %v11812_v15 = vpop.f32.mrf.mxu0  ;;  %2258 = vmatmul.mubr.bf16.gmra.mxu0 %v10502_v40  ;;  %v11814_v7 = vpop.f32.mrf.mxu1  ;;  %3956 = vmatmul.mubr.bf16.gmra.mxu1 %v10506_v57  ;;  %v10625_v40 = vld [vmem:[%s13777_s1 + $0x290] sm:$0xff]  }
 0x17e   : > { %13806 = vst [vmem:[#allocation27_spill] sm:$0xff] %v11812_v15  ;;  %13807 = vst [vmem:[#allocation28_spill] sm:$0xff] %v11814_v7  ;;  %2539 = vmatpush1.bf16.msra.mxu0 %v10509_v61  ;;  %2265 = vmatprep.mubr.bf16.mxu0 %v10512_v30  ;;  %v10510_v57 = vld [vmem:[%s11298_s28 + $0x98] ss:$24 sps:$4 sm:$0xff]  }
 0x17f   : > { %v2036_v31 = vpop.f32.mrf.mxu0  ;;  %2540 = vmatprep.subr.bf16.mxu0 %v13780_v1  ;;  %v2429_v26 = vpop.f32.mrf.mxu1  ;;  %3963 = vmatprep.mubr.bf16.mxu1 %v10515_v8  ;;  %v10513_v7 = vld [vmem:[%s11298_s28 + $0x258] ss:$24 sps:$4 sm:$0xff]   ;;  %v10521_v8 = vld [vmem:[%s11298_s28 + $0xcc] ss:$24 sps:$4 sm:$0xff]  }
 0x180   : > { %v10518_v31 = vld [vmem:[%s13777_s1 + $0x108] sm:$0xff]   ;;  %5321 = vmatpush2.bf16.msra.mxu1 %v10625_v40  ;;  %v10709_v15 = vld [vmem:[%s11298_s28 + $0x198] ss:$24 sps:$4 sm:$0xff]  }
 0x181   : > { %v11823_v50 = vpop.f32.mrf.mxu0  ;;  %v11826_v61 = vpop.f32.mrf.mxu1  ;;  %v10524_v26 = vld [vmem:[%s11298_s28 + $0x28c] ss:$24 sps:$4 sm:$0xff]   ;;  %5322 = vmatprep.subr.bf16.mxu1 %v13780_v1 }
 0x182   : > { %13808 = vst [vmem:[#allocation29_spill] sm:$0xff] %v11823_v50  ;;  %13809 = vst [vmem:[#allocation30_spill] sm:$0xff] %v11826_v61  ;;  %2541 = vmatpush1.bf16.msra.mxu0 %v10516_v13  ;;  %v10525_v13 = vld [vmem:[%s13777_s1 + $0x100] sm:$0xff]  }
 0x183   : > { %v2039_v30 = vpop.f32.mrf.mxu0  ;;  %2542 = vmatprep.subr.bf16.mxu0 %v13780_v1  ;;  %v2432_v58 = vpop.f32.mrf.mxu1  ;;  %v10702_v50 = vld [vmem:[%s11298_s28 + $0x168] ss:$24 sps:$4 sm:$0xff]  }
 0x185   : > { %v11836_v42 = vpop.f32.mrf.mxu0  ;;  %2266 = vmatmul.mubr.bf16.gmra.mxu0 %v10510_v57  ;;  %v11838_v61 = vpop.f32.mrf.mxu1  ;;  %3964 = vmatmul.mubr.bf16.gmra.mxu1 %v10513_v7  ;;  %v10526_v7 = vld [vmem:[%s13777_s1 + $0x178] sm:$0xff]  }
 0x186   : > { %13810 = vst [vmem:[#allocation31_spill] sm:$0xff] %v11836_v42  ;;  %13811 = vst [vmem:[#allocation32_spill] sm:$0xff] %v11838_v61  ;;  %2543 = vmatpush1.bf16.msra.mxu0 %v10518_v31  ;;  %2273 = vmatprep.mubr.bf16.mxu0 %v10521_v8  ;;  %v10522_v61 = vld [vmem:[%s11298_s28 + $0x288] ss:$24 sps:$4 sm:$0xff]   ;;  %v10529_v8 = vld [vmem:[%s11298_s28 + $0xfc] ss:$24 sps:$4 sm:$0xff]  }
 0x187   : > { %v2044_v40 = vpop.f32.mrf.mxu0  ;;  %3971 = vmatprep.mubr.bf16.mxu1 %v10524_v26  ;;  %v2437_v30 = vpop.f32.mrf.mxu1  ;;  %2544 = vmatprep.subr.bf16.mxu0 %v13780_v1  ;;  %v10532_v26 = vld [vmem:[%s11298_s28 + $0x2bc] ss:$24 sps:$4 sm:$0xff]   ;;  %v10696_v42 = vld [vmem:[%s11298_s28 + $0x138] ss:$24 sps:$4 sm:$0xff]  }
 0x189   : > { %v11844_v58 = vpop.f32.mrf.mxu0  ;;  %v11847_v57 = vpop.f32.mrf.mxu1 }
 0x18a   : > { %13812 = vst [vmem:[#allocation33_spill] sm:$0xff] %v11844_v58  ;;  %13813 = vst [vmem:[#allocation34_spill] sm:$0xff] %v11847_v57  ;;  %2545 = vmatpush1.bf16.msra.mxu0 %v10525_v13  ;;  %v10533_v13 = vld [vmem:[%s13777_s1 + $0x170] sm:$0xff]   ;;  %v13816_v57 = vmov 0   ;;  %v10690_v58 = vld [vmem:[%s11298_s28 + $0x108] ss:$24 sps:$4 sm:$0xff]  }
 0x18b   : > { %v2047_v31 = vpop.f32.mrf.mxu0  ;;  %2546 = vmatprep.subr.bf16.mxu0 %v13780_v1  ;;  %v2440_v40 = vpop.f32.mrf.mxu1 }
 0x18d   : > { %v11856_v30 = vpop.f32.mrf.mxu0  ;;  %2274 = vmatmul.mubr.bf16.gmra.mxu0 %v10519_v21  ;;  %v11858_v2 = vpop.f32.mrf.mxu1  ;;  %3972 = vmatmul.mubr.bf16.gmra.mxu1 %v10522_v61  ;;  %v10534_v61 = vld [vmem:[%s13777_s1 + $0x168] sm:$0xff]  }
 0x18e   : > { %13814 = vst [vmem:[#allocation35_spill] sm:$0xff] %v11856_v30  ;;  %13815 = vst [vmem:[#allocation36_spill] sm:$0xff] %v11858_v2  ;;  %2547 = vmatpush2.bf16.msra.mxu0 %v10526_v7  ;;  %2281 = vmatprep.mubr.bf16.mxu0 %v10529_v8  ;;  %v10530_v2 = vld [vmem:[%s11298_s28 + $0x2b8] ss:$24 sps:$4 sm:$0xff]   ;;  %v10540_v8 = vld [vmem:[%s11298_s28 + $0x2ec] ss:$24 sps:$4 sm:$0xff]  }
 0x18f   : > { %v2052_v31 = vpop.f32.mrf.mxu0  ;;  %3979 = vmatprep.mubr.bf16.mxu1 %v10532_v26  ;;  %v2445_v1 = vpop.f32.mrf.mxu1  ;;  %2548 = vmatprep.subr.bf16.mxu0 %v13816_v57  ;;  %v10680_v30 = vld [vmem:[%s11298_s28 + $0xd8] ss:$24 sps:$4 sm:$0xff]  }
 0x190   : > { %v10537_v31 = vld [vmem:[%s11298_s28 + $0x12c] ss:$24 sps:$4 sm:$0xff]  }
 0x191   : > { %v11864_v40 = vpop.f32.mrf.mxu0  ;;  %v11867_v21 = vpop.f32.mrf.mxu1 }
 0x192   : > { %13817 = vst [vmem:[#allocation37_spill] sm:$0xff] %v11864_v40  ;;  %13818 = vst [vmem:[#allocation38_spill] sm:$0xff] %v11867_v21  ;;  %2549 = vmatpush2.bf16.msra.mxu0 %v10533_v13  ;;  %v10541_v13 = vld [vmem:[%s13777_s1 + $0x160] sm:$0xff]  }
 0x193   : > { %v2055_v7 = vpop.f32.mrf.mxu0  ;;  %2550 = vmatprep.subr.bf16.mxu0 %v13816_v57  ;;  %v2448_v1 = vpop.f32.mrf.mxu1  ;;  %v10572_v40 = vld [vmem:[%s11298_s28 + $0x3ac] ss:$24 sps:$4 sm:$0xff]  }
 0x195   : > { %v11876_v26 = vpop.f32.mrf.mxu0  ;;  %2282 = vmatmul.mubr.bf16.gmra.mxu0 %v10527_v46  ;;  %v11878_v39 = vpop.f32.mrf.mxu1  ;;  %3980 = vmatmul.mubr.bf16.gmra.mxu1 %v10530_v2  ;;  %v10644_v46 = vld [vmem:[%s13777_s1 + $0x288] sm:$0xff]  }
 0x196   : > { %13819 = vst [vmem:[#allocation39_spill] sm:$0xff] %v11876_v26  ;;  %13820 = vst [vmem:[#allocation40_spill] sm:$0xff] %v11878_v39  ;;  %2551 = vmatpush2.bf16.msra.mxu0 %v10534_v61  ;;  %2289 = vmatprep.mubr.bf16.mxu0 %v10537_v31  ;;  %v10535_v39 = vld [vmem:[%s11298_s28 + $0x128] ss:$24 sps:$4 sm:$0xff]   ;;  %v10549_v31 = vld [vmem:[%s11298_s28 + $0x31c] ss:$24 sps:$4 sm:$0xff]  }
 0x197   : > { %v2060_v7 = vpop.f32.mrf.mxu0  ;;  %3987 = vmatprep.mubr.bf16.mxu1 %v10540_v8  ;;  %v2453_v21 = vpop.f32.mrf.mxu1  ;;  %2552 = vmatprep.subr.bf16.mxu0 %v13816_v57  ;;  %v10538_v61 = vld [vmem:[%s11298_s28 + $0x2e8] ss:$24 sps:$4 sm:$0xff]  }
 0x198   : > { %5323 = vmatpush2.bf16.msra.mxu1 %v10644_v46  ;;  %v10546_v21 = vld [vmem:[%s13777_s1 + $0x158] sm:$0xff]  }
 0x199   : > { %v11887_v1 = vpop.f32.mrf.mxu0  ;;  %v11890_v2 = vpop.f32.mrf.mxu1  ;;  %5324 = vmatprep.subr.bf16.mxu1 %v13816_v57 }
 0x19a   : > { %13821 = vst [vmem:[#allocation41_spill] sm:$0xff] %v11887_v1  ;;  %13822 = vst [vmem:[#allocation42_spill] sm:$0xff] %v11890_v2  ;;  %2553 = vmatpush2.bf16.msra.mxu0 %v10541_v13 }
 0x19b   : > { %v2063_v7 = vpop.f32.mrf.mxu0  ;;  %2554 = vmatprep.subr.bf16.mxu0 %v13816_v57  ;;  %v2456_v8 = vpop.f32.mrf.mxu1 }
 0x19c   : > { %v10550_v7 = vld [vmem:[%s13777_s1 + $0x150] sm:$0xff]  }
 0x19d   : > { %v11900_v1 = vpop.f32.mrf.mxu0  ;;  %2290 = vmatmul.mubr.bf16.gmra.mxu0 %v10535_v39  ;;  %v11902_v13 = vpop.f32.mrf.mxu1  ;;  %3988 = vmatmul.mubr.bf16.gmra.mxu1 %v10538_v61  ;;  %v10547_v39 = vld [vmem:[%s11298_s28 + $0x318] ss:$24 sps:$4 sm:$0xff]   ;;  %v10557_v61 = vld [vmem:[%s13777_s1 + $0x148] sm:$0xff]  }
 0x19e   : > { %13823 = vst [vmem:[#allocation43_spill] sm:$0xff] %v11900_v1  ;;  %13824 = vst [vmem:[#allocation44_spill] sm:$0xff] %v11902_v13  ;;  %2297 = vmatprep.mubr.bf16.mxu0 %v10545_v20  ;;  %2555 = vmatpush2.bf16.msra.mxu0 %v10546_v21  ;;  %v10553_v13 = vld [vmem:[%s11298_s28 + $0x18c] ss:$24 sps:$4 sm:$0xff]  }
 0x19f   : > { %v2068_v46 = vpop.f32.mrf.mxu0  ;;  %3995 = vmatprep.mubr.bf16.mxu1 %v10549_v31  ;;  %v2461_v2 = vpop.f32.mrf.mxu1  ;;  %2556 = vmatprep.subr.bf16.mxu0 %v13816_v57  ;;  %v10556_v20 = vld [vmem:[%s11298_s28 + $0x34c] ss:$24 sps:$4 sm:$0xff]  }
 0x1a0   : > { %v10558_v46 = vld [vmem:[%s13777_s1 + $0x140] sm:$0xff]  }
 0x1a1   : > { %v11908_v8 = vpop.f32.mrf.mxu0  ;;  %v11911_v1 = vpop.f32.mrf.mxu1 }
 0x1a2   : > { %13825 = vst [vmem:[#allocation45_spill] sm:$0xff] %v11908_v8  ;;  %13826 = vst [vmem:[#allocation46_spill] sm:$0xff] %v11911_v1  ;;  %2557 = vmatpush2.bf16.msra.mxu0 %v10550_v7 }
 0x1a3   : > { %v2071_v26 = vpop.f32.mrf.mxu0  ;;  %v2464_v21 = vpop.f32.mrf.mxu1  ;;  %2558 = vmatprep.subr.bf16.mxu0 %v13816_v57 }
 0x1a4   : > { %v10565_v21 = vld [vmem:[%s13777_s1 + $0x238] sm:$0xff]  }
 0x1a5   : > { %v11920_v2 = vpop.f32.mrf.mxu0  ;;  %2298 = vmatmul.mubr.bf16.gmra.mxu0 %v10543_v6  ;;  %v11922_v31 = vpop.f32.mrf.mxu1  ;;  %3996 = vmatmul.mubr.bf16.gmra.mxu1 %v10547_v39 }
 0x1a6   : > { %13827 = vst [vmem:[#allocation47_spill] sm:$0xff] %v11920_v2  ;;  %13828 = vst [vmem:[#allocation48_spill] sm:$0xff] %v11922_v31  ;;  %2305 = vmatprep.mubr.bf16.mxu0 %v10553_v13  ;;  %4003 = vmatprep.mubr.bf16.mxu1 %v10556_v20  ;;  %v10551_v31 = vld [vmem:[%s11298_s28 + $0x188] ss:$24 sps:$4 sm:$0xff]  }
 0x1a7   : > { %v2076_v26 = vpop.f32.mrf.mxu0  ;;  %2559 = vmatpush2.bf16.msra.mxu0 %v10557_v61  ;;  %v2469_v7 = vpop.f32.mrf.mxu1  ;;  %v10554_v13 = vld [vmem:[%s11298_s28 + $0x348] ss:$24 sps:$4 sm:$0xff]   ;;  %v10564_v61 = vld [vmem:[%s11298_s28 + $0x37c] ss:$24 sps:$4 sm:$0xff]  }
 0x1a8   : > { %2560 = vmatprep.subr.bf16.mxu0 %v13816_v57  ;;  %v10561_v26 = vld [vmem:[%s11298_s28 + $0x14] ss:$24 sps:$4 sm:$0xff]  }
 0x1a9   : > { %v11931_v6 = vpop.f32.mrf.mxu0  ;;  %v11934_v39 = vpop.f32.mrf.mxu1 }
 0x1aa   : > { %13829 = vst [vmem:[#allocation49_spill] sm:$0xff] %v11931_v6  ;;  %13830 = vst [vmem:[#allocation50_spill] sm:$0xff] %v11934_v39 }
 0x1ab   : > { %v2079_v20 = vpop.f32.mrf.mxu0  ;;  %2561 = vmatpush2.bf16.msra.mxu0 %v10558_v46  ;;  %v2472_v1 = vpop.f32.mrf.mxu1  ;;  %v10664_v46 = vld [vmem:[%s13777_s1 + $0x280] sm:$0xff]  }
 0x1ac   : > { %10093 = vmatprep.subr.bf16.mxu0 %v10565_v21  ;;  %v10559_v1 = vld [vmem:[%s11298_s28 + $0x10] ss:$24 sps:$4 sm:$0xff]   ;;  %5325 = vmatpush2.bf16.msra.mxu1 %v10664_v46 }
 0x1ad   : > { %v11939_v7 = vpop.f32.mrf.mxu0  ;;  %2306 = vmatmul.mubr.bf16.gmra.mxu0 %v10551_v31  ;;  %v11941_v2 = vpop.f32.mrf.mxu1  ;;  %4004 = vmatmul.mubr.bf16.gmra.mxu1 %v10554_v13  ;;  %v10569_v31 = vld [vmem:[%s11298_s28 + $0x44] ss:$24 sps:$4 sm:$0xff]  }
 0x1ae   : > { %13831 = vst [vmem:[#allocation51_spill] sm:$0xff] %v11939_v7  ;;  %13832 = vst [vmem:[#allocation52_spill] sm:$0xff] %v11941_v2  ;;  %2562 = vmatprep.mubr.bf16.mxu0 %v10561_v26  ;;  %4011 = vmatprep.mubr.bf16.mxu1 %v10564_v61 }
 0x1af   : > { %v2084_v6 = vpop.f32.mrf.mxu0  ;;  %v2477_v39 = vpop.f32.mrf.mxu1  ;;  %7568 = vmatprep.subr.bf16.mxu1 %v13816_v57 }
 0x1b0   : > { %v10592_v39 = vld [vmem:[%s13777_s1 + $0x230] sm:$0xff]  }
 0x1b1   : > { %v11946_v20 = vpop.f32.mrf.mxu0  ;;  %v11949_v8 = vpop.f32.mrf.mxu1 }
 0x1b2   : > { %13833 = vst [vmem:[#allocation53_spill] sm:$0xff] %v11946_v20  ;;  %13834 = vst [vmem:[#allocation54_spill] sm:$0xff] %v11949_v8  ;;  %v10567_v8 = vld [vmem:[%s11298_s28 + $0x40] ss:$24 sps:$4 sm:$0xff]   ;;  %v10581_v20 = vld [vmem:[%s11298_s28 + $0xa4] ss:$24 sps:$4 sm:$0xff]  }
 0x1b3   : > { %v2087_v7 = vpop.f32.mrf.mxu0  ;;  %v2480_v6 = vpop.f32.mrf.mxu1 }
 0x1b4   : > { %v10624_v7 = vld [vmem:[%s13777_s1 + $0x228] sm:$0xff]  }
 0x1b5   : > { %v11958_v13 = vpop.f32.mrf.mxu0  ;;  %2563 = vmatmul.mubr.bf16.vlgmr.msra.gmra.mxu0 %v10559_v1  ;;  %v11960_v26 = vpop.f32.mrf.mxu1  ;;  %4012 = vmatmul.mubr.bf16.gmra.mxu1 %v10562_v55  ;;  %v10570_v1 = vld [vmem:[%s11298_s28 + $0x3a8] ss:$24 sps:$4 sm:$0xff]   ;;  %v10578_v55 = vld [vmem:[%s11298_s28 + $0x3dc] ss:$24 sps:$4 sm:$0xff]  }
 0x1b6   : > { %13835 = vst [vmem:[#allocation55_spill] sm:$0xff] %v11958_v13  ;;  %13836 = vst [vmem:[#allocation56_spill] sm:$0xff] %v11960_v26  ;;  %10094 = vmatpush3.bf16.msra.mxu0 %v10565_v21  ;;  %2570 = vmatprep.mubr.bf16.mxu0 %v10569_v31  ;;  %v10575_v13 = vld [vmem:[%s11298_s28 + $0x74] ss:$24 sps:$4 sm:$0xff]   ;;  %v10651_v21 = vld [vmem:[%s13777_s1 + $0x220] sm:$0xff]  }
 0x1b7   : > { %v2092_v61 = vpop.f32.mrf.mxu0  ;;  %4019 = vmatprep.mubr.bf16.mxu1 %v10572_v40  ;;  %v2485_v46 = vpop.f32.mrf.mxu1  ;;  %10095 = vmatprep.subr.bf16.mxu0 %v10592_v39 }
 0x1b9   : > { %v11965_v6 = vpop.f32.mrf.mxu0  ;;  %v11968_v2 = vpop.f32.mrf.mxu1 }
 0x1ba   : > { %13837 = vst [vmem:[#allocation57_spill] sm:$0xff] %v11965_v6  ;;  %13838 = vst [vmem:[#allocation58_spill] sm:$0xff] %v11968_v2  ;;  %10096 = vmatpush3.bf16.msra.mxu0 %v10592_v39  ;;  %v10576_v6 = vld [vmem:[%s11298_s28 + $0x3d8] ss:$24 sps:$4 sm:$0xff]  }
 0x1bb   : > { %v2095_v26 = vpop.f32.mrf.mxu0  ;;  %10097 = vmatprep.subr.bf16.mxu0 %v10624_v7  ;;  %v2488_v40 = vpop.f32.mrf.mxu1 }
 0x1bc   : > { %v10573_v40 = vld [vmem:[%s11298_s28 + $0x70] ss:$24 sps:$4 sm:$0xff]  }
 0x1bd   : > { %v11976_v31 = vpop.f32.mrf.mxu0  ;;  %2571 = vmatmul.mubr.bf16.gmra.mxu0 %v10567_v8  ;;  %v11978_v61 = vpop.f32.mrf.mxu1  ;;  %4020 = vmatmul.mubr.bf16.gmra.mxu1 %v10570_v1  ;;  %v10683_v1 = vld [vmem:[%s13777_s1 + $0x218] sm:$0xff]  }
 0x1be   : > { %13839 = vst [vmem:[#allocation59_spill] sm:$0xff] %v11976_v31  ;;  %13840 = vst [vmem:[#allocation60_spill] sm:$0xff] %v11978_v61  ;;  %2578 = vmatprep.mubr.bf16.mxu0 %v10575_v13  ;;  %4027 = vmatprep.mubr.bf16.mxu1 %v10578_v55 }
 0x1bf   : > { %v2100_v39 = vpop.f32.mrf.mxu0  ;;  %10098 = vmatpush3.bf16.msra.mxu0 %v10624_v7  ;;  %v2493_v26 = vpop.f32.mrf.mxu1 }
 0x1c0   : > { %10099 = vmatprep.subr.bf16.mxu0 %v10651_v21  ;;  %v10579_v39 = vld [vmem:[%s11298_s28 + $0xa0] ss:$24 sps:$4 sm:$0xff]  }
 0x1c1   : > { %v11980_v46 = vpop.f32.mrf.mxu0  ;;  %v11983_v2 = vpop.f32.mrf.mxu1 }
 0x1c2   : > { %13841 = vst [vmem:[#allocation61_spill] sm:$0xff] %v11980_v46  ;;  %13842 = vst [vmem:[#allocation62_spill] sm:$0xff] %v11983_v2  ;;  %v10679_v46 = vld [vmem:[%s11298_s28 + $0x374] ss:$24 sps:$4 sm:$0xff]  }
 0x1c3   : > { %v2103_v31 = vpop.f32.mrf.mxu0  ;;  %10100 = vmatpush3.bf16.msra.mxu0 %v10651_v21  ;;  %v2496_v8 = vpop.f32.mrf.mxu1 }
 0x1c4   : > { %10101 = vmatprep.subr.bf16.mxu0 %v10683_v1  ;;  %v10588_v8 = vld [vmem:[%s11298_s28 + $0xd4] ss:$24 sps:$4 sm:$0xff]  }
 0x1c5   : > { %v11988_v13 = vpop.f32.mrf.mxu0  ;;  %2579 = vmatmul.mubr.bf16.gmra.mxu0 %v10573_v40  ;;  %v11990_v7 = vpop.f32.mrf.mxu1  ;;  %4028 = vmatmul.mubr.bf16.gmra.mxu1 %v10576_v6  ;;  %v10582_v40 = vld [vmem:[%s11298_s28 + $0x408] ss:$24 sps:$4 sm:$0xff]   ;;  %v10591_v6 = vld [vmem:[%s11298_s28 + $0x43c] ss:$24 sps:$4 sm:$0xff]  }
 0x1c6   : > { %13843 = vst [vmem:[#allocation63_spill] sm:$0xff] %v11988_v13  ;;  %13844 = vst [vmem:[#allocation64_spill] sm:$0xff] %v11990_v7  ;;  %2586 = vmatprep.mubr.bf16.mxu0 %v10581_v20  ;;  %4035 = vmatprep.mubr.bf16.mxu1 %v10584_v44 }
 0x1c7   : > { %v2108_v55 = vpop.f32.mrf.mxu0  ;;  %v2501_v31 = vpop.f32.mrf.mxu1  ;;  %10102 = vmatpush3.bf16.msra.mxu0 %v10683_v1 }
 0x1c9   : > { %v11995_v21 = vpop.f32.mrf.mxu0  ;;  %v11998_v26 = vpop.f32.mrf.mxu1 }
 0x1ca   : > { %13845 = vst [vmem:[#allocation65_spill] sm:$0xff] %v11995_v21  ;;  %13846 = vst [vmem:[#allocation66_spill] sm:$0xff] %v11998_v26  ;;  %v10586_v26 = vld [vmem:[%s11298_s28 + $0xd0] ss:$24 sps:$4 sm:$0xff]   ;;  %v10595_v21 = vld [vmem:[%s11298_s28 + $0x104] ss:$24 sps:$4 sm:$0xff]  }
 0x1cb   : > { %v2111_v20 = vpop.f32.mrf.mxu0  ;;  %v2504_v7 = vpop.f32.mrf.mxu1 }
 0x1cc   : > { %v10589_v20 = vld [vmem:[%s11298_s28 + $0x438] ss:$24 sps:$4 sm:$0xff]  }
 0x1cd   : > { %v12003_v2 = vpop.f32.mrf.mxu0  ;;  %2587 = vmatmul.mubr.bf16.gmra.mxu0 %v10579_v39  ;;  %v12005_v44 = vpop.f32.mrf.mxu1  ;;  %4036 = vmatmul.mubr.bf16.gmra.mxu1 %v10582_v40 }
 0x1ce   : > { %13847 = vst [vmem:[#allocation67_spill] sm:$0xff] %v12003_v2  ;;  %13848 = vst [vmem:[#allocation68_spill] sm:$0xff] %v12005_v44  ;;  %2594 = vmatprep.mubr.bf16.mxu0 %v10588_v8  ;;  %4043 = vmatprep.mubr.bf16.mxu1 %v10591_v6  ;;  %v10598_v2 = vld [vmem:[%s11298_s28 + $0x46c] ss:$24 sps:$4 sm:$0xff]  }
 0x1cf   : > { %v2116_v55 = vpop.f32.mrf.mxu0  ;;  %v2509_v1 = vpop.f32.mrf.mxu1 }
 0x1d0   : > { %v10593_v1 = vld [vmem:[%s11298_s28 + $0x100] ss:$24 sps:$4 sm:$0xff]  }
 0x1d1   : > { %v12007_v31 = vpop.f32.mrf.mxu0  ;;  %v12010_v61 = vpop.f32.mrf.mxu1 }
 0x1d2   : > { %13849 = vst [vmem:[#allocation69_spill] sm:$0xff] %v12007_v31  ;;  %13850 = vst [vmem:[#allocation70_spill] sm:$0xff] %v12010_v61  ;;  %v10601_v31 = vld [vmem:[%s11298_s28 + $0x134] ss:$24 sps:$4 sm:$0xff]  }
 0x1d3   : > { %v2119_v7 = vpop.f32.mrf.mxu0  ;;  %v2512_v39 = vpop.f32.mrf.mxu1 }
 0x1d4   : > { %v10596_v7 = vld [vmem:[%s11298_s28 + $0x468] ss:$24 sps:$4 sm:$0xff]  }
 0x1d5   : > { %v12015_v44 = vpop.f32.mrf.mxu0  ;;  %2595 = vmatmul.mubr.bf16.gmra.mxu0 %v10586_v26  ;;  %v12017_v40 = vpop.f32.mrf.mxu1  ;;  %4044 = vmatmul.mubr.bf16.gmra.mxu1 %v10589_v20 }
 0x1d6   : > { %13851 = vst [vmem:[#allocation71_spill] sm:$0xff] %v12015_v44  ;;  %13852 = vst [vmem:[#allocation72_spill] sm:$0xff] %v12017_v40  ;;  %2602 = vmatprep.mubr.bf16.mxu0 %v10595_v21  ;;  %4051 = vmatprep.mubr.bf16.mxu1 %v10598_v2  ;;  %v10604_v44 = vld [vmem:[%s11298_s28 + $0x49c] ss:$24 sps:$4 sm:$0xff]  }
 0x1d7   : > { %v2124_v8 = vpop.f32.mrf.mxu0  ;;  %v2517_v6 = vpop.f32.mrf.mxu1 }
 0x1d8   : > { %v10599_v6 = vld [vmem:[%s11298_s28 + $0x130] ss:$24 sps:$4 sm:$0xff]  }
 0x1d9   : > { %v12019_v55 = vpop.f32.mrf.mxu0  ;;  %v12022_v61 = vpop.f32.mrf.mxu1 }
 0x1da   : > { %13853 = vst [vmem:[#allocation73_spill] sm:$0xff] %v12019_v55  ;;  %13854 = vst [vmem:[#allocation74_spill] sm:$0xff] %v12022_v61  ;;  %v10608_v55 = vld [vmem:[%s11298_s28 + $0x164] ss:$24 sps:$4 sm:$0xff]  }
 0x1db   : > { %v2127_v39 = vpop.f32.mrf.mxu0  ;;  %v2520_v26 = vpop.f32.mrf.mxu1 }
 0x1dc   : > { %v10602_v39 = vld [vmem:[%s11298_s28 + $0x498] ss:$24 sps:$4 sm:$0xff]  }
 0x1dd   : > { %v12027_v40 = vpop.f32.mrf.mxu0  ;;  %2603 = vmatmul.mubr.bf16.gmra.mxu0 %v10593_v1  ;;  %v12029_v21 = vpop.f32.mrf.mxu1  ;;  %4052 = vmatmul.mubr.bf16.gmra.mxu1 %v10596_v7 }
 0x1de   : > { %13855 = vst [vmem:[#allocation75_spill] sm:$0xff] %v12027_v40  ;;  %13856 = vst [vmem:[#allocation76_spill] sm:$0xff] %v12029_v21  ;;  %2610 = vmatprep.mubr.bf16.mxu0 %v10601_v31  ;;  %4059 = vmatprep.mubr.bf16.mxu1 %v10604_v44  ;;  %v10611_v40 = vld [vmem:[%s11298_s28 + $0x4cc] ss:$24 sps:$4 sm:$0xff]  }
 0x1df   : > { %v2132_v2 = vpop.f32.mrf.mxu0  ;;  %v2525_v20 = vpop.f32.mrf.mxu1 }
 0x1e0   : > { %v10606_v20 = vld [vmem:[%s11298_s28 + $0x160] ss:$24 sps:$4 sm:$0xff]  }
 0x1e1   : > { %v12031_v8 = vpop.f32.mrf.mxu0  ;;  %v12034_v61 = vpop.f32.mrf.mxu1 }
 0x1e2   : > { %13857 = vst [vmem:[#allocation77_spill] sm:$0xff] %v12031_v8  ;;  %13858 = vst [vmem:[#allocation78_spill] sm:$0xff] %v12034_v61  ;;  %v10609_v8 = vld [vmem:[%s11298_s28 + $0x4c8] ss:$24 sps:$4 sm:$0xff]  }
 0x1e3   : > { %v2135_v26 = vpop.f32.mrf.mxu0  ;;  %v2528_v1 = vpop.f32.mrf.mxu1 }
 0x1e4   : > { %v10614_v26 = vld [vmem:[%s11298_s28 + $0x194] ss:$24 sps:$4 sm:$0xff]  }
 0x1e5   : > { %v12039_v21 = vpop.f32.mrf.mxu0  ;;  %2611 = vmatmul.mubr.bf16.gmra.mxu0 %v10599_v6  ;;  %v12041_v31 = vpop.f32.mrf.mxu1  ;;  %4060 = vmatmul.mubr.bf16.gmra.mxu1 %v10602_v39  ;;  %v10710_v1 = vld [vmem:[%s13777_s1 + $0x210] sm:$0xff]  }
 0x1e6   : > { %13859 = vst [vmem:[#allocation79_spill] sm:$0xff] %v12039_v21  ;;  %13860 = vst [vmem:[#allocation80_spill] sm:$0xff] %v12041_v31  ;;  %2618 = vmatprep.mubr.bf16.mxu0 %v10608_v55  ;;  %4067 = vmatprep.mubr.bf16.mxu1 %v10611_v40  ;;  %v10617_v31 = vld [vmem:[%s11298_s28 + $0x4fc] ss:$24 sps:$4 sm:$0xff]  }
 0x1e7   : > { %v2140_v44 = vpop.f32.mrf.mxu0  ;;  %v3871_v7 = vpop.f32.mrf.mxu1  ;;  %10103 = vmatprep.subr.bf16.mxu0 %v10710_v1  ;;  %v10620_v21 = vld [vmem:[%s11298_s28 + $0x1c4] ss:$24 sps:$4 sm:$0xff]  }
 0x1e8   : > { %10104 = vmatpush3.bf16.msra.mxu0 %v10710_v1 }
 0x1e9   : > { %v12043_v2 = vpop.f32.mrf.mxu0  ;;  %v12046_v61 = vpop.f32.mrf.mxu1 }
 0x1ea   : > { %13861 = vst [vmem:[#allocation81_spill] sm:$0xff] %v12043_v2  ;;  %13862 = vst [vmem:[#allocation82_spill] sm:$0xff] %v12046_v61 }
 0x1eb   : > { %v2143_v6 = vpop.f32.mrf.mxu0  ;;  %v3874_v55 = vpop.f32.mrf.mxu1 }
 0x1ec   : > { %v10612_v6 = vld [vmem:[%s11298_s28 + $0x190] ss:$24 sps:$4 sm:$0xff]  }
 0x1ed   : > { %v12054_v40 = vpop.f32.mrf.mxu0  ;;  %2619 = vmatmul.mubr.bf16.gmra.mxu0 %v10606_v20  ;;  %v12056_v39 = vpop.f32.mrf.mxu1  ;;  %4068 = vmatmul.mubr.bf16.gmra.mxu1 %v10609_v8  ;;  %v10615_v55 = vld [vmem:[%s11298_s28 + $0x4f8] ss:$24 sps:$4 sm:$0xff]   ;;  %v10623_v20 = vld [vmem:[%s11298_s28 + $0x52c] ss:$24 sps:$4 sm:$0xff]  }
 0x1ee   : > { %13863 = vst [vmem:[#allocation83_spill] sm:$0xff] %v12054_v40  ;;  %13864 = vst [vmem:[#allocation84_spill] sm:$0xff] %v12056_v39  ;;  %2626 = vmatprep.mubr.bf16.mxu0 %v10614_v26  ;;  %4075 = vmatprep.mubr.bf16.mxu1 %v10617_v31 }
 0x1ef   : > { %v2148_v44 = vpop.f32.mrf.mxu0  ;;  %v3879_v7 = vpop.f32.mrf.mxu1 }
 0x1f0   : > { %v10618_v7 = vld [vmem:[%s11298_s28 + $0x1c0] ss:$24 sps:$4 sm:$0xff]  }
 0x1f1   : > { %v12058_v61 = vpop.f32.mrf.mxu0  ;;  %v12061_v2 = vpop.f32.mrf.mxu1 }
 0x1f2   : > { %13865 = vst [vmem:[#allocation85_spill] sm:$0xff] %v12058_v61  ;;  %13866 = vst [vmem:[#allocation86_spill] sm:$0xff] %v12061_v2  ;;  %v10628_v61 = vld [vmem:[%s11298_s28 + $0x1f4] ss:$24 sps:$4 sm:$0xff]  }
 0x1f3   : > { %v2151_v40 = vpop.f32.mrf.mxu0  ;;  %v3882_v39 = vpop.f32.mrf.mxu1 }
 0x1f4   : > { %v10621_v40 = vld [vmem:[%s11298_s28 + $0x528] ss:$24 sps:$4 sm:$0xff]  }
 0x1f5   : > { %v12066_v8 = vpop.f32.mrf.mxu0  ;;  %2627 = vmatmul.mubr.bf16.gmra.mxu0 %v10612_v6  ;;  %v12068_v31 = vpop.f32.mrf.mxu1  ;;  %4076 = vmatmul.mubr.bf16.gmra.mxu1 %v10615_v55 }
 0x1f6   : > { %13867 = vst [vmem:[#allocation87_spill] sm:$0xff] %v12066_v8  ;;  %13868 = vst [vmem:[#allocation88_spill] sm:$0xff] %v12068_v31  ;;  %2634 = vmatprep.mubr.bf16.mxu0 %v10620_v21  ;;  %4083 = vmatprep.mubr.bf16.mxu1 %v10623_v20  ;;  %v10631_v8 = vld [vmem:[%s11298_s28 + $0x55c] ss:$24 sps:$4 sm:$0xff]  }
 0x1f7   : > { %v2156_v26 = vpop.f32.mrf.mxu0  ;;  %v3887_v1 = vpop.f32.mrf.mxu1 }
 0x1f8   : > { %v10626_v1 = vld [vmem:[%s11298_s28 + $0x1f0] ss:$24 sps:$4 sm:$0xff]  }
 0x1f9   : > { %v12070_v44 = vpop.f32.mrf.mxu0  ;;  %v12073_v2 = vpop.f32.mrf.mxu1 }
 0x1fa   : > { %13869 = vst [vmem:[#allocation89_spill] sm:$0xff] %v12070_v44  ;;  %13870 = vst [vmem:[#allocation90_spill] sm:$0xff] %v12073_v2  ;;  %v10634_v44 = vld [vmem:[%s11298_s28 + $0x224] ss:$24 sps:$4 sm:$0xff]  }
 0x1fb   : > { %v2159_v39 = vpop.f32.mrf.mxu0  ;;  %v3890_v6 = vpop.f32.mrf.mxu1 }
 0x1fc   : > { %v10629_v39 = vld [vmem:[%s11298_s28 + $0x558] ss:$24 sps:$4 sm:$0xff]  }
 0x1fd   : > { %v12078_v31 = vpop.f32.mrf.mxu0  ;;  %2635 = vmatmul.mubr.bf16.gmra.mxu0 %v10618_v7  ;;  %v12080_v21 = vpop.f32.mrf.mxu1  ;;  %4084 = vmatmul.mubr.bf16.gmra.mxu1 %v10621_v40 }
 0x1fe   : > { %13871 = vst [vmem:[#allocation91_spill] sm:$0xff] %v12078_v31  ;;  %13872 = vst [vmem:[#allocation92_spill] sm:$0xff] %v12080_v21  ;;  %2642 = vmatprep.mubr.bf16.mxu0 %v10628_v61  ;;  %4091 = vmatprep.mubr.bf16.mxu1 %v10631_v8  ;;  %v10637_v31 = vld [vmem:[%s11298_s28 + $0x58c] ss:$24 sps:$4 sm:$0xff]  }
 0x1ff   : > { %v2164_v55 = vpop.f32.mrf.mxu0  ;;  %v3895_v20 = vpop.f32.mrf.mxu1 }
 0x200   : > { %v10632_v20 = vld [vmem:[%s11298_s28 + $0x220] ss:$24 sps:$4 sm:$0xff]  }
 0x201   : > { %v12082_v26 = vpop.f32.mrf.mxu0  ;;  %v12085_v2 = vpop.f32.mrf.mxu1 }
 0x202   : > { %13873 = vst [vmem:[#allocation93_spill] sm:$0xff] %v12082_v26  ;;  %13874 = vst [vmem:[#allocation94_spill] sm:$0xff] %v12085_v2  ;;  %v10635_v26 = vld [vmem:[%s11298_s28 + $0x588] ss:$24 sps:$4 sm:$0xff]  }
 0x203   : > { %v2167_v6 = vpop.f32.mrf.mxu0  ;;  %v3898_v7 = vpop.f32.mrf.mxu1 }
 0x204   : > { %v10640_v6 = vld [vmem:[%s11298_s28 + $0x254] ss:$24 sps:$4 sm:$0xff]  }
 0x205   : > { %v12090_v21 = vpop.f32.mrf.mxu0  ;;  %2643 = vmatmul.mubr.bf16.gmra.mxu0 %v10626_v1  ;;  %v12092_v61 = vpop.f32.mrf.mxu1  ;;  %4092 = vmatmul.mubr.bf16.gmra.mxu1 %v10629_v39  ;;  %v10643_v7 = vld [vmem:[%s11298_s28 + $0x5bc] ss:$24 sps:$4 sm:$0xff]  }
 0x206   : > { %13875 = vst [vmem:[#allocation95_spill] sm:$0xff] %v12090_v21  ;;  %13876 = vst [vmem:[#allocation96_spill] sm:$0xff] %v12092_v61  ;;  %2650 = vmatprep.mubr.bf16.mxu0 %v10634_v44  ;;  %4099 = vmatprep.mubr.bf16.mxu1 %v10637_v31  ;;  %v10741_v31 = vld [vmem:[%s13777_s1 + $0x208] sm:$0xff]  }
 0x207   : > { %v2172_v8 = vpop.f32.mrf.mxu0  ;;  %v3903_v40 = vpop.f32.mrf.mxu1  ;;  %10105 = vmatprep.subr.bf16.mxu0 %v10741_v31 }
 0x208   : > { %10106 = vmatpush3.bf16.msra.mxu0 %v10741_v31 }
 0x209   : > { %v12094_v55 = vpop.f32.mrf.mxu0  ;;  %v12097_v2 = vpop.f32.mrf.mxu1 }
 0x20a   : > { %13877 = vst [vmem:[#allocation97_spill] sm:$0xff] %v12094_v55  ;;  %13878 = vst [vmem:[#allocation98_spill] sm:$0xff] %v12097_v2  ;;  %v10647_v2 = vld [vmem:[%s11298_s28 + $0x284] ss:$24 sps:$4 sm:$0xff]  }
 0x20b   : > { %v2175_v13 = vpop.f32.mrf.mxu0  ;;  %v3906_v21 = vpop.f32.mrf.mxu1  ;;  %v10676_v55 = vld [vmem:[%s11298_s28 + $0x6ac] ss:$24 sps:$4 sm:$0xff]  }
 0x20c   : > { %v10638_v21 = vld [vmem:[%s11298_s28 + $0x250] ss:$24 sps:$4 sm:$0xff]  }
 0x20d   : > { %v12102_v1 = vpop.f32.mrf.mxu0  ;;  %2651 = vmatmul.mubr.bf16.gmra.mxu0 %v10632_v20  ;;  %v12104_v44 = vpop.f32.mrf.mxu1  ;;  %4100 = vmatmul.mubr.bf16.gmra.mxu1 %v10635_v26  ;;  %v10641_v20 = vld [vmem:[%s11298_s28 + $0x5b8] ss:$24 sps:$4 sm:$0xff]  }
 0x20e   : > { %13879 = vst [vmem:[#allocation99_spill] sm:$0xff] %v12102_v1  ;;  %13880 = vst [vmem:[#allocation100_spill] sm:$0xff] %v12104_v44  ;;  %2658 = vmatprep.mubr.bf16.mxu0 %v10640_v6  ;;  %4107 = vmatprep.mubr.bf16.mxu1 %v10643_v7  ;;  %v10650_v6 = vld [vmem:[%s11298_s28 + $0x5ec] ss:$24 sps:$4 sm:$0xff]  }
 0x20f   : > { %v2180_v39 = vpop.f32.mrf.mxu0  ;;  %v3911_v8 = vpop.f32.mrf.mxu1  ;;  %v10654_v1 = vld [vmem:[%s11298_s28 + $0x2b4] ss:$24 sps:$4 sm:$0xff]  }
 0x211   : > { %v12109_v13 = vpop.f32.mrf.mxu0  ;;  %v12112_v40 = vpop.f32.mrf.mxu1 }
 0x212   : > { %13881 = vst [vmem:[#allocation101_spill] sm:$0xff] %v12109_v13  ;;  %13882 = vst [vmem:[#allocation102_spill] sm:$0xff] %v12112_v40  ;;  %v10645_v40 = vld [vmem:[%s11298_s28 + $0x280] ss:$24 sps:$4 sm:$0xff]  }
 0x213   : > { %v2183_v26 = vpop.f32.mrf.mxu0  ;;  %v3914_v61 = vpop.f32.mrf.mxu1 }
 0x214   : > { %v10648_v26 = vld [vmem:[%s11298_s28 + $0x5e8] ss:$24 sps:$4 sm:$0xff]  }
 0x215   : > { %v12117_v44 = vpop.f32.mrf.mxu0  ;;  %2659 = vmatmul.mubr.bf16.gmra.mxu0 %v10638_v21  ;;  %v12119_v7 = vpop.f32.mrf.mxu1  ;;  %4108 = vmatmul.mubr.bf16.gmra.mxu1 %v10641_v20 }
 0x216   : > { %13883 = vst [vmem:[#allocation103_spill] sm:$0xff] %v12117_v44  ;;  %13884 = vst [vmem:[#allocation104_spill] sm:$0xff] %v12119_v7  ;;  %2666 = vmatprep.mubr.bf16.mxu0 %v10647_v2  ;;  %4115 = vmatprep.mubr.bf16.mxu1 %v10650_v6  ;;  %v10657_v44 = vld [vmem:[%s11298_s28 + $0x61c] ss:$24 sps:$4 sm:$0xff]  }
 0x217   : > { %v2188_v39 = vpop.f32.mrf.mxu0  ;;  %v3919_v31 = vpop.f32.mrf.mxu1 }
 0x218   : > { %v10652_v31 = vld [vmem:[%s11298_s28 + $0x2b0] ss:$24 sps:$4 sm:$0xff]  }
 0x219   : > { %v12121_v8 = vpop.f32.mrf.mxu0  ;;  %v12124_v13 = vpop.f32.mrf.mxu1 }
 0x21a   : > { %13885 = vst [vmem:[#allocation105_spill] sm:$0xff] %v12121_v8  ;;  %13886 = vst [vmem:[#allocation106_spill] sm:$0xff] %v12124_v13  ;;  %v10660_v8 = vld [vmem:[%s11298_s28 + $0x2e4] ss:$24 sps:$4 sm:$0xff]  }
 0x21b   : > { %v2191_v61 = vpop.f32.mrf.mxu0  ;;  %v3922_v21 = vpop.f32.mrf.mxu1 }
 0x21c   : > { %v10655_v61 = vld [vmem:[%s11298_s28 + $0x618] ss:$24 sps:$4 sm:$0xff]  }
 0x21d   : > { %v12129_v7 = vpop.f32.mrf.mxu0  ;;  %2667 = vmatmul.mubr.bf16.gmra.mxu0 %v10645_v40  ;;  %v12131_v2 = vpop.f32.mrf.mxu1  ;;  %4116 = vmatmul.mubr.bf16.gmra.mxu1 %v10648_v26 }
 0x21e   : > { %13887 = vst [vmem:[#allocation107_spill] sm:$0xff] %v12129_v7  ;;  %13888 = vst [vmem:[#allocation108_spill] sm:$0xff] %v12131_v2  ;;  %2674 = vmatprep.mubr.bf16.mxu0 %v10654_v1  ;;  %4123 = vmatprep.mubr.bf16.mxu1 %v10657_v44  ;;  %v10663_v7 = vld [vmem:[%s11298_s28 + $0x64c] ss:$24 sps:$4 sm:$0xff]  }
 0x21f   : > { %v2196_v20 = vpop.f32.mrf.mxu0  ;;  %v3927_v6 = vpop.f32.mrf.mxu1 }
 0x220   : > { %v10658_v6 = vld [vmem:[%s11298_s28 + $0x2e0] ss:$24 sps:$4 sm:$0xff]  }
 0x221   : > { %v12133_v39 = vpop.f32.mrf.mxu0  ;;  %v12136_v13 = vpop.f32.mrf.mxu1 }
 0x222   : > { %13889 = vst [vmem:[#allocation109_spill] sm:$0xff] %v12133_v39  ;;  %13890 = vst [vmem:[#allocation110_spill] sm:$0xff] %v12136_v13  ;;  %v10667_v39 = vld [vmem:[%s11298_s28 + $0x314] ss:$24 sps:$4 sm:$0xff]  }
 0x223   : > { %v2199_v21 = vpop.f32.mrf.mxu0  ;;  %v3930_v40 = vpop.f32.mrf.mxu1 }
 0x224   : > { %v10661_v21 = vld [vmem:[%s11298_s28 + $0x648] ss:$24 sps:$4 sm:$0xff]  }
 0x225   : > { %v12141_v2 = vpop.f32.mrf.mxu0  ;;  %2675 = vmatmul.mubr.bf16.gmra.mxu0 %v10652_v31  ;;  %v12143_v1 = vpop.f32.mrf.mxu1  ;;  %4124 = vmatmul.mubr.bf16.gmra.mxu1 %v10655_v61 }
 0x226   : > { %13891 = vst [vmem:[#allocation111_spill] sm:$0xff] %v12141_v2  ;;  %13892 = vst [vmem:[#allocation112_spill] sm:$0xff] %v12143_v1  ;;  %2682 = vmatprep.mubr.bf16.mxu0 %v10660_v8  ;;  %4131 = vmatprep.mubr.bf16.mxu1 %v10663_v7  ;;  %v10670_v2 = vld [vmem:[%s11298_s28 + $0x67c] ss:$24 sps:$4 sm:$0xff]  }
 0x227   : > { %v2204_v44 = vpop.f32.mrf.mxu0  ;;  %v3935_v26 = vpop.f32.mrf.mxu1 }
 0x228   : > { %v10665_v26 = vld [vmem:[%s11298_s28 + $0x310] ss:$24 sps:$4 sm:$0xff]  }
 0x229   : > { %v12145_v20 = vpop.f32.mrf.mxu0  ;;  %v12148_v13 = vpop.f32.mrf.mxu1 }
 0x22a   : > { %13893 = vst [vmem:[#allocation113_spill] sm:$0xff] %v12145_v20  ;;  %13894 = vst [vmem:[#allocation114_spill] sm:$0xff] %v12148_v13  ;;  %v10668_v20 = vld [vmem:[%s11298_s28 + $0x678] ss:$24 sps:$4 sm:$0xff]  }
 0x22b   : > { %v2207_v40 = vpop.f32.mrf.mxu0  ;;  %v3938_v31 = vpop.f32.mrf.mxu1 }
 0x22c   : > { %v10673_v40 = vld [vmem:[%s11298_s28 + $0x344] ss:$24 sps:$4 sm:$0xff]  }
 0x22d   : > { %v12153_v1 = vpop.f32.mrf.mxu0  ;;  %2683 = vmatmul.mubr.bf16.gmra.mxu0 %v10658_v6  ;;  %v12155_v8 = vpop.f32.mrf.mxu1  ;;  %4132 = vmatmul.mubr.bf16.gmra.mxu1 %v10661_v21  ;;  %v10769_v31 = vld [vmem:[%s13777_s1 + $0x200] sm:$0xff]  }
 0x22e   : > { %13895 = vst [vmem:[#allocation115_spill] sm:$0xff] %v12155_v8  ;;  %2690 = vmatprep.mubr.bf16.mxu0 %v10667_v39  ;;  %4139 = vmatprep.mubr.bf16.mxu1 %v10670_v2  ;;  %v10674_v8 = vld [vmem:[%s11298_s28 + $0x6a8] ss:$24 sps:$4 sm:$0xff]  }
 0x22f   : > { %v2245_v7 = vpop.f32.mrf.mxu0  ;;  %v3943_v61 = vpop.f32.mrf.mxu1  ;;  %10107 = vmatprep.subr.bf16.mxu0 %v10769_v31 }
 0x230   : > { %10108 = vmatpush3.bf16.msra.mxu0 %v10769_v31 }
 0x231   : > { %v12157_v44 = vpop.f32.mrf.mxu0  ;;  %v12160_v13 = vpop.f32.mrf.mxu1  ;;  %6431 = vmatprep.subr.bf16.mxu0 %v13816_v57 }
 0x232   : > { %13896 = vst [vmem:[#allocation116_spill] sm:$0xff] %v12160_v13  ;;  %v10671_v13 = vld [vmem:[%s11298_s28 + $0x340] ss:$24 sps:$4 sm:$0xff]  }
 0x233   : > { %v2248_v6 = vpop.f32.mrf.mxu0  ;;  %v3946_v21 = vpop.f32.mrf.mxu1 }
 0x235   : > { %v12168_v2 = vpop.f32.mrf.mxu0  ;;  %2691 = vmatmul.mubr.bf16.gmra.mxu0 %v10665_v26  ;;  %v12170_v39 = vpop.f32.mrf.mxu1  ;;  %4140 = vmatmul.mubr.bf16.gmra.mxu1 %v10668_v20 }
 0x236   : > { %13897 = vst [vmem:[#allocation117_spill] sm:$0xff] %v12170_v39  ;;  %2698 = vmatprep.mubr.bf16.mxu0 %v10673_v40  ;;  %4147 = vmatprep.mubr.bf16.mxu1 %v10676_v55  ;;  %v10682_v39 = vld [vmem:[%s11298_s28 + $0xdc] ss:$24 sps:$4 sm:$0xff]  }
 0x237   : > { %v2253_v7 = vpop.f32.mrf.mxu0  ;;  %v3951_v61 = vpop.f32.mrf.mxu1 }
 0x239   : > { %v12173_v6 = vpop.f32.mrf.mxu0  ;;  %v12176_v21 = vpop.f32.mrf.mxu1 }
 0x23a   : > { %13898 = vst [vmem:[#allocation118_spill] sm:$0xff] %v12176_v21  ;;  %v10677_v21 = vld [vmem:[%s11298_s28 + $0x370] ss:$24 sps:$4 sm:$0xff]  }
 0x23b   : > { %v2256_v26 = vpop.f32.mrf.mxu0  ;;  %v3954_v20 = vpop.f32.mrf.mxu1 }
 0x23c   : > { %v10687_v20 = vld [vmem:[%s11298_s28 + $0x3a4] ss:$24 sps:$4 sm:$0xff]  }
 0x23d   : > { %v12181_v55 = vpop.f32.mrf.mxu0  ;;  %2699 = vmatmul.mubr.bf16.gmra.mxu0 %v10671_v13  ;;  %v12183_v40 = vpop.f32.mrf.mxu1  ;;  %4148 = vmatmul.mubr.bf16.gmra.mxu1 %v10674_v8  ;;  %v10684_v13 = vld [vmem:[%s13777_s1 + $0x338] sm:$0xff]  }
 0x23e   : > { %13899 = vst [vmem:[#allocation119_spill] sm:$0xff] %v12183_v40  ;;  %2706 = vmatprep.mubr.bf16.mxu0 %v10679_v46  ;;  %9411 = vmatprep.mubr.msk.bf16.mxu1 %vm5185_vm0, %v10682_v39  ;;  %v10688_v40 = vld [vmem:[%s11298_s28 + $0x10c] ss:$24 sps:$4 sm:$0xff]  }
 0x23f   : > { %v2261_v31 = vpop.f32.mrf.mxu0  ;;  %v3959_v7 = vpop.f32.mrf.mxu1 }
 0x241   : > { %v12186_v61 = vpop.f32.mrf.mxu0  ;;  %v12189_v26 = vpop.f32.mrf.mxu1 }
 0x242   : > { %13900 = vst [vmem:[#allocation120_spill] sm:$0xff] %v12189_v26  ;;  %v10685_v26 = vld [vmem:[%s11298_s28 + $0x3a0] ss:$24 sps:$4 sm:$0xff]  }
 0x243   : > { %v2264_v37 = vpop.f32.mrf.mxu0  ;;  %v3962_v46 = vpop.f32.mrf.mxu1 }
 0x244   : > { %v10703_v37 = vld [vmem:[%s13777_s1 + $0x330] sm:$0xff]  }
 0x245   : > { %v12197_v8 = vpop.f32.mrf.mxu0  ;;  %2707 = vmatmul.mubr.bf16.gmra.mxu0 %v10677_v21  ;;  %v12199_v39 = vpop.f32.mrf.mxu1  ;;  %5327 = vmatmul.mubr.bf16.vlgmr.msra.gmra.mxu1 %v10680_v30 }
 0x246   : > { %13901 = vst [vmem:[#allocation121_spill] sm:$0xff] %v12199_v39  ;;  %2714 = vmatprep.mubr.bf16.mxu0 %v10687_v20  ;;  %7569 = vmatpush1.bf16.msra.mxu1 %v10684_v13  ;;  %v10693_v39 = vld [vmem:[%s11298_s28 + $0x3d4] ss:$24 sps:$4 sm:$0xff]  }
 0x247   : > { %v2269_v31 = vpop.f32.mrf.mxu0  ;;  %9412 = vmatprep.mubr.msk.bf16.mxu1 %vm5185_vm0, %v10688_v40  ;;  %v3967_v7 = vpop.f32.mrf.mxu1  ;;  %7570 = vmatprep.subr.bf16.mxu1 %v13816_v57  ;;  %v10694_v20 = vld [vmem:[%s11298_s28 + $0x13c] ss:$24 sps:$4 sm:$0xff]   ;;  %v10723_v40 = vld [vmem:[%s13777_s1 + $0x328] sm:$0xff]  }
 0x249   : > { %v12206_v46 = vpop.f32.mrf.mxu0  ;;  %v12209_v21 = vpop.f32.mrf.mxu1 }
 0x24a   : > { %13902 = vst [vmem:[#allocation122_spill] sm:$0xff] %v12209_v21  ;;  %7571 = vmatpush1.bf16.msra.mxu1 %v10703_v37  ;;  %v10743_v37 = vld [vmem:[%s13777_s1 + $0x320] sm:$0xff]  }
 0x24b   : > { %v2272_v30 = vpop.f32.mrf.mxu0  ;;  %v3970_v13 = vpop.f32.mrf.mxu1  ;;  %7572 = vmatprep.subr.bf16.mxu1 %v13816_v57 }
 0x24d   : > { %v12218_v31 = vpop.f32.mrf.mxu0  ;;  %2715 = vmatmul.mubr.bf16.gmra.mxu0 %v10685_v26  ;;  %v12220_v7 = vpop.f32.mrf.mxu1  ;;  %5335 = vmatmul.mubr.bf16.gmra.mxu1 %v10690_v58 }
 0x24e   : > { %13903 = vst [vmem:[#allocation123_spill] sm:$0xff] %v12220_v7  ;;  %2722 = vmatprep.mubr.bf16.mxu0 %v10693_v39  ;;  %9413 = vmatprep.mubr.msk.bf16.mxu1 %vm5185_vm0, %v10694_v20  ;;  %v10699_v7 = vld [vmem:[%s11298_s28 + $0x404] ss:$24 sps:$4 sm:$0xff]  }
 0x24f   : > { %v2277_v30 = vpop.f32.mrf.mxu0  ;;  %7573 = vmatpush1.bf16.msra.mxu1 %v10723_v40  ;;  %v3975_v13 = vpop.f32.mrf.mxu1  ;;  %v10700_v39 = vld [vmem:[%s11298_s28 + $0x16c] ss:$24 sps:$4 sm:$0xff]   ;;  %v10762_v20 = vld [vmem:[%s13777_s1 + $0x318] sm:$0xff]  }
 0x250   : > { %7574 = vmatprep.subr.bf16.mxu1 %v13816_v57 }
 0x251   : > { %v12227_v21 = vpop.f32.mrf.mxu0  ;;  %v12230_v26 = vpop.f32.mrf.mxu1 }
 0x252   : > { %13904 = vst [vmem:[#allocation124_spill] sm:$0xff] %v12230_v26 }
 0x253   : > { %v2280_v58 = vpop.f32.mrf.mxu0  ;;  %7575 = vmatpush1.bf16.msra.mxu1 %v10743_v37  ;;  %v3978_v40 = vpop.f32.mrf.mxu1  ;;  %v10782_v37 = vld [vmem:[%s13777_s1 + $0x310] sm:$0xff]  }
 0x254   : > { %7576 = vmatprep.subr.bf16.mxu1 %v13816_v57 }
 0x255   : > { %v12239_v30 = vpop.f32.mrf.mxu0  ;;  %2723 = vmatmul.mubr.bf16.gmra.mxu0 %v10691_v23  ;;  %v12241_v13 = vpop.f32.mrf.mxu1  ;;  %5343 = vmatmul.mubr.bf16.gmra.mxu1 %v10696_v42 }
 0x256   : > { %13905 = vst [vmem:[#allocation125_spill] sm:$0xff] %v12241_v13  ;;  %2730 = vmatprep.mubr.bf16.mxu0 %v10699_v7  ;;  %9414 = vmatprep.mubr.msk.bf16.mxu1 %vm5185_vm0, %v10700_v39  ;;  %v10706_v13 = vld [vmem:[%s11298_s28 + $0x434] ss:$24 sps:$4 sm:$0xff]  }
 0x257   : > { %v2285_v58 = vpop.f32.mrf.mxu0  ;;  %7577 = vmatpush1.bf16.msra.mxu1 %v10762_v20  ;;  %v3983_v40 = vpop.f32.mrf.mxu1  ;;  %v10707_v7 = vld [vmem:[%s11298_s28 + $0x19c] ss:$24 sps:$4 sm:$0xff]   ;;  %v10801_v39 = vld [vmem:[%s13777_s1 + $0x308] sm:$0xff]  }
 0x258   : > { %7578 = vmatprep.subr.bf16.mxu1 %v13816_v57 }
 0x259   : > { %v12248_v26 = vpop.f32.mrf.mxu0  ;;  %v12251_v23 = vpop.f32.mrf.mxu1 }
 0x25a   : > { %13906 = vst [vmem:[#allocation126_spill] sm:$0xff] %v12251_v23 }
 0x25b   : > { %v2288_v42 = vpop.f32.mrf.mxu0  ;;  %7579 = vmatpush1.bf16.msra.mxu1 %v10782_v37  ;;  %v3986_v20 = vpop.f32.mrf.mxu1 }
 0x25c   : > { %7580 = vmatprep.subr.bf16.mxu1 %v13816_v57  ;;  %v10704_v20 = vld [vmem:[%s11298_s28 + $0x430] ss:$24 sps:$4 sm:$0xff]  }
 0x25d   : > { %v12260_v58 = vpop.f32.mrf.mxu0  ;;  %2731 = vmatmul.mubr.bf16.gmra.mxu0 %v10697_v12  ;;  %v12262_v40 = vpop.f32.mrf.mxu1  ;;  %5351 = vmatmul.mubr.bf16.gmra.mxu1 %v10702_v50  ;;  %v10713_v12 = vld [vmem:[%s11298_s28 + $0x464] ss:$24 sps:$4 sm:$0xff]  }
 0x25e   : > { %13907 = vst [vmem:[#allocation127_spill] sm:$0xff] %v12262_v40  ;;  %2738 = vmatprep.mubr.bf16.mxu0 %v10706_v13  ;;  %9415 = vmatprep.mubr.msk.bf16.mxu1 %vm5185_vm0, %v10707_v7  ;;  %v10714_v50 = vld [vmem:[%s11298_s28 + $0x1cc] ss:$24 sps:$4 sm:$0xff]  }
 0x25f   : > { %v2293_v42 = vpop.f32.mrf.mxu0  ;;  %7581 = vmatpush1.bf16.msra.mxu1 %v10801_v39  ;;  %v3991_v37 = vpop.f32.mrf.mxu1 }
 0x260   : > { %7582 = vmatprep.subr.bf16.mxu1 %v13816_v57 }
 0x261   : > { %v12266_v23 = vpop.f32.mrf.mxu0  ;;  %v12269_v0 = vpop.f32.mrf.mxu1 }
 0x262   : > { %13908 = vst [vmem:[#allocation128_spill] sm:$0xff] %v12269_v0 }
 0x263   : > { %v2296_v40 = vpop.f32.mrf.mxu0  ;;  %v3994_v13 = vpop.f32.mrf.mxu1 }
 0x264   : > { %v10716_v40 = vld [vmem:[%s11298_s28 + $0x1c8] ss:$24 sps:$4 sm:$0xff]  }
 0x265   : > { %v12274_v42 = vpop.f32.mrf.mxu0  ;;  %2739 = vmatmul.mubr.bf16.gmra.mxu0 %v10704_v20  ;;  %v12276_v7 = vpop.f32.mrf.mxu1  ;;  %5359 = vmatmul.mubr.bf16.gmra.mxu1 %v10709_v15  ;;  %v10720_v20 = vld [vmem:[%s11298_s28 + $0x1fc] ss:$24 sps:$4 sm:$0xff]  }
 0x266   : > { %13909 = vst [vmem:[#allocation129_spill] sm:$0xff] %v12276_v7  ;;  %2746 = vmatprep.mubr.bf16.mxu0 %v10713_v12  ;;  %9416 = vmatprep.mubr.msk.bf16.mxu1 %vm5185_vm0, %v10714_v50 }
 0x267   : > { %v2301_v39 = vpop.f32.mrf.mxu0  ;;  %v3999_v37 = vpop.f32.mrf.mxu1 }
 0x268   : > { %v10819_v39 = vld [vmem:[%s13777_s1 + $0x300] sm:$0xff]  }
 0x269   : > { %v12279_v0 = vpop.f32.mrf.mxu0  ;;  %v12282_v18 = vpop.f32.mrf.mxu1  ;;  %7583 = vmatpush1.bf16.msra.mxu1 %v10819_v39 }
 0x26a   : > { %13910 = vst [vmem:[#allocation130_spill] sm:$0xff] %v12282_v18  ;;  %v10722_v18 = vld [vmem:[%s11298_s28 + $0x1f8] ss:$24 sps:$4 sm:$0xff]   ;;  %7592 = vmatprep.subr.bf16.mxu1 %v13816_v57 }
 0x26b   : > { %v2304_v13 = vpop.f32.mrf.mxu0  ;;  %v4002_v25 = vpop.f32.mrf.mxu1 }
 0x26c   : > { %v10717_v13 = vld [vmem:[%s11298_s28 + $0x490] ss:$24 sps:$4 sm:$0xff]  }
 0x26d   : > { %v12287_v7 = vpop.f32.mrf.mxu0  ;;  %2747 = vmatmul.mubr.bf16.gmra.mxu0 %v10711_v51  ;;  %v12289_v15 = vpop.f32.mrf.mxu1  ;;  %5367 = vmatmul.mubr.bf16.gmra.mxu1 %v10716_v40  ;;  %v10727_v40 = vld [vmem:[%s11298_s28 + $0x22c] ss:$24 sps:$4 sm:$0xff]  }
 0x26e   : > { %13911 = vst [vmem:[#allocation131_spill] sm:$0xff] %v12289_v15  ;;  %2754 = vmatprep.mubr.bf16.mxu0 %v10719_v45  ;;  %9417 = vmatprep.mubr.msk.bf16.mxu1 %vm5185_vm0, %v10720_v20  ;;  %v2244_v45 = vadd.f32 %v12153_v1, %v11589_v36  ;;  %v10724_v1 = vld [vmem:[%s11298_s28 + $0x4c0] ss:$24 sps:$4 sm:$0xff]  }
 0x26f   : > { %v2309_v12 = vpop.f32.mrf.mxu0  ;;  %v4007_v50 = vpop.f32.mrf.mxu1 }
 0x271   : > { %v12295_v37 = vpop.f32.mrf.mxu0  ;;  %v12298_v25 = vpop.f32.mrf.mxu1 }
 0x272   : > { %13912 = vst [vmem:[#allocation132_spill] sm:$0xff] %v12298_v25 }
 0x273   : > { %v2312_v51 = vpop.f32.mrf.mxu0  ;;  %v4010_v20 = vpop.f32.mrf.mxu1 }
 0x274   : > { %v2247_v51 = vadd.f32 %v12157_v44, %v11595_v53 }
 0x275   : > { %v2564_v12 = vpop.f32.mrf.mxu0  ;;  %2755 = vmatmul.mubr.bf16.gmra.mxu0 %v10717_v13  ;;  %v12308_v25 = vpop.f32.mrf.mxu1  ;;  %5375 = vmatmul.mubr.bf16.gmra.mxu1 %v10722_v18  ;;  %v10729_v13 = vld [vmem:[%s11298_s28 + $0x228] ss:$24 sps:$4 sm:$0xff]  }
 0x276   : > { %v12306_v50 = vadd.f32 %v2564_v12, %v2244_v45  ;;  %13913 = vst [vmem:[#allocation133_spill] sm:$0xff] %v12308_v25  ;;  %2762 = vmatprep.mubr.bf16.mxu0 %v10726_v28  ;;  %9418 = vmatprep.mubr.msk.bf16.mxu1 %vm5185_vm0, %v10727_v40  ;;  %v10732_v45 = vld [vmem:[%s11298_s28 + $0x4f4] ss:$24 sps:$4 sm:$0xff]   ;;  %v2252_v28 = vadd.f32 %v12168_v2, %v11601_v59  ;;  %v10730_v2 = vld [vmem:[%s11298_s28 + $0x4f0] ss:$24 sps:$4 sm:$0xff]  }
 0x277   : > { %v2566_v39 = vpop.f32.mrf.mxu0  ;;  %v4015_v15 = vpop.f32.mrf.mxu1  ;;  %v10733_v25 = vld [vmem:[%s11298_s28 + $0x25c] ss:$24 sps:$4 sm:$0xff]  }
 0x278   : > { %v2255_v39 = vadd.f32 %v12173_v6, %v11608_v3 }
 0x279   : > { %v2567_v36 = vpop.f32.mrf.mxu0  ;;  %v12316_v47 = vpop.f32.mrf.mxu1 }
 0x27a   : > { %v12314_v20 = vadd.f32 %v2567_v36, %v2247_v51 }
 0x27b   : > { %v2569_v12 = vpop.f32.mrf.mxu0  ;;  %v4018_v18 = vpop.f32.mrf.mxu1 }
 0x27d   : > { %v2572_v40 = vpop.f32.mrf.mxu0  ;;  %2763 = vmatmul.mubr.bf16.gmra.mxu0 %v10724_v1  ;;  %v12325_v44 = vpop.f32.mrf.mxu1  ;;  %5383 = vmatmul.mubr.bf16.gmra.mxu1 %v10729_v13  ;;  %v10735_v1 = vld [vmem:[%s11298_s28 + $0x258] ss:$24 sps:$4 sm:$0xff]   ;;  %v2260_v13 = vadd.f32 %v12181_v55, %v11614_v10 }
 0x27e   : > { %v12323_v53 = vadd.f32 %v2572_v40, %v2252_v28  ;;  %2770 = vmatprep.mubr.bf16.mxu0 %v10732_v45  ;;  %9419 = vmatprep.mubr.msk.bf16.mxu1 %vm5185_vm0, %v10733_v25  ;;  %v10738_v28 = vld [vmem:[%s11298_s28 + $0x524] ss:$24 sps:$4 sm:$0xff]  }
 0x27f   : > { %v2574_v15 = vpop.f32.mrf.mxu0  ;;  %v4023_v51 = vpop.f32.mrf.mxu1  ;;  %v10739_v40 = vld [vmem:[%s11298_s28 + $0x28c] ss:$24 sps:$4 sm:$0xff]   ;;  %v10837_v10 = vld [vmem:[%s13777_s1 + $0x358] sm:$0xff]  }
 0x280   : > { %7593 = vmatpush2.bf16.msra.mxu1 %v10837_v10 }
 0x281   : > { %v2575_v59 = vpop.f32.mrf.mxu0  ;;  %v12333_v12 = vpop.f32.mrf.mxu1  ;;  %7594 = vmatprep.subr.bf16.mxu1 %v13816_v57 }
 0x282   : > { %v12331_v36 = vadd.f32 %v2575_v59, %v2255_v39  ;;  %v2263_v39 = vadd.f32 %v12186_v61, %v11620_v17  ;;  %v10736_v59 = vld [vmem:[%s11298_s28 + $0x520] ss:$24 sps:$4 sm:$0xff]   ;;  %v2268_v17 = vadd.f32 %v12197_v8, %v11629_v24  ;;  %v10744_v8 = vld [vmem:[%s11298_s28 + $0x550] ss:$24 sps:$4 sm:$0xff]  }
 0x283   : > { %v2577_v18 = vpop.f32.mrf.mxu0  ;;  %v4026_v45 = vpop.f32.mrf.mxu1 }
 0x285   : > { %v2580_v25 = vpop.f32.mrf.mxu0  ;;  %2771 = vmatmul.mubr.bf16.gmra.mxu0 %v10730_v2  ;;  %v12342_v6 = vpop.f32.mrf.mxu1  ;;  %5391 = vmatmul.mubr.bf16.gmra.mxu1 %v10735_v1  ;;  %v10746_v1 = vld [vmem:[%s11298_s28 + $0x554] ss:$24 sps:$4 sm:$0xff]  }
 0x286   : > { %v12340_v3 = vadd.f32 %v2580_v25, %v2260_v13  ;;  %2778 = vmatprep.mubr.bf16.mxu0 %v10738_v28  ;;  %9420 = vmatprep.mubr.msk.bf16.mxu1 %vm5185_vm0, %v10739_v40  ;;  %v10742_v13 = vld [vmem:[%s11298_s28 + $0x288] ss:$24 sps:$4 sm:$0xff]   ;;  %v10747_v40 = vld [vmem:[%s11298_s28 + $0x2bc] ss:$24 sps:$4 sm:$0xff]  }
 0x287   : > { %v2582_v15 = vpop.f32.mrf.mxu0  ;;  %v4031_v51 = vpop.f32.mrf.mxu1 }
 0x288   : > { %v2271_v51 = vadd.f32 %v12206_v46, %v11638_v35 }
 0x289   : > { %v2583_v55 = vpop.f32.mrf.mxu0  ;;  %v12353_v18 = vpop.f32.mrf.mxu1 }
 0x28a   : > { %v12351_v2 = vadd.f32 %v2583_v55, %v2263_v39  ;;  %13914 = vst [vmem:[#allocation134_spill] sm:$0xff] %v12353_v18 }
 0x28b   : > { %v2585_v28 = vpop.f32.mrf.mxu0  ;;  %v4034_v61 = vpop.f32.mrf.mxu1 }
 0x28d   : > { %v2588_v45 = vpop.f32.mrf.mxu0  ;;  %2779 = vmatmul.mubr.bf16.gmra.mxu0 %v10736_v59  ;;  %v12363_v15 = vpop.f32.mrf.mxu1  ;;  %5399 = vmatmul.mubr.bf16.gmra.mxu1 %v10742_v13  ;;  %v10749_v59 = vld [vmem:[%s11298_s28 + $0x2b8] ss:$24 sps:$4 sm:$0xff]   ;;  %v2276_v13 = vadd.f32 %v12218_v31, %v11649_v32 }
 0x28e   : > { %v12361_v25 = vadd.f32 %v2588_v45, %v2268_v17  ;;  %2786 = vmatprep.mubr.bf16.mxu0 %v10746_v1  ;;  %9421 = vmatprep.mubr.msk.bf16.mxu1 %vm5185_vm0, %v10747_v40  ;;  %v10752_v17 = vld [vmem:[%s11298_s28 + $0x584] ss:$24 sps:$4 sm:$0xff]   ;;  %v10750_v31 = vld [vmem:[%s11298_s28 + $0x580] ss:$24 sps:$4 sm:$0xff]  }
 0x28f   : > { %v2590_v39 = vpop.f32.mrf.mxu0  ;;  %v4039_v10 = vpop.f32.mrf.mxu1  ;;  %v10753_v45 = vld [vmem:[%s11298_s28 + $0x2ec] ss:$24 sps:$4 sm:$0xff]  }
 0x291   : > { %v2591_v24 = vpop.f32.mrf.mxu0  ;;  %v12371_v28 = vpop.f32.mrf.mxu1 }
 0x292   : > { %v12369_v55 = vadd.f32 %v2591_v24, %v2271_v51  ;;  %13915 = vst [vmem:[#allocation135_spill] sm:$0xff] %v12371_v28  ;;  %v2279_v51 = vadd.f32 %v12227_v21, %v11658_v49 }
 0x293   : > { %v2593_v61 = vpop.f32.mrf.mxu0  ;;  %v4042_v1 = vpop.f32.mrf.mxu1 }
 0x295   : > { %v2596_v40 = vpop.f32.mrf.mxu0  ;;  %2787 = vmatmul.mubr.bf16.gmra.mxu0 %v10744_v8  ;;  %v12380_v46 = vpop.f32.mrf.mxu1  ;;  %5407 = vmatmul.mubr.bf16.gmra.mxu1 %v10749_v59  ;;  %v10755_v8 = vld [vmem:[%s11298_s28 + $0x2e8] ss:$24 sps:$4 sm:$0xff]   ;;  %v2284_v59 = vadd.f32 %v12239_v30, %v11669_v63  ;;  %v10855_v63 = vld [vmem:[%s13777_s1 + $0x350] sm:$0xff]  }
 0x296   : > { %v12378_v35 = vadd.f32 %v2596_v40, %v2276_v13  ;;  %13916 = vst [vmem:[#allocation136_spill] sm:$0xff] %v12380_v46  ;;  %2794 = vmatprep.mubr.bf16.mxu0 %v10752_v17  ;;  %9422 = vmatprep.mubr.msk.bf16.mxu1 %vm5185_vm0, %v10753_v45  ;;  %v10758_v13 = vld [vmem:[%s11298_s28 + $0x5b4] ss:$24 sps:$4 sm:$0xff]  }
 0x297   : > { %v2598_v39 = vpop.f32.mrf.mxu0  ;;  %v4047_v10 = vpop.f32.mrf.mxu1  ;;  %v10759_v40 = vld [vmem:[%s11298_s28 + $0x31c] ss:$24 sps:$4 sm:$0xff]   ;;  %7595 = vmatpush2.bf16.msra.mxu1 %v10855_v63 }
 0x298   : > { %7596 = vmatprep.subr.bf16.mxu1 %v13816_v57 }
 0x299   : > { %v2599_v32 = vpop.f32.mrf.mxu0  ;;  %v12388_v61 = vpop.f32.mrf.mxu1 }
 0x29a   : > { %v12386_v24 = vadd.f32 %v2599_v32, %v2279_v51  ;;  %13917 = vst [vmem:[#allocation137_spill] sm:$0xff] %v12388_v61  ;;  %v2287_v51 = vadd.f32 %v12248_v26, %v11679_v9  ;;  %v10756_v32 = vld [vmem:[%s11298_s28 + $0x5b0] ss:$24 sps:$4 sm:$0xff]   ;;  %v2292_v9 = vadd.f32 %v12260_v58, %v11689_v22  ;;  %v10763_v58 = vld [vmem:[%s11298_s28 + $0x5e0] ss:$24 sps:$4 sm:$0xff]  }
 0x29b   : > { %v2601_v1 = vpop.f32.mrf.mxu0  ;;  %v4050_v17 = vpop.f32.mrf.mxu1 }
 0x29d   : > { %v2604_v45 = vpop.f32.mrf.mxu0  ;;  %2795 = vmatmul.mubr.bf16.gmra.mxu0 %v10750_v31  ;;  %v12397_v21 = vpop.f32.mrf.mxu1  ;;  %5415 = vmatmul.mubr.bf16.gmra.mxu1 %v10755_v8  ;;  %v10765_v8 = vld [vmem:[%s11298_s28 + $0x5e4] ss:$24 sps:$4 sm:$0xff]  }
 0x29e   : > { %v12395_v49 = vadd.f32 %v2604_v45, %v2284_v59  ;;  %13918 = vst [vmem:[#allocation138_spill] sm:$0xff] %v12397_v21  ;;  %2802 = vmatprep.mubr.bf16.mxu0 %v10758_v13  ;;  %9423 = vmatprep.mubr.msk.bf16.mxu1 %vm5185_vm0, %v10759_v40  ;;  %v10761_v59 = vld [vmem:[%s11298_s28 + $0x318] ss:$24 sps:$4 sm:$0xff]   ;;  %v10766_v40 = vld [vmem:[%s11298_s28 + $0x34c] ss:$24 sps:$4 sm:$0xff]  }
 0x29f   : > { %v2606_v39 = vpop.f32.mrf.mxu0  ;;  %v4055_v10 = vpop.f32.mrf.mxu1 }
 0x2a0   : > { %v2295_v10 = vadd.f32 %v12266_v23, %v11696_v33 }
 0x2a1   : > { %v2607_v30 = vpop.f32.mrf.mxu0  ;;  %v12408_v1 = vpop.f32.mrf.mxu1 }
 0x2a2   : > { %v12406_v31 = vadd.f32 %v2607_v30, %v2287_v51  ;;  %13919 = vst [vmem:[#allocation139_spill] sm:$0xff] %v12408_v1 }
 0x2a3   : > { %v2609_v13 = vpop.f32.mrf.mxu0  ;;  %v4058_v26 = vpop.f32.mrf.mxu1 }
 0x2a5   : > { %v2612_v17 = vpop.f32.mrf.mxu0  ;;  %2803 = vmatmul.mubr.bf16.gmra.mxu0 %v10756_v32  ;;  %v12418_v39 = vpop.f32.mrf.mxu1  ;;  %5423 = vmatmul.mubr.bf16.gmra.mxu1 %v10761_v59  ;;  %v10768_v32 = vld [vmem:[%s11298_s28 + $0x348] ss:$24 sps:$4 sm:$0xff]   ;;  %v2300_v59 = vadd.f32 %v12274_v42, %v11702_v43 }
 0x2a6   : > { %v12416_v45 = vadd.f32 %v2612_v17, %v2292_v9  ;;  %13920 = vst [vmem:[#allocation140_spill] sm:$0xff] %v12418_v39  ;;  %2810 = vmatprep.mubr.bf16.mxu0 %v10765_v8  ;;  %9424 = vmatprep.mubr.msk.bf16.mxu1 %vm5185_vm0, %v10766_v40  ;;  %v10772_v9 = vld [vmem:[%s11298_s28 + $0x614] ss:$24 sps:$4 sm:$0xff]   ;;  %v10770_v42 = vld [vmem:[%s11298_s28 + $0x610] ss:$24 sps:$4 sm:$0xff]  }
 0x2a7   : > { %v2614_v51 = vpop.f32.mrf.mxu0  ;;  %v4063_v63 = vpop.f32.mrf.mxu1  ;;  %v10773_v17 = vld [vmem:[%s11298_s28 + $0x37c] ss:$24 sps:$4 sm:$0xff]  }
 0x2a9   : > { %v2615_v22 = vpop.f32.mrf.mxu0  ;;  %v12426_v13 = vpop.f32.mrf.mxu1 }
 0x2aa   : > { %v12424_v30 = vadd.f32 %v2615_v22, %v2295_v10  ;;  %13921 = vst [vmem:[#allocation141_spill] sm:$0xff] %v12426_v13  ;;  %v2303_v10 = vadd.f32 %v12279_v0, %v11708_v52  ;;  %v13966_v13 = vld [vmem:[#allocation43_spill] sm:$0xff] }
 0x2ab   : > { %v2617_v26 = vpop.f32.mrf.mxu0  ;;  %v4066_v8 = vpop.f32.mrf.mxu1 }
 0x2ad   : > { %v2620_v40 = vpop.f32.mrf.mxu0  ;;  %2811 = vmatmul.mubr.bf16.gmra.mxu0 %v10763_v58  ;;  %v12435_v23 = vpop.f32.mrf.mxu1  ;;  %5431 = vmatmul.mubr.bf16.gmra.mxu1 %v10768_v32  ;;  %v10775_v58 = vld [vmem:[%s11298_s28 + $0x378] ss:$24 sps:$4 sm:$0xff]   ;;  %v2308_v32 = vadd.f32 %v12287_v7, %v11714_v5  ;;  %v10873_v5 = vld [vmem:[%s13777_s1 + $0x348] sm:$0xff]  }
 0x2ae   : > { %v12433_v33 = vadd.f32 %v2620_v40, %v2300_v59  ;;  %13922 = vst [vmem:[#allocation142_spill] sm:$0xff] %v12435_v23  ;;  %2818 = vmatprep.mubr.bf16.mxu0 %v10772_v9  ;;  %9425 = vmatprep.mubr.msk.bf16.mxu1 %vm5185_vm0, %v10773_v17  ;;  %v10778_v59 = vld [vmem:[%s11298_s28 + $0x644] ss:$24 sps:$4 sm:$0xff]  }
 0x2af   : > { %v2622_v51 = vpop.f32.mrf.mxu0  ;;  %v4071_v63 = vpop.f32.mrf.mxu1  ;;  %v10779_v40 = vld [vmem:[%s11298_s28 + $0x3ac] ss:$24 sps:$4 sm:$0xff]   ;;  %7597 = vmatpush2.bf16.msra.mxu1 %v10873_v5 }
 0x2b0   : > { %7598 = vmatprep.subr.bf16.mxu1 %v13816_v57 }
 0x2b1   : > { %v2623_v43 = vpop.f32.mrf.mxu0  ;;  %v12443_v26 = vpop.f32.mrf.mxu1 }
 0x2b2   : > { %v12441_v22 = vadd.f32 %v2623_v43, %v2303_v10  ;;  %13923 = vst [vmem:[#allocation143_spill] sm:$0xff] %v12443_v26  ;;  %v2311_v10 = vadd.f32 %v12295_v37, %v11723_v19  ;;  %v10776_v43 = vld [vmem:[%s11298_s28 + $0x640] ss:$24 sps:$4 sm:$0xff]   ;;  %v2316_v19 = vadd.f32 %v11591_v48, %v11730_v38  ;;  %v10783_v38 = vld [vmem:[%s11298_s28 + $0x670] ss:$24 sps:$4 sm:$0xff]  }
 0x2b3   : > { %v2625_v8 = vpop.f32.mrf.mxu0  ;;  %v4074_v9 = vpop.f32.mrf.mxu1  ;;  %v13967_v26 = vld [vmem:[#allocation14_spill] sm:$0xff] }
 0x2b4   : > { %v2388_v39 = vadd.f32 %v13967_v26, %v13966_v13  ;;  %v10841_v26 = vld [vmem:[%s11298_s28 + $0x2f0] ss:$24 sps:$4 sm:$0xff]  }
 0x2b5   : > { %v2628_v17 = vpop.f32.mrf.mxu0  ;;  %2819 = vmatmul.mubr.bf16.gmra.mxu0 %v10770_v42  ;;  %v12452_v52 = vpop.f32.mrf.mxu1  ;;  %5439 = vmatmul.mubr.bf16.gmra.mxu1 %v10775_v58  ;;  %v10785_v58 = vld [vmem:[%s11298_s28 + $0x674] ss:$24 sps:$4 sm:$0xff]  }
 0x2b6   : > { %v12450_v0 = vadd.f32 %v2628_v17, %v2308_v32  ;;  %13924 = vst [vmem:[#allocation144_spill] sm:$0xff] %v12452_v52  ;;  %2826 = vmatprep.mubr.bf16.mxu0 %v10778_v59  ;;  %9426 = vmatprep.mubr.msk.bf16.mxu1 %vm5185_vm0, %v10779_v40  ;;  %v10781_v32 = vld [vmem:[%s11298_s28 + $0x3a8] ss:$24 sps:$4 sm:$0xff]   ;;  %v10786_v40 = vld [vmem:[%s11298_s28 + $0x3dc] ss:$24 sps:$4 sm:$0xff]  }
 0x2b7   : > { %v2630_v51 = vpop.f32.mrf.mxu0  ;;  %v4079_v63 = vpop.f32.mrf.mxu1  ;;  %v10890_v52 = vld [vmem:[%s13777_s1 + $0x2e8] sm:$0xff]  }
 0x2b8   : > { %v2319_v63 = vadd.f32 %v11597_v54, %v11736_v34 }
 0x2b9   : > { %v2631_v7 = vpop.f32.mrf.mxu0  ;;  %v12463_v8 = vpop.f32.mrf.mxu1 }
 0x2ba   : > { %v12461_v42 = vadd.f32 %v2631_v7, %v2311_v10  ;;  %13925 = vst [vmem:[#allocation145_spill] sm:$0xff] %v12463_v8  ;;  %v10872_v8 = vld [vmem:[%s13777_s1 + $0x2f8] sm:$0xff]  }
 0x2bb   : > { %v2633_v59 = vpop.f32.mrf.mxu0  ;;  %v4082_v37 = vpop.f32.mrf.mxu1 }
 0x2bd   : > { %v2636_v9 = vpop.f32.mrf.mxu0  ;;  %2827 = vmatmul.mubr.bf16.gmra.mxu0 %v10776_v43  ;;  %v12473_v51 = vpop.f32.mrf.mxu1  ;;  %5447 = vmatmul.mubr.bf16.gmra.mxu1 %v10781_v32  ;;  %v10788_v43 = vld [vmem:[%s11298_s28 + $0x3d8] ss:$24 sps:$4 sm:$0xff]   ;;  %v2324_v32 = vadd.f32 %v11603_v60, %v11742_v62 }
 0x2be   : > { %v12471_v17 = vadd.f32 %v2636_v9, %v2316_v19  ;;  %13926 = vst [vmem:[#allocation146_spill] sm:$0xff] %v12473_v51  ;;  %2834 = vmatprep.mubr.bf16.mxu0 %v10785_v58  ;;  %9427 = vmatprep.mubr.msk.bf16.mxu1 %vm5185_vm0, %v10786_v40  ;;  %v10791_v19 = vld [vmem:[%s11298_s28 + $0x6a4] ss:$24 sps:$4 sm:$0xff]   ;;  %v10789_v62 = vld [vmem:[%s11298_s28 + $0x6a0] ss:$24 sps:$4 sm:$0xff]  }
 0x2bf   : > { %v2638_v10 = vpop.f32.mrf.mxu0  ;;  %v4087_v5 = vpop.f32.mrf.mxu1  ;;  %v10792_v9 = vld [vmem:[%s11298_s28 + $0x40c] ss:$24 sps:$4 sm:$0xff]  }
 0x2c0   : > { %v13960_v51 = vld [vmem:[#allocation39_spill] sm:$0xff] }
 0x2c1   : > { %v2639_v48 = vpop.f32.mrf.mxu0  ;;  %v12481_v59 = vpop.f32.mrf.mxu1 }
 0x2c2   : > { %v12479_v7 = vadd.f32 %v2639_v48, %v2319_v63  ;;  %13927 = vst [vmem:[#allocation147_spill] sm:$0xff] %v12481_v59  ;;  %v2327_v63 = vadd.f32 %v11610_v4, %v11747_v14  ;;  %v13954_v59 = vld [vmem:[#allocation35_spill] sm:$0xff] }
 0x2c3   : > { %v2641_v37 = vpop.f32.mrf.mxu0  ;;  %v4090_v58 = vpop.f32.mrf.mxu1 }
 0x2c5   : > { %v2644_v40 = vpop.f32.mrf.mxu0  ;;  %2835 = vmatmul.mubr.bf16.gmra.mxu0 %v10783_v38  ;;  %v12490_v34 = vpop.f32.mrf.mxu1  ;;  %5455 = vmatmul.mubr.bf16.gmra.mxu1 %v10788_v43  ;;  %v10794_v38 = vld [vmem:[%s11298_s28 + $0x408] ss:$24 sps:$4 sm:$0xff]   ;;  %v2332_v43 = vadd.f32 %v11616_v11, %v11754_v41 }
 0x2c6   : > { %v12488_v54 = vadd.f32 %v2644_v40, %v2324_v32  ;;  %13928 = vst [vmem:[#allocation148_spill] sm:$0xff] %v12490_v34  ;;  %2842 = vmatprep.mubr.bf16.mxu0 %v10791_v19  ;;  %9428 = vmatprep.mubr.msk.bf16.mxu1 %vm5185_vm0, %v10792_v9  ;;  %v10795_v32 = vld [vmem:[%s11298_s28 + $0x20] ss:$24 sps:$4 sm:$0xff]   ;;  %v10796_v40 = vld [vmem:[%s11298_s28 + $0x43c] ss:$24 sps:$4 sm:$0xff]   ;;  %v10854_v34 = vld [vmem:[%s13777_s1 + $0x2a8] sm:$0xff]  }
 0x2c7   : > { %v2646_v10 = vpop.f32.mrf.mxu0  ;;  %v4095_v5 = vpop.f32.mrf.mxu1  ;;  %v10891_v11 = vld [vmem:[%s13777_s1 + $0x340] sm:$0xff]  }
 0x2c8   : > { %7599 = vmatpush2.bf16.msra.mxu1 %v10891_v11 }
 0x2c9   : > { %v2647_v60 = vpop.f32.mrf.mxu0  ;;  %v12498_v37 = vpop.f32.mrf.mxu1 }
 0x2ca   : > { %v12496_v48 = vadd.f32 %v2647_v60, %v2327_v63  ;;  %13929 = vst [vmem:[#allocation149_spill] sm:$0xff] %v12498_v37  ;;  %v2335_v63 = vadd.f32 %v11622_v16, %v11761_v56  ;;  %v10798_v60 = vld [vmem:[%s11298_s28 + $0x50] ss:$24 sps:$4 sm:$0xff]   ;;  %v10803_v16 = vld [vmem:[%s11298_s28 + $0x46c] ss:$24 sps:$4 sm:$0xff]   ;;  %v2340_v56 = vadd.f32 %v11634_v29, %v11772_v27  ;;  %v10836_v37 = vld [vmem:[%s13777_s1 + $0x2b8] sm:$0xff]  }
 0x2cb   : > { %v2649_v58 = vpop.f32.mrf.mxu0  ;;  %v4098_v19 = vpop.f32.mrf.mxu1  ;;  %v13933_v29 = vld [vmem:[#allocation21_spill] sm:$0xff]  ;;  %v13934_v27 = vld [vmem:[#allocation3_spill] sm:$0xff] }
 0x2cd   : > { %v2652_v9 = vpop.f32.mrf.mxu0  ;;  %2843 = vmatmul.mubr.bf16.gmra.mxu0 %v10789_v62  ;;  %v12507_v14 = vpop.f32.mrf.mxu1  ;;  %5463 = vmatmul.mubr.bf16.gmra.mxu1 %v10794_v38  ;;  %v10799_v38 = vld [vmem:[%s11298_s28 + $0x438] ss:$24 sps:$4 sm:$0xff]  }
 0x2ce   : > { %v12505_v4 = vadd.f32 %v2652_v9, %v2332_v43  ;;  %13930 = vst [vmem:[#allocation150_spill] sm:$0xff] %v12507_v14  ;;  %10109 = vmatprep.mubr.bf16.mxu0 %v10795_v32  ;;  %9429 = vmatprep.mubr.msk.bf16.mxu1 %vm5185_vm0, %v10796_v40  ;;  %v10800_v32 = vld [vmem:[%s13777_s1 + $0x2d8] sm:$0xff]   ;;  %v13948_v14 = vld [vmem:[#allocation31_spill] sm:$0xff] }
 0x2cf   : > { %v2654_v10 = vpop.f32.mrf.mxu0  ;;  %v4103_v5 = vpop.f32.mrf.mxu1  ;;  %v10802_v43 = vld [vmem:[%s11298_s28 + $0x80] ss:$24 sps:$4 sm:$0xff]  }
 0x2d0   : > { %v10807_v5 = vld [vmem:[%s13777_s1 + $0x2d0] sm:$0xff]  }
 0x2d1   : > { %v2655_v41 = vpop.f32.mrf.mxu0  ;;  %v12518_v58 = vpop.f32.mrf.mxu1 }
 0x2d2   : > { %v12516_v62 = vadd.f32 %v2655_v41, %v2335_v63  ;;  %13931 = vst [vmem:[#allocation151_spill] sm:$0xff] %v12518_v58  ;;  %v2343_v41 = vadd.f32 %v13934_v27, %v13933_v29  ;;  %v13937_v29 = vld [vmem:[#allocation4_spill] sm:$0xff]  ;;  %v13942_v58 = vld [vmem:[#allocation27_spill] sm:$0xff] }
 0x2d3   : > { %v2657_v40 = vpop.f32.mrf.mxu0  ;;  %v4106_v19 = vpop.f32.mrf.mxu1 }
 0x2d5   : > { %v2660_v9 = vpop.f32.mrf.mxu0  ;;  %10110 = vmatmul.mubr.bf16.vlgmr.msra.gmra.mxu0 %v10798_v60  ;;  %v12530_v63 = vpop.f32.mrf.mxu1  ;;  %5471 = vmatmul.mubr.bf16.gmra.mxu1 %v10799_v38 }
 0x2d6   : > { %v12528_v10 = vadd.f32 %v2660_v9, %v2340_v56  ;;  %13932 = vst [vmem:[#allocation152_spill] sm:$0xff] %v12530_v63  ;;  %6432 = vmatpush1.bf16.msra.mxu0 %v10800_v32  ;;  %10113 = vmatprep.mubr.bf16.mxu0 %v10802_v43  ;;  %v10805_v56 = vld [vmem:[%s11298_s28 + $0xb0] ss:$24 sps:$4 sm:$0xff]   ;;  %v10808_v9 = vld [vmem:[%s11298_s28 + $0xe0] ss:$24 sps:$4 sm:$0xff]  }
 0x2d7   : > { %v2662_v11 = vpop.f32.mrf.mxu0  ;;  %9430 = vmatprep.mubr.msk.bf16.mxu1 %vm5185_vm0, %v10803_v16  ;;  %v4111_v60 = vpop.f32.mrf.mxu1  ;;  %6433 = vmatprep.subr.bf16.mxu0 %v13816_v57  ;;  %v10806_v32 = vld [vmem:[%s11298_s28 + $0x468] ss:$24 sps:$4 sm:$0xff]  }
 0x2d8   : > { %v10809_v11 = vld [vmem:[%s11298_s28 + $0x49c] ss:$24 sps:$4 sm:$0xff]   ;;  %v10818_v43 = vld [vmem:[%s13777_s1 + $0x2c8] sm:$0xff]   ;;  %v13936_v16 = vld [vmem:[#allocation23_spill] sm:$0xff] }
 0x2d9   : > { %v2663_v40 = vpop.f32.mrf.mxu0  ;;  %v12542_v38 = vpop.f32.mrf.mxu1  ;;  %v2348_v27 = vadd.f32 %v13937_v29, %v13936_v16  ;;  %v10825_v16 = vld [vmem:[%s13777_s1 + $0x2c0] sm:$0xff]   ;;  %v13939_v29 = vld [vmem:[#allocation25_spill] sm:$0xff] }
 0x2da   : > { %v12540_v19 = vadd.f32 %v2663_v40, %v2343_v41  ;;  %13935 = vst [vmem:[#allocation21_spill] sm:$0xff] %v12542_v38  ;;  %6434 = vmatpush1.bf16.msra.mxu0 %v10807_v5 }
 0x2db   : > { %v2665_v63 = vpop.f32.mrf.mxu0  ;;  %6435 = vmatprep.subr.bf16.mxu0 %v13816_v57  ;;  %v4114_v60 = vpop.f32.mrf.mxu1 }
 0x2dc   : > { %v13940_v60 = vld [vmem:[#allocation5_spill] sm:$0xff] }
 0x2dd   : > { %v2668_v41 = vpop.f32.mrf.mxu0  ;;  %10114 = vmatmul.mubr.bf16.gmra.mxu0 %v10805_v56  ;;  %v12555_v5 = vpop.f32.mrf.mxu1  ;;  %5479 = vmatmul.mubr.bf16.gmra.mxu1 %v10806_v32  ;;  %v2351_v56 = vadd.f32 %v13940_v60, %v13939_v29  ;;  %v13943_v29 = vld [vmem:[#allocation6_spill] sm:$0xff] }
 0x2de   : > { %v12553_v40 = vadd.f32 %v2668_v41, %v2348_v27  ;;  %13938 = vst [vmem:[#allocation3_spill] sm:$0xff] %v12555_v5  ;;  %10117 = vmatprep.mubr.bf16.mxu0 %v10808_v9  ;;  %9431 = vmatprep.mubr.msk.bf16.mxu1 %vm5185_vm0, %v10809_v11  ;;  %v10811_v41 = vld [vmem:[%s11298_s28 + $0x110] ss:$24 sps:$4 sm:$0xff]  }
 0x2df   : > { %v2670_v63 = vpop.f32.mrf.mxu0  ;;  %6436 = vmatpush1.bf16.msra.mxu0 %v10818_v43  ;;  %v4119_v38 = vpop.f32.mrf.mxu1  ;;  %v10812_v9 = vld [vmem:[%s11298_s28 + $0x498] ss:$24 sps:$4 sm:$0xff]   ;;  %v10814_v43 = vld [vmem:[%s11298_s28 + $0x4cc] ss:$24 sps:$4 sm:$0xff]  }
 0x2e0   : > { %6437 = vmatprep.subr.bf16.mxu0 %v13816_v57  ;;  %v10813_v63 = vld [vmem:[%s11298_s28 + $0x140] ss:$24 sps:$4 sm:$0xff]   ;;  %v2356_v38 = vadd.f32 %v13943_v29, %v13942_v58  ;;  %v10843_v58 = vld [vmem:[%s13777_s1 + $0x2b0] sm:$0xff]  }
 0x2e1   : > { %v2671_v27 = vpop.f32.mrf.mxu0  ;;  %v12567_v32 = vpop.f32.mrf.mxu1  ;;  %v13945_v29 = vld [vmem:[#allocation29_spill] sm:$0xff] }
 0x2e2   : > { %v12565_v5 = vadd.f32 %v2671_v27, %v2351_v56  ;;  %13941 = vst [vmem:[#allocation23_spill] sm:$0xff] %v12567_v32 }
 0x2e3   : > { %v2673_v11 = vpop.f32.mrf.mxu0  ;;  %6438 = vmatpush1.bf16.msra.mxu0 %v10825_v16  ;;  %v4122_v60 = vpop.f32.mrf.mxu1 }
 0x2e4   : > { %6439 = vmatprep.subr.bf16.mxu0 %v13816_v57  ;;  %v13946_v60 = vld [vmem:[#allocation7_spill] sm:$0xff] }
 0x2e5   : > { %v2676_v56 = vpop.f32.mrf.mxu0  ;;  %10118 = vmatmul.mubr.bf16.gmra.mxu0 %v10811_v41  ;;  %v12580_v11 = vpop.f32.mrf.mxu1  ;;  %5487 = vmatmul.mubr.bf16.gmra.mxu1 %v10812_v9  ;;  %v2359_v41 = vadd.f32 %v13946_v60, %v13945_v29  ;;  %v13949_v29 = vld [vmem:[#allocation8_spill] sm:$0xff] }
 0x2e6   : > { %v12578_v27 = vadd.f32 %v2676_v56, %v2356_v38  ;;  %13944 = vst [vmem:[#allocation4_spill] sm:$0xff] %v12580_v11  ;;  %10121 = vmatprep.mubr.bf16.mxu0 %v10813_v63  ;;  %9432 = vmatprep.mubr.msk.bf16.mxu1 %vm5185_vm0, %v10814_v43  ;;  %v10816_v56 = vld [vmem:[%s11298_s28 + $0x170] ss:$24 sps:$4 sm:$0xff]  }
 0x2e7   : > { %v2678_v16 = vpop.f32.mrf.mxu0  ;;  %6440 = vmatpush1.bf16.msra.mxu0 %v10836_v37  ;;  %v4127_v32 = vpop.f32.mrf.mxu1  ;;  %v10817_v63 = vld [vmem:[%s11298_s28 + $0x4c8] ss:$24 sps:$4 sm:$0xff]   ;;  %v10821_v37 = vld [vmem:[%s11298_s28 + $0x4fc] ss:$24 sps:$4 sm:$0xff]  }
 0x2e8   : > { %6441 = vmatprep.subr.bf16.mxu0 %v13816_v57  ;;  %v10820_v16 = vld [vmem:[%s11298_s28 + $0x1a0] ss:$24 sps:$4 sm:$0xff]   ;;  %v2364_v32 = vadd.f32 %v13949_v29, %v13948_v14  ;;  %v13951_v29 = vld [vmem:[#allocation33_spill] sm:$0xff] }
 0x2e9   : > { %v2679_v38 = vpop.f32.mrf.mxu0  ;;  %v12592_v9 = vpop.f32.mrf.mxu1  ;;  %v10861_v14 = vld [vmem:[%s13777_s1 + $0x2a0] sm:$0xff]  }
 0x2ea   : > { %v12590_v11 = vadd.f32 %v2679_v38, %v2359_v41  ;;  %13947 = vst [vmem:[#allocation25_spill] sm:$0xff] %v12592_v9 }
 0x2eb   : > { %v2681_v43 = vpop.f32.mrf.mxu0  ;;  %6442 = vmatpush1.bf16.msra.mxu0 %v10843_v58  ;;  %v4130_v60 = vpop.f32.mrf.mxu1 }
 0x2ec   : > { %6443 = vmatprep.subr.bf16.mxu0 %v13816_v57  ;;  %v13952_v60 = vld [vmem:[#allocation9_spill] sm:$0xff] }
 0x2ed   : > { %v2684_v41 = vpop.f32.mrf.mxu0  ;;  %10122 = vmatmul.mubr.bf16.gmra.mxu0 %v10816_v56  ;;  %v12605_v43 = vpop.f32.mrf.mxu1  ;;  %5495 = vmatmul.mubr.bf16.gmra.mxu1 %v10817_v63  ;;  %v2367_v56 = vadd.f32 %v13952_v60, %v13951_v29  ;;  %v13955_v29 = vld [vmem:[#allocation10_spill] sm:$0xff] }
 0x2ee   : > { %v12603_v38 = vadd.f32 %v2684_v41, %v2364_v32  ;;  %13950 = vst [vmem:[#allocation5_spill] sm:$0xff] %v12605_v43  ;;  %10125 = vmatprep.mubr.bf16.mxu0 %v10820_v16  ;;  %9433 = vmatprep.mubr.msk.bf16.mxu1 %vm5185_vm0, %v10821_v37  ;;  %v10823_v41 = vld [vmem:[%s11298_s28 + $0x1d0] ss:$24 sps:$4 sm:$0xff]  }
 0x2ef   : > { %v2686_v58 = vpop.f32.mrf.mxu0  ;;  %6444 = vmatpush1.bf16.msra.mxu0 %v10854_v34  ;;  %v4135_v9 = vpop.f32.mrf.mxu1  ;;  %v10824_v16 = vld [vmem:[%s11298_s28 + $0x4f8] ss:$24 sps:$4 sm:$0xff]   ;;  %v10827_v34 = vld [vmem:[%s11298_s28 + $0x52c] ss:$24 sps:$4 sm:$0xff]  }
 0x2f0   : > { %6445 = vmatprep.subr.bf16.mxu0 %v13816_v57  ;;  %v10826_v58 = vld [vmem:[%s11298_s28 + $0x200] ss:$24 sps:$4 sm:$0xff]   ;;  %v2372_v9 = vadd.f32 %v13955_v29, %v13954_v59  ;;  %v10879_v59 = vld [vmem:[%s13777_s1 + $0x2f0] sm:$0xff]  }
 0x2f1   : > { %v2687_v32 = vpop.f32.mrf.mxu0  ;;  %v12617_v63 = vpop.f32.mrf.mxu1  ;;  %v13957_v29 = vld [vmem:[#allocation37_spill] sm:$0xff] }
 0x2f2   : > { %v12615_v43 = vadd.f32 %v2687_v32, %v2367_v56  ;;  %13953 = vst [vmem:[#allocation27_spill] sm:$0xff] %v12617_v63 }
 0x2f3   : > { %v2689_v37 = vpop.f32.mrf.mxu0  ;;  %6446 = vmatpush1.bf16.msra.mxu0 %v10861_v14  ;;  %v4138_v60 = vpop.f32.mrf.mxu1 }
 0x2f4   : > { %6455 = vmatprep.subr.bf16.mxu0 %v13816_v57  ;;  %v13958_v60 = vld [vmem:[#allocation11_spill] sm:$0xff] }
 0x2f5   : > { %v2692_v56 = vpop.f32.mrf.mxu0  ;;  %10126 = vmatmul.mubr.bf16.gmra.mxu0 %v10823_v41  ;;  %v12630_v37 = vpop.f32.mrf.mxu1  ;;  %5503 = vmatmul.mubr.bf16.gmra.mxu1 %v10824_v16  ;;  %v2375_v41 = vadd.f32 %v13958_v60, %v13957_v29  ;;  %v13961_v29 = vld [vmem:[#allocation12_spill] sm:$0xff] }
 0x2f6   : > { %v12628_v32 = vadd.f32 %v2692_v56, %v2372_v9  ;;  %13956 = vst [vmem:[#allocation6_spill] sm:$0xff] %v12630_v37  ;;  %10129 = vmatprep.mubr.bf16.mxu0 %v10826_v58  ;;  %9434 = vmatprep.mubr.msk.bf16.mxu1 %vm5185_vm0, %v10827_v34  ;;  %v10829_v56 = vld [vmem:[%s11298_s28 + $0x230] ss:$24 sps:$4 sm:$0xff]  }
 0x2f7   : > { %v2694_v14 = vpop.f32.mrf.mxu0  ;;  %6456 = vmatpush2.bf16.msra.mxu0 %v10872_v8  ;;  %v4143_v63 = vpop.f32.mrf.mxu1  ;;  %v10830_v58 = vld [vmem:[%s11298_s28 + $0x528] ss:$24 sps:$4 sm:$0xff]   ;;  %v10832_v8 = vld [vmem:[%s11298_s28 + $0x55c] ss:$24 sps:$4 sm:$0xff]  }
 0x2f8   : > { %6457 = vmatprep.subr.bf16.mxu0 %v13816_v57  ;;  %v10831_v14 = vld [vmem:[%s11298_s28 + $0x260] ss:$24 sps:$4 sm:$0xff]   ;;  %v2380_v63 = vadd.f32 %v13961_v29, %v13960_v51  ;;  %v13963_v29 = vld [vmem:[#allocation41_spill] sm:$0xff] }
 0x2f9   : > { %v2695_v9 = vpop.f32.mrf.mxu0  ;;  %v12642_v16 = vpop.f32.mrf.mxu1  ;;  %v10897_v51 = vld [vmem:[%s13777_s1 + $0x2e0] sm:$0xff]  }
 0x2fa   : > { %v12640_v37 = vadd.f32 %v2695_v9, %v2375_v41  ;;  %13959 = vst [vmem:[#allocation29_spill] sm:$0xff] %v12642_v16 }
 0x2fb   : > { %v2697_v34 = vpop.f32.mrf.mxu0  ;;  %6458 = vmatpush2.bf16.msra.mxu0 %v10879_v59  ;;  %v4146_v60 = vpop.f32.mrf.mxu1 }
 0x2fc   : > { %6459 = vmatprep.subr.bf16.mxu0 %v13816_v57  ;;  %v13964_v60 = vld [vmem:[#allocation13_spill] sm:$0xff] }
 0x2fd   : > { %v2700_v41 = vpop.f32.mrf.mxu0  ;;  %10130 = vmatmul.mubr.bf16.gmra.mxu0 %v10829_v56  ;;  %v12655_v34 = vpop.f32.mrf.mxu1  ;;  %5511 = vmatmul.mubr.bf16.gmra.mxu1 %v10830_v58  ;;  %v2383_v56 = vadd.f32 %v13964_v60, %v13963_v29 }
 0x2fe   : > { %v12653_v9 = vadd.f32 %v2700_v41, %v2380_v63  ;;  %13962 = vst [vmem:[#allocation7_spill] sm:$0xff] %v12655_v34  ;;  %10133 = vmatprep.mubr.bf16.mxu0 %v10831_v14  ;;  %9435 = vmatprep.mubr.msk.bf16.mxu1 %vm5185_vm0, %v10832_v8  ;;  %v10834_v41 = vld [vmem:[%s11298_s28 + $0x290] ss:$24 sps:$4 sm:$0xff]  }
 0x2ff   : > { %v2702_v59 = vpop.f32.mrf.mxu0  ;;  %6460 = vmatpush2.bf16.msra.mxu0 %v10890_v52  ;;  %v4151_v16 = vpop.f32.mrf.mxu1  ;;  %v10835_v14 = vld [vmem:[%s11298_s28 + $0x558] ss:$24 sps:$4 sm:$0xff]   ;;  %v10839_v52 = vld [vmem:[%s11298_s28 + $0x58c] ss:$24 sps:$4 sm:$0xff]  }
 0x300   : > { %6461 = vmatprep.subr.bf16.mxu0 %v13816_v57  ;;  %v10838_v59 = vld [vmem:[%s11298_s28 + $0x2c0] ss:$24 sps:$4 sm:$0xff]  }
 0x301   : > { %v2703_v63 = vpop.f32.mrf.mxu0  ;;  %v12667_v58 = vpop.f32.mrf.mxu1 }
 0x302   : > { %v12665_v34 = vadd.f32 %v2703_v63, %v2383_v56  ;;  %13965 = vst [vmem:[#allocation31_spill] sm:$0xff] %v12667_v58  ;;  %v13969_v63 = vld [vmem:[#allocation45_spill] sm:$0xff] }
 0x303   : > { %v2705_v8 = vpop.f32.mrf.mxu0  ;;  %6462 = vmatpush2.bf16.msra.mxu0 %v10897_v51  ;;  %v4154_v29 = vpop.f32.mrf.mxu1  ;;  %v13970_v51 = vld [vmem:[#allocation15_spill] sm:$0xff] }
 0x304   : > { %v2391_v8 = vadd.f32 %v13970_v51, %v13969_v63 }
 0x305   : > { %v2708_v16 = vpop.f32.mrf.mxu0  ;;  %10134 = vmatmul.mubr.bf16.gmra.mxu0 %v10834_v41  ;;  %v12676_v60 = vpop.f32.mrf.mxu1  ;;  %5519 = vmatmul.mubr.bf16.gmra.mxu1 %v10835_v14  ;;  %v10842_v41 = vld [vmem:[%s11298_s28 + $0x588] ss:$24 sps:$4 sm:$0xff]  }
 0x306   : > { %v12674_v57 = vadd.f32 %v2708_v16, %v2388_v39  ;;  %13968 = vst [vmem:[#allocation8_spill] sm:$0xff] %v12676_v60  ;;  %10137 = vmatprep.mubr.bf16.mxu0 %v10838_v59  ;;  %9436 = vmatprep.mubr.msk.bf16.mxu1 %vm5185_vm0, %v10839_v52  ;;  %v10844_v39 = vld [vmem:[%s11298_s28 + $0x320] ss:$24 sps:$4 sm:$0xff]   ;;  %v10845_v60 = vld [vmem:[%s11298_s28 + $0x5bc] ss:$24 sps:$4 sm:$0xff]   ;;  %v13973_v59 = vld [vmem:[#allocation16_spill] sm:$0xff] }
 0x307   : > { %v2710_v56 = vpop.f32.mrf.mxu0  ;;  %v5330_v58 = vpop.f32.mrf.mxu1  ;;  %v13972_v14 = vld [vmem:[#allocation47_spill] sm:$0xff] }
 0x308   : > { %v2396_v56 = vadd.f32 %v13973_v59, %v13972_v14  ;;  %v10847_v59 = vld [vmem:[%s11298_s28 + $0x350] ss:$24 sps:$4 sm:$0xff]  }
 0x309   : > { %v2711_v13 = vpop.f32.mrf.mxu0  ;;  %v12684_v23 = vpop.f32.mrf.mxu1 }
 0x30a   : > { %v12682_v29 = vadd.f32 %v2711_v13, %v2391_v8  ;;  %13971 = vst [vmem:[#allocation33_spill] sm:$0xff] %v12684_v23  ;;  %v13975_v8 = vld [vmem:[#allocation49_spill] sm:$0xff] }
 0x30b   : > { %v2713_v16 = vpop.f32.mrf.mxu0  ;;  %v5333_v52 = vpop.f32.mrf.mxu1  ;;  %v13976_v13 = vld [vmem:[#allocation17_spill] sm:$0xff] }
 0x30c   : > { %v2399_v16 = vadd.f32 %v13976_v13, %v13975_v8 }
 0x30d   : > { %v2716_v61 = vpop.f32.mrf.mxu0  ;;  %10138 = vmatmul.mubr.bf16.gmra.mxu0 %v10841_v26  ;;  %v12693_v63 = vpop.f32.mrf.mxu1  ;;  %5527 = vmatmul.mubr.bf16.gmra.mxu1 %v10842_v41  ;;  %v10848_v26 = vld [vmem:[%s11298_s28 + $0x5b8] ss:$24 sps:$4 sm:$0xff]   ;;  %v13978_v41 = vld [vmem:[#allocation51_spill] sm:$0xff] }
 0x30e   : > { %v12691_v58 = vadd.f32 %v2716_v61, %v2396_v56  ;;  %13974 = vst [vmem:[#allocation9_spill] sm:$0xff] %v12693_v63  ;;  %10141 = vmatprep.mubr.bf16.mxu0 %v10844_v39  ;;  %9437 = vmatprep.mubr.msk.bf16.mxu1 %vm5185_vm0, %v10845_v60  ;;  %v10849_v61 = vld [vmem:[%s11298_s28 + $0x380] ss:$24 sps:$4 sm:$0xff]   ;;  %v10850_v63 = vld [vmem:[%s11298_s28 + $0x5ec] ss:$24 sps:$4 sm:$0xff]  }
 0x30f   : > { %v2718_v51 = vpop.f32.mrf.mxu0  ;;  %v5338_v23 = vpop.f32.mrf.mxu1  ;;  %v13979_v39 = vld [vmem:[#allocation18_spill] sm:$0xff] }
 0x310   : > { %v2404_v51 = vadd.f32 %v13979_v39, %v13978_v41  ;;  %v10852_v39 = vld [vmem:[%s11298_s28 + $0x3b0] ss:$24 sps:$4 sm:$0xff]  }
 0x311   : > { %v2719_v14 = vpop.f32.mrf.mxu0  ;;  %v12701_v1 = vpop.f32.mrf.mxu1 }
 0x312   : > { %v12699_v52 = vadd.f32 %v2719_v14, %v2399_v16  ;;  %13977 = vst [vmem:[#allocation35_spill] sm:$0xff] %v12701_v1  ;;  %v13981_v16 = vld [vmem:[#allocation53_spill] sm:$0xff]  ;;  %v13982_v14 = vld [vmem:[#allocation19_spill] sm:$0xff] }
 0x313   : > { %v2721_v56 = vpop.f32.mrf.mxu0  ;;  %v5341_v60 = vpop.f32.mrf.mxu1 }
 0x314   : > { %v2407_v56 = vadd.f32 %v13982_v14, %v13981_v16 }
 0x315   : > { %v2724_v46 = vpop.f32.mrf.mxu0  ;;  %10142 = vmatmul.mubr.bf16.gmra.mxu0 %v10847_v59  ;;  %v12710_v8 = vpop.f32.mrf.mxu1  ;;  %5535 = vmatmul.mubr.bf16.gmra.mxu1 %v10848_v26  ;;  %v10853_v59 = vld [vmem:[%s11298_s28 + $0x5e8] ss:$24 sps:$4 sm:$0xff]  }
 0x316   : > { %v12708_v23 = vadd.f32 %v2724_v46, %v2404_v51  ;;  %13980 = vst [vmem:[#allocation10_spill] sm:$0xff] %v12710_v8  ;;  %10145 = vmatprep.mubr.bf16.mxu0 %v10849_v61  ;;  %9438 = vmatprep.mubr.msk.bf16.mxu1 %vm5185_vm0, %v10850_v63  ;;  %v10856_v46 = vld [vmem:[%s11298_s28 + $0x3e0] ss:$24 sps:$4 sm:$0xff]   ;;  %v10857_v8 = vld [vmem:[%s11298_s28 + $0x61c] ss:$24 sps:$4 sm:$0xff]   ;;  %v13986_v61 = vld [vmem:[#allocation20_spill] sm:$0xff] }
 0x317   : > { %v2726_v13 = vpop.f32.mrf.mxu0  ;;  %v5346_v1 = vpop.f32.mrf.mxu1  ;;  %v13985_v26 = vld [vmem:[#allocation55_spill] sm:$0xff] }
 0x318   : > { %v2412_v13 = vadd.f32 %v13986_v61, %v13985_v26  ;;  %v10859_v61 = vld [vmem:[%s11298_s28 + $0x410] ss:$24 sps:$4 sm:$0xff]  }
 0x319   : > { %v2727_v41 = vpop.f32.mrf.mxu0  ;;  %v12718_v21 = vpop.f32.mrf.mxu1 }
 0x31a   : > { %v12716_v60 = vadd.f32 %v2727_v41, %v2407_v56  ;;  %13984 = vst [vmem:[#allocation11_spill] sm:$0xff] %v12718_v21  ;;  %v13988_v56 = vld [vmem:[#allocation57_spill] sm:$0xff]  ;;  %v13989_v41 = vld [vmem:[#allocation22_spill] sm:$0xff] }
 0x31b   : > { %v2729_v51 = vpop.f32.mrf.mxu0  ;;  %v5349_v63 = vpop.f32.mrf.mxu1 }
 0x31c   : > { %13983 = vst [vmem:[#allocation37_spill] sm:$0xff] %v12716_v60  ;;  %v2415_v51 = vadd.f32 %v13989_v41, %v13988_v56 }
 0x31d   : > { %v2732_v18 = vpop.f32.mrf.mxu0  ;;  %10146 = vmatmul.mubr.bf16.gmra.mxu0 %v10852_v39  ;;  %v12727_v16 = vpop.f32.mrf.mxu1  ;;  %5543 = vmatmul.mubr.bf16.gmra.mxu1 %v10853_v59  ;;  %v10860_v39 = vld [vmem:[%s11298_s28 + $0x618] ss:$24 sps:$4 sm:$0xff]   ;;  %v13992_v59 = vld [vmem:[#allocation59_spill] sm:$0xff] }
 0x31e   : > { %v12725_v1 = vadd.f32 %v2732_v18, %v2412_v13  ;;  %13987 = vst [vmem:[#allocation39_spill] sm:$0xff] %v12727_v16  ;;  %10149 = vmatprep.mubr.bf16.mxu0 %v10856_v46  ;;  %9439 = vmatprep.mubr.msk.bf16.mxu1 %vm5185_vm0, %v10857_v8  ;;  %v10862_v18 = vld [vmem:[%s11298_s28 + $0x440] ss:$24 sps:$4 sm:$0xff]   ;;  %v10863_v16 = vld [vmem:[%s11298_s28 + $0x64c] ss:$24 sps:$4 sm:$0xff]  }
 0x31f   : > { %v2734_v14 = vpop.f32.mrf.mxu0  ;;  %v5354_v21 = vpop.f32.mrf.mxu1  ;;  %v13993_v46 = vld [vmem:[#allocation24_spill] sm:$0xff] }
 0x320   : > { %v2420_v14 = vadd.f32 %v13993_v46, %v13992_v59  ;;  %v10865_v46 = vld [vmem:[%s11298_s28 + $0x470] ss:$24 sps:$4 sm:$0xff]  }
 0x321   : > { %v2735_v26 = vpop.f32.mrf.mxu0  ;;  %v12735_v60 = vpop.f32.mrf.mxu1 }
 0x322   : > { %v12733_v63 = vadd.f32 %v2735_v26, %v2415_v51  ;;  %13991 = vst [vmem:[#allocation41_spill] sm:$0xff] %v12735_v60  ;;  %v13996_v51 = vld [vmem:[#allocation61_spill] sm:$0xff]  ;;  %v13997_v26 = vld [vmem:[#allocation26_spill] sm:$0xff] }
 0x323   : > { %v2737_v13 = vpop.f32.mrf.mxu0  ;;  %v5357_v8 = vpop.f32.mrf.mxu1 }
 0x324   : > { %13990 = vst [vmem:[#allocation12_spill] sm:$0xff] %v12733_v63  ;;  %v2423_v13 = vadd.f32 %v13997_v26, %v13996_v51 }
 0x325   : > { %v2740_v28 = vpop.f32.mrf.mxu0  ;;  %10150 = vmatmul.mubr.bf16.gmra.mxu0 %v10859_v61  ;;  %v12744_v56 = vpop.f32.mrf.mxu1  ;;  %5551 = vmatmul.mubr.bf16.gmra.mxu1 %v10860_v39  ;;  %v10866_v61 = vld [vmem:[%s11298_s28 + $0x648] ss:$24 sps:$4 sm:$0xff]  }
 0x326   : > { %v12742_v21 = vadd.f32 %v2740_v28, %v2420_v14  ;;  %13995 = vst [vmem:[#allocation43_spill] sm:$0xff] %v12744_v56  ;;  %10153 = vmatprep.mubr.bf16.mxu0 %v10862_v18  ;;  %9440 = vmatprep.mubr.msk.bf16.mxu1 %vm5185_vm0, %v10863_v16  ;;  %v10867_v28 = vld [vmem:[%s11298_s28 + $0x4a0] ss:$24 sps:$4 sm:$0xff]   ;;  %v10868_v56 = vld [vmem:[%s11298_s28 + $0x67c] ss:$24 sps:$4 sm:$0xff]   ;;  %v14001_v18 = vld [vmem:[#allocation28_spill] sm:$0xff] }
 0x327   : > { %v2742_v41 = vpop.f32.mrf.mxu0  ;;  %v5362_v60 = vpop.f32.mrf.mxu1  ;;  %v14000_v39 = vld [vmem:[#allocation63_spill] sm:$0xff] }
 0x328   : > { %13994 = vst [vmem:[#allocation13_spill] sm:$0xff] %v12742_v21  ;;  %v2428_v41 = vadd.f32 %v14001_v18, %v14000_v39  ;;  %v10870_v18 = vld [vmem:[%s11298_s28 + $0x4d0] ss:$24 sps:$4 sm:$0xff]  }
 0x329   : > { %v2743_v59 = vpop.f32.mrf.mxu0  ;;  %v12752_v63 = vpop.f32.mrf.mxu1 }
 0x32a   : > { %v12750_v8 = vadd.f32 %v2743_v59, %v2423_v13  ;;  %13999 = vst [vmem:[#allocation45_spill] sm:$0xff] %v12752_v63  ;;  %v14004_v13 = vld [vmem:[#allocation65_spill] sm:$0xff]  ;;  %v14005_v59 = vld [vmem:[#allocation30_spill] sm:$0xff] }
 0x32b   : > { %v2745_v14 = vpop.f32.mrf.mxu0  ;;  %v5365_v16 = vpop.f32.mrf.mxu1 }
 0x32c   : > { %13998 = vst [vmem:[#allocation14_spill] sm:$0xff] %v12750_v8  ;;  %v2431_v14 = vadd.f32 %v14005_v59, %v14004_v13 }
 0x32d   : > { %v2748_v21 = vpop.f32.mrf.mxu0  ;;  %10154 = vmatmul.mubr.bf16.gmra.mxu0 %v10865_v46  ;;  %v12761_v51 = vpop.f32.mrf.mxu1  ;;  %5559 = vmatmul.mubr.bf16.gmra.mxu1 %v10866_v61  ;;  %v10871_v46 = vld [vmem:[%s11298_s28 + $0x678] ss:$24 sps:$4 sm:$0xff]   ;;  %v14008_v61 = vld [vmem:[#allocation67_spill] sm:$0xff] }
 0x32e   : > { %v12759_v60 = vadd.f32 %v2748_v21, %v2428_v41  ;;  %14003 = vst [vmem:[#allocation47_spill] sm:$0xff] %v12761_v51  ;;  %10157 = vmatprep.mubr.bf16.mxu0 %v10867_v28  ;;  %9441 = vmatprep.mubr.msk.bf16.mxu1 %vm5185_vm0, %v10868_v56  ;;  %v10874_v21 = vld [vmem:[%s11298_s28 + $0x500] ss:$24 sps:$4 sm:$0xff]   ;;  %v10875_v51 = vld [vmem:[%s11298_s28 + $0x6ac] ss:$24 sps:$4 sm:$0xff]  }
 0x32f   : > { %v2750_v26 = vpop.f32.mrf.mxu0  ;;  %v5370_v63 = vpop.f32.mrf.mxu1  ;;  %v14009_v28 = vld [vmem:[#allocation32_spill] sm:$0xff] }
 0x330   : > { %14002 = vst [vmem:[#allocation15_spill] sm:$0xff] %v12759_v60  ;;  %v2436_v26 = vadd.f32 %v14009_v28, %v14008_v61  ;;  %v10877_v28 = vld [vmem:[%s11298_s28 + $0x530] ss:$24 sps:$4 sm:$0xff]  }
 0x331   : > { %v2751_v39 = vpop.f32.mrf.mxu0  ;;  %v12769_v8 = vpop.f32.mrf.mxu1 }
 0x332   : > { %v12767_v16 = vadd.f32 %v2751_v39, %v2431_v14  ;;  %14007 = vst [vmem:[#allocation49_spill] sm:$0xff] %v12769_v8  ;;  %v14012_v14 = vld [vmem:[#allocation69_spill] sm:$0xff]  ;;  %v14013_v39 = vld [vmem:[#allocation34_spill] sm:$0xff] }
 0x333   : > { %v2753_v41 = vpop.f32.mrf.mxu0  ;;  %v5373_v56 = vpop.f32.mrf.mxu1 }
 0x334   : > { %14006 = vst [vmem:[#allocation16_spill] sm:$0xff] %v12767_v16  ;;  %v2439_v41 = vadd.f32 %v14013_v39, %v14012_v14 }
 0x335   : > { %v2756_v60 = vpop.f32.mrf.mxu0  ;;  %10158 = vmatmul.mubr.bf16.gmra.mxu0 %v10870_v18  ;;  %v12778_v13 = vpop.f32.mrf.mxu1  ;;  %5567 = vmatmul.mubr.bf16.gmra.mxu1 %v10871_v46  ;;  %v10878_v18 = vld [vmem:[%s11298_s28 + $0x6a8] ss:$24 sps:$4 sm:$0xff]  }
 0x336   : > { %v12776_v63 = vadd.f32 %v2756_v60, %v2436_v26  ;;  %14011 = vst [vmem:[#allocation51_spill] sm:$0xff] %v12778_v13  ;;  %10161 = vmatprep.mubr.bf16.mxu0 %v10874_v21  ;;  %9442 = vmatprep.mubr.msk.bf16.mxu1 %vm5185_vm0, %v10875_v51  ;;  %v10880_v60 = vld [vmem:[%s11298_s28 + $0x560] ss:$24 sps:$4 sm:$0xff]   ;;  %v10881_v13 = vld [vmem:[%s11298_s28 + $0x6dc] ss:$24 sps:$4 sm:$0xff]   ;;  %v14017_v21 = vld [vmem:[#allocation36_spill] sm:$0xff] }
 0x337   : > { %v2758_v59 = vpop.f32.mrf.mxu0  ;;  %v5378_v8 = vpop.f32.mrf.mxu1  ;;  %v14016_v46 = vld [vmem:[#allocation71_spill] sm:$0xff] }
 0x338   : > { %14010 = vst [vmem:[#allocation17_spill] sm:$0xff] %v12776_v63  ;;  %v2444_v59 = vadd.f32 %v14017_v21, %v14016_v46  ;;  %v10883_v21 = vld [vmem:[%s11298_s28 + $0x590] ss:$24 sps:$4 sm:$0xff]  }
 0x339   : > { %v2759_v61 = vpop.f32.mrf.mxu0  ;;  %v12786_v16 = vpop.f32.mrf.mxu1 }
 0x33a   : > { %v12784_v56 = vadd.f32 %v2759_v61, %v2439_v41  ;;  %14015 = vst [vmem:[#allocation53_spill] sm:$0xff] %v12786_v16  ;;  %v14020_v41 = vld [vmem:[#allocation73_spill] sm:$0xff]  ;;  %v14021_v61 = vld [vmem:[#allocation38_spill] sm:$0xff] }
 0x33b   : > { %v2761_v26 = vpop.f32.mrf.mxu0  ;;  %v5381_v51 = vpop.f32.mrf.mxu1 }
 0x33c   : > { %14014 = vst [vmem:[#allocation18_spill] sm:$0xff] %v12784_v56  ;;  %v2447_v26 = vadd.f32 %v14021_v61, %v14020_v41 }
 0x33d   : > { %v2764_v63 = vpop.f32.mrf.mxu0  ;;  %10162 = vmatmul.mubr.bf16.gmra.mxu0 %v10877_v28  ;;  %v12795_v14 = vpop.f32.mrf.mxu1  ;;  %5575 = vmatmul.mubr.bf16.gmra.mxu1 %v10878_v18  ;;  %v10884_v28 = vld [vmem:[%s11298_s28 + $0x6d8] ss:$24 sps:$4 sm:$0xff]   ;;  %v14024_v18 = vld [vmem:[#allocation75_spill] sm:$0xff] }
 0x33e   : > { %v12793_v8 = vadd.f32 %v2764_v63, %v2444_v59  ;;  %14019 = vst [vmem:[#allocation55_spill] sm:$0xff] %v12795_v14  ;;  %10165 = vmatprep.mubr.bf16.mxu0 %v10880_v60  ;;  %9443 = vmatprep.mubr.msk.bf16.mxu1 %vm5185_vm0, %v10881_v13  ;;  %v10885_v63 = vld [vmem:[%s11298_s28 + $0x5c0] ss:$24 sps:$4 sm:$0xff]   ;;  %v10886_v14 = vld [vmem:[%s11298_s28 + $0x70c] ss:$24 sps:$4 sm:$0xff]  }
 0x33f   : > { %v2766_v39 = vpop.f32.mrf.mxu0  ;;  %v5386_v16 = vpop.f32.mrf.mxu1  ;;  %v14025_v60 = vld [vmem:[#allocation40_spill] sm:$0xff] }
 0x340   : > { %14018 = vst [vmem:[#allocation19_spill] sm:$0xff] %v12793_v8  ;;  %v2452_v39 = vadd.f32 %v14025_v60, %v14024_v18  ;;  %v10888_v60 = vld [vmem:[%s11298_s28 + $0x5f0] ss:$24 sps:$4 sm:$0xff]  }
 0x341   : > { %v2767_v46 = vpop.f32.mrf.mxu0  ;;  %v12803_v56 = vpop.f32.mrf.mxu1 }
 0x342   : > { %v12801_v51 = vadd.f32 %v2767_v46, %v2447_v26  ;;  %14023 = vst [vmem:[#allocation57_spill] sm:$0xff] %v12803_v56  ;;  %v14028_v26 = vld [vmem:[#allocation77_spill] sm:$0xff]  ;;  %v14029_v46 = vld [vmem:[#allocation42_spill] sm:$0xff] }
 0x343   : > { %v2769_v59 = vpop.f32.mrf.mxu0  ;;  %v5389_v13 = vpop.f32.mrf.mxu1 }
 0x344   : > { %14022 = vst [vmem:[#allocation20_spill] sm:$0xff] %v12801_v51  ;;  %v2455_v59 = vadd.f32 %v14029_v46, %v14028_v26 }
 0x345   : > { %v2772_v8 = vpop.f32.mrf.mxu0  ;;  %10166 = vmatmul.mubr.bf16.gmra.mxu0 %v10883_v21  ;;  %v12812_v41 = vpop.f32.mrf.mxu1  ;;  %5583 = vmatmul.mubr.bf16.gmra.mxu1 %v10884_v28  ;;  %v10889_v21 = vld [vmem:[%s11298_s28 + $0x708] ss:$24 sps:$4 sm:$0xff]  }
 0x346   : > { %v12810_v16 = vadd.f32 %v2772_v8, %v2452_v39  ;;  %14027 = vst [vmem:[#allocation59_spill] sm:$0xff] %v12812_v41  ;;  %10169 = vmatprep.mubr.bf16.mxu0 %v10885_v63  ;;  %9444 = vmatprep.mubr.msk.bf16.mxu1 %vm5185_vm0, %v10886_v14  ;;  %v10892_v8 = vld [vmem:[%s11298_s28 + $0x620] ss:$24 sps:$4 sm:$0xff]   ;;  %v10893_v41 = vld [vmem:[%s11298_s28 + $0x73c] ss:$24 sps:$4 sm:$0xff]   ;;  %v14033_v63 = vld [vmem:[#allocation44_spill] sm:$0xff] }
 0x347   : > { %v2774_v61 = vpop.f32.mrf.mxu0  ;;  %v5394_v56 = vpop.f32.mrf.mxu1  ;;  %v14032_v28 = vld [vmem:[#allocation79_spill] sm:$0xff] }
 0x348   : > { %14026 = vst [vmem:[#allocation22_spill] sm:$0xff] %v12810_v16  ;;  %v2460_v61 = vadd.f32 %v14033_v63, %v14032_v28  ;;  %v10895_v63 = vld [vmem:[%s11298_s28 + $0x650] ss:$24 sps:$4 sm:$0xff]  }
 0x349   : > { %v2775_v18 = vpop.f32.mrf.mxu0  ;;  %v12820_v51 = vpop.f32.mrf.mxu1 }
 0x34a   : > { %v12818_v13 = vadd.f32 %v2775_v18, %v2455_v59  ;;  %14031 = vst [vmem:[#allocation61_spill] sm:$0xff] %v12820_v51  ;;  %v14036_v59 = vld [vmem:[#allocation81_spill] sm:$0xff]  ;;  %v14037_v18 = vld [vmem:[#allocation46_spill] sm:$0xff] }
 0x34b   : > { %v2777_v39 = vpop.f32.mrf.mxu0  ;;  %v5397_v14 = vpop.f32.mrf.mxu1 }
 0x34c   : > { %14030 = vst [vmem:[#allocation24_spill] sm:$0xff] %v12818_v13  ;;  %v2463_v39 = vadd.f32 %v14037_v18, %v14036_v59 }
 0x34d   : > { %v2780_v16 = vpop.f32.mrf.mxu0  ;;  %10170 = vmatmul.mubr.bf16.gmra.mxu0 %v10888_v60  ;;  %v12829_v26 = vpop.f32.mrf.mxu1  ;;  %5591 = vmatmul.mubr.bf16.gmra.mxu1 %v10889_v21  ;;  %v10896_v60 = vld [vmem:[%s11298_s28 + $0x738] ss:$24 sps:$4 sm:$0xff]   ;;  %v14040_v21 = vld [vmem:[#allocation83_spill] sm:$0xff] }
 0x34e   : > { %v12827_v56 = vadd.f32 %v2780_v16, %v2460_v61  ;;  %14035 = vst [vmem:[#allocation63_spill] sm:$0xff] %v12829_v26  ;;  %10173 = vmatprep.mubr.bf16.mxu0 %v10892_v8  ;;  %9445 = vmatprep.mubr.msk.bf16.mxu1 %vm5185_vm0, %v10893_v41  ;;  %v10898_v16 = vld [vmem:[%s11298_s28 + $0x680] ss:$24 sps:$4 sm:$0xff]   ;;  %v10899_v26 = vld [vmem:[%s11298_s28 + $0x76c] ss:$24 sps:$4 sm:$0xff]  }
 0x34f   : > { %v2782_v46 = vpop.f32.mrf.mxu0  ;;  %v5402_v51 = vpop.f32.mrf.mxu1  ;;  %v14041_v8 = vld [vmem:[#allocation48_spill] sm:$0xff] }
 0x350   : > { %14034 = vst [vmem:[#allocation26_spill] sm:$0xff] %v12827_v56  ;;  %v2468_v46 = vadd.f32 %v14041_v8, %v14040_v21  ;;  %v10901_v8 = vld [vmem:[%s11298_s28 + $0x6b0] ss:$24 sps:$4 sm:$0xff]  }
 0x351   : > { %v2783_v28 = vpop.f32.mrf.mxu0  ;;  %v12837_v13 = vpop.f32.mrf.mxu1 }
 0x352   : > { %v12835_v14 = vadd.f32 %v2783_v28, %v2463_v39  ;;  %14039 = vst [vmem:[#allocation65_spill] sm:$0xff] %v12837_v13  ;;  %v14044_v39 = vld [vmem:[#allocation85_spill] sm:$0xff]  ;;  %v14045_v28 = vld [vmem:[#allocation50_spill] sm:$0xff] }
 0x353   : > { %v2785_v61 = vpop.f32.mrf.mxu0  ;;  %v5405_v41 = vpop.f32.mrf.mxu1 }
 0x354   : > { %14038 = vst [vmem:[#allocation28_spill] sm:$0xff] %v12835_v14  ;;  %v2471_v61 = vadd.f32 %v14045_v28, %v14044_v39 }
 0x355   : > { %v2788_v56 = vpop.f32.mrf.mxu0  ;;  %10174 = vmatmul.mubr.bf16.gmra.mxu0 %v10895_v63  ;;  %v12846_v59 = vpop.f32.mrf.mxu1  ;;  %5599 = vmatmul.mubr.bf16.gmra.mxu1 %v10896_v60  ;;  %v10902_v63 = vld [vmem:[%s11298_s28 + $0x768] ss:$24 sps:$4 sm:$0xff]  }
 0x356   : > { %v12844_v51 = vadd.f32 %v2788_v56, %v2468_v46  ;;  %14043 = vst [vmem:[#allocation67_spill] sm:$0xff] %v12846_v59  ;;  %10177 = vmatprep.mubr.bf16.mxu0 %v10898_v16  ;;  %9446 = vmatprep.mubr.msk.bf16.mxu1 %vm5185_vm0, %v10899_v26  ;;  %v10905_v56 = vld [vmem:[%s11298_s28 + $0xe8] ss:$24 sps:$4 sm:$0xff]   ;;  %v10908_v59 = vld [vmem:[%s11298_s28 + $0xf4] ss:$24 sps:$4 sm:$0xff]  }
 0x357   : > { %v2790_v18 = vpop.f32.mrf.mxu0  ;;  %v5410_v13 = vpop.f32.mrf.mxu1  ;;  %v14048_v60 = vld [vmem:[#allocation87_spill] sm:$0xff]  ;;  %v14049_v16 = vld [vmem:[#allocation52_spill] sm:$0xff] }
 0x358   : > { %14042 = vst [vmem:[#allocation30_spill] sm:$0xff] %v12844_v51  ;;  %v2476_v18 = vadd.f32 %v14049_v16, %v14048_v60 }
 0x359   : > { %v2791_v21 = vpop.f32.mrf.mxu0  ;;  %v12854_v14 = vpop.f32.mrf.mxu1 }
 0x35a   : > { %v12852_v41 = vadd.f32 %v2791_v21, %v2471_v61  ;;  %14047 = vst [vmem:[#allocation69_spill] sm:$0xff] %v12854_v14  ;;  %v14052_v61 = vld [vmem:[#allocation89_spill] sm:$0xff]  ;;  %v14053_v21 = vld [vmem:[#allocation54_spill] sm:$0xff] }
 0x35b   : > { %v2793_v46 = vpop.f32.mrf.mxu0  ;;  %v5413_v26 = vpop.f32.mrf.mxu1 }
 0x35c   : > { %14046 = vst [vmem:[#allocation32_spill] sm:$0xff] %v12852_v41  ;;  %v2479_v46 = vadd.f32 %v14053_v21, %v14052_v61  ;;  %v10903_v26 = vld [vmem:[%s11298_s28 + $0xe4] ss:$24 sps:$4 sm:$0xff]  }
 0x35d   : > { %v2796_v51 = vpop.f32.mrf.mxu0  ;;  %10178 = vmatmul.mubr.bf16.gmra.mxu0 %v10901_v8  ;;  %v12863_v39 = vpop.f32.mrf.mxu1  ;;  %5607 = vmatmul.mubr.bf16.gmra.mxu1 %v10902_v63  ;;  %v10911_v63 = vld [vmem:[%s11298_s28 + $0x124] ss:$24 sps:$4 sm:$0xff]  }
 0x35e   : > { %v12861_v13 = vadd.f32 %v2796_v51, %v2476_v18  ;;  %14051 = vst [vmem:[#allocation71_spill] sm:$0xff] %v12863_v39  ;;  %9531 = vmatprep.mubr.msk.bf16.mxu0 %vm5185_vm0, %v10905_v56  ;;  %9651 = vmatprep.mubr.msk.bf16.mxu1 %vm5185_vm0, %v10908_v59  ;;  %v10906_v51 = vld [vmem:[%s11298_s28 + $0xf0] ss:$24 sps:$4 sm:$0xff]   ;;  %v14056_v41 = vld [vmem:[#allocation91_spill] sm:$0xff] }
 0x35f   : > { %v2798_v28 = vpop.f32.mrf.mxu0  ;;  %v5418_v60 = vpop.f32.mrf.mxu1  ;;  %v10909_v18 = vld [vmem:[%s11298_s28 + $0x118] ss:$24 sps:$4 sm:$0xff]   ;;  %v14057_v56 = vld [vmem:[#allocation56_spill] sm:$0xff] }
 0x360   : > { %14050 = vst [vmem:[#allocation34_spill] sm:$0xff] %v12861_v13  ;;  %v2484_v28 = vadd.f32 %v14057_v56, %v14056_v41  ;;  %v14061_v60 = vld [vmem:[#allocation58_spill] sm:$0xff] }
 0x361   : > { %v2799_v16 = vpop.f32.mrf.mxu0  ;;  %v12872_v8 = vpop.f32.mrf.mxu1 }
 0x362   : > { %v12870_v14 = vadd.f32 %v2799_v16, %v2479_v46  ;;  %14055 = vst [vmem:[#allocation73_spill] sm:$0xff] %v12872_v8 }
 0x363   : > { %v2801_v39 = vpop.f32.mrf.mxu0  ;;  %v5421_v59 = vpop.f32.mrf.mxu1 }
 0x364   : > { %14054 = vst [vmem:[#allocation36_spill] sm:$0xff] %v12870_v14  ;;  %v14060_v39 = vld [vmem:[#allocation93_spill] sm:$0xff] }
 0x365   : > { %v2804_v13 = vpop.f32.mrf.mxu0  ;;  %6464 = vmatmul.mubr.bf16.vlgmr.msra.gmra.mxu0 %v10903_v26  ;;  %v12881_v21 = vpop.f32.mrf.mxu1  ;;  %7601 = vmatmul.mubr.bf16.vlgmr.msra.gmra.mxu1 %v10906_v51  ;;  %v2487_v16 = vadd.f32 %v14061_v60, %v14060_v39  ;;  %v10913_v59 = vld [vmem:[%s11298_s28 + $0x114] ss:$24 sps:$4 sm:$0xff]  }
 0x366   : > { %v12879_v61 = vadd.f32 %v2804_v13, %v2484_v28  ;;  %14059 = vst [vmem:[#allocation75_spill] sm:$0xff] %v12881_v21  ;;  %9532 = vmatprep.mubr.msk.bf16.mxu0 %vm5185_vm0, %v10909_v18  ;;  %9652 = vmatprep.mubr.msk.bf16.mxu1 %vm5185_vm0, %v10911_v63  ;;  %v10914_v13 = vld [vmem:[%s11298_s28 + $0x120] ss:$24 sps:$4 sm:$0xff]   ;;  %v10917_v51 = vld [vmem:[%s11298_s28 + $0x154] ss:$24 sps:$4 sm:$0xff]  }
 0x367   : > { %v2806_v46 = vpop.f32.mrf.mxu0  ;;  %v5426_v41 = vpop.f32.mrf.mxu1  ;;  %v10915_v28 = vld [vmem:[%s11298_s28 + $0x148] ss:$24 sps:$4 sm:$0xff]  }
 0x368   : > { %14058 = vst [vmem:[#allocation38_spill] sm:$0xff] %v12879_v61  ;;  %v14064_v61 = vld [vmem:[#allocation95_spill] sm:$0xff]  ;;  %v14065_v18 = vld [vmem:[#allocation60_spill] sm:$0xff]  ;;  %v14069_v41 = vld [vmem:[#allocation62_spill] sm:$0xff] }
 0x369   : > { %v2807_v56 = vpop.f32.mrf.mxu0  ;;  %v12890_v26 = vpop.f32.mrf.mxu1  ;;  %v2492_v46 = vadd.f32 %v14065_v18, %v14064_v61 }
 0x36a   : > { %v12888_v8 = vadd.f32 %v2807_v56, %v2487_v16  ;;  %14063 = vst [vmem:[#allocation77_spill] sm:$0xff] %v12890_v26 }
 0x36b   : > { %v2809_v21 = vpop.f32.mrf.mxu0  ;;  %v5429_v63 = vpop.f32.mrf.mxu1 }
 0x36c   : > { %14062 = vst [vmem:[#allocation40_spill] sm:$0xff] %v12888_v8  ;;  %v14068_v21 = vld [vmem:[#allocation97_spill] sm:$0xff]  ;;  %v10919_v63 = vld [vmem:[%s11298_s28 + $0x144] ss:$24 sps:$4 sm:$0xff]  }
 0x36d   : > { %v2812_v14 = vpop.f32.mrf.mxu0  ;;  %6472 = vmatmul.mubr.bf16.gmra.mxu0 %v10913_v59  ;;  %v12899_v60 = vpop.f32.mrf.mxu1  ;;  %7609 = vmatmul.mubr.bf16.gmra.mxu1 %v10914_v13  ;;  %v2495_v56 = vadd.f32 %v14069_v41, %v14068_v21  ;;  %v10923_v13 = vld [vmem:[%s11298_s28 + $0x184] ss:$24 sps:$4 sm:$0xff]  }
 0x36e   : > { %v12897_v39 = vadd.f32 %v2812_v14, %v2492_v46  ;;  %14067 = vst [vmem:[#allocation79_spill] sm:$0xff] %v12899_v60  ;;  %9533 = vmatprep.mubr.msk.bf16.mxu0 %vm5185_vm0, %v10915_v28  ;;  %9653 = vmatprep.mubr.msk.bf16.mxu1 %vm5185_vm0, %v10917_v51  ;;  %v10920_v14 = vld [vmem:[%s11298_s28 + $0x150] ss:$24 sps:$4 sm:$0xff]   ;;  %v14072_v8 = vld [vmem:[#allocation99_spill] sm:$0xff] }
 0x36f   : > { %v2814_v16 = vpop.f32.mrf.mxu0  ;;  %v5434_v61 = vpop.f32.mrf.mxu1  ;;  %v10921_v46 = vld [vmem:[%s11298_s28 + $0x178] ss:$24 sps:$4 sm:$0xff]   ;;  %v14073_v28 = vld [vmem:[#allocation64_spill] sm:$0xff] }
 0x370   : > { %14066 = vst [vmem:[#allocation42_spill] sm:$0xff] %v12897_v39  ;;  %v2500_v16 = vadd.f32 %v14073_v28, %v14072_v8  ;;  %v14077_v61 = vld [vmem:[#allocation66_spill] sm:$0xff] }
 0x371   : > { %v2815_v18 = vpop.f32.mrf.mxu0  ;;  %v12908_v59 = vpop.f32.mrf.mxu1 }
 0x372   : > { %v12906_v26 = vadd.f32 %v2815_v18, %v2495_v56  ;;  %14071 = vst [vmem:[#allocation81_spill] sm:$0xff] %v12908_v59 }
 0x373   : > { %v2817_v60 = vpop.f32.mrf.mxu0  ;;  %v5437_v51 = vpop.f32.mrf.mxu1 }
 0x374   : > { %14070 = vst [vmem:[#allocation44_spill] sm:$0xff] %v12906_v26  ;;  %v14076_v60 = vld [vmem:[#allocation101_spill] sm:$0xff] }
 0x375   : > { %v2820_v39 = vpop.f32.mrf.mxu0  ;;  %6480 = vmatmul.mubr.bf16.gmra.mxu0 %v10919_v63  ;;  %v12917_v41 = vpop.f32.mrf.mxu1  ;;  %7617 = vmatmul.mubr.bf16.gmra.mxu1 %v10920_v14  ;;  %v2503_v18 = vadd.f32 %v14077_v61, %v14076_v60  ;;  %v10925_v51 = vld [vmem:[%s11298_s28 + $0x174] ss:$24 sps:$4 sm:$0xff]  }
 0x376   : > { %v12915_v21 = vadd.f32 %v2820_v39, %v2500_v16  ;;  %14075 = vst [vmem:[#allocation83_spill] sm:$0xff] %v12917_v41  ;;  %9534 = vmatprep.mubr.msk.bf16.mxu0 %vm5185_vm0, %v10921_v46  ;;  %9654 = vmatprep.mubr.msk.bf16.mxu1 %vm5185_vm0, %v10923_v13  ;;  %v10926_v39 = vld [vmem:[%s11298_s28 + $0x180] ss:$24 sps:$4 sm:$0xff]   ;;  %v10929_v14 = vld [vmem:[%s11298_s28 + $0x1b4] ss:$24 sps:$4 sm:$0xff]  }
 0x377   : > { %v2822_v56 = vpop.f32.mrf.mxu0  ;;  %v5442_v8 = vpop.f32.mrf.mxu1  ;;  %v10927_v16 = vld [vmem:[%s11298_s28 + $0x1a8] ss:$24 sps:$4 sm:$0xff]  }
 0x378   : > { %14074 = vst [vmem:[#allocation46_spill] sm:$0xff] %v12915_v21  ;;  %v14080_v21 = vld [vmem:[#allocation103_spill] sm:$0xff]  ;;  %v14081_v46 = vld [vmem:[#allocation68_spill] sm:$0xff]  ;;  %v14085_v8 = vld [vmem:[#allocation70_spill] sm:$0xff] }
 0x379   : > { %v2823_v28 = vpop.f32.mrf.mxu0  ;;  %v12926_v63 = vpop.f32.mrf.mxu1  ;;  %v2508_v56 = vadd.f32 %v14081_v46, %v14080_v21 }
 0x37a   : > { %v12924_v59 = vadd.f32 %v2823_v28, %v2503_v18  ;;  %14079 = vst [vmem:[#allocation85_spill] sm:$0xff] %v12926_v63 }
 0x37b   : > { %v2825_v41 = vpop.f32.mrf.mxu0  ;;  %v5445_v13 = vpop.f32.mrf.mxu1 }
 0x37c   : > { %14078 = vst [vmem:[#allocation48_spill] sm:$0xff] %v12924_v59  ;;  %v14084_v41 = vld [vmem:[#allocation105_spill] sm:$0xff]  ;;  %v10931_v13 = vld [vmem:[%s11298_s28 + $0x1a4] ss:$24 sps:$4 sm:$0xff]  }
 0x37d   : > { %v2828_v26 = vpop.f32.mrf.mxu0  ;;  %6488 = vmatmul.mubr.bf16.gmra.mxu0 %v10925_v51  ;;  %v12935_v61 = vpop.f32.mrf.mxu1  ;;  %7625 = vmatmul.mubr.bf16.gmra.mxu1 %v10926_v39  ;;  %v2511_v28 = vadd.f32 %v14085_v8, %v14084_v41  ;;  %v10935_v39 = vld [vmem:[%s11298_s28 + $0x1e4] ss:$24 sps:$4 sm:$0xff]  }
 0x37e   : > { %v12933_v60 = vadd.f32 %v2828_v26, %v2508_v56  ;;  %14083 = vst [vmem:[#allocation87_spill] sm:$0xff] %v12935_v61  ;;  %9535 = vmatprep.mubr.msk.bf16.mxu0 %vm5185_vm0, %v10927_v16  ;;  %9655 = vmatprep.mubr.msk.bf16.mxu1 %vm5185_vm0, %v10929_v14  ;;  %v10932_v26 = vld [vmem:[%s11298_s28 + $0x1b0] ss:$24 sps:$4 sm:$0xff]   ;;  %v14088_v59 = vld [vmem:[#allocation107_spill] sm:$0xff] }
 0x37f   : > { %v2830_v18 = vpop.f32.mrf.mxu0  ;;  %v5450_v21 = vpop.f32.mrf.mxu1  ;;  %v10933_v56 = vld [vmem:[%s11298_s28 + $0x1d8] ss:$24 sps:$4 sm:$0xff]   ;;  %v14089_v16 = vld [vmem:[#allocation72_spill] sm:$0xff] }
 0x380   : > { %14082 = vst [vmem:[#allocation50_spill] sm:$0xff] %v12933_v60  ;;  %v2516_v18 = vadd.f32 %v14089_v16, %v14088_v59  ;;  %v14093_v21 = vld [vmem:[#allocation74_spill] sm:$0xff] }
 0x381   : > { %v2831_v46 = vpop.f32.mrf.mxu0  ;;  %v12944_v51 = vpop.f32.mrf.mxu1 }
 0x382   : > { %v12942_v63 = vadd.f32 %v2831_v46, %v2511_v28  ;;  %14087 = vst [vmem:[#allocation89_spill] sm:$0xff] %v12944_v51 }
 0x383   : > { %v2833_v61 = vpop.f32.mrf.mxu0  ;;  %v5453_v14 = vpop.f32.mrf.mxu1 }
 0x384   : > { %14086 = vst [vmem:[#allocation52_spill] sm:$0xff] %v12942_v63  ;;  %v14092_v61 = vld [vmem:[#allocation109_spill] sm:$0xff] }
 0x385   : > { %v2836_v60 = vpop.f32.mrf.mxu0  ;;  %6496 = vmatmul.mubr.bf16.gmra.mxu0 %v10931_v13  ;;  %v12953_v8 = vpop.f32.mrf.mxu1  ;;  %7633 = vmatmul.mubr.bf16.gmra.mxu1 %v10932_v26  ;;  %v2519_v46 = vadd.f32 %v14093_v21, %v14092_v61  ;;  %v10937_v14 = vld [vmem:[%s11298_s28 + $0x1d4] ss:$24 sps:$4 sm:$0xff]  }
 0x386   : > { %v12951_v41 = vadd.f32 %v2836_v60, %v2516_v18  ;;  %14091 = vst [vmem:[#allocation91_spill] sm:$0xff] %v12953_v8  ;;  %9536 = vmatprep.mubr.msk.bf16.mxu0 %vm5185_vm0, %v10933_v56  ;;  %9656 = vmatprep.mubr.msk.bf16.mxu1 %vm5185_vm0, %v10935_v39  ;;  %v10938_v60 = vld [vmem:[%s11298_s28 + $0x1e0] ss:$24 sps:$4 sm:$0xff]   ;;  %v10941_v26 = vld [vmem:[%s11298_s28 + $0x214] ss:$24 sps:$4 sm:$0xff]  }
 0x387   : > { %v2838_v28 = vpop.f32.mrf.mxu0  ;;  %v5458_v59 = vpop.f32.mrf.mxu1  ;;  %v10939_v18 = vld [vmem:[%s11298_s28 + $0x208] ss:$24 sps:$4 sm:$0xff]  }
 0x388   : > { %14090 = vst [vmem:[#allocation54_spill] sm:$0xff] %v12951_v41  ;;  %v14096_v41 = vld [vmem:[#allocation111_spill] sm:$0xff]  ;;  %v14097_v56 = vld [vmem:[#allocation76_spill] sm:$0xff]  ;;  %v14101_v59 = vld [vmem:[#allocation78_spill] sm:$0xff] }
 0x389   : > { %v2839_v16 = vpop.f32.mrf.mxu0  ;;  %v12962_v13 = vpop.f32.mrf.mxu1  ;;  %v2524_v28 = vadd.f32 %v14097_v56, %v14096_v41 }
 0x38a   : > { %v12960_v51 = vadd.f32 %v2839_v16, %v2519_v46  ;;  %14095 = vst [vmem:[#allocation93_spill] sm:$0xff] %v12962_v13 }
 0x38b   : > { %v2841_v8 = vpop.f32.mrf.mxu0  ;;  %v5461_v39 = vpop.f32.mrf.mxu1 }
 0x38c   : > { %14094 = vst [vmem:[#allocation56_spill] sm:$0xff] %v12960_v51  ;;  %v14100_v8 = vld [vmem:[#allocation113_spill] sm:$0xff]  ;;  %v10943_v39 = vld [vmem:[%s11298_s28 + $0x204] ss:$24 sps:$4 sm:$0xff]  }
 0x38d   : > { %v2844_v63 = vpop.f32.mrf.mxu0  ;;  %6504 = vmatmul.mubr.bf16.gmra.mxu0 %v10937_v14  ;;  %v12971_v21 = vpop.f32.mrf.mxu1  ;;  %7641 = vmatmul.mubr.bf16.gmra.mxu1 %v10938_v60  ;;  %v2527_v16 = vadd.f32 %v14101_v59, %v14100_v8  ;;  %v10947_v60 = vld [vmem:[%s11298_s28 + $0x244] ss:$24 sps:$4 sm:$0xff]  }
 0x38e   : > { %v12969_v61 = vadd.f32 %v2844_v63, %v2524_v28  ;;  %14099 = vst [vmem:[#allocation95_spill] sm:$0xff] %v12971_v21  ;;  %9537 = vmatprep.mubr.msk.bf16.mxu0 %vm5185_vm0, %v10939_v18  ;;  %9657 = vmatprep.mubr.msk.bf16.mxu1 %vm5185_vm0, %v10941_v26  ;;  %v10944_v63 = vld [vmem:[%s11298_s28 + $0x210] ss:$24 sps:$4 sm:$0xff]  }
 0x38f   : > { %v2846_v46 = vpop.f32.mrf.mxu0  ;;  %v5466_v41 = vpop.f32.mrf.mxu1  ;;  %v10945_v28 = vld [vmem:[%s11298_s28 + $0x238] ss:$24 sps:$4 sm:$0xff]   ;;  %v14104_v26 = vld [vmem:[#allocation84_spill] sm:$0xff] }
 0x390   : > { %14098 = vst [vmem:[#allocation58_spill] sm:$0xff] %v12969_v61  ;;  %v10953_v61 = vld [vmem:[%s11298_s28 + $0x274] ss:$24 sps:$4 sm:$0xff]  }
 0x391   : > { %v2847_v56 = vpop.f32.mrf.mxu0  ;;  %v12980_v14 = vpop.f32.mrf.mxu1 }
 0x392   : > { %v12978_v13 = vadd.f32 %v2847_v56, %v2527_v16  ;;  %14103 = vst [vmem:[#allocation97_spill] sm:$0xff] %v12980_v14 }
 0x393   : > { %v2849_v21 = vpop.f32.mrf.mxu0  ;;  %v5469_v51 = vpop.f32.mrf.mxu1 }
 0x394   : > { %14102 = vst [vmem:[#allocation60_spill] sm:$0xff] %v12978_v13  ;;  %v14106_v21 = vld [vmem:[#allocation80_spill] sm:$0xff] }
 0x395   : > { %v10111_v18 = vpop.f32.mrf.mxu0  ;;  %6512 = vmatmul.mubr.bf16.gmra.mxu0 %v10943_v39  ;;  %v12986_v8 = vpop.f32.mrf.mxu1  ;;  %7649 = vmatmul.mubr.bf16.gmra.mxu1 %v10944_v63  ;;  %v10949_v39 = vld [vmem:[%s11298_s28 + $0x234] ss:$24 sps:$4 sm:$0xff]   ;;  %v10950_v63 = vld [vmem:[%s11298_s28 + $0x240] ss:$24 sps:$4 sm:$0xff]  }
 0x396   : > { %v4199_v46 = vadd.f32 %v10111_v18, %v14104_v26  ;;  %14105 = vst [vmem:[#allocation62_spill] sm:$0xff] %v12986_v8  ;;  %9538 = vmatprep.mubr.msk.bf16.mxu0 %vm5185_vm0, %v10945_v28  ;;  %9658 = vmatprep.mubr.msk.bf16.mxu1 %vm5185_vm0, %v10947_v60  ;;  %v14107_v18 = vld [vmem:[#allocation86_spill] sm:$0xff]  ;;  %v10951_v28 = vld [vmem:[%s11298_s28 + $0x268] ss:$24 sps:$4 sm:$0xff]  }
 0x397   : > { %v4190_v59 = vpop.f32.mrf.mxu0  ;;  %v5474_v41 = vpop.f32.mrf.mxu1 }
 0x398   : > { %v12991_v16 = vadd.f32 %v4199_v46, %v12323_v53  ;;  %v4191_v51 = vadd.f32 %v4190_v59, %v14106_v21  ;;  %v14109_v53 = vld [vmem:[#allocation82_spill] sm:$0xff] }
 0x399   : > { %v10112_v56 = vpop.f32.mrf.mxu0  ;;  %v12999_v8 = vpop.f32.mrf.mxu1 }
 0x39a   : > { %v12996_v14 = vadd.f32 %v4191_v51, %v12306_v50  ;;  %v4202_v26 = vadd.f32 %v10112_v56, %v14107_v18  ;;  %14108 = vst [vmem:[#allocation99_spill] sm:$0xff] %v12999_v8  ;;  %v14110_v51 = vld [vmem:[#allocation92_spill] sm:$0xff]  ;;  %v10959_v8 = vld [vmem:[%s11298_s28 + $0x2a4] ss:$24 sps:$4 sm:$0xff]  }
 0x39b   : > { %v4193_v13 = vpop.f32.mrf.mxu0  ;;  %v5477_v59 = vpop.f32.mrf.mxu1 }
 0x39c   : > { %v13005_v60 = vadd.f32 %v4202_v26, %v12331_v36  ;;  %v4194_v46 = vadd.f32 %v4193_v13, %v14109_v53  ;;  %v10955_v53 = vld [vmem:[%s11298_s28 + $0x264] ss:$24 sps:$4 sm:$0xff]  }
 0x39d   : > { %v10115_v21 = vpop.f32.mrf.mxu0  ;;  %6520 = vmatmul.mubr.bf16.gmra.mxu0 %v10949_v39  ;;  %v13012_v56 = vpop.f32.mrf.mxu1  ;;  %7657 = vmatmul.mubr.bf16.gmra.mxu1 %v10950_v63  ;;  %v14112_v39 = vld [vmem:[#allocation88_spill] sm:$0xff]  ;;  %v14113_v59 = vld [vmem:[#allocation94_spill] sm:$0xff] }
 0x39e   : > { %v13009_v50 = vadd.f32 %v4194_v46, %v12314_v20  ;;  %v4215_v41 = vadd.f32 %v10115_v21, %v14110_v51  ;;  %14111 = vst [vmem:[#allocation64_spill] sm:$0xff] %v13012_v56  ;;  %9539 = vmatprep.mubr.msk.bf16.mxu0 %vm5185_vm0, %v10951_v28  ;;  %9659 = vmatprep.mubr.msk.bf16.mxu1 %vm5185_vm0, %v10953_v61  ;;  %v10956_v63 = vld [vmem:[%s11298_s28 + $0x270] ss:$24 sps:$4 sm:$0xff]  }
 0x39f   : > { %v4206_v36 = vpop.f32.mrf.mxu0  ;;  %v5482_v26 = vpop.f32.mrf.mxu1  ;;  %v10957_v28 = vld [vmem:[%s11298_s28 + $0x298] ss:$24 sps:$4 sm:$0xff]  }
 0x3a0   : > { %v13017_v13 = vadd.f32 %v4215_v41, %v12361_v25  ;;  %v4207_v18 = vadd.f32 %v4206_v36, %v14112_v39  ;;  %v14115_v25 = vld [vmem:[#allocation90_spill] sm:$0xff] }
 0x3a1   : > { %v10116_v20 = vpop.f32.mrf.mxu0  ;;  %v13025_v51 = vpop.f32.mrf.mxu1 }
 0x3a2   : > { %v13022_v46 = vadd.f32 %v4207_v18, %v12340_v3  ;;  %v4218_v21 = vadd.f32 %v10116_v20, %v14113_v59  ;;  %14114 = vst [vmem:[#allocation101_spill] sm:$0xff] %v13025_v51  ;;  %v14116_v18 = vld [vmem:[#allocation100_spill] sm:$0xff] }
 0x3a3   : > { %v4209_v56 = vpop.f32.mrf.mxu0  ;;  %v5485_v36 = vpop.f32.mrf.mxu1  ;;  %v10965_v51 = vld [vmem:[%s11298_s28 + $0x2d4] ss:$24 sps:$4 sm:$0xff]  }
 0x3a4   : > { %v13031_v61 = vadd.f32 %v4218_v21, %v12369_v55  ;;  %v4210_v41 = vadd.f32 %v4209_v56, %v14115_v25  ;;  %v10961_v25 = vld [vmem:[%s11298_s28 + $0x294] ss:$24 sps:$4 sm:$0xff]   ;;  %v14119_v36 = vld [vmem:[#allocation102_spill] sm:$0xff] }
 0x3a5   : > { %v10119_v39 = vpop.f32.mrf.mxu0  ;;  %6528 = vmatmul.mubr.bf16.gmra.mxu0 %v10955_v53  ;;  %v13038_v20 = vpop.f32.mrf.mxu1  ;;  %7665 = vmatmul.mubr.bf16.gmra.mxu1 %v10956_v63  ;;  %v14118_v53 = vld [vmem:[#allocation96_spill] sm:$0xff]  ;;  %v10962_v63 = vld [vmem:[%s11298_s28 + $0x2a0] ss:$24 sps:$4 sm:$0xff]  }
 0x3a6   : > { %v13035_v3 = vadd.f32 %v4210_v41, %v12351_v2  ;;  %v4231_v26 = vadd.f32 %v10119_v39, %v14116_v18  ;;  %14117 = vst [vmem:[#allocation66_spill] sm:$0xff] %v13038_v20  ;;  %9540 = vmatprep.mubr.msk.bf16.mxu0 %vm5185_vm0, %v10957_v28  ;;  %9660 = vmatprep.mubr.msk.bf16.mxu1 %vm5185_vm0, %v10959_v8  ;;  %v10963_v28 = vld [vmem:[%s11298_s28 + $0x2c8] ss:$24 sps:$4 sm:$0xff]  }
 0x3a7   : > { %v4222_v55 = vpop.f32.mrf.mxu0  ;;  %v5490_v21 = vpop.f32.mrf.mxu1 }
 0x3a8   : > { %v13043_v56 = vadd.f32 %v4231_v26, %v12395_v49  ;;  %v4223_v59 = vadd.f32 %v4222_v55, %v14118_v53  ;;  %v14122_v49 = vld [vmem:[#allocation98_spill] sm:$0xff] }
 0x3a9   : > { %v10120_v2 = vpop.f32.mrf.mxu0  ;;  %v13051_v18 = vpop.f32.mrf.mxu1 }
 0x3aa   : > { %v13048_v41 = vadd.f32 %v4223_v59, %v12378_v35  ;;  %v4234_v39 = vadd.f32 %v10120_v2, %v14119_v36  ;;  %14120 = vst [vmem:[#allocation103_spill] sm:$0xff] %v13051_v18  ;;  %v14123_v59 = vld [vmem:[#allocation108_spill] sm:$0xff] }
 0x3ab   : > { %v4225_v20 = vpop.f32.mrf.mxu0  ;;  %v5493_v55 = vpop.f32.mrf.mxu1 }
 0x3ac   : > { %v13057_v8 = vadd.f32 %v4234_v39, %v12406_v31  ;;  %v4226_v26 = vadd.f32 %v4225_v20, %v14122_v49  ;;  %v10967_v49 = vld [vmem:[%s11298_s28 + $0x2c4] ss:$24 sps:$4 sm:$0xff]  }
 0x3ad   : > { %v10123_v53 = vpop.f32.mrf.mxu0  ;;  %6536 = vmatmul.mubr.bf16.gmra.mxu0 %v10961_v25  ;;  %v13064_v2 = vpop.f32.mrf.mxu1  ;;  %7673 = vmatmul.mubr.bf16.gmra.mxu1 %v10962_v63  ;;  %v14125_v25 = vld [vmem:[#allocation104_spill] sm:$0xff]  ;;  %v14126_v55 = vld [vmem:[#allocation110_spill] sm:$0xff] }
 0x3ae   : > { %14121 = vst [vmem:[#allocation68_spill] sm:$0xff] %v13057_v8  ;;  %v13061_v35 = vadd.f32 %v4226_v26, %v12386_v24  ;;  %v4247_v21 = vadd.f32 %v10123_v53, %v14123_v59  ;;  %9541 = vmatprep.mubr.msk.bf16.mxu0 %vm5185_vm0, %v10963_v28  ;;  %9661 = vmatprep.mubr.msk.bf16.mxu1 %vm5185_vm0, %v10965_v51  ;;  %v10968_v63 = vld [vmem:[%s11298_s28 + $0x2d0] ss:$24 sps:$4 sm:$0xff]   ;;  %v10971_v8 = vld [vmem:[%s11298_s28 + $0x304] ss:$24 sps:$4 sm:$0xff]  }
 0x3af   : > { %v4238_v31 = vpop.f32.mrf.mxu0  ;;  %v5498_v39 = vpop.f32.mrf.mxu1  ;;  %v10969_v28 = vld [vmem:[%s11298_s28 + $0x2f8] ss:$24 sps:$4 sm:$0xff]  }
 0x3b0   : > { %v13069_v20 = vadd.f32 %v4247_v21, %v12433_v33  ;;  %v4239_v36 = vadd.f32 %v4238_v31, %v14125_v25  ;;  %v14128_v33 = vld [vmem:[#allocation106_spill] sm:$0xff] }
 0x3b1   : > { %v10124_v24 = vpop.f32.mrf.mxu0  ;;  %v13077_v59 = vpop.f32.mrf.mxu1 }
 0x3b2   : > { %14124 = vst [vmem:[#allocation105_spill] sm:$0xff] %v13069_v20  ;;  %v13074_v26 = vadd.f32 %v4239_v36, %v12416_v45  ;;  %v4250_v53 = vadd.f32 %v10124_v24, %v14126_v55  ;;  %v14129_v36 = vld [vmem:[#allocation115_spill] sm:$0xff]  ;;  %v10977_v20 = vld [vmem:[%s11298_s28 + $0x334] ss:$24 sps:$4 sm:$0xff]  }
 0x3b3   : > { %v4241_v18 = vpop.f32.mrf.mxu0  ;;  %v5501_v31 = vpop.f32.mrf.mxu1 }
 0x3b4   : > { %v13083_v51 = vadd.f32 %v4250_v53, %v12441_v22  ;;  %v4242_v21 = vadd.f32 %v4241_v18, %v14128_v33  ;;  %v10973_v33 = vld [vmem:[%s11298_s28 + $0x2f4] ss:$24 sps:$4 sm:$0xff]  }
 0x3b5   : > { %v10127_v25 = vpop.f32.mrf.mxu0  ;;  %6544 = vmatmul.mubr.bf16.gmra.mxu0 %v10967_v49  ;;  %v13090_v24 = vpop.f32.mrf.mxu1  ;;  %7681 = vmatmul.mubr.bf16.gmra.mxu1 %v10968_v63  ;;  %v14131_v49 = vld [vmem:[#allocation112_spill] sm:$0xff]  ;;  %v10974_v63 = vld [vmem:[%s11298_s28 + $0x300] ss:$24 sps:$4 sm:$0xff]  }
 0x3b6   : > { %14127 = vst [vmem:[#allocation70_spill] sm:$0xff] %v13083_v51  ;;  %v13087_v45 = vadd.f32 %v4242_v21, %v12424_v30  ;;  %v4263_v39 = vadd.f32 %v10127_v25, %v14129_v36  ;;  %9542 = vmatprep.mubr.msk.bf16.mxu0 %vm5185_vm0, %v10969_v28  ;;  %9662 = vmatprep.mubr.msk.bf16.mxu1 %vm5185_vm0, %v10971_v8  ;;  %v14132_v31 = vld [vmem:[#allocation116_spill] sm:$0xff] }
 0x3b7   : > { %v4254_v22 = vpop.f32.mrf.mxu0  ;;  %v5506_v53 = vpop.f32.mrf.mxu1  ;;  %v10975_v28 = vld [vmem:[%s11298_s28 + $0x328] ss:$24 sps:$4 sm:$0xff]  }
 0x3b8   : > { %v13095_v18 = vadd.f32 %v4263_v39, %v12471_v17  ;;  %v4255_v55 = vadd.f32 %v4254_v22, %v14131_v49  ;;  %v14134_v17 = vld [vmem:[#allocation114_spill] sm:$0xff] }
 0x3b9   : > { %v10128_v30 = vpop.f32.mrf.mxu0  ;;  %v13103_v36 = vpop.f32.mrf.mxu1 }
 0x3ba   : > { %14130 = vst [vmem:[#allocation107_spill] sm:$0xff] %v13095_v18  ;;  %v13100_v21 = vadd.f32 %v4255_v55, %v12450_v0  ;;  %v4266_v25 = vadd.f32 %v10128_v30, %v14132_v31  ;;  %v14135_v55 = vld [vmem:[#allocation119_spill] sm:$0xff] }
 0x3bb   : > { %v4257_v51 = vpop.f32.mrf.mxu0  ;;  %v5509_v22 = vpop.f32.mrf.mxu1  ;;  %v10983_v18 = vld [vmem:[%s11298_s28 + $0x364] ss:$24 sps:$4 sm:$0xff]  }
 0x3bc   : > { %v13109_v8 = vadd.f32 %v4266_v25, %v12479_v7  ;;  %v4258_v39 = vadd.f32 %v4257_v51, %v14134_v17  ;;  %v10979_v17 = vld [vmem:[%s11298_s28 + $0x324] ss:$24 sps:$4 sm:$0xff]   ;;  %v14138_v22 = vld [vmem:[#allocation120_spill] sm:$0xff] }
 0x3bd   : > { %v10131_v49 = vpop.f32.mrf.mxu0  ;;  %6552 = vmatmul.mubr.bf16.gmra.mxu0 %v10973_v33  ;;  %v13116_v30 = vpop.f32.mrf.mxu1  ;;  %7689 = vmatmul.mubr.bf16.gmra.mxu1 %v10974_v63  ;;  %v14137_v33 = vld [vmem:[#allocation117_spill] sm:$0xff] }
 0x3be   : > { %14133 = vst [vmem:[#allocation72_spill] sm:$0xff] %v13109_v8  ;;  %v13113_v0 = vadd.f32 %v4258_v39, %v12461_v42  ;;  %v4279_v53 = vadd.f32 %v10131_v49, %v14135_v55  ;;  %9543 = vmatprep.mubr.msk.bf16.mxu0 %vm5185_vm0, %v10975_v28  ;;  %9663 = vmatprep.mubr.msk.bf16.mxu1 %vm5185_vm0, %v10977_v20  ;;  %v10980_v63 = vld [vmem:[%s11298_s28 + $0x330] ss:$24 sps:$4 sm:$0xff]  }
 0x3bf   : > { %v4270_v7 = vpop.f32.mrf.mxu0  ;;  %v5514_v25 = vpop.f32.mrf.mxu1  ;;  %v10981_v28 = vld [vmem:[%s11298_s28 + $0x358] ss:$24 sps:$4 sm:$0xff]  }
 0x3c0   : > { %v13121_v51 = vadd.f32 %v4279_v53, %v12505_v4  ;;  %v4271_v31 = vadd.f32 %v4270_v7, %v14137_v33  ;;  %v14140_v4 = vld [vmem:[#allocation118_spill] sm:$0xff] }
 0x3c1   : > { %v10132_v42 = vpop.f32.mrf.mxu0  ;;  %v13129_v55 = vpop.f32.mrf.mxu1 }
 0x3c2   : > { %14136 = vst [vmem:[#allocation109_spill] sm:$0xff] %v13121_v51  ;;  %v13126_v39 = vadd.f32 %v4271_v31, %v12488_v54  ;;  %v4282_v49 = vadd.f32 %v10132_v42, %v14138_v22  ;;  %v14141_v31 = vld [vmem:[#allocation123_spill] sm:$0xff]  ;;  %v10989_v51 = vld [vmem:[%s11298_s28 + $0x394] ss:$24 sps:$4 sm:$0xff]  }
 0x3c3   : > { %v4273_v8 = vpop.f32.mrf.mxu0  ;;  %v5517_v7 = vpop.f32.mrf.mxu1 }
 0x3c4   : > { %v13135_v20 = vadd.f32 %v4282_v49, %v12516_v62  ;;  %v4274_v53 = vadd.f32 %v4273_v8, %v14140_v4  ;;  %v10985_v4 = vld [vmem:[%s11298_s28 + $0x354] ss:$24 sps:$4 sm:$0xff]  }
 0x3c5   : > { %v10135_v33 = vpop.f32.mrf.mxu0  ;;  %6560 = vmatmul.mubr.bf16.gmra.mxu0 %v10979_v17  ;;  %v13142_v42 = vpop.f32.mrf.mxu1  ;;  %7697 = vmatmul.mubr.bf16.gmra.mxu1 %v10980_v63  ;;  %v14143_v17 = vld [vmem:[#allocation121_spill] sm:$0xff]  ;;  %v14144_v7 = vld [vmem:[#allocation124_spill] sm:$0xff]  ;;  %v10986_v63 = vld [vmem:[%s11298_s28 + $0x360] ss:$24 sps:$4 sm:$0xff]  }
 0x3c6   : > { %14139 = vst [vmem:[#allocation74_spill] sm:$0xff] %v13135_v20  ;;  %v13139_v54 = vadd.f32 %v4274_v53, %v12496_v48  ;;  %v4295_v25 = vadd.f32 %v10135_v33, %v14141_v31  ;;  %9544 = vmatprep.mubr.msk.bf16.mxu0 %vm5185_vm0, %v10981_v28  ;;  %9664 = vmatprep.mubr.msk.bf16.mxu1 %vm5185_vm0, %v10983_v18  ;;  %v10987_v28 = vld [vmem:[%s11298_s28 + $0x388] ss:$24 sps:$4 sm:$0xff]  }
 0x3c7   : > { %v4286_v62 = vpop.f32.mrf.mxu0  ;;  %v5522_v49 = vpop.f32.mrf.mxu1 }
 0x3c8   : > { %v13147_v8 = vadd.f32 %v4295_v25, %v12553_v40  ;;  %v4287_v22 = vadd.f32 %v4286_v62, %v14143_v17  ;;  %v14146_v40 = vld [vmem:[#allocation122_spill] sm:$0xff] }
 0x3c9   : > { %v10136_v48 = vpop.f32.mrf.mxu0  ;;  %v13155_v31 = vpop.f32.mrf.mxu1 }
 0x3ca   : > { %14142 = vst [vmem:[#allocation111_spill] sm:$0xff] %v13147_v8  ;;  %v13152_v53 = vadd.f32 %v4287_v22, %v12528_v10  ;;  %v4298_v33 = vadd.f32 %v10136_v48, %v14144_v7  ;;  %v14147_v22 = vld [vmem:[#allocation127_spill] sm:$0xff] }
 0x3cb   : > { %v4289_v20 = vpop.f32.mrf.mxu0  ;;  %v5525_v62 = vpop.f32.mrf.mxu1  ;;  %v10995_v8 = vld [vmem:[%s11298_s28 + $0x3c4] ss:$24 sps:$4 sm:$0xff]  }
 0x3cc   : > { %v13161_v18 = vadd.f32 %v4298_v33, %v12565_v5  ;;  %v4290_v25 = vadd.f32 %v4289_v20, %v14146_v40  ;;  %v10991_v40 = vld [vmem:[%s11298_s28 + $0x384] ss:$24 sps:$4 sm:$0xff]   ;;  %v14150_v62 = vld [vmem:[#allocation128_spill] sm:$0xff] }
 0x3cd   : > { %v10139_v17 = vpop.f32.mrf.mxu0  ;;  %6568 = vmatmul.mubr.bf16.gmra.mxu0 %v10985_v4  ;;  %v13168_v48 = vpop.f32.mrf.mxu1  ;;  %7705 = vmatmul.mubr.bf16.gmra.mxu1 %v10986_v63  ;;  %v14149_v4 = vld [vmem:[#allocation125_spill] sm:$0xff] }
 0x3ce   : > { %14145 = vst [vmem:[#allocation76_spill] sm:$0xff] %v13161_v18  ;;  %v13165_v10 = vadd.f32 %v4290_v25, %v12540_v19  ;;  %v4311_v49 = vadd.f32 %v10139_v17, %v14147_v22  ;;  %9545 = vmatprep.mubr.msk.bf16.mxu0 %vm5185_vm0, %v10987_v28  ;;  %9665 = vmatprep.mubr.msk.bf16.mxu1 %vm5185_vm0, %v10989_v51  ;;  %v10992_v63 = vld [vmem:[%s11298_s28 + $0x390] ss:$24 sps:$4 sm:$0xff]  }
 0x3cf   : > { %v4302_v5 = vpop.f32.mrf.mxu0  ;;  %v5530_v33 = vpop.f32.mrf.mxu1  ;;  %v10993_v28 = vld [vmem:[%s11298_s28 + $0x3b8] ss:$24 sps:$4 sm:$0xff]  }
 0x3d0   : > { %v13173_v20 = vadd.f32 %v4311_v49, %v12603_v38  ;;  %v4303_v7 = vadd.f32 %v4302_v5, %v14149_v4  ;;  %v14152_v38 = vld [vmem:[#allocation126_spill] sm:$0xff] }
 0x3d1   : > { %v10140_v19 = vpop.f32.mrf.mxu0  ;;  %v13181_v22 = vpop.f32.mrf.mxu1 }
 0x3d2   : > { %14148 = vst [vmem:[#allocation113_spill] sm:$0xff] %v13173_v20  ;;  %v13178_v25 = vadd.f32 %v4303_v7, %v12578_v27  ;;  %v4314_v17 = vadd.f32 %v10140_v19, %v14150_v62  ;;  %v14153_v7 = vld [vmem:[#allocation131_spill] sm:$0xff]  ;;  %v11001_v20 = vld [vmem:[%s11298_s28 + $0x3f4] ss:$24 sps:$4 sm:$0xff]  }
 0x3d3   : > { %v4305_v18 = vpop.f32.mrf.mxu0  ;;  %v5533_v5 = vpop.f32.mrf.mxu1 }
 0x3d4   : > { %v13187_v51 = vadd.f32 %v4314_v17, %v12615_v43  ;;  %v4306_v49 = vadd.f32 %v4305_v18, %v14152_v38  ;;  %v10997_v38 = vld [vmem:[%s11298_s28 + $0x3b4] ss:$24 sps:$4 sm:$0xff]  }
 0x3d5   : > { %v10143_v4 = vpop.f32.mrf.mxu0  ;;  %6576 = vmatmul.mubr.bf16.gmra.mxu0 %v10991_v40  ;;  %v13194_v19 = vpop.f32.mrf.mxu1  ;;  %7713 = vmatmul.mubr.bf16.gmra.mxu1 %v10992_v63  ;;  %v14154_v40 = vld [vmem:[#allocation129_spill] sm:$0xff]  ;;  %v14155_v5 = vld [vmem:[#allocation132_spill] sm:$0xff]  ;;  %v10998_v63 = vld [vmem:[%s11298_s28 + $0x3c0] ss:$24 sps:$4 sm:$0xff]  }
 0x3d6   : > { %14151 = vst [vmem:[#allocation78_spill] sm:$0xff] %v13187_v51  ;;  %v13191_v27 = vadd.f32 %v4306_v49, %v12590_v11  ;;  %v4327_v33 = vadd.f32 %v10143_v4, %v14153_v7  ;;  %9546 = vmatprep.mubr.msk.bf16.mxu0 %vm5185_vm0, %v10993_v28  ;;  %9666 = vmatprep.mubr.msk.bf16.mxu1 %vm5185_vm0, %v10995_v8  ;;  %v10999_v28 = vld [vmem:[%s11298_s28 + $0x3e8] ss:$24 sps:$4 sm:$0xff]  }
 0x3d7   : > { %v4318_v43 = vpop.f32.mrf.mxu0  ;;  %v5538_v17 = vpop.f32.mrf.mxu1 }
 0x3d8   : > { %v13199_v18 = vadd.f32 %v4327_v33, %v12653_v9  ;;  %v4319_v62 = vadd.f32 %v4318_v43, %v14154_v40  ;;  %v14156_v9 = vld [vmem:[#allocation130_spill] sm:$0xff] }
 0x3d9   : > { %v10144_v11 = vpop.f32.mrf.mxu0  ;;  %v13207_v7 = vpop.f32.mrf.mxu1 }
 0x3da   : > { %v13204_v49 = vadd.f32 %v4319_v62, %v12628_v32  ;;  %v4330_v4 = vadd.f32 %v10144_v11, %v14155_v5  ;;  %v14157_v11 = vld [vmem:[#allocation133_spill] sm:$0xff] }
 0x3db   : > { %v4321_v51 = vpop.f32.mrf.mxu0  ;;  %v5541_v43 = vpop.f32.mrf.mxu1 }
 0x3dc   : > { %v13213_v8 = vadd.f32 %v4330_v4, %v12665_v34  ;;  %v4322_v33 = vadd.f32 %v4321_v51, %v14156_v9  ;;  %v11003_v4 = vld [vmem:[%s11298_s28 + $0x3e4] ss:$24 sps:$4 sm:$0xff]  }
 0x3dd   : > { %v10147_v40 = vpop.f32.mrf.mxu0  ;;  %6584 = vmatmul.mubr.bf16.gmra.mxu0 %v10997_v38  ;;  %v13220_v17 = vpop.f32.mrf.mxu1  ;;  %7721 = vmatmul.mubr.bf16.gmra.mxu1 %v10998_v63  ;;  %v11004_v63 = vld [vmem:[%s11298_s28 + $0x3f0] ss:$24 sps:$4 sm:$0xff]  }
 0x3de   : > { %v13217_v32 = vadd.f32 %v4322_v33, %v12640_v37  ;;  %v4343_v62 = vadd.f32 %v10147_v40, %v12325_v44  ;;  %9547 = vmatprep.mubr.msk.bf16.mxu0 %vm5185_vm0, %v10999_v28  ;;  %9667 = vmatprep.mubr.msk.bf16.mxu1 %vm5185_vm0, %v11001_v20  ;;  %v11005_v28 = vld [vmem:[%s11298_s28 + $0x418] ss:$24 sps:$4 sm:$0xff]   ;;  %v11007_v40 = vld [vmem:[%s11298_s28 + $0x424] ss:$24 sps:$4 sm:$0xff]  }
 0x3df   : > { %v4334_v34 = vpop.f32.mrf.mxu0  ;;  %v5546_v5 = vpop.f32.mrf.mxu1 }
 0x3e0   : > { %v13225_v51 = vadd.f32 %v4343_v62, %v12691_v58  ;;  %v4335_v38 = vadd.f32 %v4334_v34, %v14157_v11 }
 0x3e1   : > { %v10148_v37 = vpop.f32.mrf.mxu0  ;;  %v13233_v33 = vpop.f32.mrf.mxu1 }
 0x3e2   : > { %v13230_v9 = vadd.f32 %v4335_v38, %v12674_v57  ;;  %v4346_v44 = vadd.f32 %v10148_v37, %v12333_v12 }
 0x3e3   : > { %v4337_v43 = vpop.f32.mrf.mxu0  ;;  %v5549_v62 = vpop.f32.mrf.mxu1 }
 0x3e4   : > { %v13239_v20 = vadd.f32 %v4346_v44, %v12699_v52  ;;  %v4338_v58 = vadd.f32 %v4337_v43, %v12316_v47  ;;  %v11013_v62 = vld [vmem:[%s11298_s28 + $0x454] ss:$24 sps:$4 sm:$0xff]  }
 0x3e5   : > { %v10151_v34 = vpop.f32.mrf.mxu0  ;;  %6592 = vmatmul.mubr.bf16.gmra.mxu0 %v11003_v4  ;;  %v13246_v11 = vpop.f32.mrf.mxu1  ;;  %7729 = vmatmul.mubr.bf16.gmra.mxu1 %v11004_v63  ;;  %v11010_v63 = vld [vmem:[%s11298_s28 + $0x420] ss:$24 sps:$4 sm:$0xff]  }
 0x3e6   : > { %14158 = vst [vmem:[#allocation84_spill] sm:$0xff] %v13239_v20  ;;  %v13243_v57 = vadd.f32 %v4338_v58, %v12682_v29  ;;  %v4359_v12 = vadd.f32 %v10151_v34, %v12363_v15  ;;  %9548 = vmatprep.mubr.msk.bf16.mxu0 %vm5185_vm0, %v11005_v28  ;;  %9668 = vmatprep.mubr.msk.bf16.mxu1 %vm5185_vm0, %v11007_v40  ;;  %v11009_v29 = vld [vmem:[%s11298_s28 + $0x414] ss:$24 sps:$4 sm:$0xff]   ;;  %v14160_v15 = vld [vmem:[#allocation135_spill] sm:$0xff] }
 0x3e7   : > { %v4350_v52 = vpop.f32.mrf.mxu0  ;;  %v5554_v5 = vpop.f32.mrf.mxu1  ;;  %v11011_v58 = vld [vmem:[%s11298_s28 + $0x448] ss:$24 sps:$4 sm:$0xff]  }
 0x3e8   : > { %v4591_v47 = vadd.f32 %v4359_v12, %v12725_v1  ;;  %v4351_v38 = vadd.f32 %v4350_v52, %v12342_v6  ;;  %v14162_v1 = vld [vmem:[#allocation12_spill] sm:$0xff]  ;;  %v14163_v6 = vld [vmem:[#allocation134_spill] sm:$0xff] }
 0x3e9   : > { %v10152_v37 = vpop.f32.mrf.mxu0  ;;  %v13257_v43 = vpop.f32.mrf.mxu1 }
 0x3ea   : > { %v13254_v4 = vadd.f32 %v4351_v38, %v12708_v23  ;;  %v4362_v44 = vadd.f32 %v10152_v37, %v14160_v15  ;;  %v13262_v28 = vadd.f32 %v13064_v2, %v4591_v47  ;;  %v14164_v23 = vld [vmem:[#allocation37_spill] sm:$0xff]  ;;  %v14166_v37 = vld [vmem:[#allocation138_spill] sm:$0xff] }
 0x3eb   : > { %v4353_v40 = vpop.f32.mrf.mxu0  ;;  %v5557_v52 = vpop.f32.mrf.mxu1 }
 0x3ec   : > { %14159 = vst [vmem:[#allocation80_spill] sm:$0xff] %v13254_v4  ;;  %14161 = vst [vmem:[#allocation86_spill] sm:$0xff] %v13262_v28  ;;  %v4592_v34 = vadd.f32 %v4362_v44, %v14162_v1  ;;  %v4354_v12 = vadd.f32 %v4353_v40, %v14163_v6  ;;  %v14169_v40 = vld [vmem:[#allocation136_spill] sm:$0xff]  ;;  %v11015_v52 = vld [vmem:[%s11298_s28 + $0x444] ss:$24 sps:$4 sm:$0xff]  }
 0x3ed   : > { %v10155_v5 = vpop.f32.mrf.mxu0  ;;  %6600 = vmatmul.mubr.bf16.gmra.mxu0 %v11009_v29  ;;  %v13271_v4 = vpop.f32.mrf.mxu1  ;;  %7737 = vmatmul.mubr.bf16.gmra.mxu1 %v11010_v63  ;;  %v14168_v29 = vld [vmem:[#allocation15_spill] sm:$0xff] }
 0x3ee   : > { %v13268_v38 = vadd.f32 %v4354_v12, %v14164_v23  ;;  %v4375_v15 = vadd.f32 %v10155_v5, %v14166_v37  ;;  %9549 = vmatprep.mubr.msk.bf16.mxu0 %vm5185_vm0, %v11011_v58  ;;  %v13275_v2 = vadd.f32 %v13077_v59, %v4592_v34  ;;  %9669 = vmatprep.mubr.msk.bf16.mxu1 %vm5185_vm0, %v11013_v62  ;;  %v14170_v5 = vld [vmem:[#allocation13_spill] sm:$0xff]  ;;  %v14171_v37 = vld [vmem:[#allocation139_spill] sm:$0xff] }
 0x3ef   : > { %v4366_v47 = vpop.f32.mrf.mxu0  ;;  %v5562_v6 = vpop.f32.mrf.mxu1  ;;  %v11016_v58 = vld [vmem:[%s11298_s28 + $0x450] ss:$24 sps:$4 sm:$0xff]   ;;  %v11019_v62 = vld [vmem:[%s11298_s28 + $0x484] ss:$24 sps:$4 sm:$0xff]  }
 0x3f0   : > { %14165 = vst [vmem:[#allocation82_spill] sm:$0xff] %v13268_v38  ;;  %14167 = vst [vmem:[#allocation92_spill] sm:$0xff] %v13275_v2  ;;  %v4595_v44 = vadd.f32 %v4375_v15, %v14168_v29  ;;  %v4367_v1 = vadd.f32 %v4366_v47, %v14169_v40  ;;  %v11017_v38 = vld [vmem:[%s11298_s28 + $0x478] ss:$24 sps:$4 sm:$0xff]   ;;  %v14173_v2 = vld [vmem:[#allocation16_spill] sm:$0xff] }
 0x3f1   : > { %v10156_v12 = vpop.f32.mrf.mxu0  ;;  %v13283_v28 = vpop.f32.mrf.mxu1  ;;  %v14174_v29 = vld [vmem:[#allocation137_spill] sm:$0xff] }
 0x3f2   : > { %v4593_v23 = vadd.f32 %v4367_v1, %v14170_v5  ;;  %v4378_v63 = vadd.f32 %v10156_v12, %v14171_v37  ;;  %v13288_v59 = vadd.f32 %v13116_v30, %v4595_v44  ;;  %v14175_v12 = vld [vmem:[#allocation14_spill] sm:$0xff]  ;;  %v14178_v44 = vld [vmem:[#allocation19_spill] sm:$0xff] }
 0x3f3   : > { %v4369_v34 = vpop.f32.mrf.mxu0  ;;  %v5565_v40 = vpop.f32.mrf.mxu1  ;;  %v14176_v37 = vld [vmem:[#allocation142_spill] sm:$0xff] }
 0x3f4   : > { %14172 = vst [vmem:[#allocation88_spill] sm:$0xff] %v13288_v59  ;;  %v4596_v15 = vadd.f32 %v4378_v63, %v14173_v2  ;;  %v4370_v47 = vadd.f32 %v4369_v34, %v14174_v29  ;;  %v13294_v6 = vadd.f32 %v13090_v24, %v4593_v23  ;;  %v14179_v23 = vld [vmem:[#allocation140_spill] sm:$0xff] }
 0x3f5   : > { %v10159_v1 = vpop.f32.mrf.mxu0  ;;  %6608 = vmatmul.mubr.bf16.gmra.mxu0 %v11015_v52  ;;  %v13298_v30 = vpop.f32.mrf.mxu1  ;;  %7745 = vmatmul.mubr.bf16.gmra.mxu1 %v11016_v58  ;;  %v11021_v40 = vld [vmem:[%s11298_s28 + $0x474] ss:$24 sps:$4 sm:$0xff]  }
 0x3f6   : > { %v4594_v5 = vadd.f32 %v4370_v47, %v14175_v12  ;;  %v4391_v20 = vadd.f32 %v10159_v1, %v14176_v37  ;;  %9550 = vmatprep.mubr.msk.bf16.mxu0 %vm5185_vm0, %v11017_v38  ;;  %v13302_v2 = vadd.f32 %v13129_v55, %v4596_v15  ;;  %9670 = vmatprep.mubr.msk.bf16.mxu1 %vm5185_vm0, %v11019_v62  ;;  %v14180_v58 = vld [vmem:[#allocation17_spill] sm:$0xff]  ;;  %v14181_v38 = vld [vmem:[#allocation143_spill] sm:$0xff] }
 0x3f7   : > { %v4382_v24 = vpop.f32.mrf.mxu0  ;;  %v5570_v34 = vpop.f32.mrf.mxu1  ;;  %v11022_v15 = vld [vmem:[%s11298_s28 + $0x480] ss:$24 sps:$4 sm:$0xff]  }
 0x3f8   : > { %14177 = vst [vmem:[#allocation94_spill] sm:$0xff] %v13302_v2  ;;  %v4599_v52 = vadd.f32 %v4391_v20, %v14178_v44  ;;  %v4383_v63 = vadd.f32 %v4382_v24, %v14179_v23  ;;  %v13308_v29 = vadd.f32 %v13103_v36, %v4594_v5  ;;  %v11023_v37 = vld [vmem:[%s11298_s28 + $0x4a8] ss:$24 sps:$4 sm:$0xff]   ;;  %v11025_v44 = vld [vmem:[%s11298_s28 + $0x4b4] ss:$24 sps:$4 sm:$0xff]  }
 0x3f9   : > { %v10160_v47 = vpop.f32.mrf.mxu0  ;;  %v13313_v55 = vpop.f32.mrf.mxu1  ;;  %v14183_v24 = vld [vmem:[#allocation20_spill] sm:$0xff]  ;;  %v14184_v34 = vld [vmem:[#allocation141_spill] sm:$0xff] }
 0x3fa   : > { %v4597_v1 = vadd.f32 %v4383_v63, %v14180_v58  ;;  %v4394_v12 = vadd.f32 %v10160_v47, %v14181_v38  ;;  %v13318_v62 = vadd.f32 %v13168_v48, %v4599_v52  ;;  %v14185_v47 = vld [vmem:[#allocation18_spill] sm:$0xff] }
 0x3fb   : > { %v4385_v20 = vpop.f32.mrf.mxu0  ;;  %v5573_v5 = vpop.f32.mrf.mxu1  ;;  %v14186_v38 = vld [vmem:[#allocation146_spill] sm:$0xff] }
 0x3fc   : > { %14182 = vst [vmem:[#allocation90_spill] sm:$0xff] %v13318_v62  ;;  %v4600_v23 = vadd.f32 %v4394_v12, %v14183_v24  ;;  %v4386_v36 = vadd.f32 %v4385_v20, %v14184_v34  ;;  %v13324_v2 = vadd.f32 %v13142_v42, %v4597_v1  ;;  %v14188_v1 = vld [vmem:[#allocation26_spill] sm:$0xff]  ;;  %v14189_v12 = vld [vmem:[#allocation144_spill] sm:$0xff] }
 0x3fd   : > { %v10163_v63 = vpop.f32.mrf.mxu0  ;;  %6616 = vmatmul.mubr.bf16.gmra.mxu0 %v11021_v40  ;;  %v13328_v48 = vpop.f32.mrf.mxu1  ;;  %7753 = vmatmul.mubr.bf16.gmra.mxu1 %v11022_v15  ;;  %v11027_v5 = vld [vmem:[%s11298_s28 + $0x4a4] ss:$24 sps:$4 sm:$0xff]  }
 0x3fe   : > { %v4598_v58 = vadd.f32 %v4386_v36, %v14185_v47  ;;  %v4407_v59 = vadd.f32 %v10163_v63, %v14186_v38  ;;  %9551 = vmatprep.mubr.msk.bf16.mxu0 %vm5185_vm0, %v11023_v37  ;;  %v13332_v52 = vadd.f32 %v13181_v22, %v4600_v23  ;;  %9671 = vmatprep.mubr.msk.bf16.mxu1 %vm5185_vm0, %v11025_v44  ;;  %v14190_v15 = vld [vmem:[#allocation22_spill] sm:$0xff]  ;;  %v14191_v37 = vld [vmem:[#allocation147_spill] sm:$0xff]  ;;  %v11028_v23 = vld [vmem:[%s11298_s28 + $0x4b0] ss:$24 sps:$4 sm:$0xff]  }
 0x3ff   : > { %v4398_v42 = vpop.f32.mrf.mxu0  ;;  %v5578_v24 = vpop.f32.mrf.mxu1  ;;  %v11029_v38 = vld [vmem:[%s11298_s28 + $0x4d8] ss:$24 sps:$4 sm:$0xff]  }
 0x400   : > { %14187 = vst [vmem:[#allocation100_spill] sm:$0xff] %v13332_v52  ;;  %v4603_v40 = vadd.f32 %v4407_v59, %v14188_v1  ;;  %v4399_v20 = vadd.f32 %v4398_v42, %v14189_v12  ;;  %v13338_v34 = vadd.f32 %v13155_v31, %v4598_v58  ;;  %v11031_v1 = vld [vmem:[%s11298_s28 + $0x4e4] ss:$24 sps:$4 sm:$0xff]   ;;  %v14193_v42 = vld [vmem:[#allocation28_spill] sm:$0xff]  ;;  %v14194_v24 = vld [vmem:[#allocation145_spill] sm:$0xff] }
 0x401   : > { %v10164_v36 = vpop.f32.mrf.mxu0  ;;  %v13343_v22 = vpop.f32.mrf.mxu1 }
 0x402   : > { %v4601_v63 = vadd.f32 %v4399_v20, %v14190_v15  ;;  %v4410_v47 = vadd.f32 %v10164_v36, %v14191_v37  ;;  %v13348_v44 = vadd.f32 %v13220_v17, %v4603_v40  ;;  %v14195_v36 = vld [vmem:[#allocation24_spill] sm:$0xff]  ;;  %v14196_v37 = vld [vmem:[#allocation150_spill] sm:$0xff] }
 0x403   : > { %v4401_v59 = vpop.f32.mrf.mxu0  ;;  %v5581_v58 = vpop.f32.mrf.mxu1 }
 0x404   : > { %14192 = vst [vmem:[#allocation96_spill] sm:$0xff] %v13348_v44  ;;  %v4604_v12 = vadd.f32 %v4410_v47, %v14193_v42  ;;  %v4402_v31 = vadd.f32 %v4401_v59, %v14194_v24  ;;  %v13354_v52 = vadd.f32 %v13194_v19, %v4601_v63  ;;  %v14198_v63 = vld [vmem:[#allocation34_spill] sm:$0xff]  ;;  %v14199_v47 = vld [vmem:[#allocation148_spill] sm:$0xff] }
 0x405   : > { %v10167_v20 = vpop.f32.mrf.mxu0  ;;  %6624 = vmatmul.mubr.bf16.gmra.mxu0 %v11027_v5  ;;  %v13358_v17 = vpop.f32.mrf.mxu1  ;;  %7761 = vmatmul.mubr.bf16.gmra.mxu1 %v11028_v23  ;;  %v11033_v58 = vld [vmem:[%s11298_s28 + $0x4d4] ss:$24 sps:$4 sm:$0xff]   ;;  %v14200_v23 = vld [vmem:[#allocation30_spill] sm:$0xff] }
 0x406   : > { %v4602_v15 = vadd.f32 %v4402_v31, %v14195_v36  ;;  %v4423_v62 = vadd.f32 %v10167_v20, %v14196_v37  ;;  %9552 = vmatprep.mubr.msk.bf16.mxu0 %vm5185_vm0, %v11029_v38  ;;  %v13362_v40 = vadd.f32 %v13233_v33, %v4604_v12  ;;  %9672 = vmatprep.mubr.msk.bf16.mxu1 %vm5185_vm0, %v11031_v1  ;;  %v14201_v38 = vld [vmem:[#allocation151_spill] sm:$0xff] }
 0x407   : > { %v4414_v19 = vpop.f32.mrf.mxu0  ;;  %v5586_v42 = vpop.f32.mrf.mxu1  ;;  %v11034_v12 = vld [vmem:[%s11298_s28 + $0x4e0] ss:$24 sps:$4 sm:$0xff]  }
 0x408   : > { %14197 = vst [vmem:[#allocation102_spill] sm:$0xff] %v13362_v40  ;;  %v4607_v5 = vadd.f32 %v4423_v62, %v14198_v63  ;;  %v4415_v59 = vadd.f32 %v4414_v19, %v14199_v47  ;;  %v13368_v24 = vadd.f32 %v13207_v7, %v4602_v15  ;;  %v11035_v37 = vld [vmem:[%s11298_s28 + $0x508] ss:$24 sps:$4 sm:$0xff]   ;;  %v11037_v63 = vld [vmem:[%s11298_s28 + $0x514] ss:$24 sps:$4 sm:$0xff]  }
 0x409   : > { %v10168_v31 = vpop.f32.mrf.mxu0  ;;  %v13373_v33 = vpop.f32.mrf.mxu1  ;;  %v14203_v19 = vld [vmem:[#allocation36_spill] sm:$0xff]  ;;  %v14204_v42 = vld [vmem:[#allocation149_spill] sm:$0xff] }
 0x40a   : > { %v4605_v20 = vadd.f32 %v4415_v59, %v14200_v23  ;;  %v4426_v36 = vadd.f32 %v10168_v31, %v14201_v38  ;;  %v13378_v1 = vadd.f32 %v13271_v4, %v4607_v5  ;;  %v14205_v31 = vld [vmem:[#allocation32_spill] sm:$0xff]  ;;  %v14206_v38 = vld [vmem:[#allocation3_spill] sm:$0xff] }
 0x40b   : > { %v4417_v62 = vpop.f32.mrf.mxu0  ;;  %v5589_v15 = vpop.f32.mrf.mxu1 }
 0x40c   : > { %14202 = vst [vmem:[#allocation98_spill] sm:$0xff] %v13378_v1  ;;  %v4608_v47 = vadd.f32 %v4426_v36, %v14203_v19  ;;  %v4418_v7 = vadd.f32 %v4417_v62, %v14204_v42  ;;  %v13384_v40 = vadd.f32 %v13246_v11, %v4605_v20  ;;  %v14208_v11 = vld [vmem:[#allocation42_spill] sm:$0xff] }
 0x40d   : > { %v10171_v59 = vpop.f32.mrf.mxu0  ;;  %6632 = vmatmul.mubr.bf16.gmra.mxu0 %v11033_v58  ;;  %v5592_v4 = vpop.f32.mrf.mxu1  ;;  %7769 = vmatmul.mubr.bf16.gmra.mxu1 %v11034_v12  ;;  %v14209_v58 = vld [vmem:[#allocation152_spill] sm:$0xff]  ;;  %v11039_v15 = vld [vmem:[%s11298_s28 + $0x504] ss:$24 sps:$4 sm:$0xff]  }
 0x40e   : > { %v4606_v23 = vadd.f32 %v4418_v7, %v14205_v31  ;;  %v4439_v44 = vadd.f32 %v10171_v59, %v14206_v38  ;;  %9553 = vmatprep.mubr.msk.bf16.mxu0 %vm5185_vm0, %v11035_v37  ;;  %v13390_v5 = vadd.f32 %v13283_v28, %v4608_v47  ;;  %9673 = vmatprep.mubr.msk.bf16.mxu1 %vm5185_vm0, %v11037_v63  ;;  %v14210_v12 = vld [vmem:[#allocation38_spill] sm:$0xff]  ;;  %v14211_v37 = vld [vmem:[#allocation23_spill] sm:$0xff]  ;;  %v11040_v47 = vld [vmem:[%s11298_s28 + $0x510] ss:$24 sps:$4 sm:$0xff]  }
 0x40f   : > { %v4430_v36 = vpop.f32.mrf.mxu0  ;;  %v5594_v19 = vpop.f32.mrf.mxu1  ;;  %v11041_v38 = vld [vmem:[%s11298_s28 + $0x538] ss:$24 sps:$4 sm:$0xff]  }
 0x410   : > { %14207 = vst [vmem:[#allocation108_spill] sm:$0xff] %v13390_v5  ;;  %v4611_v20 = vadd.f32 %v4439_v44, %v14208_v11  ;;  %v4431_v62 = vadd.f32 %v4430_v36, %v14209_v58  ;;  %v13396_v42 = vadd.f32 %v13257_v43, %v4606_v23  ;;  %v11043_v44 = vld [vmem:[%s11298_s28 + $0x544] ss:$24 sps:$4 sm:$0xff]   ;;  %v14213_v11 = vld [vmem:[#allocation44_spill] sm:$0xff]  ;;  %v14214_v58 = vld [vmem:[#allocation21_spill] sm:$0xff] }
 0x411   : > { %v10172_v7 = vpop.f32.mrf.mxu0  ;;  %v5595_v28 = vpop.f32.mrf.mxu1 }
 0x412   : > { %v4609_v59 = vadd.f32 %v4431_v62, %v14210_v12  ;;  %v4442_v31 = vadd.f32 %v10172_v7, %v14211_v37  ;;  %v13404_v5 = vadd.f32 %v13328_v48, %v4611_v20  ;;  %v14215_v7 = vld [vmem:[#allocation40_spill] sm:$0xff]  ;;  %v14216_v37 = vld [vmem:[#allocation5_spill] sm:$0xff] }
 0x413   : > { %v4433_v63 = vpop.f32.mrf.mxu0  ;;  %v5597_v43 = vpop.f32.mrf.mxu1 }
 0x414   : > { %14212 = vst [vmem:[#allocation104_spill] sm:$0xff] %v13404_v5  ;;  %v4612_v36 = vadd.f32 %v4442_v31, %v14213_v11  ;;  %v4434_v19 = vadd.f32 %v4433_v63, %v14214_v58  ;;  %v13410_v23 = vadd.f32 %v13298_v30, %v4609_v59  ;;  %v14218_v30 = vld [vmem:[#allocation50_spill] sm:$0xff]  ;;  %v11045_v43 = vld [vmem:[%s11298_s28 + $0x534] ss:$24 sps:$4 sm:$0xff]  }
 0x415   : > { %v10175_v62 = vpop.f32.mrf.mxu0  ;;  %6640 = vmatmul.mubr.bf16.gmra.mxu0 %v11039_v15  ;;  %v5600_v48 = vpop.f32.mrf.mxu1  ;;  %7777 = vmatmul.mubr.bf16.gmra.mxu1 %v11040_v47  ;;  %v14219_v15 = vld [vmem:[#allocation4_spill] sm:$0xff]  ;;  %v14221_v47 = vld [vmem:[#allocation46_spill] sm:$0xff] }
 0x416   : > { %v4610_v12 = vadd.f32 %v4434_v19, %v14215_v7  ;;  %v4455_v1 = vadd.f32 %v10175_v62, %v14216_v37  ;;  %9554 = vmatprep.mubr.msk.bf16.mxu0 %vm5185_vm0, %v11041_v38  ;;  %v13416_v20 = vadd.f32 %v13343_v22, %v4612_v36  ;;  %9674 = vmatprep.mubr.msk.bf16.mxu1 %vm5185_vm0, %v11043_v44  ;;  %v14222_v38 = vld [vmem:[#allocation27_spill] sm:$0xff]  ;;  %v11049_v5 = vld [vmem:[%s11298_s28 + $0x574] ss:$24 sps:$4 sm:$0xff]  }
 0x417   : > { %v4446_v31 = vpop.f32.mrf.mxu0  ;;  %v5602_v11 = vpop.f32.mrf.mxu1  ;;  %v11046_v36 = vld [vmem:[%s11298_s28 + $0x540] ss:$24 sps:$4 sm:$0xff]  }
 0x418   : > { %14217 = vst [vmem:[#allocation110_spill] sm:$0xff] %v13416_v20  ;;  %v4615_v59 = vadd.f32 %v4455_v1, %v14218_v30  ;;  %v4447_v63 = vadd.f32 %v4446_v31, %v14219_v15  ;;  %v13422_v58 = vadd.f32 %v13313_v55, %v4610_v12  ;;  %v11047_v37 = vld [vmem:[%s11298_s28 + $0x568] ss:$24 sps:$4 sm:$0xff]   ;;  %v14225_v31 = vld [vmem:[#allocation25_spill] sm:$0xff] }
 0x419   : > { %v10176_v19 = vpop.f32.mrf.mxu0  ;;  %v5603_v22 = vpop.f32.mrf.mxu1  ;;  %v14224_v1 = vld [vmem:[#allocation52_spill] sm:$0xff] }
 0x41a   : > { %14220 = vst [vmem:[#allocation106_spill] sm:$0xff] %v13422_v58  ;;  %v4613_v62 = vadd.f32 %v4447_v63, %v14221_v47  ;;  %v4458_v7 = vadd.f32 %v10176_v19, %v14222_v38  ;;  %v13429_v20 = vadd.f32 %v5592_v4, %v4615_v59  ;;  %v14226_v63 = vld [vmem:[#allocation48_spill] sm:$0xff]  ;;  %v14227_v47 = vld [vmem:[#allocation7_spill] sm:$0xff] }
 0x41b   : > { %v4449_v44 = vpop.f32.mrf.mxu0  ;;  %v5605_v11 = vpop.f32.mrf.mxu1 }
 0x41c   : > { %14223 = vst [vmem:[#allocation115_spill] sm:$0xff] %v13429_v20  ;;  %v4616_v30 = vadd.f32 %v4458_v7, %v14224_v1  ;;  %v4450_v15 = vadd.f32 %v4449_v44, %v14225_v31  ;;  %v13435_v55 = vadd.f32 %v13358_v17, %v4613_v62  ;;  %v14229_v17 = vld [vmem:[#allocation58_spill] sm:$0xff] }
 0x41d   : > { %v10179_v12 = vpop.f32.mrf.mxu0  ;;  %6648 = vmatmul.mubr.bf16.gmra.mxu0 %v11045_v43  ;;  %v5608_v58 = vpop.f32.mrf.mxu1  ;;  %7785 = vmatmul.mubr.bf16.gmra.mxu1 %v11046_v36  ;;  %v14230_v7 = vld [vmem:[#allocation6_spill] sm:$0xff] }
 0x41e   : > { %v4614_v19 = vadd.f32 %v4450_v15, %v14226_v63  ;;  %v4471_v38 = vadd.f32 %v10179_v12, %v14227_v47  ;;  %9555 = vmatprep.mubr.msk.bf16.mxu0 %vm5185_vm0, %v11047_v37  ;;  %v13440_v4 = vadd.f32 %v5595_v28, %v4616_v30  ;;  %9675 = vmatprep.mubr.msk.bf16.mxu1 %vm5185_vm0, %v11049_v5  ;;  %v11051_v15 = vld [vmem:[%s11298_s28 + $0x564] ss:$24 sps:$4 sm:$0xff]   ;;  %v11052_v63 = vld [vmem:[%s11298_s28 + $0x570] ss:$24 sps:$4 sm:$0xff]  }
 0x41f   : > { %v4462_v59 = vpop.f32.mrf.mxu0  ;;  %v5610_v44 = vpop.f32.mrf.mxu1  ;;  %v14231_v11 = vld [vmem:[#allocation54_spill] sm:$0xff]  ;;  %v14232_v28 = vld [vmem:[#allocation31_spill] sm:$0xff] }
 0x420   : > { %14228 = vst [vmem:[#allocation112_spill] sm:$0xff] %v13440_v4  ;;  %v4619_v62 = vadd.f32 %v4471_v38, %v14229_v17  ;;  %v4463_v43 = vadd.f32 %v4462_v59, %v14230_v7  ;;  %v13446_v1 = vadd.f32 %v13373_v33, %v4614_v19  ;;  %v11053_v47 = vld [vmem:[%s11298_s28 + $0x598] ss:$24 sps:$4 sm:$0xff]   ;;  %v11055_v4 = vld [vmem:[%s11298_s28 + $0x5a4] ss:$24 sps:$4 sm:$0xff]   ;;  %v14233_v38 = vld [vmem:[#allocation60_spill] sm:$0xff] }
 0x421   : > { %v10180_v31 = vpop.f32.mrf.mxu0  ;;  %v5611_v12 = vpop.f32.mrf.mxu1  ;;  %v14234_v59 = vld [vmem:[#allocation29_spill] sm:$0xff]  ;;  %v14235_v33 = vld [vmem:[#allocation8_spill] sm:$0xff] }
 0x422   : > { %v13449_v36 = vadd.f32 %v5608_v58, %v4619_v62  ;;  %v4617_v37 = vadd.f32 %v4463_v43, %v14231_v11  ;;  %v4474_v30 = vadd.f32 %v10180_v31, %v14232_v28  ;;  %v5687_v19 = vadd.f32 %v14235_v33, %v12996_v14  ;;  %v14236_v43 = vld [vmem:[#allocation56_spill] sm:$0xff]  ;;  %v13469_v14 = vld [vmem:[%s13778_s2] ss:$0 sm:$0xff] }
 0x423   : > { %v4465_v5 = vpop.f32.mrf.mxu0  ;;  %v5613_v44 = vpop.f32.mrf.mxu1 }
 0x424   : > { %v4620_v17 = vadd.f32 %v4474_v30, %v14233_v38  ;;  %v4466_v7 = vadd.f32 %v4465_v5, %v14234_v59  ;;  %v13460_v20 = vadd.f32 %v5600_v48, %v4617_v37  ;;  %v14237_v30 = vld [vmem:[#allocation33_spill] sm:$0xff]  ;;  %v11059_v44 = vld [vmem:[%s11298_s28 + $0x5c8] ss:$24 sps:$4 sm:$0xff]  }
 0x425   : > { %v6465_v58 = vpop.f32.mrf.mxu0  ;;  %6656 = vmatmul.mubr.bf16.gmra.mxu0 %v11051_v15  ;;  %v7602_v28 = vpop.f32.mrf.mxu1  ;;  %7793 = vmatmul.mubr.bf16.gmra.mxu1 %v11052_v63  ;;  %v11057_v38 = vld [vmem:[%s11298_s28 + $0x594] ss:$24 sps:$4 sm:$0xff]  }
 0x426   : > { %v13462_v62 = vadd.f32 %v5611_v12, %v4620_v17  ;;  %v4618_v31 = vadd.f32 %v4466_v7, %v14236_v43  ;;  %v6824_v11 = vadd.f32 %v6465_v58, %v5687_v19  ;;  %9556 = vmatprep.mubr.msk.bf16.mxu0 %vm5185_vm0, %v11053_v47  ;;  %9676 = vmatprep.mubr.msk.bf16.mxu1 %vm5185_vm0, %v11055_v4  ;;  %v11058_v7 = vld [vmem:[%s11298_s28 + $0x5a0] ss:$24 sps:$4 sm:$0xff]   ;;  %v11061_v19 = vld [vmem:[%s11298_s28 + $0x5d4] ss:$24 sps:$4 sm:$0xff]  }
 0x427   : > { %v6467_v48 = vpop.f32.mrf.mxu0  ;;  %v7604_v37 = vpop.f32.mrf.mxu1  ;;  %v5688_v12 = vadd.f32 %v14237_v30, %v13009_v50  ;;  %v14238_v43 = vld [vmem:[#allocation9_spill] sm:$0xff] }
 0x428   : > { %v7961_v15 = vadd.f32 %v7602_v28, %v6824_v11  ;;  %v13474_v5 = vadd.f32 %v5603_v22, %v4618_v31  ;;  %v5689_v11 = vadd.f32 %v14238_v43, %v12991_v16 }
 0x429   : > { %v6468_v63 = vpop.f32.mrf.mxu0  ;;  %v7605_v59 = vpop.f32.mrf.mxu1 }
 0x42a   : > { %v8184_v47 = vadd.f32 %v13469_v14, %v7961_v15  ;;  %v6825_v17 = vadd.f32 %v6468_v63, %v5688_v12  ;;  %v14239_v12 = vld [vmem:[#allocation35_spill] sm:$0xff] }
 0x42b   : > { %v6470_v33 = vpop.f32.mrf.mxu0  ;;  %v7607_v4 = vpop.f32.mrf.mxu1  ;;  %v5690_v63 = vadd.f32 %v14239_v12, %v13005_v60 }
 0x42c   : > { %v7962_v58 = vadd.f32 %v7605_v59, %v6825_v17  ;;  %v8328_v50 = vmul.f32 0.01, %v8184_v47  ;;  %vm8256_vm1 = vcmp.ge.f32.partialorder %v8184_v47, 0.0  ;;  %v11063_v17 = vld [vmem:[%s11298_s28 + $0x5c4] ss:$24 sps:$4 sm:$0xff]  }
 0x42d   : > { %v6473_v28 = vpop.f32.mrf.mxu0  ;;  %6664 = vmatmul.mubr.bf16.gmra.mxu0 %v11057_v38  ;;  %v7610_v48 = vpop.f32.mrf.mxu1  ;;  %7801 = vmatmul.mubr.bf16.gmra.mxu1 %v11058_v7  ;;  %v11065_v4 = vld [vmem:[%s11298_s28 + $0x5f8] ss:$24 sps:$4 sm:$0xff]  }
 0x42e   : > { %v8185_v22 = vadd.f32 %v13469_v14, %v7962_v58  ;;  %v6826_v31 = vadd.f32 %v6473_v28, %v5689_v11  ;;  %9557 = vmatprep.mubr.msk.bf16.mxu0 %vm5185_vm0, %v11059_v44  ;;  %9677 = vmatprep.mubr.msk.bf16.mxu1 %vm5185_vm0, %v11061_v19  ;;  %v8400_v59 = vsel %vm8256_vm1, %v8184_v47, %v8328_v50  ;;  %v11064_v58 = vld [vmem:[%s11298_s28 + $0x5d0] ss:$24 sps:$4 sm:$0xff]   ;;  %v11067_v28 = vld [vmem:[%s11298_s28 + $0x604] ss:$24 sps:$4 sm:$0xff]  }
 0x42f   : > { %v6475_v15 = vpop.f32.mrf.mxu0  ;;  %v7612_v30 = vpop.f32.mrf.mxu1  ;;  %v14240_v47 = vld [vmem:[#allocation10_spill] sm:$0xff] }
 0x430   : > { %vm8257_vm2 = vcmp.ge.f32.partialorder %v8185_v22, 0.0  ;;  %v8329_v16 = vmul.f32 0.01, %v8185_v22  ;;  %v7963_v37 = vadd.f32 %v7610_v48, %v6826_v31  ;;  %v5691_v50 = vadd.f32 %v14240_v47, %v13022_v46  ;;  %v11073_v47 = vld [vmem:[%s11298_s28 + $0x634] ss:$24 sps:$4 sm:$0xff]  }
 0x431   : > { %v6476_v38 = vpop.f32.mrf.mxu0  ;;  %v7613_v19 = vpop.f32.mrf.mxu1 }
 0x432   : > { %v8401_v7 = vsel %vm8257_vm2, %v8185_v22, %v8329_v16  ;;  %v8186_v44 = vadd.f32 %v13469_v14, %v7963_v37  ;;  %v6827_v33 = vadd.f32 %v6476_v38, %v5690_v63  ;;  %v14241_v38 = vld [vmem:[#allocation11_spill] sm:$0xff] }
 0x433   : > { %v9837_v43 = vpack.c.bf16 %v8401_v7, %v8400_v59  ;;  %v6478_v11 = vpop.f32.mrf.mxu0  ;;  %v7615_v31 = vpop.f32.mrf.mxu1  ;;  %v11069_v7 = vld [vmem:[%s11298_s28 + $0x5f4] ss:$24 sps:$4 sm:$0xff]  }
 0x434   : > { %v7964_v60 = vadd.f32 %v7613_v19, %v6827_v33  ;;  %v8330_v15 = vmul.f32 0.01, %v8186_v44  ;;  %vm8258_vm3 = vcmp.ge.f32.partialorder %v8186_v44, 0.0  ;;  %v11070_v11 = vld [vmem:[%s11298_s28 + $0x600] ss:$24 sps:$4 sm:$0xff]  }
 0x435   : > { %9838 = vst [vmem:[%s13493_s18] sm:$0xff] %v9837_v43   ;;  %v6481_v48 = vpop.f32.mrf.mxu0  ;;  %6672 = vmatmul.mubr.bf16.gmra.mxu0 %v11063_v17  ;;  %v7618_v37 = vpop.f32.mrf.mxu1  ;;  %7809 = vmatmul.mubr.bf16.gmra.mxu1 %v11064_v58  ;;  %v5692_v17 = vadd.f32 %v14241_v38, %v13035_v3  ;;  %v14243_v38 = vld [vmem:[#allocation41_spill] sm:$0xff] }
 0x436   : > { %v8187_v22 = vadd.f32 %v13469_v14, %v7964_v60  ;;  %v6828_v16 = vadd.f32 %v6481_v48, %v5691_v50  ;;  %9558 = vmatprep.mubr.msk.bf16.mxu0 %vm5185_vm0, %v11065_v4  ;;  %9678 = vmatprep.mubr.msk.bf16.mxu1 %vm5185_vm0, %v11067_v28  ;;  %v8402_v33 = vsel %vm8258_vm3, %v8186_v44, %v8330_v15  ;;  %v11071_v60 = vld [vmem:[%s11298_s28 + $0x628] ss:$24 sps:$4 sm:$0xff]  }
 0x437   : > { %v6483_v30 = vpop.f32.mrf.mxu0  ;;  %v7620_v63 = vpop.f32.mrf.mxu1 }
 0x438   : > { %vm8259_vm4 = vcmp.ge.f32.partialorder %v8187_v22, 0.0  ;;  %v8331_v46 = vmul.f32 0.01, %v8187_v22  ;;  %v7965_v12 = vadd.f32 %v7618_v37, %v6828_v16  ;;  %v14242_v16 = vld [vmem:[#allocation39_spill] sm:$0xff] }
 0x439   : > { %v6484_v59 = vpop.f32.mrf.mxu0  ;;  %v7621_v43 = vpop.f32.mrf.mxu1  ;;  %v5693_v37 = vadd.f32 %v14242_v16, %v13017_v13 }
 0x43a   : > { %v8403_v19 = vsel %vm8259_vm4, %v8187_v22, %v8331_v46  ;;  %v8188_v58 = vadd.f32 %v13469_v14, %v7965_v12  ;;  %v6829_v4 = vadd.f32 %v6484_v59, %v5692_v17  ;;  %v5694_v17 = vadd.f32 %v14243_v38, %v13031_v61 }
 0x43b   : > { %v9842_v28 = vpack.c.bf16 %v8403_v19, %v8402_v33  ;;  %v6486_v31 = vpop.f32.mrf.mxu0  ;;  %v7623_v48 = vpop.f32.mrf.mxu1 }
 0x43c   : > { %v7966_v50 = vadd.f32 %v7621_v43, %v6829_v4  ;;  %v8332_v44 = vmul.f32 0.01, %v8188_v58  ;;  %vm8260_vm5 = vcmp.ge.f32.partialorder %v8188_v58, 0.0 }
 0x43d   : > { %10014 = vst [vmem:[%s13493_s18 + $0x8] sm:$0xff] %v9842_v28   ;;  %v6489_v3 = vpop.f32.mrf.mxu0  ;;  %6680 = vmatmul.mubr.bf16.gmra.mxu0 %v11069_v7  ;;  %v7626_v30 = vpop.f32.mrf.mxu1  ;;  %7817 = vmatmul.mubr.bf16.gmra.mxu1 %v11070_v11  ;;  %v11075_v7 = vld [vmem:[%s11298_s28 + $0x624] ss:$24 sps:$4 sm:$0xff]   ;;  %v11077_v28 = vld [vmem:[%s11298_s28 + $0x658] ss:$24 sps:$4 sm:$0xff]  }
 0x43e   : > { %v8189_v15 = vadd.f32 %v13469_v14, %v7966_v50  ;;  %v6830_v22 = vadd.f32 %v6489_v3, %v5693_v37  ;;  %9559 = vmatprep.mubr.msk.bf16.mxu0 %vm5185_vm0, %v11071_v60  ;;  %9679 = vmatprep.mubr.msk.bf16.mxu1 %vm5185_vm0, %v11073_v47  ;;  %v8404_v33 = vsel %vm8260_vm5, %v8188_v58, %v8332_v44  ;;  %v11076_v60 = vld [vmem:[%s11298_s28 + $0x630] ss:$24 sps:$4 sm:$0xff]   ;;  %v11079_v50 = vld [vmem:[%s11298_s28 + $0x664] ss:$24 sps:$4 sm:$0xff]  }
 0x43f   : > { %v6491_v46 = vpop.f32.mrf.mxu0  ;;  %v7628_v63 = vpop.f32.mrf.mxu1  ;;  %v14244_v37 = vld [vmem:[#allocation43_spill] sm:$0xff] }
 0x440   : > { %vm8261_vm6 = vcmp.ge.f32.partialorder %v8189_v15, 0.0  ;;  %v8333_v13 = vmul.f32 0.01, %v8189_v15  ;;  %v7967_v12 = vadd.f32 %v7626_v30, %v6830_v22  ;;  %v5695_v3 = vadd.f32 %v14244_v37, %v13048_v41 }
 0x441   : > { %v6492_v59 = vpop.f32.mrf.mxu0  ;;  %v7629_v11 = vpop.f32.mrf.mxu1 }
 0x442   : > { %v8405_v19 = vsel %vm8261_vm6, %v8189_v15, %v8333_v13  ;;  %v8190_v4 = vadd.f32 %v13469_v14, %v7967_v12  ;;  %v6831_v43 = vadd.f32 %v6492_v59, %v5694_v17  ;;  %v14245_v12 = vld [vmem:[#allocation45_spill] sm:$0xff] }
 0x443   : > { %v9847_v31 = vpack.c.bf16 %v8405_v19, %v8404_v33  ;;  %v6494_v47 = vpop.f32.mrf.mxu0  ;;  %v7631_v16 = vpop.f32.mrf.mxu1  ;;  %v5696_v63 = vadd.f32 %v14245_v12, %v13061_v35  ;;  %v11081_v17 = vld [vmem:[%s11298_s28 + $0x654] ss:$24 sps:$4 sm:$0xff]   ;;  %v11087_v12 = vld [vmem:[%s11298_s28 + $0x684] ss:$24 sps:$4 sm:$0xff]  }
 0x444   : > { %v7968_v48 = vadd.f32 %v7629_v11, %v6831_v43  ;;  %v8334_v58 = vmul.f32 0.01, %v8190_v4  ;;  %vm8262_vm7 = vcmp.ge.f32.partialorder %v8190_v4, 0.0  ;;  %v11082_v11 = vld [vmem:[%s11298_s28 + $0x660] ss:$24 sps:$4 sm:$0xff]  }
 0x445   : > { %10015 = vst [vmem:[%s13493_s18 + $0x10] sm:$0xff] %v9847_v31   ;;  %v6497_v61 = vpop.f32.mrf.mxu0  ;;  %6688 = vmatmul.mubr.bf16.gmra.mxu0 %v11075_v7  ;;  %v7634_v22 = vpop.f32.mrf.mxu1  ;;  %7825 = vmatmul.mubr.bf16.gmra.mxu1 %v11076_v60  ;;  %v11083_v60 = vld [vmem:[%s11298_s28 + $0x688] ss:$24 sps:$4 sm:$0xff]   ;;  %v11085_v47 = vld [vmem:[%s11298_s28 + $0x694] ss:$24 sps:$4 sm:$0xff]  }
 0x446   : > { %v8191_v44 = vadd.f32 %v13469_v14, %v7968_v48  ;;  %v6832_v15 = vadd.f32 %v6497_v61, %v5695_v3  ;;  %9560 = vmatprep.mubr.msk.bf16.mxu0 %vm5185_vm0, %v11077_v28  ;;  %9680 = vmatprep.mubr.msk.bf16.mxu1 %vm5185_vm0, %v11079_v50  ;;  %v8406_v59 = vsel %vm8262_vm7, %v8190_v4, %v8334_v58  ;;  %v14246_v16 = vld [vmem:[#allocation47_spill] sm:$0xff] }
 0x447   : > { %v6499_v30 = vpop.f32.mrf.mxu0  ;;  %v7636_v13 = vpop.f32.mrf.mxu1  ;;  %v5697_v37 = vadd.f32 %v14246_v16, %v13043_v56 }
 0x448   : > { %vm8263_vm8 = vcmp.ge.f32.partialorder %v8191_v44, 0.0  ;;  %v8335_v41 = vmul.f32 0.01, %v8191_v44  ;;  %v7969_v46 = vadd.f32 %v7634_v22, %v6832_v15  ;;  %v14247_v30 = vld [vmem:[#allocation68_spill] sm:$0xff] }
 0x449   : > { %v6500_v38 = vpop.f32.mrf.mxu0  ;;  %v7637_v43 = vpop.f32.mrf.mxu1 }
 0x44a   : > { %v8407_v7 = vsel %vm8263_vm8, %v8191_v44, %v8335_v41  ;;  %v8192_v33 = vadd.f32 %v13469_v14, %v7969_v46  ;;  %v6833_v19 = vadd.f32 %v6500_v38, %v5696_v63  ;;  %v14248_v41 = vld [vmem:[#allocation49_spill] sm:$0xff] }
 0x44b   : > { %v9852_v28 = vpack.c.bf16 %v8407_v7, %v8406_v59  ;;  %v6502_v31 = vpop.f32.mrf.mxu0  ;;  %v7639_v48 = vpop.f32.mrf.mxu1  ;;  %v5698_v46 = vadd.f32 %v14248_v41, %v14247_v30 }
 0x44c   : > { %v7970_v50 = vadd.f32 %v7637_v43, %v6833_v19  ;;  %v8336_v4 = vmul.f32 0.01, %v8192_v33  ;;  %vm8264_vm9 = vcmp.ge.f32.partialorder %v8192_v33, 0.0  ;;  %v11088_v19 = vld [vmem:[%s11298_s28 + $0x690] ss:$24 sps:$4 sm:$0xff]  }
 0x44d   : > { %10016 = vst [vmem:[%s13493_s18 + $0x18] sm:$0xff] %v9852_v28   ;;  %v6505_v35 = vpop.f32.mrf.mxu0  ;;  %6696 = vmatmul.mubr.bf16.gmra.mxu0 %v11081_v17  ;;  %v7642_v58 = vpop.f32.mrf.mxu1  ;;  %7833 = vmatmul.mubr.bf16.gmra.mxu1 %v11082_v11  ;;  %v11089_v43 = vld [vmem:[%s11298_s28 + $0x6b8] ss:$24 sps:$4 sm:$0xff]   ;;  %v11091_v28 = vld [vmem:[%s11298_s28 + $0x6c4] ss:$24 sps:$4 sm:$0xff]  }
 0x44e   : > { %v8193_v3 = vadd.f32 %v13469_v14, %v7970_v50  ;;  %v6834_v61 = vadd.f32 %v6505_v35, %v5697_v37  ;;  %9561 = vmatprep.mubr.msk.bf16.mxu0 %vm5185_vm0, %v11083_v60  ;;  %9681 = vmatprep.mubr.msk.bf16.mxu1 %vm5185_vm0, %v11085_v47  ;;  %v8408_v63 = vsel %vm8264_vm9, %v8192_v33, %v8336_v4  ;;  %v14249_v50 = vld [vmem:[#allocation51_spill] sm:$0xff] }
 0x44f   : > { %v6507_v44 = vpop.f32.mrf.mxu0  ;;  %v7644_v22 = vpop.f32.mrf.mxu1  ;;  %v5699_v48 = vadd.f32 %v14249_v50, %v13074_v26 }
 0x450   : > { %vm8265_vm10 = vcmp.ge.f32.partialorder %v8193_v3, 0.0  ;;  %v8337_v56 = vmul.f32 0.01, %v8193_v3  ;;  %v7971_v15 = vadd.f32 %v7642_v58, %v6834_v61  ;;  %v14250_v44 = vld [vmem:[#allocation53_spill] sm:$0xff] }
 0x451   : > { %v6508_v13 = vpop.f32.mrf.mxu0  ;;  %v7645_v7 = vpop.f32.mrf.mxu1  ;;  %v11093_v22 = vld [vmem:[%s11298_s28 + $0x6b4] ss:$24 sps:$4 sm:$0xff]  }
 0x452   : > { %v8409_v38 = vsel %vm8265_vm10, %v8193_v3, %v8337_v56  ;;  %v8194_v17 = vadd.f32 %v13469_v14, %v7971_v15  ;;  %v6835_v59 = vadd.f32 %v6508_v13, %v5698_v46  ;;  %v5700_v56 = vadd.f32 %v14250_v44, %v13087_v45 }
 0x453   : > { %v9857_v11 = vpack.c.bf16 %v8409_v38, %v8408_v63  ;;  %v6510_v60 = vpop.f32.mrf.mxu0  ;;  %v7647_v47 = vpop.f32.mrf.mxu1  ;;  %v11094_v63 = vld [vmem:[%s11298_s28 + $0x6c0] ss:$24 sps:$4 sm:$0xff]  }
 0x454   : > { %v7972_v31 = vadd.f32 %v7645_v7, %v6835_v59  ;;  %v8338_v33 = vmul.f32 0.01, %v8194_v17  ;;  %vm8266_vm11 = vcmp.ge.f32.partialorder %v8194_v17, 0.0  ;;  %v11095_v38 = vld [vmem:[%s11298_s28 + $0x6e8] ss:$24 sps:$4 sm:$0xff]   ;;  %v14251_v60 = vld [vmem:[#allocation105_spill] sm:$0xff] }
 0x455   : > { %10017 = vst [vmem:[%s13493_s18 + $0x20] sm:$0xff] %v9857_v11   ;;  %v6513_v16 = vpop.f32.mrf.mxu0  ;;  %6704 = vmatmul.mubr.bf16.gmra.mxu0 %v11087_v12  ;;  %v7650_v4 = vpop.f32.mrf.mxu1  ;;  %7841 = vmatmul.mubr.bf16.gmra.mxu1 %v11088_v19  ;;  %v11097_v19 = vld [vmem:[%s11298_s28 + $0x6f4] ss:$24 sps:$4 sm:$0xff]  }
 0x456   : > { %v8195_v37 = vadd.f32 %v13469_v14, %v7972_v31  ;;  %v6836_v35 = vadd.f32 %v6513_v16, %v5699_v48  ;;  %9562 = vmatprep.mubr.msk.bf16.mxu0 %vm5185_vm0, %v11089_v43  ;;  %9682 = vmatprep.mubr.msk.bf16.mxu1 %vm5185_vm0, %v11091_v28  ;;  %v8410_v30 = vsel %vm8266_vm11, %v8194_v17, %v8338_v33  ;;  %v14252_v28 = vld [vmem:[#allocation55_spill] sm:$0xff] }
 0x457   : > { %v6515_v3 = vpop.f32.mrf.mxu0  ;;  %v7652_v58 = vpop.f32.mrf.mxu1  ;;  %v5701_v31 = vadd.f32 %v14252_v28, %v14251_v60 }
 0x458   : > { %vm8267_vm12 = vcmp.ge.f32.partialorder %v8195_v37, 0.0  ;;  %v8339_v26 = vmul.f32 0.01, %v8195_v37  ;;  %v7973_v61 = vadd.f32 %v7650_v4, %v6836_v35  ;;  %v14253_v4 = vld [vmem:[#allocation70_spill] sm:$0xff]  ;;  %v14254_v3 = vld [vmem:[#allocation57_spill] sm:$0xff] }
 0x459   : > { %v6516_v15 = vpop.f32.mrf.mxu0  ;;  %v7653_v12 = vpop.f32.mrf.mxu1  ;;  %v11099_v58 = vld [vmem:[%s11298_s28 + $0x6e4] ss:$24 sps:$4 sm:$0xff]  }
 0x45a   : > { %v8411_v41 = vsel %vm8267_vm12, %v8195_v37, %v8339_v26  ;;  %v8196_v46 = vadd.f32 %v13469_v14, %v7973_v61  ;;  %v6837_v13 = vadd.f32 %v6516_v15, %v5700_v56  ;;  %v5702_v26 = vadd.f32 %v14254_v3, %v14253_v4 }
 0x45b   : > { %v9862_v59 = vpack.c.bf16 %v8411_v41, %v8410_v30  ;;  %v6518_v7 = vpop.f32.mrf.mxu0  ;;  %v7655_v11 = vpop.f32.mrf.mxu1  ;;  %v11100_v41 = vld [vmem:[%s11298_s28 + $0x6f0] ss:$24 sps:$4 sm:$0xff]  }
 0x45c   : > { %v7974_v43 = vadd.f32 %v7653_v12, %v6837_v13  ;;  %v8340_v17 = vmul.f32 0.01, %v8196_v46  ;;  %vm8268_vm13 = vcmp.ge.f32.partialorder %v8196_v46, 0.0  ;;  %v11101_v13 = vld [vmem:[%s11298_s28 + $0x718] ss:$24 sps:$4 sm:$0xff]  }
 0x45d   : > { %10018 = vst [vmem:[%s13493_s18 + $0x28] sm:$0xff] %v9862_v59   ;;  %v6521_v45 = vpop.f32.mrf.mxu0  ;;  %6712 = vmatmul.mubr.bf16.gmra.mxu0 %v11093_v22  ;;  %v7658_v48 = vpop.f32.mrf.mxu1  ;;  %7849 = vmatmul.mubr.bf16.gmra.mxu1 %v11094_v63 }
 0x45e   : > { %v8197_v47 = vadd.f32 %v13469_v14, %v7974_v43  ;;  %v6838_v50 = vadd.f32 %v6521_v45, %v5701_v31  ;;  %9563 = vmatprep.mubr.msk.bf16.mxu0 %vm5185_vm0, %v11095_v38  ;;  %9683 = vmatprep.mubr.msk.bf16.mxu1 %vm5185_vm0, %v11097_v19  ;;  %v8412_v44 = vsel %vm8268_vm13, %v8196_v46, %v8340_v17  ;;  %v11103_v38 = vld [vmem:[%s11298_s28 + $0x724] ss:$24 sps:$4 sm:$0xff]  }
 0x45f   : > { %v6523_v16 = vpop.f32.mrf.mxu0  ;;  %v7660_v35 = vpop.f32.mrf.mxu1  ;;  %v14255_v19 = vld [vmem:[#allocation59_spill] sm:$0xff] }
 0x460   : > { %vm8269_vm14 = vcmp.ge.f32.partialorder %v8197_v47, 0.0  ;;  %v8341_v33 = vmul.f32 0.01, %v8197_v47  ;;  %v7975_v37 = vadd.f32 %v7658_v48, %v6838_v50  ;;  %v5703_v43 = vadd.f32 %v14255_v19, %v13100_v21  ;;  %v14256_v50 = vld [vmem:[#allocation61_spill] sm:$0xff] }
 0x461   : > { %v6524_v61 = vpop.f32.mrf.mxu0  ;;  %v7661_v30 = vpop.f32.mrf.mxu1  ;;  %v5704_v48 = vadd.f32 %v14256_v50, %v13113_v0 }
 0x462   : > { %v8413_v56 = vsel %vm8269_vm14, %v8197_v47, %v8341_v33  ;;  %v8198_v15 = vadd.f32 %v13469_v14, %v7975_v37  ;;  %v6839_v22 = vadd.f32 %v6524_v61, %v5702_v26  ;;  %v11105_v33 = vld [vmem:[%s11298_s28 + $0x714] ss:$24 sps:$4 sm:$0xff]   ;;  %v11106_v61 = vld [vmem:[%s11298_s28 + $0x720] ss:$24 sps:$4 sm:$0xff]  }
 0x463   : > { %v9867_v12 = vpack.c.bf16 %v8413_v56, %v8412_v44  ;;  %v6526_v63 = vpop.f32.mrf.mxu0  ;;  %v7663_v7 = vpop.f32.mrf.mxu1 }
 0x464   : > { %v7976_v59 = vadd.f32 %v7661_v30, %v6839_v22  ;;  %v8342_v46 = vmul.f32 0.01, %v8198_v15  ;;  %vm8270_vm15 = vcmp.ge.f32.partialorder %v8198_v15, 0.0  ;;  %v11109_v22 = vld [vmem:[%s11298_s28 + $0x754] ss:$24 sps:$4 sm:$0xff]  }
 0x465   : > { %10019 = vst [vmem:[%s13493_s18 + $0x30] sm:$0xff] %v9867_v12   ;;  %v6529_v11 = vpop.f32.mrf.mxu0  ;;  %6720 = vmatmul.mubr.bf16.gmra.mxu0 %v11099_v58  ;;  %v7666_v31 = vpop.f32.mrf.mxu1  ;;  %7857 = vmatmul.mubr.bf16.gmra.mxu1 %v11100_v41  ;;  %v11107_v58 = vld [vmem:[%s11298_s28 + $0x748] ss:$24 sps:$4 sm:$0xff]  }
 0x466   : > { %v8199_v60 = vadd.f32 %v13469_v14, %v7976_v59  ;;  %v6840_v28 = vadd.f32 %v6529_v11, %v5703_v43  ;;  %9564 = vmatprep.mubr.msk.bf16.mxu0 %vm5185_vm0, %v11101_v13  ;;  %9684 = vmatprep.mubr.msk.bf16.mxu1 %vm5185_vm0, %v11103_v38  ;;  %v8414_v37 = vsel %vm8270_vm15, %v8198_v15, %v8342_v46  ;;  %v14257_v13 = vld [vmem:[#allocation107_spill] sm:$0xff] }
 0x467   : > { %v6531_v45 = vpop.f32.mrf.mxu0  ;;  %v7668_v47 = vpop.f32.mrf.mxu1  ;;  %v14258_v12 = vld [vmem:[#allocation63_spill] sm:$0xff] }
 0x468   : > { %vm8271_vm1 = vcmp.ge.f32.partialorder %v8199_v60, 0.0  ;;  %v8343_v21 = vmul.f32 0.01, %v8199_v60  ;;  %v7977_v17 = vadd.f32 %v7666_v31, %v6840_v28  ;;  %v5705_v63 = vadd.f32 %v14258_v12, %v14257_v13  ;;  %v14260_v28 = vld [vmem:[#allocation65_spill] sm:$0xff] }
 0x469   : > { %v6532_v16 = vpop.f32.mrf.mxu0  ;;  %v7669_v26 = vpop.f32.mrf.mxu1 }
 0x46a   : > { %v8415_v35 = vsel %vm8271_vm1, %v8199_v60, %v8343_v21  ;;  %v8200_v4 = vadd.f32 %v13469_v14, %v7977_v17  ;;  %v6841_v3 = vadd.f32 %v6532_v16, %v5704_v48  ;;  %v14259_v60 = vld [vmem:[#allocation72_spill] sm:$0xff]  ;;  %v11111_v21 = vld [vmem:[%s11298_s28 + $0x744] ss:$24 sps:$4 sm:$0xff]  }
 0x46b   : > { %v9872_v44 = vpack.c.bf16 %v8415_v35, %v8414_v37  ;;  %v6534_v56 = vpop.f32.mrf.mxu0  ;;  %v7671_v41 = vpop.f32.mrf.mxu1  ;;  %v5706_v31 = vadd.f32 %v14260_v28, %v14259_v60  ;;  %v11113_v37 = vld [vmem:[%s11298_s28 + $0x778] ss:$24 sps:$4 sm:$0xff]  }
 0x46c   : > { %v7978_v30 = vadd.f32 %v7669_v26, %v6841_v3  ;;  %v8344_v15 = vmul.f32 0.01, %v8200_v4  ;;  %vm8272_vm2 = vcmp.ge.f32.partialorder %v8200_v4, 0.0  ;;  %v11115_v26 = vld [vmem:[%s11298_s28 + $0x784] ss:$24 sps:$4 sm:$0xff]  }
 0x46d   : > { %10020 = vst [vmem:[%s13493_s18 + $0x38] sm:$0xff] %v9872_v44   ;;  %v6537_v0 = vpop.f32.mrf.mxu0  ;;  %6728 = vmatmul.mubr.bf16.gmra.mxu0 %v11105_v33  ;;  %v7674_v7 = vpop.f32.mrf.mxu1  ;;  %7865 = vmatmul.mubr.bf16.gmra.mxu1 %v11106_v61  ;;  %v11112_v33 = vld [vmem:[%s11298_s28 + $0x750] ss:$24 sps:$4 sm:$0xff]   ;;  %v14261_v44 = vld [vmem:[#allocation67_spill] sm:$0xff] }
 0x46e   : > { %v8201_v38 = vadd.f32 %v13469_v14, %v7978_v30  ;;  %v6842_v59 = vadd.f32 %v6537_v0, %v5705_v63  ;;  %9565 = vmatprep.mubr.msk.bf16.mxu0 %vm5185_vm0, %v11107_v58  ;;  %9685 = vmatprep.mubr.msk.bf16.mxu1 %vm5185_vm0, %v11109_v22  ;;  %v8416_v17 = vsel %vm8272_vm2, %v8200_v4, %v8344_v15  ;;  %v14262_v15 = vld [vmem:[#allocation69_spill] sm:$0xff]  ;;  %v11118_v28 = vld [vmem:[%s11298_s28 + $0x780] ss:$24 sps:$4 sm:$0xff]  }
 0x46f   : > { %v6539_v19 = vpop.f32.mrf.mxu0  ;;  %v7676_v46 = vpop.f32.mrf.mxu1  ;;  %v5707_v56 = vadd.f32 %v14261_v44, %v13126_v39  ;;  %v14265_v44 = vld [vmem:[#allocation74_spill] sm:$0xff] }
 0x470   : > { %vm8273_vm3 = vcmp.ge.f32.partialorder %v8201_v38, 0.0  ;;  %v8345_v43 = vmul.f32 0.01, %v8201_v38  ;;  %v7979_v11 = vadd.f32 %v7674_v7, %v6842_v59  ;;  %v11117_v7 = vld [vmem:[%s11298_s28 + $0x774] ss:$24 sps:$4 sm:$0xff]  }
 0x471   : > { %v6540_v45 = vpop.f32.mrf.mxu0  ;;  %v7677_v16 = vpop.f32.mrf.mxu1 }
 0x472   : > { %v8417_v47 = vsel %vm8273_vm3, %v8201_v38, %v8345_v43  ;;  %v8202_v50 = vadd.f32 %v13469_v14, %v7979_v11  ;;  %v6843_v48 = vadd.f32 %v6540_v45, %v5706_v31  ;;  %v5708_v38 = vadd.f32 %v14262_v15, %v13139_v54 }
 0x473   : > { %v9877_v35 = vpack.c.bf16 %v8417_v47, %v8416_v17  ;;  %v6542_v3 = vpop.f32.mrf.mxu0  ;;  %v7679_v58 = vpop.f32.mrf.mxu1  ;;  %v14263_v47 = vld [vmem:[#allocation109_spill] sm:$0xff] }
 0x474   : > { %v7980_v61 = vadd.f32 %v7677_v16, %v6843_v48  ;;  %v8346_v4 = vmul.f32 0.01, %v8202_v50  ;;  %vm8274_vm4 = vcmp.ge.f32.partialorder %v8202_v50, 0.0  ;;  %v14264_v48 = vld [vmem:[#allocation71_spill] sm:$0xff] }
 0x475   : > { %10021 = vst [vmem:[%s13493_s18 + $0x40] sm:$0xff] %v9877_v35   ;;  %v6545_v22 = vpop.f32.mrf.mxu0  ;;  %6736 = vmatmul.mubr.bf16.gmra.mxu0 %v11111_v21  ;;  %v7682_v13 = vpop.f32.mrf.mxu1  ;;  %7873 = vmatmul.mubr.bf16.gmra.mxu1 %v11112_v33  ;;  %v5709_v16 = vadd.f32 %v14264_v48, %v14263_v47 }
 0x476   : > { %v8203_v30 = vadd.f32 %v13469_v14, %v7980_v61  ;;  %v6844_v41 = vadd.f32 %v6545_v22, %v5707_v56  ;;  %9566 = vmatprep.mubr.msk.bf16.mxu0 %vm5185_vm0, %v11113_v37  ;;  %9686 = vmatprep.mubr.msk.bf16.mxu1 %vm5185_vm0, %v11115_v26  ;;  %v8418_v19 = vsel %vm8274_vm4, %v8202_v50, %v8346_v4  ;;  %v14266_v56 = vld [vmem:[#allocation73_spill] sm:$0xff] }
 0x477   : > { %v6547_v12 = vpop.f32.mrf.mxu0  ;;  %v7684_v0 = vpop.f32.mrf.mxu1  ;;  %v5710_v22 = vadd.f32 %v14266_v56, %v14265_v44 }
 0x478   : > { %vm8275_vm5 = vcmp.ge.f32.partialorder %v8203_v30, 0.0  ;;  %v8347_v63 = vmul.f32 0.01, %v8203_v30  ;;  %v7981_v39 = vadd.f32 %v7682_v13, %v6844_v41 }
 0x479   : > { %v6548_v59 = vpop.f32.mrf.mxu0  ;;  %v7685_v60 = vpop.f32.mrf.mxu1 }
 0x47a   : > { %v8419_v43 = vsel %vm8275_vm5, %v8203_v30, %v8347_v63  ;;  %v8204_v11 = vadd.f32 %v13469_v14, %v7981_v39  ;;  %v6845_v46 = vadd.f32 %v6548_v59, %v5708_v38  ;;  %v14267_v59 = vld [vmem:[#allocation75_spill] sm:$0xff] }
 0x47b   : > { %v9882_v31 = vpack.c.bf16 %v8419_v43, %v8418_v19  ;;  %v6550_v45 = vpop.f32.mrf.mxu0  ;;  %v7687_v17 = vpop.f32.mrf.mxu1 }
 0x47c   : > { %v7982_v21 = vadd.f32 %v7685_v60, %v6845_v46  ;;  %v8348_v54 = vmul.f32 0.01, %v8204_v11  ;;  %vm8276_vm0 = vcmp.ge.f32.partialorder %v8204_v11, 0.0  ;;  %v14268_v17 = vld [vmem:[#allocation77_spill] sm:$0xff] }
 0x47d   : > { %10022 = vst [vmem:[%s13493_s18 + $0x48] sm:$0xff] %v9882_v31   ;;  %v6553_v33 = vpop.f32.mrf.mxu0  ;;  %6744 = vmatmul.mubr.bf16.gmra.mxu0 %v11117_v7  ;;  %v7690_v35 = vpop.f32.mrf.mxu1  ;;  %7881 = vmatmul.mubr.bf16.gmra.mxu1 %v11118_v28  ;;  %v5711_v7 = vadd.f32 %v14267_v59, %v13152_v53  ;;  %v5712_v47 = vadd.f32 %v14268_v17, %v13165_v10 }
 0x47e   : > { %v8205_v37 = vadd.f32 %v13469_v14, %v7982_v21  ;;  %v6846_v50 = vadd.f32 %v6553_v33, %v5709_v16  ;;  %v8420_v30 = vsel %vm8276_vm0, %v8204_v11, %v8348_v54 }
 0x47f   : > { %v6555_v3 = vpop.f32.mrf.mxu0  ;;  %v7692_v58 = vpop.f32.mrf.mxu1 }
 0x480   : > { %vm8277_vm6 = vcmp.ge.f32.partialorder %v8205_v37, 0.0  ;;  %v8349_v26 = vmul.f32 0.01, %v8205_v37  ;;  %v7983_v61 = vadd.f32 %v7690_v35, %v6846_v50  ;;  %v14270_v58 = vld [vmem:[#allocation79_spill] sm:$0xff] }
 0x481   : > { %v6556_v4 = vpop.f32.mrf.mxu0  ;;  %v7693_v63 = vpop.f32.mrf.mxu1 }
 0x482   : > { %v8421_v41 = vsel %vm8277_vm6, %v8205_v37, %v8349_v26  ;;  %v8206_v13 = vadd.f32 %v13469_v14, %v7983_v61  ;;  %v6847_v12 = vadd.f32 %v6556_v4, %v5710_v22  ;;  %v14269_v61 = vld [vmem:[#allocation111_spill] sm:$0xff] }
 0x483   : > { %v9887_v39 = vpack.c.bf16 %v8421_v41, %v8420_v30  ;;  %v6558_v0 = vpop.f32.mrf.mxu0  ;;  %v7695_v38 = vpop.f32.mrf.mxu1  ;;  %v5713_v44 = vadd.f32 %v14270_v58, %v14269_v61 }
 0x484   : > { %v7984_v15 = vadd.f32 %v7693_v63, %v6847_v12  ;;  %v8350_v43 = vmul.f32 0.01, %v8206_v13  ;;  %vm8278_vm7 = vcmp.ge.f32.partialorder %v8206_v13, 0.0  ;;  %v14272_v0 = vld [vmem:[#allocation81_spill] sm:$0xff] }
 0x485   : > { %10023 = vst [vmem:[%s13493_s18 + $0x50] sm:$0xff] %v9887_v39   ;;  %v6561_v19 = vpop.f32.mrf.mxu0  ;;  %v7698_v28 = vpop.f32.mrf.mxu1  ;;  %v14271_v39 = vld [vmem:[#allocation76_spill] sm:$0xff] }
 0x486   : > { %v8207_v46 = vadd.f32 %v13469_v14, %v7984_v15  ;;  %v6848_v60 = vadd.f32 %v6561_v19, %v5711_v7  ;;  %v8422_v16 = vsel %vm8278_vm7, %v8206_v13, %v8350_v43  ;;  %v5714_v15 = vadd.f32 %v14272_v0, %v14271_v39 }
 0x487   : > { %v6563_v11 = vpop.f32.mrf.mxu0  ;;  %v7700_v21 = vpop.f32.mrf.mxu1 }
 0x488   : > { %vm8279_vm8 = vcmp.ge.f32.partialorder %v8207_v46, 0.0  ;;  %v8351_v31 = vmul.f32 0.01, %v8207_v46  ;;  %v7985_v45 = vadd.f32 %v7698_v28, %v6848_v60 }
 0x489   : > { %v6564_v48 = vpop.f32.mrf.mxu0  ;;  %v7701_v37 = vpop.f32.mrf.mxu1 }
 0x48a   : > { %v8423_v53 = vsel %vm8279_vm8, %v8207_v46, %v8351_v31  ;;  %v8208_v33 = vadd.f32 %v13469_v14, %v7985_v45  ;;  %v6849_v54 = vadd.f32 %v6564_v48, %v5712_v47  ;;  %v14273_v45 = vld [vmem:[#allocation83_spill] sm:$0xff] }
 0x48b   : > { %v9892_v50 = vpack.c.bf16 %v8423_v53, %v8422_v16  ;;  %v6566_v35 = vpop.f32.mrf.mxu0  ;;  %v7703_v26 = vpop.f32.mrf.mxu1  ;;  %v5715_v21 = vadd.f32 %v14273_v45, %v13178_v25 }
 0x48c   : > { %v7986_v3 = vadd.f32 %v7701_v37, %v6849_v54  ;;  %v8352_v22 = vmul.f32 0.01, %v8208_v33  ;;  %vm8280_vm9 = vcmp.ge.f32.partialorder %v8208_v33, 0.0  ;;  %v14274_v35 = vld [vmem:[#allocation85_spill] sm:$0xff] }
 0x48d   : > { %10024 = vst [vmem:[%s13493_s18 + $0x58] sm:$0xff] %v9892_v50   ;;  %v6569_v56 = vpop.f32.mrf.mxu0  ;;  %v7706_v30 = vpop.f32.mrf.mxu1 }
 0x48e   : > { %v8209_v4 = vadd.f32 %v13469_v14, %v7986_v3  ;;  %v6850_v10 = vadd.f32 %v6569_v56, %v5713_v44  ;;  %v8424_v59 = vsel %vm8280_vm9, %v8208_v33, %v8352_v22  ;;  %v5716_v3 = vadd.f32 %v14274_v35, %v13191_v27 }
 0x48f   : > { %v6571_v41 = vpop.f32.mrf.mxu0  ;;  %v7708_v63 = vpop.f32.mrf.mxu1 }
 0x490   : > { %vm8281_vm10 = vcmp.ge.f32.partialorder %v8209_v4, 0.0  ;;  %v8353_v13 = vmul.f32 0.01, %v8209_v4  ;;  %v7987_v12 = vadd.f32 %v7706_v30, %v6850_v10  ;;  %v14275_v41 = vld [vmem:[#allocation113_spill] sm:$0xff] }
 0x491   : > { %v6572_v38 = vpop.f32.mrf.mxu0  ;;  %v7709_v46 = vpop.f32.mrf.mxu1 }
 0x492   : > { %v8425_v7 = vsel %vm8281_vm10, %v8209_v4, %v8353_v13  ;;  %v8210_v19 = vadd.f32 %v13469_v14, %v7987_v12  ;;  %v6851_v43 = vadd.f32 %v6572_v38, %v5714_v15  ;;  %v14276_v13 = vld [vmem:[#allocation87_spill] sm:$0xff] }
 0x493   : > { %v9897_v60 = vpack.c.bf16 %v8425_v7, %v8424_v59  ;;  %v6574_v28 = vpop.f32.mrf.mxu0  ;;  %v7711_v31 = vpop.f32.mrf.mxu1  ;;  %v5717_v12 = vadd.f32 %v14276_v13, %v14275_v41 }
 0x494   : > { %v7988_v11 = vadd.f32 %v7709_v46, %v6851_v43  ;;  %v8354_v47 = vmul.f32 0.01, %v8210_v19  ;;  %vm8282_vm11 = vcmp.ge.f32.partialorder %v8210_v19, 0.0  ;;  %v14277_v43 = vld [vmem:[#allocation78_spill] sm:$0xff]  ;;  %v14278_v46 = vld [vmem:[#allocation89_spill] sm:$0xff] }
 0x495   : > { %10025 = vst [vmem:[%s13493_s18 + $0x60] sm:$0xff] %v9897_v60   ;;  %v6577_v17 = vpop.f32.mrf.mxu0  ;;  %v7714_v53 = vpop.f32.mrf.mxu1  ;;  %v5718_v60 = vadd.f32 %v14278_v46, %v14277_v43 }
 0x496   : > { %v8211_v48 = vadd.f32 %v13469_v14, %v7988_v11  ;;  %v6852_v16 = vadd.f32 %v6577_v17, %v5715_v21  ;;  %v8426_v61 = vsel %vm8282_vm11, %v8210_v19, %v8354_v47 }
 0x497   : > { %v6579_v33 = vpop.f32.mrf.mxu0  ;;  %v7716_v50 = vpop.f32.mrf.mxu1 }
 0x498   : > { %vm8283_vm12 = vcmp.ge.f32.partialorder %v8211_v48, 0.0  ;;  %v8355_v54 = vmul.f32 0.01, %v8211_v48  ;;  %v7989_v37 = vadd.f32 %v7714_v53, %v6852_v16  ;;  %v14279_v33 = vld [vmem:[#allocation91_spill] sm:$0xff] }
 0x499   : > { %v6580_v26 = vpop.f32.mrf.mxu0  ;;  %v7717_v56 = vpop.f32.mrf.mxu1 }
 0x49a   : > { %v8427_v25 = vsel %vm8283_vm12, %v8211_v48, %v8355_v54  ;;  %v8212_v58 = vadd.f32 %v13469_v14, %v7989_v37  ;;  %v6853_v44 = vadd.f32 %v6580_v26, %v5716_v3  ;;  %v5719_v54 = vadd.f32 %v14279_v33, %v13204_v49 }
 0x49b   : > { %v9902_v22 = vpack.c.bf16 %v8427_v25, %v8426_v61  ;;  %v6582_v4 = vpop.f32.mrf.mxu0  ;;  %v7719_v30 = vpop.f32.mrf.mxu1 }
 0x49c   : > { %v7990_v10 = vadd.f32 %v7717_v56, %v6853_v44  ;;  %v8356_v39 = vmul.f32 0.01, %v8212_v58  ;;  %vm8284_vm13 = vcmp.ge.f32.partialorder %v8212_v58, 0.0  ;;  %v14280_v56 = vld [vmem:[#allocation93_spill] sm:$0xff] }
 0x49d   : > { %10026 = vst [vmem:[%s13493_s18 + $0x68] sm:$0xff] %v9902_v22   ;;  %v6585_v63 = vpop.f32.mrf.mxu0  ;;  %v7722_v15 = vpop.f32.mrf.mxu1  ;;  %v5720_v22 = vadd.f32 %v14280_v56, %v13217_v32 }
 0x49e   : > { %v8213_v0 = vadd.f32 %v13469_v14, %v7990_v10  ;;  %v6854_v27 = vadd.f32 %v6585_v63, %v5717_v12  ;;  %v8428_v11 = vsel %vm8284_vm13, %v8212_v58, %v8356_v39 }
 0x49f   : > { %v6587_v38 = vpop.f32.mrf.mxu0  ;;  %v7724_v19 = vpop.f32.mrf.mxu1 }
 0x4a0   : > { %vm8285_vm14 = vcmp.ge.f32.partialorder %v8213_v0, 0.0  ;;  %v8357_v59 = vmul.f32 0.01, %v8213_v0  ;;  %v7991_v7 = vadd.f32 %v7722_v15, %v6854_v27  ;;  %v14281_v27 = vld [vmem:[#allocation95_spill] sm:$0xff] }
 0x4a1   : > { %v6588_v28 = vpop.f32.mrf.mxu0  ;;  %v7725_v17 = vpop.f32.mrf.mxu1  ;;  %v5721_v15 = vadd.f32 %v14281_v27, %v13199_v18  ;;  %v14285_v27 = vld [vmem:[#allocation64_spill] sm:$0xff] }
 0x4a2   : > { %v8429_v31 = vsel %vm8285_vm14, %v8213_v0, %v8357_v59  ;;  %v8214_v45 = vadd.f32 %v13469_v14, %v7991_v7  ;;  %v6855_v21 = vadd.f32 %v6588_v28, %v5718_v60 }
 0x4a3   : > { %v9907_v47 = vpack.c.bf16 %v8429_v31, %v8428_v11  ;;  %v6590_v48 = vpop.f32.mrf.mxu0  ;;  %v7727_v53 = vpop.f32.mrf.mxu1  ;;  %v14282_v11 = vld [vmem:[#allocation97_spill] sm:$0xff] }
 0x4a4   : > { %v7992_v16 = vadd.f32 %v7725_v17, %v6855_v21  ;;  %v8358_v50 = vmul.f32 0.01, %v8214_v45  ;;  %vm8286_vm15 = vcmp.ge.f32.partialorder %v8214_v45, 0.0  ;;  %v5722_v31 = vadd.f32 %v14282_v11, %v13213_v8  ;;  %v14287_v11 = vld [vmem:[#allocation101_spill] sm:$0xff] }
 0x4a5   : > { %10027 = vst [vmem:[%s13493_s18 + $0x70] sm:$0xff] %v9907_v47   ;;  %v6593_v37 = vpop.f32.mrf.mxu0  ;;  %v7730_v26 = vpop.f32.mrf.mxu1 }
 0x4a6   : > { %v8215_v35 = vadd.f32 %v13469_v14, %v7992_v16  ;;  %v6856_v3 = vadd.f32 %v6593_v37, %v5719_v54  ;;  %v8430_v10 = vsel %vm8286_vm15, %v8214_v45, %v8358_v50  ;;  %v14283_v37 = vld [vmem:[#allocation62_spill] sm:$0xff] }
 0x4a7   : > { %v6595_v61 = vpop.f32.mrf.mxu0  ;;  %v7732_v44 = vpop.f32.mrf.mxu1  ;;  %v5723_v50 = vadd.f32 %v14283_v37, %v13230_v9  ;;  %v14289_v37 = vld [vmem:[#allocation66_spill] sm:$0xff] }
 0x4a8   : > { %vm8287_vm1 = vcmp.ge.f32.partialorder %v8215_v35, 0.0  ;;  %v8359_v25 = vmul.f32 0.01, %v8215_v35  ;;  %v7993_v58 = vadd.f32 %v7730_v26, %v6856_v3 }
 0x4a9   : > { %v6596_v4 = vpop.f32.mrf.mxu0  ;;  %v7733_v13 = vpop.f32.mrf.mxu1 }
 0x4aa   : > { %v8431_v49 = vsel %vm8287_vm1, %v8215_v35, %v8359_v25  ;;  %v8216_v30 = vadd.f32 %v13469_v14, %v7993_v58  ;;  %v6857_v41 = vadd.f32 %v6596_v4, %v5720_v22  ;;  %v14284_v22 = vld [vmem:[#allocation99_spill] sm:$0xff] }
 0x4ab   : > { %v9912_v12 = vpack.c.bf16 %v8431_v49, %v8430_v10  ;;  %v6598_v63 = vpop.f32.mrf.mxu0  ;;  %v7735_v0 = vpop.f32.mrf.mxu1  ;;  %v5724_v4 = vadd.f32 %v14284_v22, %v13243_v57  ;;  %v14290_v22 = vld [vmem:[#allocation82_spill] sm:$0xff] }
 0x4ac   : > { %v7994_v39 = vadd.f32 %v7733_v13, %v6857_v41  ;;  %v8360_v59 = vmul.f32 0.01, %v8216_v30  ;;  %vm8288_vm2 = vcmp.ge.f32.partialorder %v8216_v30, 0.0 }
 0x4ad   : > { %10028 = vst [vmem:[%s13493_s18 + $0x78] sm:$0xff] %v9912_v12   ;;  %v6601_v38 = vpop.f32.mrf.mxu0  ;;  %v7738_v19 = vpop.f32.mrf.mxu1 }
 0x4ae   : > { %v8217_v7 = vadd.f32 %v13469_v14, %v7994_v39  ;;  %v6858_v32 = vadd.f32 %v6601_v38, %v5721_v15  ;;  %v8432_v21 = vsel %vm8288_vm2, %v8216_v30, %v8360_v59  ;;  %v13672_v30 = vld [vmem:[%s13778_s2] ss:$0 sm:$0xff]  ;;  %v5725_v15 = vadd.f32 %v14285_v27, %v13225_v51 }
 0x4af   : > { %v6603_v43 = vpop.f32.mrf.mxu0  ;;  %v7740_v28 = vpop.f32.mrf.mxu1 }
 0x4b0   : > { %vm8289_vm3 = vcmp.ge.f32.partialorder %v8217_v7, 0.0  ;;  %v8361_v46 = vmul.f32 0.01, %v8217_v7  ;;  %v7995_v60 = vadd.f32 %v7738_v19, %v6858_v32  ;;  %v14286_v28 = vld [vmem:[#allocation84_spill] sm:$0xff] }
 0x4b1   : > { %v6604_v45 = vpop.f32.mrf.mxu0  ;;  %v7741_v48 = vpop.f32.mrf.mxu1 }
 0x4b2   : > { %v8433_v18 = vsel %vm8289_vm3, %v8217_v7, %v8361_v46  ;;  %v8218_v17 = vadd.f32 %v13469_v14, %v7995_v60  ;;  %v6859_v47 = vadd.f32 %v6604_v45, %v5722_v31  ;;  %v5726_v31 = vadd.f32 %v14287_v11, %v14286_v28 }
 0x4b3   : > { %v9917_v16 = vpack.c.bf16 %v8433_v18, %v8432_v21  ;;  %v6606_v53 = vpop.f32.mrf.mxu0  ;;  %v7743_v54 = vpop.f32.mrf.mxu1 }
 0x4b4   : > { %v7996_v33 = vadd.f32 %v7741_v48, %v6859_v47  ;;  %v8362_v3 = vmul.f32 0.01, %v8218_v17  ;;  %vm8290_vm4 = vcmp.ge.f32.partialorder %v8218_v17, 0.0  ;;  %v14288_v54 = vld [vmem:[#allocation80_spill] sm:$0xff] }
 0x4b5   : > { %10029 = vst [vmem:[%s13493_s18 + $0x80] sm:$0xff] %v9917_v16   ;;  %v6609_v35 = vpop.f32.mrf.mxu0  ;;  %v7746_v61 = vpop.f32.mrf.mxu1 }
 0x4b6   : > { %v8219_v26 = vadd.f32 %v13469_v14, %v7996_v33  ;;  %v6860_v8 = vadd.f32 %v6609_v35, %v5723_v50  ;;  %v8434_v49 = vsel %vm8290_vm4, %v8218_v17, %v8362_v3  ;;  %v5727_v50 = vadd.f32 %v14289_v37, %v14288_v54 }
 0x4b7   : > { %v6611_v25 = vpop.f32.mrf.mxu0  ;;  %v7748_v56 = vpop.f32.mrf.mxu1 }
 0x4b8   : > { %vm8291_vm5 = vcmp.ge.f32.partialorder %v8219_v26, 0.0  ;;  %v8363_v58 = vmul.f32 0.01, %v8219_v26  ;;  %v7997_v44 = vadd.f32 %v7746_v61, %v6860_v8 }
 0x4b9   : > { %v6612_v10 = vpop.f32.mrf.mxu0  ;;  %v7749_v13 = vpop.f32.mrf.mxu1 }
 0x4ba   : > { %v8435_v9 = vsel %vm8291_vm5, %v8219_v26, %v8363_v58  ;;  %v8220_v14 = vadd.f32 %v13672_v30, %v7997_v44  ;;  %v6861_v41 = vadd.f32 %v6612_v10, %v5724_v4  ;;  %v14291_v4 = vld [vmem:[#allocation103_spill] sm:$0xff] }
 0x4bb   : > { %v9922_v12 = vpack.c.bf16 %v8435_v9, %v8434_v49  ;;  %v6614_v63 = vpop.f32.mrf.mxu0  ;;  %v7751_v0 = vpop.f32.mrf.mxu1  ;;  %v5728_v10 = vadd.f32 %v14291_v4, %v14290_v22 }
 0x4bc   : > { %v7998_v39 = vadd.f32 %v7749_v13, %v6861_v41  ;;  %v8364_v38 = vmul.f32 0.01, %v8220_v14  ;;  %vm8292_vm0 = vcmp.ge.f32.partialorder %v8220_v14, 0.0 }
 0x4bd   : > { %10030 = vst [vmem:[%s13493_s18 + $0x88] sm:$0xff] %v9922_v12   ;;  %v6617_v57 = vpop.f32.mrf.mxu0  ;;  %v7754_v32 = vpop.f32.mrf.mxu1 }
 0x4be   : > { %v8221_v59 = vadd.f32 %v13672_v30, %v7998_v39  ;;  %v6862_v7 = vadd.f32 %v6617_v57, %v5725_v15  ;;  %v8436_v21 = vsel %vm8292_vm0, %v8220_v14, %v8364_v38 }
 0x4bf   : > { %v6619_v19 = vpop.f32.mrf.mxu0  ;;  %v7756_v60 = vpop.f32.mrf.mxu1 }
 0x4c0   : > { %vm8293_vm6 = vcmp.ge.f32.partialorder %v8221_v59, 0.0  ;;  %v8365_v43 = vmul.f32 0.01, %v8221_v59  ;;  %v7999_v46 = vadd.f32 %v7754_v32, %v6862_v7 }
 0x4c1   : > { %v6620_v45 = vpop.f32.mrf.mxu0  ;;  %v7757_v47 = vpop.f32.mrf.mxu1 }
 0x4c2   : > { %v8437_v51 = vsel %vm8293_vm6, %v8221_v59, %v8365_v43  ;;  %v8222_v18 = vadd.f32 %v13672_v30, %v7999_v46  ;;  %v6863_v17 = vadd.f32 %v6620_v45, %v5726_v31  ;;  %v14292_v59 = vld [vmem:[#allocation86_spill] sm:$0xff] }
 0x4c3   : > { %v9927_v48 = vpack.c.bf16 %v8437_v51, %v8436_v21  ;;  %v6622_v16 = vpop.f32.mrf.mxu0  ;;  %v7759_v33 = vpop.f32.mrf.mxu1  ;;  %v14293_v21 = vld [vmem:[#allocation92_spill] sm:$0xff] }
 0x4c4   : > { %v8000_v53 = vadd.f32 %v7757_v47, %v6863_v17  ;;  %v8366_v3 = vmul.f32 0.01, %v8222_v18  ;;  %vm8294_vm7 = vcmp.ge.f32.partialorder %v8222_v18, 0.0 }
 0x4c5   : > { %10031 = vst [vmem:[%s13493_s18 + $0x90] sm:$0xff] %v9927_v48   ;;  %v6625_v35 = vpop.f32.mrf.mxu0  ;;  %v7762_v61 = vpop.f32.mrf.mxu1 }
 0x4c6   : > { %v8223_v26 = vadd.f32 %v13672_v30, %v8000_v53  ;;  %v6864_v8 = vadd.f32 %v6625_v35, %v5727_v50  ;;  %v8438_v9 = vsel %vm8294_vm7, %v8222_v18, %v8366_v3 }
 0x4c7   : > { %v6627_v25 = vpop.f32.mrf.mxu0  ;;  %v7764_v56 = vpop.f32.mrf.mxu1 }
 0x4c8   : > { %vm8295_vm8 = vcmp.ge.f32.partialorder %v8223_v26, 0.0  ;;  %v8367_v58 = vmul.f32 0.01, %v8223_v26  ;;  %v8001_v44 = vadd.f32 %v7762_v61, %v6864_v8 }
 0x4c9   : > { %v6628_v49 = vpop.f32.mrf.mxu0  ;;  %v7765_v12 = vpop.f32.mrf.mxu1 }
 0x4ca   : > { %v8439_v14 = vsel %vm8295_vm8, %v8223_v26, %v8367_v58  ;;  %v8224_v41 = vadd.f32 %v13672_v30, %v8001_v44  ;;  %v6865_v13 = vadd.f32 %v6628_v49, %v5728_v10 }
 0x4cb   : > { %v9932_v63 = vpack.c.bf16 %v8439_v14, %v8438_v9  ;;  %v6630_v39 = vpop.f32.mrf.mxu0  ;;  %v7767_v27 = vpop.f32.mrf.mxu1 }
 0x4cc   : > { %v8002_v0 = vadd.f32 %v7765_v12, %v6865_v13  ;;  %v8368_v57 = vmul.f32 0.01, %v8224_v41  ;;  %vm8296_vm9 = vcmp.ge.f32.partialorder %v8224_v41, 0.0  ;;  %v14294_v13 = vld [vmem:[#allocation88_spill] sm:$0xff] }
 0x4cd   : > { %10032 = vst [vmem:[%s13493_s18 + $0x98] sm:$0xff] %v9932_v63   ;;  %v6633_v15 = vpop.f32.mrf.mxu0  ;;  %v7770_v32 = vpop.f32.mrf.mxu1 }
 0x4ce   : > { %v8225_v38 = vadd.f32 %v13672_v30, %v8002_v0  ;;  %v6866_v7 = vadd.f32 %v6633_v15, %v14292_v59  ;;  %v8440_v11 = vsel %vm8296_vm9, %v8224_v41, %v8368_v57 }
 0x4cf   : > { %v6635_v19 = vpop.f32.mrf.mxu0  ;;  %v7772_v60 = vpop.f32.mrf.mxu1 }
 0x4d0   : > { %vm8297_vm10 = vcmp.ge.f32.partialorder %v8225_v38, 0.0  ;;  %v8369_v43 = vmul.f32 0.01, %v8225_v38  ;;  %v8003_v46 = vadd.f32 %v7770_v32, %v6866_v7  ;;  %v14295_v7 = vld [vmem:[#allocation94_spill] sm:$0xff] }
 0x4d1   : > { %v6636_v28 = vpop.f32.mrf.mxu0  ;;  %v7773_v18 = vpop.f32.mrf.mxu1 }
 0x4d2   : > { %v8441_v31 = vsel %vm8297_vm10, %v8225_v38, %v8369_v43  ;;  %v8226_v45 = vadd.f32 %v13672_v30, %v8003_v46  ;;  %v6867_v51 = vadd.f32 %v6636_v28, %v14293_v21 }
 0x4d3   : > { %v9937_v17 = vpack.c.bf16 %v8441_v31, %v8440_v11  ;;  %v6638_v47 = vpop.f32.mrf.mxu0  ;;  %v7775_v16 = vpop.f32.mrf.mxu1 }
 0x4d4   : > { %v8004_v48 = vadd.f32 %v7773_v18, %v6867_v51  ;;  %v8370_v33 = vmul.f32 0.01, %v8226_v45  ;;  %vm8298_vm11 = vcmp.ge.f32.partialorder %v8226_v45, 0.0 }
 0x4d5   : > { %10033 = vst [vmem:[%s13493_s18 + $0xa0] sm:$0xff] %v9937_v17   ;;  %v6641_v53 = vpop.f32.mrf.mxu0  ;;  %v7778_v50 = vpop.f32.mrf.mxu1 }
 0x4d6   : > { %v8227_v54 = vadd.f32 %v13672_v30, %v8004_v48  ;;  %v6868_v37 = vadd.f32 %v6641_v53, %v13294_v6  ;;  %v8442_v25 = vsel %vm8298_vm11, %v8226_v45, %v8370_v33 }
 0x4d7   : > { %v6643_v35 = vpop.f32.mrf.mxu0  ;;  %v7780_v8 = vpop.f32.mrf.mxu1 }
 0x4d8   : > { %vm8299_vm12 = vcmp.ge.f32.partialorder %v8227_v54, 0.0  ;;  %v8371_v3 = vmul.f32 0.01, %v8227_v54  ;;  %v8005_v26 = vadd.f32 %v7778_v50, %v6868_v37 }
 0x4d9   : > { %v6644_v61 = vpop.f32.mrf.mxu0  ;;  %v7781_v22 = vpop.f32.mrf.mxu1 }
 0x4da   : > { %v8443_v58 = vsel %vm8299_vm12, %v8227_v54, %v8371_v3  ;;  %v8228_v44 = vadd.f32 %v13672_v30, %v8005_v26  ;;  %v6869_v56 = vadd.f32 %v6644_v61, %v13308_v29 }
 0x4db   : > { %v9942_v4 = vpack.c.bf16 %v8443_v58, %v8442_v25  ;;  %v6646_v10 = vpop.f32.mrf.mxu0  ;;  %v7783_v6 = vpop.f32.mrf.mxu1  ;;  %v14296_v58 = vld [vmem:[#allocation90_spill] sm:$0xff] }
 0x4dc   : > { %v8006_v49 = vadd.f32 %v7781_v22, %v6869_v56  ;;  %v8372_v14 = vmul.f32 0.01, %v8228_v44  ;;  %vm8300_vm13 = vcmp.ge.f32.partialorder %v8228_v44, 0.0 }
 0x4dd   : > { %10034 = vst [vmem:[%s13493_s18 + $0xa8] sm:$0xff] %v9942_v4   ;;  %v6649_v9 = vpop.f32.mrf.mxu0  ;;  %v7786_v63 = vpop.f32.mrf.mxu1 }
 0x4de   : > { %v8229_v41 = vadd.f32 %v13672_v30, %v8006_v49  ;;  %v6870_v12 = vadd.f32 %v6649_v9, %v14294_v13  ;;  %v8444_v57 = vsel %vm8300_vm13, %v8228_v44, %v8372_v14 }
 0x4df   : > { %v6651_v39 = vpop.f32.mrf.mxu0  ;;  %v7788_v29 = vpop.f32.mrf.mxu1 }
 0x4e0   : > { %vm8301_vm14 = vcmp.ge.f32.partialorder %v8229_v41, 0.0  ;;  %v8373_v0 = vmul.f32 0.01, %v8229_v41  ;;  %v8007_v27 = vadd.f32 %v7786_v63, %v6870_v12 }
 0x4e1   : > { %v6652_v15 = vpop.f32.mrf.mxu0  ;;  %v7789_v19 = vpop.f32.mrf.mxu1 }
 0x4e2   : > { %v8445_v38 = vsel %vm8301_vm14, %v8229_v41, %v8373_v0  ;;  %v8230_v59 = vadd.f32 %v13672_v30, %v8007_v27  ;;  %v6871_v32 = vadd.f32 %v6652_v15, %v14295_v7  ;;  %v14297_v41 = vld [vmem:[#allocation100_spill] sm:$0xff] }
 0x4e3   : > { %v9947_v43 = vpack.c.bf16 %v8445_v38, %v8444_v57  ;;  %v6654_v46 = vpop.f32.mrf.mxu0  ;;  %v7791_v28 = vpop.f32.mrf.mxu1 }
 0x4e4   : > { %v8008_v60 = vadd.f32 %v7789_v19, %v6871_v32  ;;  %v8374_v31 = vmul.f32 0.01, %v8230_v59  ;;  %vm8302_vm15 = vcmp.ge.f32.partialorder %v8230_v59, 0.0 }
 0x4e5   : > { %10035 = vst [vmem:[%s13493_s18 + $0xb0] sm:$0xff] %v9947_v43   ;;  %v6657_v11 = vpop.f32.mrf.mxu0  ;;  %v7794_v51 = vpop.f32.mrf.mxu1 }
 0x4e6   : > { %v8231_v45 = vadd.f32 %v13672_v30, %v8008_v60  ;;  %v6872_v21 = vadd.f32 %v6657_v11, %v13324_v2  ;;  %v8446_v53 = vsel %vm8302_vm15, %v8230_v59, %v8374_v31 }
 0x4e7   : > { %v6659_v18 = vpop.f32.mrf.mxu0  ;;  %v7796_v48 = vpop.f32.mrf.mxu1 }
 0x4e8   : > { %vm8303_vm1 = vcmp.ge.f32.partialorder %v8231_v45, 0.0  ;;  %v8375_v17 = vmul.f32 0.01, %v8231_v45  ;;  %v8009_v47 = vadd.f32 %v7794_v51, %v6872_v21 }
 0x4e9   : > { %v6660_v16 = vpop.f32.mrf.mxu0  ;;  %v7797_v50 = vpop.f32.mrf.mxu1 }
 0x4ea   : > { %v8447_v33 = vsel %vm8303_vm1, %v8231_v45, %v8375_v17  ;;  %v8232_v54 = vadd.f32 %v13672_v30, %v8009_v47  ;;  %v6873_v37 = vadd.f32 %v6660_v16, %v13338_v34  ;;  %v14298_v16 = vld [vmem:[#allocation96_spill] sm:$0xff] }
 0x4eb   : > { %v9952_v35 = vpack.c.bf16 %v8447_v33, %v8446_v53  ;;  %v6662_v3 = vpop.f32.mrf.mxu0  ;;  %v7799_v2 = vpop.f32.mrf.mxu1 }
 0x4ec   : > { %v8010_v26 = vadd.f32 %v7797_v50, %v6873_v37  ;;  %v8376_v61 = vmul.f32 0.01, %v8232_v54  ;;  %vm8304_vm2 = vcmp.ge.f32.partialorder %v8232_v54, 0.0 }
 0x4ed   : > { %10036 = vst [vmem:[%s13493_s18 + $0xb8] sm:$0xff] %v9952_v35   ;;  %v6665_v8 = vpop.f32.mrf.mxu0  ;;  %v7802_v56 = vpop.f32.mrf.mxu1 }
 0x4ee   : > { %v8233_v25 = vadd.f32 %v13672_v30, %v8010_v26  ;;  %v6874_v44 = vadd.f32 %v6665_v8, %v14296_v58  ;;  %v8448_v6 = vsel %vm8304_vm2, %v8232_v54, %v8376_v61  ;;  %v14299_v8 = vld [vmem:[#allocation102_spill] sm:$0xff] }
 0x4ef   : > { %v6667_v22 = vpop.f32.mrf.mxu0  ;;  %v7804_v34 = vpop.f32.mrf.mxu1 }
 0x4f0   : > { %vm8305_vm3 = vcmp.ge.f32.partialorder %v8233_v25, 0.0  ;;  %v8377_v4 = vmul.f32 0.01, %v8233_v25  ;;  %v8011_v10 = vadd.f32 %v7802_v56, %v6874_v44 }
 0x4f1   : > { %v6668_v49 = vpop.f32.mrf.mxu0  ;;  %v7805_v12 = vpop.f32.mrf.mxu1 }
 0x4f2   : > { %v8449_v9 = vsel %vm8305_vm3, %v8233_v25, %v8377_v4  ;;  %v8234_v14 = vadd.f32 %v13672_v30, %v8011_v10  ;;  %v6875_v13 = vadd.f32 %v6668_v49, %v14297_v41 }
 0x4f3   : > { %v9957_v63 = vpack.c.bf16 %v8449_v9, %v8448_v6  ;;  %v6670_v39 = vpop.f32.mrf.mxu0  ;;  %v7807_v27 = vpop.f32.mrf.mxu1 }
 0x4f4   : > { %v8012_v0 = vadd.f32 %v7805_v12, %v6875_v13  ;;  %v8378_v15 = vmul.f32 0.01, %v8234_v14  ;;  %vm8306_vm4 = vcmp.ge.f32.partialorder %v8234_v14, 0.0 }
 0x4f5   : > { %10037 = vst [vmem:[%s13493_s18 + $0xc0] sm:$0xff] %v9957_v63   ;;  %v6673_v29 = vpop.f32.mrf.mxu0  ;;  %v7810_v59 = vpop.f32.mrf.mxu1 }
 0x4f6   : > { %v8235_v57 = vadd.f32 %v13672_v30, %v8012_v0  ;;  %v6876_v38 = vadd.f32 %v6673_v29, %v13354_v52  ;;  %v8450_v60 = vsel %vm8306_vm4, %v8234_v14, %v8378_v15 }
 0x4f7   : > { %v6675_v7 = vpop.f32.mrf.mxu0  ;;  %v7812_v43 = vpop.f32.mrf.mxu1 }
 0x4f8   : > { %vm8307_vm5 = vcmp.ge.f32.partialorder %v8235_v57, 0.0  ;;  %v8379_v32 = vmul.f32 0.01, %v8235_v57  ;;  %v8013_v19 = vadd.f32 %v7810_v59, %v6876_v38 }
 0x4f9   : > { %v6676_v46 = vpop.f32.mrf.mxu0  ;;  %v7813_v45 = vpop.f32.mrf.mxu1 }
 0x4fa   : > { %v8451_v28 = vsel %vm8307_vm5, %v8235_v57, %v8379_v32  ;;  %v8236_v11 = vadd.f32 %v13672_v30, %v8013_v19  ;;  %v6877_v31 = vadd.f32 %v6676_v46, %v13368_v24  ;;  %v14300_v19 = vld [vmem:[#allocation98_spill] sm:$0xff] }
 0x4fb   : > { %v9962_v21 = vpack.c.bf16 %v8451_v28, %v8450_v60  ;;  %v6678_v51 = vpop.f32.mrf.mxu0  ;;  %v7815_v52 = vpop.f32.mrf.mxu1 }
 0x4fc   : > { %v8014_v18 = vadd.f32 %v7813_v45, %v6877_v31  ;;  %v8380_v47 = vmul.f32 0.01, %v8236_v11  ;;  %vm8308_vm0 = vcmp.ge.f32.partialorder %v8236_v11, 0.0 }
 0x4fd   : > { %10038 = vst [vmem:[%s13493_s18 + $0xc8] sm:$0xff] %v9962_v21   ;;  %v6681_v17 = vpop.f32.mrf.mxu0  ;;  %v7818_v33 = vpop.f32.mrf.mxu1 }
 0x4fe   : > { %v8237_v48 = vadd.f32 %v13672_v30, %v8014_v18  ;;  %v6878_v53 = vadd.f32 %v6681_v17, %v14298_v16  ;;  %v8452_v3 = vsel %vm8308_vm0, %v8236_v11, %v8380_v47  ;;  %v14301_v18 = vld [vmem:[#allocation108_spill] sm:$0xff] }
 0x4ff   : > { %v6683_v54 = vpop.f32.mrf.mxu0  ;;  %v7820_v24 = vpop.f32.mrf.mxu1 }
 0x500   : > { %vm8309_vm6 = vcmp.ge.f32.partialorder %v8237_v48, 0.0  ;;  %v8381_v37 = vmul.f32 0.01, %v8237_v48  ;;  %v8015_v50 = vadd.f32 %v7818_v33, %v6878_v53 }
 0x501   : > { %v6684_v35 = vpop.f32.mrf.mxu0  ;;  %v7821_v25 = vpop.f32.mrf.mxu1 }
 0x502   : > { %v8453_v26 = vsel %vm8309_vm6, %v8237_v48, %v8381_v37  ;;  %v8238_v2 = vadd.f32 %v13672_v30, %v8015_v50  ;;  %v6879_v61 = vadd.f32 %v6684_v35, %v14299_v8 }
 0x503   : > { %v9967_v58 = vpack.c.bf16 %v8453_v26, %v8452_v3  ;;  %v6686_v44 = vpop.f32.mrf.mxu0  ;;  %v7823_v22 = vpop.f32.mrf.mxu1 }
 0x504   : > { %v8016_v56 = vadd.f32 %v7821_v25, %v6879_v61  ;;  %v8382_v10 = vmul.f32 0.01, %v8238_v2  ;;  %vm8310_vm7 = vcmp.ge.f32.partialorder %v8238_v2, 0.0  ;;  %v14302_v44 = vld [vmem:[#allocation106_spill] sm:$0xff] }
 0x505   : > { %10039 = vst [vmem:[%s13493_s18 + $0xd0] sm:$0xff] %v9967_v58   ;;  %v6689_v4 = vpop.f32.mrf.mxu0  ;;  %v7826_v6 = vpop.f32.mrf.mxu1 }
 0x506   : > { %v8239_v34 = vadd.f32 %v13672_v30, %v8016_v56  ;;  %v6880_v49 = vadd.f32 %v6689_v4, %v13384_v40  ;;  %v8454_v63 = vsel %vm8310_vm7, %v8238_v2, %v8382_v10 }
 0x507   : > { %v6691_v9 = vpop.f32.mrf.mxu0  ;;  %v7828_v13 = vpop.f32.mrf.mxu1 }
 0x508   : > { %vm8311_vm8 = vcmp.ge.f32.partialorder %v8239_v34, 0.0  ;;  %v8383_v14 = vmul.f32 0.01, %v8239_v34  ;;  %v8017_v41 = vadd.f32 %v7826_v6, %v6880_v49 }
 0x509   : > { %v6692_v12 = vpop.f32.mrf.mxu0  ;;  %v7829_v29 = vpop.f32.mrf.mxu1 }
 0x50a   : > { %v8455_v39 = vsel %vm8311_vm8, %v8239_v34, %v8383_v14  ;;  %v8240_v0 = vadd.f32 %v13672_v30, %v8017_v41  ;;  %v6881_v27 = vadd.f32 %v6692_v12, %v13396_v42  ;;  %v14303_v14 = vld [vmem:[#allocation104_spill] sm:$0xff] }
 0x50b   : > { %v9972_v15 = vpack.c.bf16 %v8455_v39, %v8454_v63  ;;  %v6694_v57 = vpop.f32.mrf.mxu0  ;;  %v7831_v40 = vpop.f32.mrf.mxu1 }
 0x50c   : > { %v8018_v38 = vadd.f32 %v7829_v29, %v6881_v27  ;;  %v8384_v7 = vmul.f32 0.01, %v8240_v0  ;;  %vm8312_vm9 = vcmp.ge.f32.partialorder %v8240_v0, 0.0 }
 0x50d   : > { %10040 = vst [vmem:[%s13493_s18 + $0xd8] sm:$0xff] %v9972_v15   ;;  %v6697_v59 = vpop.f32.mrf.mxu0  ;;  %v7834_v46 = vpop.f32.mrf.mxu1 }
 0x50e   : > { %v8241_v32 = vadd.f32 %v13672_v30, %v8018_v38  ;;  %v6882_v43 = vadd.f32 %v6697_v59, %v14300_v19  ;;  %v8456_v45 = vsel %vm8312_vm9, %v8240_v0, %v8384_v7  ;;  %v14304_v38 = vld [vmem:[#allocation110_spill] sm:$0xff] }
 0x50f   : > { %v6699_v60 = vpop.f32.mrf.mxu0  ;;  %v7836_v42 = vpop.f32.mrf.mxu1 }
 0x510   : > { %vm8313_vm10 = vcmp.ge.f32.partialorder %v8241_v32, 0.0  ;;  %v8385_v28 = vmul.f32 0.01, %v8241_v32  ;;  %v8019_v11 = vadd.f32 %v7834_v46, %v6882_v43 }
 0x511   : > { %v6700_v31 = vpop.f32.mrf.mxu0  ;;  %v7837_v17 = vpop.f32.mrf.mxu1 }
 0x512   : > { %v8457_v21 = vsel %vm8313_vm10, %v8241_v32, %v8385_v28  ;;  %v8242_v51 = vadd.f32 %v13672_v30, %v8019_v11  ;;  %v6883_v52 = vadd.f32 %v6700_v31, %v14301_v18 }
 0x513   : > { %v9977_v47 = vpack.c.bf16 %v8457_v21, %v8456_v45  ;;  %v6702_v48 = vpop.f32.mrf.mxu0  ;;  %v7839_v53 = vpop.f32.mrf.mxu1 }
 0x514   : > { %v8020_v16 = vadd.f32 %v7837_v17, %v6883_v52  ;;  %v8386_v54 = vmul.f32 0.01, %v8242_v51  ;;  %vm8314_vm11 = vcmp.ge.f32.partialorder %v8242_v51, 0.0 }
 0x515   : > { %10041 = vst [vmem:[%s13493_s18 + $0xe0] sm:$0xff] %v9977_v47   ;;  %v6705_v33 = vpop.f32.mrf.mxu0  ;;  %v7842_v24 = vpop.f32.mrf.mxu1 }
 0x516   : > { %v8243_v37 = vadd.f32 %v13672_v30, %v8020_v16  ;;  %v6884_v50 = vadd.f32 %v6705_v33, %v13410_v23  ;;  %v8458_v61 = vsel %vm8314_vm11, %v8242_v51, %v8386_v54 }
 0x517   : > { %v6707_v35 = vpop.f32.mrf.mxu0  ;;  %v7844_v2 = vpop.f32.mrf.mxu1 }
 0x518   : > { %vm8315_vm12 = vcmp.ge.f32.partialorder %v8243_v37, 0.0  ;;  %v8387_v3 = vmul.f32 0.01, %v8243_v37  ;;  %v8021_v26 = vadd.f32 %v7842_v24, %v6884_v50  ;;  %v14305_v35 = vld [vmem:[#allocation115_spill] sm:$0xff] }
 0x519   : > { %v6708_v8 = vpop.f32.mrf.mxu0  ;;  %v7845_v22 = vpop.f32.mrf.mxu1 }
 0x51a   : > { %v8459_v25 = vsel %vm8315_vm12, %v8243_v37, %v8387_v3  ;;  %v8244_v58 = vadd.f32 %v13672_v30, %v8021_v26  ;;  %v6885_v56 = vadd.f32 %v6708_v8, %v14302_v44 }
 0x51b   : > { %v9982_v4 = vpack.c.bf16 %v8459_v25, %v8458_v61  ;;  %v6710_v10 = vpop.f32.mrf.mxu0  ;;  %v7847_v23 = vpop.f32.mrf.mxu1 }
 0x51c   : > { %v8022_v34 = vadd.f32 %v7845_v22, %v6885_v56  ;;  %v8388_v6 = vmul.f32 0.01, %v8244_v58  ;;  %vm8316_vm13 = vcmp.ge.f32.partialorder %v8244_v58, 0.0  ;;  %v14306_v22 = vld [vmem:[#allocation112_spill] sm:$0xff] }
 0x51d   : > { %10042 = vst [vmem:[%s13493_s18 + $0xe8] sm:$0xff] %v9982_v4   ;;  %v6713_v49 = vpop.f32.mrf.mxu0  ;;  %v7850_v13 = vpop.f32.mrf.mxu1 }
 0x51e   : > { %v8245_v9 = vadd.f32 %v13672_v30, %v8022_v34  ;;  %v6886_v41 = vadd.f32 %v6713_v49, %v14303_v14  ;;  %v8460_v29 = vsel %vm8316_vm13, %v8244_v58, %v8388_v6 }
 0x51f   : > { %v6715_v12 = vpop.f32.mrf.mxu0  ;;  %v7852_v0 = vpop.f32.mrf.mxu1 }
 0x520   : > { %vm8317_vm14 = vcmp.ge.f32.partialorder %v8245_v9, 0.0  ;;  %v8389_v63 = vmul.f32 0.01, %v8245_v9  ;;  %v8023_v39 = vadd.f32 %v7850_v13, %v6886_v41 }
 0x521   : > { %v6716_v27 = vpop.f32.mrf.mxu0  ;;  %v7853_v59 = vpop.f32.mrf.mxu1 }
 0x522   : > { %v8461_v15 = vsel %vm8317_vm14, %v8245_v9, %v8389_v63  ;;  %v8246_v57 = vadd.f32 %v13672_v30, %v8023_v39  ;;  %v6887_v40 = vadd.f32 %v6716_v27, %v14304_v38 }
 0x523   : > { %v9987_v7 = vpack.c.bf16 %v8461_v15, %v8460_v29  ;;  %v6718_v32 = vpop.f32.mrf.mxu0  ;;  %v7855_v43 = vpop.f32.mrf.mxu1 }
 0x524   : > { %v8024_v19 = vadd.f32 %v7853_v59, %v6887_v40  ;;  %v8390_v60 = vmul.f32 0.01, %v8246_v57  ;;  %vm8318_vm15 = vcmp.ge.f32.partialorder %v8246_v57, 0.0 }
 0x525   : > { %10043 = vst [vmem:[%s13493_s18 + $0xf0] sm:$0xff] %v9987_v7   ;;  %v6721_v46 = vpop.f32.mrf.mxu0  ;;  %v7858_v42 = vpop.f32.mrf.mxu1 }
 0x526   : > { %v8247_v28 = vadd.f32 %v13672_v30, %v8024_v19  ;;  %v6888_v11 = vadd.f32 %v6721_v46, %v13435_v55  ;;  %v8462_v52 = vsel %vm8318_vm15, %v8246_v57, %v8390_v60 }
 0x527   : > { %v6723_v31 = vpop.f32.mrf.mxu0  ;;  %v7860_v51 = vpop.f32.mrf.mxu1 }
 0x528   : > { %vm8319_vm1 = vcmp.ge.f32.partialorder %v8247_v28, 0.0  ;;  %v8391_v45 = vmul.f32 0.01, %v8247_v28  ;;  %v8025_v21 = vadd.f32 %v7858_v42, %v6888_v11 }
 0x529   : > { %v6724_v18 = vpop.f32.mrf.mxu0  ;;  %v7861_v16 = vpop.f32.mrf.mxu1 }
 0x52a   : > { %v8463_v17 = vsel %vm8319_vm1, %v8247_v28, %v8391_v45  ;;  %v8248_v47 = vadd.f32 %v13672_v30, %v8025_v21  ;;  %v6889_v48 = vadd.f32 %v6724_v18, %v13446_v1 }
 0x52b   : > { %v9992_v53 = vpack.c.bf16 %v8463_v17, %v8462_v52  ;;  %v6726_v33 = vpop.f32.mrf.mxu0  ;;  %v7863_v55 = vpop.f32.mrf.mxu1 }
 0x52c   : > { %v8026_v54 = vadd.f32 %v7861_v16, %v6889_v48  ;;  %v8392_v50 = vmul.f32 0.01, %v8248_v47  ;;  %vm8320_vm2 = vcmp.ge.f32.partialorder %v8248_v47, 0.0 }
 0x52d   : > { %10044 = vst [vmem:[%s13493_s18 + $0xf8] sm:$0xff] %v9992_v53   ;;  %v6729_v37 = vpop.f32.mrf.mxu0  ;;  %v7866_v26 = vpop.f32.mrf.mxu1 }
 0x52e   : > { %v8249_v24 = vadd.f32 %v13672_v30, %v8026_v54  ;;  %v6890_v3 = vadd.f32 %v6729_v37, %v14305_v35  ;;  %v8464_v58 = vsel %vm8320_vm2, %v8248_v47, %v8392_v50 }
 0x52f   : > { %v6731_v2 = vpop.f32.mrf.mxu0  ;;  %v7868_v1 = vpop.f32.mrf.mxu1 }
 0x530   : > { %vm8321_vm3 = vcmp.ge.f32.partialorder %v8249_v24, 0.0  ;;  %v8393_v8 = vmul.f32 0.01, %v8249_v24  ;;  %v8027_v61 = vadd.f32 %v7866_v26, %v6890_v3 }
 0x531   : > { %v6732_v25 = vpop.f32.mrf.mxu0  ;;  %v7869_v10 = vpop.f32.mrf.mxu1 }
 0x532   : > { %v8465_v44 = vsel %vm8321_vm3, %v8249_v24, %v8393_v8  ;;  %v8250_v56 = vadd.f32 %v13672_v30, %v8027_v61  ;;  %v6891_v4 = vadd.f32 %v6732_v25, %v14306_v22 }
 0x533   : > { %v9997_v34 = vpack.c.bf16 %v8465_v44, %v8464_v58  ;;  %v6734_v23 = vpop.f32.mrf.mxu0  ;;  %v7871_v6 = vpop.f32.mrf.mxu1 }
 0x534   : > { %v8028_v49 = vadd.f32 %v7869_v10, %v6891_v4  ;;  %v8394_v14 = vmul.f32 0.01, %v8250_v56  ;;  %vm8322_vm4 = vcmp.ge.f32.partialorder %v8250_v56, 0.0 }
 0x535   : > { %10045 = vst [vmem:[%s13493_s18 + $0x100] sm:$0xff] %v9997_v34   ;;  %v6737_v9 = vpop.f32.mrf.mxu0  ;;  %v7874_v12 = vpop.f32.mrf.mxu1 }
 0x536   : > { %v8251_v41 = vadd.f32 %v13672_v30, %v8028_v49  ;;  %v6892_v13 = vadd.f32 %v6737_v9, %v13460_v20  ;;  %v8466_v15 = vsel %vm8322_vm4, %v8250_v56, %v8394_v14 }
 0x537   : > { %v6739_v63 = vpop.f32.mrf.mxu0  ;;  %v7876_v27 = vpop.f32.mrf.mxu1 }
 0x538   : > { %vm8323_vm5 = vcmp.ge.f32.partialorder %v8251_v41, 0.0  ;;  %v8395_v39 = vmul.f32 0.01, %v8251_v41  ;;  %v8029_v0 = vadd.f32 %v7874_v12, %v6892_v13 }
 0x539   : > { %v6740_v29 = vpop.f32.mrf.mxu0  ;;  %v7877_v59 = vpop.f32.mrf.mxu1 }
 0x53a   : > { %v8467_v57 = vsel %vm8323_vm5, %v8251_v41, %v8395_v39  ;;  %v8252_v38 = vadd.f32 %v13672_v30, %v8029_v0  ;;  %v6893_v40 = vadd.f32 %v6740_v29, %v13474_v5 }
 0x53b   : > { %v10002_v7 = vpack.c.bf16 %v8467_v57, %v8466_v15  ;;  %v6742_v32 = vpop.f32.mrf.mxu0  ;;  %v7879_v20 = vpop.f32.mrf.mxu1 }
 0x53c   : > { %v8030_v19 = vadd.f32 %v7877_v59, %v6893_v40  ;;  %v8396_v46 = vmul.f32 0.01, %v8252_v38  ;;  %vm8324_vm0 = vcmp.ge.f32.partialorder %v8252_v38, 0.0 }
 0x53d   : > { %10046 = vst [vmem:[%s13493_s18 + $0x108] sm:$0xff] %v10002_v7   ;;  %v6745_v43 = vpop.f32.mrf.mxu0  ;;  %v7882_v11 = vpop.f32.mrf.mxu1 }
 0x53e   : > { %v8253_v60 = vadd.f32 %v13672_v30, %v8030_v19  ;;  %v6894_v28 = vadd.f32 %v6745_v43, %v13449_v36  ;;  %v8468_v51 = vsel %vm8324_vm0, %v8252_v38, %v8396_v46 }
 0x53f   : > { %v6747_v42 = vpop.f32.mrf.mxu0  ;;  %v7884_v5 = vpop.f32.mrf.mxu1 }
 0x540   : > { %vm8325_vm6 = vcmp.ge.f32.partialorder %v8253_v60, 0.0  ;;  %v8397_v31 = vmul.f32 0.01, %v8253_v60  ;;  %v8031_v45 = vadd.f32 %v7882_v11, %v6894_v28 }
 0x541   : > { %v6748_v21 = vpop.f32.mrf.mxu0  ;;  %v7885_v47 = vpop.f32.mrf.mxu1 }
 0x542   : > { %v8469_v18 = vsel %vm8325_vm6, %v8253_v60, %v8397_v31  ;;  %v8254_v52 = vadd.f32 %v13672_v30, %v8031_v45  ;;  %v6895_v17 = vadd.f32 %v6748_v21, %v13462_v62 }
 0x543   : > { %v10007_v48 = vpack.c.bf16 %v8469_v18, %v8468_v51  ;;  %v6750_v16 = vpop.f32.mrf.mxu0  ;;  %v7887_v53 = vpop.f32.mrf.mxu1 }
 0x544   : > { %v8032_v36 = vadd.f32 %v7885_v47, %v6895_v17  ;;  %v8398_v33 = vmul.f32 0.01, %v8254_v52  ;;  %vm8326_vm7 = vcmp.ge.f32.partialorder %v8254_v52, 0.0 }
 0x545   : > { %10047 = vst [vmem:[%s13493_s18 + $0x110] sm:$0xff] %v10007_v48  }
 0x546   : > { %v8255_v54 = vadd.f32 %v13672_v30, %v8032_v36  ;;  %v8470_v37 = vsel %vm8326_vm7, %v8254_v52, %v8398_v33 }
 0x548   : > { %vm8327_vm8 = vcmp.ge.f32.partialorder %v8255_v54, 0.0  ;;  %v8399_v55 = vmul.f32 0.01, %v8255_v54 }
 0x54a   : > { %v8471_v50 = vsel %vm8327_vm8, %v8255_v54, %v8399_v55 }
 0x54b   : > { %v10012_v24 = vpack.c.bf16 %v8471_v50, %v8470_v37 }
 0x54d   : > { %10048 = vst [vmem:[%s13493_s18 + $0x118] sm:$0xff] %v10012_v24  }
 0x54e PF: > { %s13_s14 = sadd.s32 1, %s11160_s14   ;;  %s14307_s12 = smov %s11156_s13 }
 0x54f   : > { %p10_p5 = scmp.ge.s32.totalorder %s13_s14, 4   ;;  %s14308_s13 = smov %s14310_s15 }
 0x551   :  { %12 = sbr.rel (!%p10_p5) target bundleno = 2 (0x2), region = 62 }

</bundles_post_ra>
